<compile_context>
chip_gen: v7x
topology: tpu7x:2x2x1
jax: 0.10.0
libtpu: 0.0.40
codegen_flags: <defaults>
</compile_context>

<pallas_src>
import functools

import jax
import jax.numpy as jnp
from jax import lax
from jax.experimental import pallas as pl
from jax.experimental.pallas import tpu as pltpu


# ----------------------------------------------------------------------------
# Plain-JAX glue: sampling / grouping (mirrors the PyTorch helper functions)
# ----------------------------------------------------------------------------
def index_points(points, idx):
    """points: [B, N, C], idx: [B, ...] -> [B, ..., C]"""
    B = points.shape[0]
    batch_idx = jnp.arange(B).reshape((B,) + (1,) * (idx.ndim - 1))
    return points[batch_idx, idx]


def square_distance(src, dst):
    """src: [B, N, C], dst: [B, M, C] -> [B, N, M]"""
    dist = -2.0 * jnp.einsum('bnc,bmc->bnm', src, dst)
    dist = dist + jnp.sum(src ** 2, axis=-1)[:, :, None]
    dist = dist + jnp.sum(dst ** 2, axis=-1)[:, None, :]
    return dist


def farthest_point_sample(xyz, npoints):
    """xyz: [B, N, 3] -> centroids [B, npoints] (int32)."""
    # TODO(synk): torch.randint initial seed replaced by deterministic index 0.
    B, N, _ = xyz.shape

    def body(i, state):
        centroids, distance, farthest = state
        centroids = centroids.at[:, i].set(farthest)
        centroid = index_points(xyz, farthest[:, None])          # [B, 1, 3]
        dist = jnp.sum((xyz - centroid) ** 2, axis=-1)           # [B, N]
        distance = jnp.where(dist < distance, dist, distance)
        farthest = jnp.argmax(distance, axis=-1).astype(jnp.int32)
        return centroids, distance, farthest

    centroids = jnp.zeros((B, npoints), dtype=jnp.int32)
    distance = jnp.full((B, N), 1e10, dtype=jnp.float32)
    farthest = jnp.zeros((B,), dtype=jnp.int32)
    centroids, _, _ = lax.fori_loop(0, npoints, body,
                                    (centroids, distance, farthest))
    return centroids


def query_ball_point(nsample, xyz, new_xyz):
    """kNN selection (matches torch sort[:, :, :nsample]); tie-breaking at
    equal distances can differ from torch's sort (valid, not bit-exact)."""
    sqrdists = square_distance(new_xyz, xyz)                     # [B, S, N]
    _, idx = lax.top_k(-sqrdists, nsample)                       # ascending dist
    return idx


# ----------------------------------------------------------------------------
# In-kernel helpers
# ----------------------------------------------------------------------------
def _softmax(x, axis, approx):
    m = jnp.max(x, axis=axis, keepdims=True)
    e = jnp.exp(x - m)
    s = jnp.sum(e, axis=axis, keepdims=True)
    if approx:
        return e * pl.reciprocal(s, approx=True)   # EUP slot
    return e / s                                    # exact (weights must sum to 1)


def _matmul(x, w, cd):
    """2-D matmul with compute-dtype (bf16) operands, f32 accumulation (MXU)."""
    return jnp.dot(x.astype(cd), w.astype(cd),
                   preferred_element_type=jnp.float32)


def _bmm(eq, a, b, cd):
    """Batched einsum with compute-dtype operands, f32 accumulation (MXU)."""
    return jnp.einsum(eq, a.astype(cd), b.astype(cd),
                      preferred_element_type=jnp.float32)


def _proj3(x3, w):
    """[M, 3] x [3, C] as 3 broadcast FMAs on the VPU, all in f32.
    Contraction depth 3 would waste 3/256 of the MXU systolic depth; keeping it
    on the VALU also keeps coordinate math at full precision."""
    acc = x3[:, 0:1] * w[0:1, :]
    acc = acc + x3[:, 1:2] * w[1:2, :]
    acc = acc + x3[:, 2:3] * w[2:3, :]
    return acc


# ----------------------------------------------------------------------------
# Fused kernel: adaptive sampling + skip + local + non-local + fusion + FF
# (one invocation handles one S-tile of one batch element)
# ----------------------------------------------------------------------------
def _fused_asnl_kernel(b_c, b_c1, n_mlp, n_lmlp, use_nl, nl_tile, cd, *refs):
    idx = 0
    gxyz_ref = refs[idx]; idx += 1            # [1, TS, K, 3]  f32
    gfeat_ref = refs[idx]; idx += 1           # [1, TS, K, D]  bf16
    ctr_ref = refs[idx]; idx += 1             # [1, TS, 3]     f32 (FPS centre)
    if use_nl:
        pts_ref = refs[idx]; idx += 1         # [1, N, D]      bf16 (resident)
    wqkv_x_ref = refs[idx]; idx += 1          # [3, 3*b_c]  (q cols pre-scaled)
    wqkv_f_ref = refs[idx]; idx += 1          # [D, 3*b_c]
    mlp_refs = refs[idx:idx + 2 * n_mlp]; idx += 2 * n_mlp
    lw0x_ref, lw0g_ref, lw0f_ref, lb0_ref = refs[idx:idx + 4]; idx += 4
    lrest_refs = refs[idx:idx + 2 * (n_lmlp - 1)]; idx += 2 * (n_lmlp - 1)
    wwn_ref, bwn_ref, wpc_ref, bpc_ref = refs[idx:idx + 4]; idx += 4
    wskx_ref, wskg_ref, wskf_ref, bsk_ref = refs[idx:idx + 4]; idx += 4
    if use_nl:
        wnlq_ref, wnlkv_ref, wnl_ref, bnl_ref = refs[idx:idx + 4]; idx += 4
    wff_ref, bff_ref = refs[idx:idx + 2]; idx += 2
    nxyz_ref, nout_ref = refs[idx:idx + 2]

    gxyz = gxyz_ref[0]                        # [TS, K, 3]
    gfeat = gfeat_ref[0]                      # [TS, K, D]  bf16
    ctr = ctr_ref[0]                          # [TS, 3]
    TS, K, _ = gxyz.shape
    D = gfeat.shape[-1]

    gxyz_f = gxyz.reshape(TS * K, 3)
    gfeat_f = gfeat.reshape(TS * K, D)

    # ---------------- adaptive sampling ----------------
    shift = gxyz - ctr[:, None, :]            # [TS, K, 3]
    shift_f = shift.reshape(TS * K, 3)

    # fused q|k|v projection; the `[shift | feature]` concat of the reference
    # is a split matmul: 3-wide shift part on the VPU, D-wide part on the MXU.
    qkv = (_proj3(shift_f, wqkv_x_ref[...])
           + _matmul(gfeat_f, wqkv_f_ref[...], cd)).reshape(TS, K, 3 * b_c)
    q = qkv[:, :, :b_c]
    k = qkv[:, :, b_c:2 * b_c]
    v = qkv[:, :, 2 * b_c:]

    # TODO(synk): if bundle profiling shows these per-group [K,b_c] matmuls
    # serialize on the vex slot, reformulate as VPU broadcast-mul + reduce.
    att = _softmax(_bmm('sqd,skd->sqk', q, k, cd), axis=-1, approx=True)
    h = _bmm('sqk,skd->sqd', att, v, cd).reshape(TS * K, b_c)

    for j in range(n_mlp):                    # point MLP (+folded BN) + ReLU
        h = jnp.maximum(
            _matmul(h, mlp_refs[2 * j][...], cd) + mlp_refs[2 * j + 1][...],
            0.0)

    # neighbour weights must sum to exactly 1 (they produce new_xyz/new_feat).
    w = _softmax(h.reshape(TS, K, -1), axis=1, approx=False)
    new_xyz = jnp.sum(w[:, :, 0:1] * gxyz, axis=1)               # [TS, 3] f32
    new_feat = jnp.sum(w[:, :, 1:] * gfeat, axis=1)              # [TS, D] f32

    # ---------------- skip branch ----------------
    ngx = gxyz - new_xyz[:, None, :]                             # [TS, K, 3]
    ngx_f = ngx.reshape(TS * K, 3)
    # max over K of concat([ngx, gxyz, gfeat]) == concat of per-chunk maxes;
    # the skip conv is the corresponding split matmul (3-wide parts on VPU).
    skip = jnp.maximum(
        _proj3(jnp.max(ngx, axis=1), wskx_ref[...])
        + _proj3(jnp.max(gxyz, axis=1), wskg_ref[...])
        + _matmul(jnp.max(gfeat, axis=1), wskf_ref[...], cd)
        + bsk_ref[...], 0.0)                                     # [TS, L]

    # ---------------- local branch ----------------
    hl = jnp.maximum(
        _proj3(ngx_f, lw0x_ref[...])
        + _proj3(gxyz_f, lw0g_ref[...])
        + _matmul(gfeat_f, lw0f_ref[...], cd)
        + lb0_ref[...], 0.0)                                     # [TS*K, C0]
    for j in range(n_lmlp - 1):
        hl = jnp.maximum(
            _matmul(hl, lrest_refs[2 * j][...], cd)
            + lrest_refs[2 * j + 1][...], 0.0)
    L = hl.shape[-1]
    hl = hl.reshape(TS, K, L)

    # weight-net on centred xyz (3 -> 32, VPU)
    wn = jnp.maximum(_proj3(ngx_f, wwn_ref[...]) + bwn_ref[...], 0.0)
    wn = wn.reshape(TS, K, 32)

    # aggregate over neighbours WITHOUT transposing the large hl tensor:
    # the small 32-channel weight-net side is the "transposed" operand and
    # pc_conv's weight is pre-permuted in make_params to match [32*L, L].
    wn_t = jnp.swapaxes(wn, 1, 2)                                # [TS, 32, K]
    m = _bmm('sck,skl->scl', wn_t, hl, cd)                       # [TS, 32, L]

    local = jnp.maximum(
        _matmul(m.reshape(TS, 32 * L), wpc_ref[...], cd) + bpc_ref[...], 0.0)

    # ------------- non-local attention (flash over N) + fusion + FF -------------
    if use_nl:
        N = pts_ref.shape[1]
        n_ntiles = N // nl_tile
        pts_view = pts_ref.at[0]                                  # [N, D] ref view
        wnlkv = wnlkv_ref[...]

        nlq = _matmul(new_feat, wnlq_ref[...], cd).astype(cd)     # scale folded in

        # TODO(synk): when the S axis is marked "arbitrary", the per-N-tile
        # k/v projection could be cached in a VMEM scratch at s-tile 0 instead
        # of being recomputed per S-tile.
        def nl_body(t, carry):
            m_i, l_i, acc = carry
            off = pl.multiple_of(t * nl_tile, nl_tile)
            pts_t = pts_view[pl.ds(off, nl_tile), :]              # [TN, D] bf16
            kv_t = _matmul(pts_t, wnlkv, cd)                      # [TN, 2*b_c1]
            k_t = kv_t[:, :b_c1]
            v_t = kv_t[:, b_c1:]
            s_t = jnp.dot(nlq, k_t.astype(cd).T,
                          preferred_element_type=jnp.float32)     # [TS, TN]
            m_new = jnp.maximum(m_i, jnp.max(s_t, axis=-1, keepdims=True))
            a = jnp.exp(m_i - m_new)
            p = jnp.exp(s_t - m_new)
            l_new = a * l_i + jnp.sum(p, axis=-1, keepdims=True)
            acc_new = a * acc + jnp.dot(p.astype(cd), v_t.astype(cd),
                                        preferred_element_type=jnp.float32)
            return m_new, l_new, acc_new

        m0 = jnp.full((TS, 1), -jnp.inf, dtype=jnp.float32)
        l0 = jnp.zeros((TS, 1), dtype=jnp.float32)
        a0 = jnp.zeros((TS, b_c1), dtype=jnp.float32)
        _, l_i, acc = lax.fori_loop(0, n_ntiles, nl_body, (m0, l0, a0))

        nlp = acc * pl.reciprocal(l_i, approx=True)               # [TS, b_c1]
        nlp = jnp.maximum(_matmul(nlp, wnl_ref[...], cd) + bnl_ref[...], 0.0)
        fused = local + nlp + skip
    else:
        fused = local + skip

    out = jnp.maximum(_matmul(fused, wff_ref[...], cd) + bff_ref[...], 0.0)

    # new_xyz is tiny ([TS,3]); the large feature output is written lane-dense
    # ([L, TS], TS a multiple of 128 when S allows -> unmasked vst).
    nxyz_ref[0] = new_xyz                                         # [TS, 3]
    nout_ref[0] = jnp.swapaxes(out, 0, 1).astype(nout_ref.dtype)  # [L, TS]


# ----------------------------------------------------------------------------
# Tiling helpers
# ----------------------------------------------------------------------------
def _pick_s_tile(S, target=128):
    """S tile: full extent if small, else a multiple of 128 dividing S
    (lane-dense [L, TS] output blocks -> unmasked stores)."""
    if S <= target:
        return S
    for t in range(target, 127, -128):
        if S % t == 0:
            return t
    return S


def _pick_n_tile(N, target=512):
    """N tile for the flash non-local loop (any divisor of N <= target)."""
    if N <= target:
        return N
    for t in range(target, 0, -1):
        if N % t == 0:
            return t
    return N


def _default_vmem_limit():
    try:
        cap = int(pltpu.get_tpu_info().vmem_capacity_bytes)
    except Exception:
        cap = 128 * 1024 * 1024
    # ~75% of physical: 48 MiB on v7x (64 MiB), 96 MiB on v5e/v6e (128 MiB).
    return min(cap * 3 // 4, 100 * 1024 * 1024)


# ----------------------------------------------------------------------------
# Forward wrapper
# ----------------------------------------------------------------------------
def point_asnl_forward(params, xyz, points, *, npoint, nsample, b_c, b_c1,
                       mlp_list, l_mlp_list, NL=True, cidx=None,
                       compute_dtype=jnp.bfloat16, out_dtype=jnp.float32,
                       s_tile_target=128, nl_tile_target=512):
    xyz_t = jnp.transpose(xyz, (0, 2, 1)).astype(jnp.float32)     # [B, N, 3]
    pts_t = jnp.transpose(points, (0, 2, 1)).astype(jnp.float32)  # [B, N, D]
    B, N, _ = xyz_t.shape
    D = pts_t.shape[-1]
    S, K = npoint, nsample
    L = l_mlp_list[-1]
    n_mlp, n_lmlp = len(mlp_list), len(l_mlp_list)
    assert mlp_list[-1] == 1 + D, (
        "adaptive MLP must emit 1 xyz weight + D feature weights per neighbour")

    TS = _pick_s_tile(S, s_tile_target)
    n_s_tiles = S // TS
    TN = _pick_n_tile(N, nl_tile_target)

    # ---- sampling / grouping (data-dependent gathers; stays in plain JAX) ----
    c_idx = farthest_point_sample(xyz_t, S) if cidx is None else cidx
    ctr_xyz = index_points(xyz_t, c_idx)                          # [B, S, 3]
    group_idx = query_ball_point(K, xyz_t, ctr_xyz)               # [B, S, K]
    grouped_xyz = index_points(xyz_t, group_idx)                  # [B, S, K, 3]
    grouped_feature = index_points(pts_t, group_idx)              # [B, S, K, D]

    # Dominant HBM reads go in bf16 (halves DMA + VMEM); coordinates stay f32.
    grouped_feature = grouped_feature.astype(jnp.bfloat16)
    pts_bf16 = pts_t.astype(jnp.bfloat16)

    # ---- weight prep: fuse q|kv, fold attention scales, split concat convs ----
    wqkv = jnp.concatenate(
        [params['wq'] * (1.0 / (b_c ** 0.5)), params['wkv']], axis=-1)
    wqkv_x, wqkv_f = wqkv[:3], wqkv[3:]

    mlp_flat = []
    for w, b in zip(params['mlp_w'], params['mlp_b']):
        mlp_flat += [w, b]

    lw0 = params['l_w'][0]
    lw0_x, lw0_g, lw0_f = lw0[:3], lw0[3:6], lw0[6:]
    lrest_flat = []
    for w, b in zip(params['l_w'][1:], params['l_b'][1:]):
        lrest_flat += [w, b]

    wsk = params['wsk']
    wsk_x, wsk_g, wsk_f = wsk[:3], wsk[3:6], wsk[6:]

    inputs = [grouped_xyz, grouped_feature, ctr_xyz]
    in_specs = [
        pl.BlockSpec((1, TS, K, 3), lambda b, s: (b, s, 0, 0)),
        # TODO(synk): raise to pipeline_mode=pl.Buffered(3) if profiling shows
        # this (largest per-step) DMA exposed and VMEM headroom remains.
        pl.BlockSpec((1, TS, K, D), lambda b, s: (b, s, 0, 0)),
        pl.BlockSpec((1, TS, 3), lambda b, s: (b, s, 0)),
    ]
    if NL:
        inputs.append(pts_bf16)
        # block index constant across the inner S axis -> stays VMEM-resident.
        in_specs.append(pl.BlockSpec((1, N, D), lambda b, s: (b, 0, 0)))

    weights = [wqkv_x, wqkv_f, *mlp_flat,
               lw0_x, lw0_g, lw0_f, params['l_b'][0], *lrest_flat,
               params['wwn'], params['bwn'], params['wpc'], params['bpc'],
               wsk_x, wsk_g, wsk_f, params['bsk']]
    if NL:
        weights += [params['wnlq'] * (1.0 / (b_c1 ** 0.5)),
                    params['wnlkv'], params['wnl'], params['bnl']]
    weights += [params['wff'], params['bff']]
    inputs += weights
    # TODO(synk): pack these ~25 tiny weight/bias operands into a few stacked
    # arrays sliced with ref.at[...] to cut per-operand DMA/buffer overhead.
    in_specs += [pl.BlockSpec(tuple(w.shape),
                              lambda b, s, _r=w.ndim: (0,) * _r)
                 for w in weights]

    out_specs = [pl.BlockSpec((1, TS, 3), lambda b, s: (b, s, 0)),
                 pl.BlockSpec((1, L, TS), lambda b, s: (b, 0, s))]
    out_shape = [jax.ShapeDtypeStruct((B, S, 3), jnp.float32),
                 jax.ShapeDtypeStruct((B, L, S), out_dtype)]

    fused_call = pl.pallas_call(
        functools.partial(_fused_asnl_kernel, b_c, b_c1, n_mlp, n_lmlp, NL,
                          TN, compute_dtype),
        grid=(B, n_s_tiles),
        in_specs=in_specs,
        out_specs=out_specs,
        out_shape=out_shape,
        compiler_params=pltpu.CompilerParams(
            dimension_semantics=("parallel", "parallel"),
            vmem_limit_bytes=_default_vmem_limit()),
    )
    new_xyz_cl, new_points_out = fused_call(*inputs)

    new_xyz_out = jnp.transpose(new_xyz_cl, (0, 2, 1))            # [B, 3, S]
    return new_xyz_out, new_points_out                            # [B, L, S]


# ----------------------------------------------------------------------------
# Deterministic parameter initialisation (BatchNorm folded, inference mode)
# ----------------------------------------------------------------------------
def make_params(key, D, in_channel, b_c, b_c1, mlp_list, l_mlp_list):
    eps = 1e-5
    L = l_mlp_list[-1]
    keys = iter(jax.random.split(key, 128))

    def nrm(shape, scale=0.1):
        return scale * jax.random.normal(next(keys), shape, dtype=jnp.float32)

    def bn_stats(c):
        gamma = 1.0 + 0.1 * jax.random.normal(next(keys), (c,), dtype=jnp.float32)
        beta = 0.1 * jax.random.normal(next(keys), (c,), dtype=jnp.float32)
        mean = 0.05 * jax.random.normal(next(keys), (c,), dtype=jnp.float32)
        var = 0.5 + jax.random.uniform(next(keys), (c,), dtype=jnp.float32)
        return gamma, beta, mean, var

    def fold(w_mat, b_vec, bnp):
        gamma, beta, mean, var = bnp
        scale = gamma / jnp.sqrt(var + eps)
        w_eff = w_mat * scale[None, :]
        b0 = b_vec if b_vec is not None else jnp.zeros_like(beta)
        b_eff = b0 * scale + beta - mean * scale
        return w_eff, b_eff.reshape(1, -1)

    p = {}
    p['wq'] = nrm((in_channel, b_c))
    p['wkv'] = nrm((in_channel, 2 * b_c))

    last = b_c
    ws, bs = [], []
    for out in mlp_list:
        w, b = nrm((last, out)), nrm((out,), 0.02)
        wf, bf = fold(w, b, bn_stats(out))
        ws.append(wf); bs.append(bf); last = out
    p['mlp_w'], p['mlp_b'] = ws, bs

    last = in_channel + 3
    lws, lbs = [], []
    for out in l_mlp_list:
        w, b = nrm((last, out)), nrm((out,), 0.02)
        wf, bf = fold(w, b, bn_stats(out))
        lws.append(wf); lbs.append(bf); last = out
    p['l_w'], p['l_b'] = lws, lbs

    # weight_net (3 -> 32) + BN
    p['wwn'], p['bwn'] = fold(nrm((3, 32)), nrm((32,), 0.02), bn_stats(32))

    # pc_conv: Conv2d(32, L, [1, L]) -> weight [o=L, c=32, w=L], fold pc_bn.
    # Pre-permute to [c, w, o] and flatten to [(32*L), L] so the kernel's
    # [TS, 32, L] aggregate (no hl transpose) feeds one matmul.
    wpc = nrm((L, 32, L))
    bpc = nrm((L,), 0.02)
    g, be, mu, var = bn_stats(L)
    scale = g / jnp.sqrt(var + eps)
    wpc_eff = wpc * scale[:, None, None]
    p['wpc'] = jnp.transpose(wpc_eff, (1, 2, 0)).reshape(32 * L, L)
    p['bpc'] = (bpc * scale + be - mu * scale).reshape(1, L)

    # skip / non-local / feed-forward convs (bias=False) folded with their BN
    p['wsk'], p['bsk'] = fold(nrm((in_channel + 3, L)), None, bn_stats(L))
    p['wnlq'] = nrm((in_channel - 3, b_c1))
    p['wnlkv'] = nrm((in_channel - 3, 2 * b_c1))
    p['wnl'], p['bnl'] = fold(nrm((b_c1, L)), None, bn_stats(L))
    p['wff'], p['bff'] = fold(nrm((L, L)), None, bn_stats(L))
    return p


# ----------------------------------------------------------------------------
if __name__ == "__main__":
    B, N = 2, 64
    D = 6                            # feature channels of `points`
    in_channel = 3 + D               # q/kv conv input channels
    npoint, nsample = 16, 8
    b_c, b_c1 = 16, 8
    mlp_list = (16, 1 + D)           # last must equal 1 + D
    l_mlp_list = (16, 32)

    key = jax.random.PRNGKey(0)
    kx, kp, kw = jax.random.split(key, 3)
    xyz = jax.random.normal(kx, (B, 3, N), dtype=jnp.float32)
    points = jax.random.normal(kp, (B, D, N), dtype=jnp.float32)
    params = make_params(kw, D, in_channel, b_c, b_c1, mlp_list, l_mlp_list)

    fwd = jax.jit(functools.partial(
        point_asnl_forward,
        npoint=npoint, nsample=nsample, b_c=b_c, b_c1=b_c1,
        mlp_list=mlp_list, l_mlp_list=l_mlp_list, NL=True))

    new_xyz, new_points = fwd(params, xyz, points)
    jax.block_until_ready((new_xyz, new_points))

    assert new_xyz.shape == (B, 3, npoint)
    assert new_points.shape == (B, l_mlp_list[-1], npoint)
    assert bool(jnp.all(jnp.isfinite(new_xyz))) and bool(jnp.all(jnp.isfinite(new_points)))
    print("KERNEL_OK")
</pallas_src>

<mosaic_0001>
module attributes {stable_mosaic.version = 11 : i64} {
  func.func @_fused_asnl_kernel(%arg0: i32, %arg1: i32, %arg2: memref<1x16x8x3xf32, #tpu.memory_space<vmem>>, %arg3: memref<1x16x8x6xbf16, #tpu.memory_space<vmem>>, %arg4: memref<1x16x3xf32, #tpu.memory_space<vmem>>, %arg5: memref<1x64x6xbf16, #tpu.memory_space<vmem>>, %arg6: memref<3x48xf32, #tpu.memory_space<vmem>>, %arg7: memref<6x48xf32, #tpu.memory_space<vmem>>, %arg8: memref<16x16xf32, #tpu.memory_space<vmem>>, %arg9: memref<1x16xf32, #tpu.memory_space<vmem>>, %arg10: memref<16x7xf32, #tpu.memory_space<vmem>>, %arg11: memref<1x7xf32, #tpu.memory_space<vmem>>, %arg12: memref<3x16xf32, #tpu.memory_space<vmem>>, %arg13: memref<3x16xf32, #tpu.memory_space<vmem>>, %arg14: memref<6x16xf32, #tpu.memory_space<vmem>>, %arg15: memref<1x16xf32, #tpu.memory_space<vmem>>, %arg16: memref<16x32xf32, #tpu.memory_space<vmem>>, %arg17: memref<1x32xf32, #tpu.memory_space<vmem>>, %arg18: memref<3x32xf32, #tpu.memory_space<vmem>>, %arg19: memref<1x32xf32, #tpu.memory_space<vmem>>, %arg20: memref<1024x32xf32, #tpu.memory_space<vmem>>, %arg21: memref<1x32xf32, #tpu.memory_space<vmem>>, %arg22: memref<3x32xf32, #tpu.memory_space<vmem>>, %arg23: memref<3x32xf32, #tpu.memory_space<vmem>>, %arg24: memref<6x32xf32, #tpu.memory_space<vmem>>, %arg25: memref<1x32xf32, #tpu.memory_space<vmem>>, %arg26: memref<6x8xf32, #tpu.memory_space<vmem>>, %arg27: memref<6x16xf32, #tpu.memory_space<vmem>>, %arg28: memref<8x32xf32, #tpu.memory_space<vmem>>, %arg29: memref<1x32xf32, #tpu.memory_space<vmem>>, %arg30: memref<32x32xf32, #tpu.memory_space<vmem>>, %arg31: memref<1x32xf32, #tpu.memory_space<vmem>>, %arg32: memref<1x16x3xf32, #tpu.memory_space<vmem>>, %arg33: memref<1x32x16xf32, #tpu.memory_space<vmem>>) attributes {dimension_semantics = [#tpu.dimension_semantics<parallel>, #tpu.dimension_semantics<parallel>], iteration_bounds = array<i64: 2, 1>, scalar_prefetch = 0 : i64, scratch_operands = 0 : i64, tpu.core_type = #tpu.core_type<tc>, window_params = [{transform_indices = @transform_0, window_bounds = array<i64: 1, 16, 8, 3>}, {transform_indices = @transform_1, window_bounds = array<i64: 1, 16, 8, 6>}, {transform_indices = @transform_2, window_bounds = array<i64: 1, 16, 3>}, {transform_indices = @transform_3, window_bounds = array<i64: 1, 64, 6>}, {pipeline_mode = #tpu.pipeline_mode<synchronous>, transform_indices = @transform_4, window_bounds = array<i64: 3, 48>}, {pipeline_mode = #tpu.pipeline_mode<synchronous>, transform_indices = @transform_5, window_bounds = array<i64: 6, 48>}, {pipeline_mode = #tpu.pipeline_mode<synchronous>, transform_indices = @transform_6, window_bounds = array<i64: 16, 16>}, {pipeline_mode = #tpu.pipeline_mode<synchronous>, transform_indices = @transform_7, window_bounds = array<i64: 1, 16>}, {pipeline_mode = #tpu.pipeline_mode<synchronous>, transform_indices = @transform_8, window_bounds = array<i64: 16, 7>}, {pipeline_mode = #tpu.pipeline_mode<synchronous>, transform_indices = @transform_9, window_bounds = array<i64: 1, 7>}, {pipeline_mode = #tpu.pipeline_mode<synchronous>, transform_indices = @transform_10, window_bounds = array<i64: 3, 16>}, {pipeline_mode = #tpu.pipeline_mode<synchronous>, transform_indices = @transform_11, window_bounds = array<i64: 3, 16>}, {pipeline_mode = #tpu.pipeline_mode<synchronous>, transform_indices = @transform_12, window_bounds = array<i64: 6, 16>}, {pipeline_mode = #tpu.pipeline_mode<synchronous>, transform_indices = @transform_13, window_bounds = array<i64: 1, 16>}, {pipeline_mode = #tpu.pipeline_mode<synchronous>, transform_indices = @transform_14, window_bounds = array<i64: 16, 32>}, {pipeline_mode = #tpu.pipeline_mode<synchronous>, transform_indices = @transform_15, window_bounds = array<i64: 1, 32>}, {pipeline_mode = #tpu.pipeline_mode<synchronous>, transform_indices = @transform_16, window_bounds = array<i64: 3, 32>}, {pipeline_mode = #tpu.pipeline_mode<synchronous>, transform_indices = @transform_17, window_bounds = array<i64: 1, 32>}, {pipeline_mode = #tpu.pipeline_mode<synchronous>, transform_indices = @transform_18, window_bounds = array<i64: 1024, 32>}, {pipeline_mode = #tpu.pipeline_mode<synchronous>, transform_indices = @transform_19, window_bounds = array<i64: 1, 32>}, {pipeline_mode = #tpu.pipeline_mode<synchronous>, transform_indices = @transform_20, window_bounds = array<i64: 3, 32>}, {pipeline_mode = #tpu.pipeline_mode<synchronous>, transform_indices = @transform_21, window_bounds = array<i64: 3, 32>}, {pipeline_mode = #tpu.pipeline_mode<synchronous>, transform_indices = @transform_22, window_bounds = array<i64: 6, 32>}, {pipeline_mode = #tpu.pipeline_mode<synchronous>, transform_indices = @transform_23, window_bounds = array<i64: 1, 32>}, {pipeline_mode = #tpu.pipeline_mode<synchronous>, transform_indices = @transform_24, window_bounds = array<i64: 6, 8>}, {pipeline_mode = #tpu.pipeline_mode<synchronous>, transform_indices = @transform_25, window_bounds = array<i64: 6, 16>}, {pipeline_mode = #tpu.pipeline_mode<synchronous>, transform_indices = @transform_26, window_bounds = array<i64: 8, 32>}, {pipeline_mode = #tpu.pipeline_mode<synchronous>, transform_indices = @transform_27, window_bounds = array<i64: 1, 32>}, {pipeline_mode = #tpu.pipeline_mode<synchronous>, transform_indices = @transform_28, window_bounds = array<i64: 32, 32>}, {pipeline_mode = #tpu.pipeline_mode<synchronous>, transform_indices = @transform_29, window_bounds = array<i64: 1, 32>}, {transform_indices = @transform_30, window_bounds = array<i64: 1, 16, 3>}, {transform_indices = @transform_31, window_bounds = array<i64: 1, 32, 16>}]} {
    %c0 = arith.constant 0 : index
    %c0_0 = arith.constant 0 : index
    %c0_1 = arith.constant 0 : index
    %c0_2 = arith.constant 0 : index
    %0 = vector.load %arg2[%c0, %c0_0, %c0_1, %c0_2] : memref<1x16x8x3xf32, #tpu.memory_space<vmem>>, vector<1x16x8x3xf32>
    %1 = vector.shape_cast %0 : vector<1x16x8x3xf32> to vector<16x8x3xf32>
    %c0_3 = arith.constant 0 : index
    %c0_4 = arith.constant 0 : index
    %c0_5 = arith.constant 0 : index
    %c0_6 = arith.constant 0 : index
    %2 = vector.load %arg3[%c0_3, %c0_4, %c0_5, %c0_6] : memref<1x16x8x6xbf16, #tpu.memory_space<vmem>>, vector<1x16x8x6xbf16>
    %3 = vector.shape_cast %2 : vector<1x16x8x6xbf16> to vector<16x8x6xbf16>
    %c0_7 = arith.constant 0 : index
    %c0_8 = arith.constant 0 : index
    %c0_9 = arith.constant 0 : index
    %4 = vector.load %arg4[%c0_7, %c0_8, %c0_9] : memref<1x16x3xf32, #tpu.memory_space<vmem>>, vector<1x16x3xf32>
    %5 = vector.shape_cast %4 : vector<1x16x3xf32> to vector<16x3xf32>
    %6 = vector.shape_cast %1 : vector<16x8x3xf32> to vector<128x3xf32>
    %7 = vector.shape_cast %3 : vector<16x8x6xbf16> to vector<128x6xbf16>
    %8 = vector.shape_cast %5 : vector<16x3xf32> to vector<16x1x3xf32>
    %9 = vector.broadcast %8 : vector<16x1x3xf32> to vector<16x8x3xf32>
    %10 = arith.subf %1, %9 : vector<16x8x3xf32>
    %11 = vector.shape_cast %10 : vector<16x8x3xf32> to vector<128x3xf32>
    %c0_10 = arith.constant 0 : index
    %c0_11 = arith.constant 0 : index
    %12 = vector.load %arg6[%c0_10, %c0_11] : memref<3x48xf32, #tpu.memory_space<vmem>>, vector<3x48xf32>
    %13 = vector.extract_strided_slice %11 {offsets = [0, 0], sizes = [128, 1], strides = [1, 1]} : vector<128x3xf32> to vector<128x1xf32>
    %14 = vector.extract_strided_slice %12 {offsets = [0, 0], sizes = [1, 48], strides = [1, 1]} : vector<3x48xf32> to vector<1x48xf32>
    %15 = vector.broadcast %13 : vector<128x1xf32> to vector<128x48xf32>
    %16 = vector.broadcast %14 : vector<1x48xf32> to vector<128x48xf32>
    %17 = arith.mulf %15, %16 : vector<128x48xf32>
    %18 = vector.extract_strided_slice %11 {offsets = [0, 1], sizes = [128, 1], strides = [1, 1]} : vector<128x3xf32> to vector<128x1xf32>
    %19 = vector.extract_strided_slice %12 {offsets = [1, 0], sizes = [1, 48], strides = [1, 1]} : vector<3x48xf32> to vector<1x48xf32>
    %20 = vector.broadcast %18 : vector<128x1xf32> to vector<128x48xf32>
    %21 = vector.broadcast %19 : vector<1x48xf32> to vector<128x48xf32>
    %22 = arith.mulf %20, %21 : vector<128x48xf32>
    %23 = arith.addf %17, %22 : vector<128x48xf32>
    %24 = vector.extract_strided_slice %11 {offsets = [0, 2], sizes = [128, 1], strides = [1, 1]} : vector<128x3xf32> to vector<128x1xf32>
    %25 = vector.extract_strided_slice %12 {offsets = [2, 0], sizes = [1, 48], strides = [1, 1]} : vector<3x48xf32> to vector<1x48xf32>
    %26 = vector.broadcast %24 : vector<128x1xf32> to vector<128x48xf32>
    %27 = vector.broadcast %25 : vector<1x48xf32> to vector<128x48xf32>
    %28 = arith.mulf %26, %27 : vector<128x48xf32>
    %29 = arith.addf %23, %28 : vector<128x48xf32>
    %c0_12 = arith.constant 0 : index
    %c0_13 = arith.constant 0 : index
    %30 = vector.load %arg7[%c0_12, %c0_13] : memref<6x48xf32, #tpu.memory_space<vmem>>, vector<6x48xf32>
    %31 = arith.truncf %30 : vector<6x48xf32> to vector<6x48xbf16>
    %cst = arith.constant dense<0.000000e+00> : vector<128x48xf32>
    %32 = tpu.matmul %7, %31, %cst {dimension_numbers = #tpu.dot_dimension_numbers<[1], [0], [0], [1], [0, 0, 1, 1], [], []>} : vector<128x6xbf16>, vector<6x48xbf16>, vector<128x48xf32> -> vector<128x48xf32>
    %33 = arith.addf %29, %32 : vector<128x48xf32>
    %34 = vector.shape_cast %33 : vector<128x48xf32> to vector<16x8x48xf32>
    %35 = vector.extract_strided_slice %34 {offsets = [0, 0, 0], sizes = [16, 8, 16], strides = [1, 1, 1]} : vector<16x8x48xf32> to vector<16x8x16xf32>
    %36 = vector.extract_strided_slice %34 {offsets = [0, 0, 16], sizes = [16, 8, 16], strides = [1, 1, 1]} : vector<16x8x48xf32> to vector<16x8x16xf32>
    %37 = vector.extract_strided_slice %34 {offsets = [0, 0, 32], sizes = [16, 8, 16], strides = [1, 1, 1]} : vector<16x8x48xf32> to vector<16x8x16xf32>
    %38 = arith.truncf %35 : vector<16x8x16xf32> to vector<16x8x16xbf16>
    %39 = arith.truncf %36 : vector<16x8x16xf32> to vector<16x8x16xbf16>
    "tpu.trace_start"() <{level = 10 : i32, message = "sqd,skd->sqk"}> : () -> ()
    %cst_14 = arith.constant dense<0.000000e+00> : vector<16x8x8xf32>
    %40 = tpu.matmul %38, %39, %cst_14 {dimension_numbers = #tpu.dot_dimension_numbers<[2], [2], [1], [1], [0, 0, 0, 1, 1, 1], [0], [0]>} : vector<16x8x16xbf16>, vector<16x8x16xbf16>, vector<16x8x8xf32> -> vector<16x8x8xf32>
    "tpu.trace_stop"() : () -> ()
    %cst_15 = arith.constant dense<0xFF800000> : vector<16x8xf32>
    %41 = vector.multi_reduction <maximumf>, %40, %cst_15 [2] : vector<16x8x8xf32> to vector<16x8xf32>
    %42 = vector.shape_cast %41 : vector<16x8xf32> to vector<16x8x1xf32>
    %43 = vector.broadcast %42 : vector<16x8x1xf32> to vector<16x8x8xf32>
    %44 = arith.subf %40, %43 : vector<16x8x8xf32>
    %45 = math.exp %44 : vector<16x8x8xf32>
    %cst_16 = arith.constant dense<0.000000e+00> : vector<16x8xf32>
    %46 = vector.multi_reduction <add>, %45, %cst_16 [2] : vector<16x8x8xf32> to vector<16x8xf32>
    %47 = vector.shape_cast %46 : vector<16x8xf32> to vector<16x8x1xf32>
    %48 = tpu.reciprocal %47 {approx = true} : vector<16x8x1xf32> -> vector<16x8x1xf32>
    %49 = vector.broadcast %48 : vector<16x8x1xf32> to vector<16x8x8xf32>
    %50 = arith.mulf %45, %49 : vector<16x8x8xf32>
    %51 = arith.truncf %50 : vector<16x8x8xf32> to vector<16x8x8xbf16>
    %52 = arith.truncf %37 : vector<16x8x16xf32> to vector<16x8x16xbf16>
    "tpu.trace_start"() <{level = 10 : i32, message = "sqk,skd->sqd"}> : () -> ()
    %cst_17 = arith.constant dense<0.000000e+00> : vector<16x8x16xf32>
    %53 = tpu.matmul %51, %52, %cst_17 {dimension_numbers = #tpu.dot_dimension_numbers<[2], [1], [1], [2], [0, 0, 0, 1, 1, 2], [0], [0]>} : vector<16x8x8xbf16>, vector<16x8x16xbf16>, vector<16x8x16xf32> -> vector<16x8x16xf32>
    "tpu.trace_stop"() : () -> ()
    %54 = vector.shape_cast %53 : vector<16x8x16xf32> to vector<128x16xf32>
    %c0_18 = arith.constant 0 : index
    %c0_19 = arith.constant 0 : index
    %55 = vector.load %arg8[%c0_18, %c0_19] : memref<16x16xf32, #tpu.memory_space<vmem>>, vector<16x16xf32>
    %56 = arith.truncf %54 : vector<128x16xf32> to vector<128x16xbf16>
    %57 = arith.truncf %55 : vector<16x16xf32> to vector<16x16xbf16>
    %cst_20 = arith.constant dense<0.000000e+00> : vector<128x16xf32>
    %58 = tpu.matmul %56, %57, %cst_20 {dimension_numbers = #tpu.dot_dimension_numbers<[1], [0], [0], [1], [0, 0, 1, 1], [], []>} : vector<128x16xbf16>, vector<16x16xbf16>, vector<128x16xf32> -> vector<128x16xf32>
    %c0_21 = arith.constant 0 : index
    %c0_22 = arith.constant 0 : index
    %59 = vector.load %arg9[%c0_21, %c0_22] : memref<1x16xf32, #tpu.memory_space<vmem>>, vector<1x16xf32>
    %60 = vector.broadcast %59 : vector<1x16xf32> to vector<128x16xf32>
    %61 = arith.addf %58, %60 : vector<128x16xf32>
    %cst_23 = arith.constant 0.000000e+00 : f32
    %62 = vector.broadcast %cst_23 : f32 to vector<128x16xf32>
    %63 = arith.maximumf %61, %62 : vector<128x16xf32>
    %c0_24 = arith.constant 0 : index
    %c0_25 = arith.constant 0 : index
    %64 = vector.load %arg10[%c0_24, %c0_25] : memref<16x7xf32, #tpu.memory_space<vmem>>, vector<16x7xf32>
    %65 = arith.truncf %63 : vector<128x16xf32> to vector<128x16xbf16>
    %66 = arith.truncf %64 : vector<16x7xf32> to vector<16x7xbf16>
    %cst_26 = arith.constant dense<0.000000e+00> : vector<128x7xf32>
    %67 = tpu.matmul %65, %66, %cst_26 {dimension_numbers = #tpu.dot_dimension_numbers<[1], [0], [0], [1], [0, 0, 1, 1], [], []>} : vector<128x16xbf16>, vector<16x7xbf16>, vector<128x7xf32> -> vector<128x7xf32>
    %c0_27 = arith.constant 0 : index
    %c0_28 = arith.constant 0 : index
    %68 = vector.load %arg11[%c0_27, %c0_28] : memref<1x7xf32, #tpu.memory_space<vmem>>, vector<1x7xf32>
    %69 = vector.broadcast %68 : vector<1x7xf32> to vector<128x7xf32>
    %70 = arith.addf %67, %69 : vector<128x7xf32>
    %cst_29 = arith.constant 0.000000e+00 : f32
    %71 = vector.broadcast %cst_29 : f32 to vector<128x7xf32>
    %72 = arith.maximumf %70, %71 : vector<128x7xf32>
    %73 = vector.shape_cast %72 : vector<128x7xf32> to vector<16x8x7xf32>
    %cst_30 = arith.constant dense<0xFF800000> : vector<16x7xf32>
    %74 = vector.multi_reduction <maximumf>, %73, %cst_30 [1] : vector<16x8x7xf32> to vector<16x7xf32>
    %75 = vector.shape_cast %74 : vector<16x7xf32> to vector<16x1x7xf32>
    %76 = vector.broadcast %75 : vector<16x1x7xf32> to vector<16x8x7xf32>
    %77 = arith.subf %73, %76 : vector<16x8x7xf32>
    %78 = math.exp %77 : vector<16x8x7xf32>
    %cst_31 = arith.constant dense<0.000000e+00> : vector<16x7xf32>
    %79 = vector.multi_reduction <add>, %78, %cst_31 [1] : vector<16x8x7xf32> to vector<16x7xf32>
    %80 = vector.shape_cast %79 : vector<16x7xf32> to vector<16x1x7xf32>
    %81 = vector.broadcast %80 : vector<16x1x7xf32> to vector<16x8x7xf32>
    %82 = arith.divf %78, %81 : vector<16x8x7xf32>
    %83 = vector.extract_strided_slice %82 {offsets = [0, 0, 0], sizes = [16, 8, 1], strides = [1, 1, 1]} : vector<16x8x7xf32> to vector<16x8x1xf32>
    %84 = vector.broadcast %83 : vector<16x8x1xf32> to vector<16x8x3xf32>
    %85 = arith.mulf %84, %1 : vector<16x8x3xf32>
    %cst_32 = arith.constant dense<0.000000e+00> : vector<16x3xf32>
    %86 = vector.multi_reduction <add>, %85, %cst_32 [1] : vector<16x8x3xf32> to vector<16x3xf32>
    %87 = vector.extract_strided_slice %82 {offsets = [0, 0, 1], sizes = [16, 8, 6], strides = [1, 1, 1]} : vector<16x8x7xf32> to vector<16x8x6xf32>
    %88 = arith.extf %3 : vector<16x8x6xbf16> to vector<16x8x6xf32>
    %89 = arith.mulf %87, %88 : vector<16x8x6xf32>
    %cst_33 = arith.constant dense<0.000000e+00> : vector<16x6xf32>
    %90 = vector.multi_reduction <add>, %89, %cst_33 [1] : vector<16x8x6xf32> to vector<16x6xf32>
    %91 = vector.shape_cast %86 : vector<16x3xf32> to vector<16x1x3xf32>
    %92 = vector.broadcast %91 : vector<16x1x3xf32> to vector<16x8x3xf32>
    %93 = arith.subf %1, %92 : vector<16x8x3xf32>
    %94 = vector.shape_cast %93 : vector<16x8x3xf32> to vector<128x3xf32>
    %cst_34 = arith.constant dense<0xFF800000> : vector<16x3xf32>
    %95 = vector.multi_reduction <maximumf>, %93, %cst_34 [1] : vector<16x8x3xf32> to vector<16x3xf32>
    %c0_35 = arith.constant 0 : index
    %c0_36 = arith.constant 0 : index
    %96 = vector.load %arg22[%c0_35, %c0_36] : memref<3x32xf32, #tpu.memory_space<vmem>>, vector<3x32xf32>
    %97 = vector.extract_strided_slice %95 {offsets = [0, 0], sizes = [16, 1], strides = [1, 1]} : vector<16x3xf32> to vector<16x1xf32>
    %98 = vector.extract_strided_slice %96 {offsets = [0, 0], sizes = [1, 32], strides = [1, 1]} : vector<3x32xf32> to vector<1x32xf32>
    %99 = vector.broadcast %97 : vector<16x1xf32> to vector<16x32xf32>
    %100 = vector.broadcast %98 : vector<1x32xf32> to vector<16x32xf32>
    %101 = arith.mulf %99, %100 : vector<16x32xf32>
    %102 = vector.extract_strided_slice %95 {offsets = [0, 1], sizes = [16, 1], strides = [1, 1]} : vector<16x3xf32> to vector<16x1xf32>
    %103 = vector.extract_strided_slice %96 {offsets = [1, 0], sizes = [1, 32], strides = [1, 1]} : vector<3x32xf32> to vector<1x32xf32>
    %104 = vector.broadcast %102 : vector<16x1xf32> to vector<16x32xf32>
    %105 = vector.broadcast %103 : vector<1x32xf32> to vector<16x32xf32>
    %106 = arith.mulf %104, %105 : vector<16x32xf32>
    %107 = arith.addf %101, %106 : vector<16x32xf32>
    %108 = vector.extract_strided_slice %95 {offsets = [0, 2], sizes = [16, 1], strides = [1, 1]} : vector<16x3xf32> to vector<16x1xf32>
    %109 = vector.extract_strided_slice %96 {offsets = [2, 0], sizes = [1, 32], strides = [1, 1]} : vector<3x32xf32> to vector<1x32xf32>
    %110 = vector.broadcast %108 : vector<16x1xf32> to vector<16x32xf32>
    %111 = vector.broadcast %109 : vector<1x32xf32> to vector<16x32xf32>
    %112 = arith.mulf %110, %111 : vector<16x32xf32>
    %113 = arith.addf %107, %112 : vector<16x32xf32>
    %cst_37 = arith.constant dense<0xFF800000> : vector<16x3xf32>
    %114 = vector.multi_reduction <maximumf>, %1, %cst_37 [1] : vector<16x8x3xf32> to vector<16x3xf32>
    %c0_38 = arith.constant 0 : index
    %c0_39 = arith.constant 0 : index
    %115 = vector.load %arg23[%c0_38, %c0_39] : memref<3x32xf32, #tpu.memory_space<vmem>>, vector<3x32xf32>
    %116 = vector.extract_strided_slice %114 {offsets = [0, 0], sizes = [16, 1], strides = [1, 1]} : vector<16x3xf32> to vector<16x1xf32>
    %117 = vector.extract_strided_slice %115 {offsets = [0, 0], sizes = [1, 32], strides = [1, 1]} : vector<3x32xf32> to vector<1x32xf32>
    %118 = vector.broadcast %116 : vector<16x1xf32> to vector<16x32xf32>
    %119 = vector.broadcast %117 : vector<1x32xf32> to vector<16x32xf32>
    %120 = arith.mulf %118, %119 : vector<16x32xf32>
    %121 = vector.extract_strided_slice %114 {offsets = [0, 1], sizes = [16, 1], strides = [1, 1]} : vector<16x3xf32> to vector<16x1xf32>
    %122 = vector.extract_strided_slice %115 {offsets = [1, 0], sizes = [1, 32], strides = [1, 1]} : vector<3x32xf32> to vector<1x32xf32>
    %123 = vector.broadcast %121 : vector<16x1xf32> to vector<16x32xf32>
    %124 = vector.broadcast %122 : vector<1x32xf32> to vector<16x32xf32>
    %125 = arith.mulf %123, %124 : vector<16x32xf32>
    %126 = arith.addf %120, %125 : vector<16x32xf32>
    %127 = vector.extract_strided_slice %114 {offsets = [0, 2], sizes = [16, 1], strides = [1, 1]} : vector<16x3xf32> to vector<16x1xf32>
    %128 = vector.extract_strided_slice %115 {offsets = [2, 0], sizes = [1, 32], strides = [1, 1]} : vector<3x32xf32> to vector<1x32xf32>
    %129 = vector.broadcast %127 : vector<16x1xf32> to vector<16x32xf32>
    %130 = vector.broadcast %128 : vector<1x32xf32> to vector<16x32xf32>
    %131 = arith.mulf %129, %130 : vector<16x32xf32>
    %132 = arith.addf %126, %131 : vector<16x32xf32>
    %133 = arith.addf %113, %132 : vector<16x32xf32>
    %cst_40 = arith.constant dense<0xFF80> : vector<16x6xbf16>
    %134 = vector.multi_reduction <maximumf>, %3, %cst_40 [1] : vector<16x8x6xbf16> to vector<16x6xbf16>
    %c0_41 = arith.constant 0 : index
    %c0_42 = arith.constant 0 : index
    %135 = vector.load %arg24[%c0_41, %c0_42] : memref<6x32xf32, #tpu.memory_space<vmem>>, vector<6x32xf32>
    %136 = arith.truncf %135 : vector<6x32xf32> to vector<6x32xbf16>
    %cst_43 = arith.constant dense<0.000000e+00> : vector<16x32xf32>
    %137 = tpu.matmul %134, %136, %cst_43 {dimension_numbers = #tpu.dot_dimension_numbers<[1], [0], [0], [1], [0, 0, 1, 1], [], []>} : vector<16x6xbf16>, vector<6x32xbf16>, vector<16x32xf32> -> vector<16x32xf32>
    %138 = arith.addf %133, %137 : vector<16x32xf32>
    %c0_44 = arith.constant 0 : index
    %c0_45 = arith.constant 0 : index
    %139 = vector.load %arg25[%c0_44, %c0_45] : memref<1x32xf32, #tpu.memory_space<vmem>>, vector<1x32xf32>
    %140 = vector.broadcast %139 : vector<1x32xf32> to vector<16x32xf32>
    %141 = arith.addf %138, %140 : vector<16x32xf32>
    %cst_46 = arith.constant 0.000000e+00 : f32
    %142 = vector.broadcast %cst_46 : f32 to vector<16x32xf32>
    %143 = arith.maximumf %141, %142 : vector<16x32xf32>
    %c0_47 = arith.constant 0 : index
    %c0_48 = arith.constant 0 : index
    %144 = vector.load %arg12[%c0_47, %c0_48] : memref<3x16xf32, #tpu.memory_space<vmem>>, vector<3x16xf32>
    %145 = vector.extract_strided_slice %94 {offsets = [0, 0], sizes = [128, 1], strides = [1, 1]} : vector<128x3xf32> to vector<128x1xf32>
    %146 = vector.extract_strided_slice %144 {offsets = [0, 0], sizes = [1, 16], strides = [1, 1]} : vector<3x16xf32> to vector<1x16xf32>
    %147 = vector.broadcast %145 : vector<128x1xf32> to vector<128x16xf32>
    %148 = vector.broadcast %146 : vector<1x16xf32> to vector<128x16xf32>
    %149 = arith.mulf %147, %148 : vector<128x16xf32>
    %150 = vector.extract_strided_slice %94 {offsets = [0, 1], sizes = [128, 1], strides = [1, 1]} : vector<128x3xf32> to vector<128x1xf32>
    %151 = vector.extract_strided_slice %144 {offsets = [1, 0], sizes = [1, 16], strides = [1, 1]} : vector<3x16xf32> to vector<1x16xf32>
    %152 = vector.broadcast %150 : vector<128x1xf32> to vector<128x16xf32>
    %153 = vector.broadcast %151 : vector<1x16xf32> to vector<128x16xf32>
    %154 = arith.mulf %152, %153 : vector<128x16xf32>
    %155 = arith.addf %149, %154 : vector<128x16xf32>
    %156 = vector.extract_strided_slice %94 {offsets = [0, 2], sizes = [128, 1], strides = [1, 1]} : vector<128x3xf32> to vector<128x1xf32>
    %157 = vector.extract_strided_slice %144 {offsets = [2, 0], sizes = [1, 16], strides = [1, 1]} : vector<3x16xf32> to vector<1x16xf32>
    %158 = vector.broadcast %156 : vector<128x1xf32> to vector<128x16xf32>
    %159 = vector.broadcast %157 : vector<1x16xf32> to vector<128x16xf32>
    %160 = arith.mulf %158, %159 : vector<128x16xf32>
    %161 = arith.addf %155, %160 : vector<128x16xf32>
    %c0_49 = arith.constant 0 : index
    %c0_50 = arith.constant 0 : index
    %162 = vector.load %arg13[%c0_49, %c0_50] : memref<3x16xf32, #tpu.memory_space<vmem>>, vector<3x16xf32>
    %163 = vector.extract_strided_slice %6 {offsets = [0, 0], sizes = [128, 1], strides = [1, 1]} : vector<128x3xf32> to vector<128x1xf32>
    %164 = vector.extract_strided_slice %162 {offsets = [0, 0], sizes = [1, 16], strides = [1, 1]} : vector<3x16xf32> to vector<1x16xf32>
    %165 = vector.broadcast %163 : vector<128x1xf32> to vector<128x16xf32>
    %166 = vector.broadcast %164 : vector<1x16xf32> to vector<128x16xf32>
    %167 = arith.mulf %165, %166 : vector<128x16xf32>
    %168 = vector.extract_strided_slice %6 {offsets = [0, 1], sizes = [128, 1], strides = [1, 1]} : vector<128x3xf32> to vector<128x1xf32>
    %169 = vector.extract_strided_slice %162 {offsets = [1, 0], sizes = [1, 16], strides = [1, 1]} : vector<3x16xf32> to vector<1x16xf32>
    %170 = vector.broadcast %168 : vector<128x1xf32> to vector<128x16xf32>
    %171 = vector.broadcast %169 : vector<1x16xf32> to vector<128x16xf32>
    %172 = arith.mulf %170, %171 : vector<128x16xf32>
    %173 = arith.addf %167, %172 : vector<128x16xf32>
    %174 = vector.extract_strided_slice %6 {offsets = [0, 2], sizes = [128, 1], strides = [1, 1]} : vector<128x3xf32> to vector<128x1xf32>
    %175 = vector.extract_strided_slice %162 {offsets = [2, 0], sizes = [1, 16], strides = [1, 1]} : vector<3x16xf32> to vector<1x16xf32>
    %176 = vector.broadcast %174 : vector<128x1xf32> to vector<128x16xf32>
    %177 = vector.broadcast %175 : vector<1x16xf32> to vector<128x16xf32>
    %178 = arith.mulf %176, %177 : vector<128x16xf32>
    %179 = arith.addf %173, %178 : vector<128x16xf32>
    %180 = arith.addf %161, %179 : vector<128x16xf32>
    %c0_51 = arith.constant 0 : index
    %c0_52 = arith.constant 0 : index
    %181 = vector.load %arg14[%c0_51, %c0_52] : memref<6x16xf32, #tpu.memory_space<vmem>>, vector<6x16xf32>
    %182 = arith.truncf %181 : vector<6x16xf32> to vector<6x16xbf16>
    %cst_53 = arith.constant dense<0.000000e+00> : vector<128x16xf32>
    %183 = tpu.matmul %7, %182, %cst_53 {dimension_numbers = #tpu.dot_dimension_numbers<[1], [0], [0], [1], [0, 0, 1, 1], [], []>} : vector<128x6xbf16>, vector<6x16xbf16>, vector<128x16xf32> -> vector<128x16xf32>
    %184 = arith.addf %180, %183 : vector<128x16xf32>
    %c0_54 = arith.constant 0 : index
    %c0_55 = arith.constant 0 : index
    %185 = vector.load %arg15[%c0_54, %c0_55] : memref<1x16xf32, #tpu.memory_space<vmem>>, vector<1x16xf32>
    %186 = vector.broadcast %185 : vector<1x16xf32> to vector<128x16xf32>
    %187 = arith.addf %184, %186 : vector<128x16xf32>
    %cst_56 = arith.constant 0.000000e+00 : f32
    %188 = vector.broadcast %cst_56 : f32 to vector<128x16xf32>
    %189 = arith.maximumf %187, %188 : vector<128x16xf32>
    %c0_57 = arith.constant 0 : index
    %c0_58 = arith.constant 0 : index
    %190 = vector.load %arg16[%c0_57, %c0_58] : memref<16x32xf32, #tpu.memory_space<vmem>>, vector<16x32xf32>
    %191 = arith.truncf %189 : vector<128x16xf32> to vector<128x16xbf16>
    %192 = arith.truncf %190 : vector<16x32xf32> to vector<16x32xbf16>
    %cst_59 = arith.constant dense<0.000000e+00> : vector<128x32xf32>
    %193 = tpu.matmul %191, %192, %cst_59 {dimension_numbers = #tpu.dot_dimension_numbers<[1], [0], [0], [1], [0, 0, 1, 1], [], []>} : vector<128x16xbf16>, vector<16x32xbf16>, vector<128x32xf32> -> vector<128x32xf32>
    %c0_60 = arith.constant 0 : index
    %c0_61 = arith.constant 0 : index
    %194 = vector.load %arg17[%c0_60, %c0_61] : memref<1x32xf32, #tpu.memory_space<vmem>>, vector<1x32xf32>
    %195 = vector.broadcast %194 : vector<1x32xf32> to vector<128x32xf32>
    %196 = arith.addf %193, %195 : vector<128x32xf32>
    %cst_62 = arith.constant 0.000000e+00 : f32
    %197 = vector.broadcast %cst_62 : f32 to vector<128x32xf32>
    %198 = arith.maximumf %196, %197 : vector<128x32xf32>
    %199 = vector.shape_cast %198 : vector<128x32xf32> to vector<16x8x32xf32>
    %c0_63 = arith.constant 0 : index
    %c0_64 = arith.constant 0 : index
    %200 = vector.load %arg18[%c0_63, %c0_64] : memref<3x32xf32, #tpu.memory_space<vmem>>, vector<3x32xf32>
    %201 = vector.extract_strided_slice %94 {offsets = [0, 0], sizes = [128, 1], strides = [1, 1]} : vector<128x3xf32> to vector<128x1xf32>
    %202 = vector.extract_strided_slice %200 {offsets = [0, 0], sizes = [1, 32], strides = [1, 1]} : vector<3x32xf32> to vector<1x32xf32>
    %203 = vector.broadcast %201 : vector<128x1xf32> to vector<128x32xf32>
    %204 = vector.broadcast %202 : vector<1x32xf32> to vector<128x32xf32>
    %205 = arith.mulf %203, %204 : vector<128x32xf32>
    %206 = vector.extract_strided_slice %94 {offsets = [0, 1], sizes = [128, 1], strides = [1, 1]} : vector<128x3xf32> to vector<128x1xf32>
    %207 = vector.extract_strided_slice %200 {offsets = [1, 0], sizes = [1, 32], strides = [1, 1]} : vector<3x32xf32> to vector<1x32xf32>
    %208 = vector.broadcast %206 : vector<128x1xf32> to vector<128x32xf32>
    %209 = vector.broadcast %207 : vector<1x32xf32> to vector<128x32xf32>
    %210 = arith.mulf %208, %209 : vector<128x32xf32>
    %211 = arith.addf %205, %210 : vector<128x32xf32>
    %212 = vector.extract_strided_slice %94 {offsets = [0, 2], sizes = [128, 1], strides = [1, 1]} : vector<128x3xf32> to vector<128x1xf32>
    %213 = vector.extract_strided_slice %200 {offsets = [2, 0], sizes = [1, 32], strides = [1, 1]} : vector<3x32xf32> to vector<1x32xf32>
    %214 = vector.broadcast %212 : vector<128x1xf32> to vector<128x32xf32>
    %215 = vector.broadcast %213 : vector<1x32xf32> to vector<128x32xf32>
    %216 = arith.mulf %214, %215 : vector<128x32xf32>
    %217 = arith.addf %211, %216 : vector<128x32xf32>
    %c0_65 = arith.constant 0 : index
    %c0_66 = arith.constant 0 : index
    %218 = vector.load %arg19[%c0_65, %c0_66] : memref<1x32xf32, #tpu.memory_space<vmem>>, vector<1x32xf32>
    %219 = vector.broadcast %218 : vector<1x32xf32> to vector<128x32xf32>
    %220 = arith.addf %217, %219 : vector<128x32xf32>
    %cst_67 = arith.constant 0.000000e+00 : f32
    %221 = vector.broadcast %cst_67 : f32 to vector<128x32xf32>
    %222 = arith.maximumf %220, %221 : vector<128x32xf32>
    %223 = vector.shape_cast %222 : vector<128x32xf32> to vector<16x8x32xf32>
    %224 = tpu.transpose %223, [0, 2, 1] : vector<16x8x32xf32> -> vector<16x32x8xf32>
    %225 = arith.truncf %224 : vector<16x32x8xf32> to vector<16x32x8xbf16>
    %226 = arith.truncf %199 : vector<16x8x32xf32> to vector<16x8x32xbf16>
    "tpu.trace_start"() <{level = 10 : i32, message = "sck,skl->scl"}> : () -> ()
    %cst_68 = arith.constant dense<0.000000e+00> : vector<16x32x32xf32>
    %227 = tpu.matmul %225, %226, %cst_68 {dimension_numbers = #tpu.dot_dimension_numbers<[2], [1], [1], [2], [0, 0, 0, 1, 1, 2], [0], [0]>} : vector<16x32x8xbf16>, vector<16x8x32xbf16>, vector<16x32x32xf32> -> vector<16x32x32xf32>
    "tpu.trace_stop"() : () -> ()
    %228 = vector.shape_cast %227 : vector<16x32x32xf32> to vector<16x1024xf32>
    %c0_69 = arith.constant 0 : index
    %c0_70 = arith.constant 0 : index
    %229 = vector.load %arg20[%c0_69, %c0_70] : memref<1024x32xf32, #tpu.memory_space<vmem>>, vector<1024x32xf32>
    %230 = arith.truncf %228 : vector<16x1024xf32> to vector<16x1024xbf16>
    %231 = arith.truncf %229 : vector<1024x32xf32> to vector<1024x32xbf16>
    %cst_71 = arith.constant dense<0.000000e+00> : vector<16x32xf32>
    %232 = tpu.matmul %230, %231, %cst_71 {dimension_numbers = #tpu.dot_dimension_numbers<[1], [0], [0], [1], [0, 0, 1, 1], [], []>} : vector<16x1024xbf16>, vector<1024x32xbf16>, vector<16x32xf32> -> vector<16x32xf32>
    %c0_72 = arith.constant 0 : index
    %c0_73 = arith.constant 0 : index
    %233 = vector.load %arg21[%c0_72, %c0_73] : memref<1x32xf32, #tpu.memory_space<vmem>>, vector<1x32xf32>
    %234 = vector.broadcast %233 : vector<1x32xf32> to vector<16x32xf32>
    %235 = arith.addf %232, %234 : vector<16x32xf32>
    %cst_74 = arith.constant 0.000000e+00 : f32
    %236 = vector.broadcast %cst_74 : f32 to vector<16x32xf32>
    %237 = arith.maximumf %235, %236 : vector<16x32xf32>
    %c0_75 = arith.constant 0 : index
    %c0_76 = arith.constant 0 : index
    %238 = vector.load %arg27[%c0_75, %c0_76] : memref<6x16xf32, #tpu.memory_space<vmem>>, vector<6x16xf32>
    %c0_77 = arith.constant 0 : index
    %c0_78 = arith.constant 0 : index
    %239 = vector.load %arg26[%c0_77, %c0_78] : memref<6x8xf32, #tpu.memory_space<vmem>>, vector<6x8xf32>
    %240 = arith.truncf %90 : vector<16x6xf32> to vector<16x6xbf16>
    %241 = arith.truncf %239 : vector<6x8xf32> to vector<6x8xbf16>
    %cst_79 = arith.constant dense<0.000000e+00> : vector<16x8xf32>
    %242 = tpu.matmul %240, %241, %cst_79 {dimension_numbers = #tpu.dot_dimension_numbers<[1], [0], [0], [1], [0, 0, 1, 1], [], []>} : vector<16x6xbf16>, vector<6x8xbf16>, vector<16x8xf32> -> vector<16x8xf32>
    %243 = arith.truncf %242 : vector<16x8xf32> to vector<16x8xbf16>
    %cst_80 = arith.constant 0xFF800000 : f32
    %244 = vector.broadcast %cst_80 : f32 to vector<16x1xf32>
    %cst_81 = arith.constant 0.000000e+00 : f32
    %245 = vector.broadcast %cst_81 : f32 to vector<16x1xf32>
    %cst_82 = arith.constant 0.000000e+00 : f32
    %246 = vector.broadcast %cst_82 : f32 to vector<16x8xf32>
    %c0_i32 = arith.constant 0 : i32
    %c0_i32_83 = arith.constant 0 : i32
    %c64_i32 = arith.constant 64 : i32
    %247 = arith.muli %c0_i32_83, %c64_i32 : i32
    %248 = tpu.assume_multiple %247, 64 : i32
    %c0_i32_84 = arith.constant 0 : i32
    %c0_i32_85 = arith.constant 0 : i32
    %249 = tpu.memref_slice %arg5[%c0_i32, %c0_i32_84, %c0_i32_85] : memref<1x64x6xbf16, #tpu.memory_space<vmem>> -> memref<1x64x6xbf16, #tpu.memory_space<vmem>>
    %250 = tpu.memref_squeeze %249 : memref<1x64x6xbf16, #tpu.memory_space<vmem>> -> memref<64x6xbf16, #tpu.memory_space<vmem>>
    %251 = arith.index_cast %248 : i32 to index
    %c0_86 = arith.constant 0 : index
    %252 = vector.load %250[%251, %c0_86] : memref<64x6xbf16, #tpu.memory_space<vmem>>, vector<64x6xbf16>
    %253 = arith.truncf %238 : vector<6x16xf32> to vector<6x16xbf16>
    %cst_87 = arith.constant dense<0.000000e+00> : vector<64x16xf32>
    %254 = tpu.matmul %252, %253, %cst_87 {dimension_numbers = #tpu.dot_dimension_numbers<[1], [0], [0], [1], [0, 0, 1, 1], [], []>} : vector<64x6xbf16>, vector<6x16xbf16>, vector<64x16xf32> -> vector<64x16xf32>
    %255 = vector.extract_strided_slice %254 {offsets = [0, 0], sizes = [64, 8], strides = [1, 1]} : vector<64x16xf32> to vector<64x8xf32>
    %256 = vector.extract_strided_slice %254 {offsets = [0, 8], sizes = [64, 8], strides = [1, 1]} : vector<64x16xf32> to vector<64x8xf32>
    %257 = arith.truncf %255 : vector<64x8xf32> to vector<64x8xbf16>
    %258 = tpu.transpose %257, [1, 0] : vector<64x8xbf16> -> vector<8x64xbf16>
    %cst_88 = arith.constant dense<0.000000e+00> : vector<16x64xf32>
    %259 = tpu.matmul %243, %258, %cst_88 {dimension_numbers = #tpu.dot_dimension_numbers<[1], [0], [0], [1], [0, 0, 1, 1], [], []>} : vector<16x8xbf16>, vector<8x64xbf16>, vector<16x64xf32> -> vector<16x64xf32>
    %cst_89 = arith.constant dense<0xFF800000> : vector<16xf32>
    %260 = vector.multi_reduction <maximumf>, %259, %cst_89 [1] : vector<16x64xf32> to vector<16xf32>
    %261 = vector.shape_cast %260 : vector<16xf32> to vector<16x1xf32>
    %262 = arith.maximumf %244, %261 : vector<16x1xf32>
    %263 = arith.subf %244, %262 : vector<16x1xf32>
    %264 = math.exp %263 : vector<16x1xf32>
    %265 = vector.broadcast %262 : vector<16x1xf32> to vector<16x64xf32>
    %266 = arith.subf %259, %265 : vector<16x64xf32>
    %267 = math.exp %266 : vector<16x64xf32>
    %268 = arith.mulf %264, %245 : vector<16x1xf32>
    %cst_90 = arith.constant dense<0.000000e+00> : vector<16xf32>
    %269 = vector.multi_reduction <add>, %267, %cst_90 [1] : vector<16x64xf32> to vector<16xf32>
    %270 = vector.shape_cast %269 : vector<16xf32> to vector<16x1xf32>
    %271 = arith.addf %268, %270 : vector<16x1xf32>
    %272 = vector.broadcast %264 : vector<16x1xf32> to vector<16x8xf32>
    %273 = arith.mulf %272, %246 : vector<16x8xf32>
    %274 = arith.truncf %267 : vector<16x64xf32> to vector<16x64xbf16>
    %275 = arith.truncf %256 : vector<64x8xf32> to vector<64x8xbf16>
    %cst_91 = arith.constant dense<0.000000e+00> : vector<16x8xf32>
    %276 = tpu.matmul %274, %275, %cst_91 {dimension_numbers = #tpu.dot_dimension_numbers<[1], [0], [0], [1], [0, 0, 1, 1], [], []>} : vector<16x64xbf16>, vector<64x8xbf16>, vector<16x8xf32> -> vector<16x8xf32>
    %277 = arith.addf %273, %276 : vector<16x8xf32>
    %c1_i32 = arith.constant 1 : i32
    %278 = tpu.reciprocal %271 {approx = true} : vector<16x1xf32> -> vector<16x1xf32>
    %279 = vector.broadcast %278 : vector<16x1xf32> to vector<16x8xf32>
    %280 = arith.mulf %277, %279 : vector<16x8xf32>
    %c0_92 = arith.constant 0 : index
    %c0_93 = arith.constant 0 : index
    %281 = vector.load %arg28[%c0_92, %c0_93] : memref<8x32xf32, #tpu.memory_space<vmem>>, vector<8x32xf32>
    %282 = arith.truncf %280 : vector<16x8xf32> to vector<16x8xbf16>
    %283 = arith.truncf %281 : vector<8x32xf32> to vector<8x32xbf16>
    %cst_94 = arith.constant dense<0.000000e+00> : vector<16x32xf32>
    %284 = tpu.matmul %282, %283, %cst_94 {dimension_numbers = #tpu.dot_dimension_numbers<[1], [0], [0], [1], [0, 0, 1, 1], [], []>} : vector<16x8xbf16>, vector<8x32xbf16>, vector<16x32xf32> -> vector<16x32xf32>
    %c0_95 = arith.constant 0 : index
    %c0_96 = arith.constant 0 : index
    %285 = vector.load %arg29[%c0_95, %c0_96] : memref<1x32xf32, #tpu.memory_space<vmem>>, vector<1x32xf32>
    %286 = vector.broadcast %285 : vector<1x32xf32> to vector<16x32xf32>
    %287 = arith.addf %284, %286 : vector<16x32xf32>
    %cst_97 = arith.constant 0.000000e+00 : f32
    %288 = vector.broadcast %cst_97 : f32 to vector<16x32xf32>
    %289 = arith.maximumf %287, %288 : vector<16x32xf32>
    %290 = arith.addf %237, %289 : vector<16x32xf32>
    %291 = arith.addf %290, %143 : vector<16x32xf32>
    %c0_98 = arith.constant 0 : index
    %c0_99 = arith.constant 0 : index
    %292 = vector.load %arg30[%c0_98, %c0_99] : memref<32x32xf32, #tpu.memory_space<vmem>>, vector<32x32xf32>
    %293 = arith.truncf %291 : vector<16x32xf32> to vector<16x32xbf16>
    %294 = arith.truncf %292 : vector<32x32xf32> to vector<32x32xbf16>
    %cst_100 = arith.constant dense<0.000000e+00> : vector<16x32xf32>
    %295 = tpu.matmul %293, %294, %cst_100 {dimension_numbers = #tpu.dot_dimension_numbers<[1], [0], [0], [1], [0, 0, 1, 1], [], []>} : vector<16x32xbf16>, vector<32x32xbf16>, vector<16x32xf32> -> vector<16x32xf32>
    %c0_101 = arith.constant 0 : index
    %c0_102 = arith.constant 0 : index
    %296 = vector.load %arg31[%c0_101, %c0_102] : memref<1x32xf32, #tpu.memory_space<vmem>>, vector<1x32xf32>
    %297 = vector.broadcast %296 : vector<1x32xf32> to vector<16x32xf32>
    %298 = arith.addf %295, %297 : vector<16x32xf32>
    %cst_103 = arith.constant 0.000000e+00 : f32
    %299 = vector.broadcast %cst_103 : f32 to vector<16x32xf32>
    %300 = arith.maximumf %298, %299 : vector<16x32xf32>
    %c0_104 = arith.constant 0 : index
    %c0_105 = arith.constant 0 : index
    %c0_106 = arith.constant 0 : index
    %301 = vector.load %arg32[%c0_104, %c0_105, %c0_106] : memref<1x16x3xf32, #tpu.memory_space<vmem>>, vector<1x16x3xf32>
    %302 = vector.shape_cast %301 : vector<1x16x3xf32> to vector<16x3xf32>
    %303 = vector.shape_cast %86 : vector<16x3xf32> to vector<1x16x3xf32>
    tpu.vector_store %arg32[%c0_104, %c0_105, %c0_106], %303 {strides = array<i32>} : memref<1x16x3xf32, #tpu.memory_space<vmem>>, vector<1x16x3xf32>,
    %304 = tpu.transpose %300, [1, 0] : vector<16x32xf32> -> vector<32x16xf32>
    %c0_107 = arith.constant 0 : index
    %c0_108 = arith.constant 0 : index
    %c0_109 = arith.constant 0 : index
    %305 = vector.load %arg33[%c0_107, %c0_108, %c0_109] : memref<1x32x16xf32, #tpu.memory_space<vmem>>, vector<1x32x16xf32>
    %306 = vector.shape_cast %305 : vector<1x32x16xf32> to vector<32x16xf32>
    %307 = vector.shape_cast %304 : vector<32x16xf32> to vector<1x32x16xf32>
    tpu.vector_store %arg33[%c0_107, %c0_108, %c0_109], %307 {strides = array<i32>} : memref<1x32x16xf32, #tpu.memory_space<vmem>>, vector<1x32x16xf32>,
    return
  }
  func.func @transform_0(%arg0: i32, %arg1: i32) -> (i32, i32, i32, i32) {
    %c0_i32 = arith.constant 0 : i32
    %c0_i32_0 = arith.constant 0 : i32
    %c0_i32_1 = arith.constant 0 : i32
    return %arg0, %arg1, %c0_i32, %c0_i32_0 : i32, i32, i32, i32
  }
  func.func @transform_1(%arg0: i32, %arg1: i32) -> (i32, i32, i32, i32) {
    %c0_i32 = arith.constant 0 : i32
    %c0_i32_0 = arith.constant 0 : i32
    %c0_i32_1 = arith.constant 0 : i32
    return %arg0, %arg1, %c0_i32, %c0_i32_0 : i32, i32, i32, i32
  }
  func.func @transform_2(%arg0: i32, %arg1: i32) -> (i32, i32, i32) {
    %c0_i32 = arith.constant 0 : i32
    %c0_i32_0 = arith.constant 0 : i32
    return %arg0, %arg1, %c0_i32 : i32, i32, i32
  }
  func.func @transform_3(%arg0: i32, %arg1: i32) -> (i32, i32, i32) {
    %c0_i32 = arith.constant 0 : i32
    %c0_i32_0 = arith.constant 0 : i32
    %c0_i32_1 = arith.constant 0 : i32
    return %arg0, %c0_i32, %c0_i32_0 : i32, i32, i32
  }
  func.func @transform_4(%arg0: i32, %arg1: i32) -> (i32, i32) {
    %c0_i32 = arith.constant 0 : i32
    %c0_i32_0 = arith.constant 0 : i32
    %c0_i32_1 = arith.constant 0 : i32
    return %c0_i32, %c0_i32_0 : i32, i32
  }
  func.func @transform_5(%arg0: i32, %arg1: i32) -> (i32, i32) {
    %c0_i32 = arith.constant 0 : i32
    %c0_i32_0 = arith.constant 0 : i32
    %c0_i32_1 = arith.constant 0 : i32
    return %c0_i32, %c0_i32_0 : i32, i32
  }
  func.func @transform_6(%arg0: i32, %arg1: i32) -> (i32, i32) {
    %c0_i32 = arith.constant 0 : i32
    %c0_i32_0 = arith.constant 0 : i32
    %c0_i32_1 = arith.constant 0 : i32
    return %c0_i32, %c0_i32_0 : i32, i32
  }
  func.func @transform_7(%arg0: i32, %arg1: i32) -> (i32, i32) {
    %c0_i32 = arith.constant 0 : i32
    %c0_i32_0 = arith.constant 0 : i32
    %c0_i32_1 = arith.constant 0 : i32
    return %c0_i32, %c0_i32_0 : i32, i32
  }
  func.func @transform_8(%arg0: i32, %arg1: i32) -> (i32, i32) {
    %c0_i32 = arith.constant 0 : i32
    %c0_i32_0 = arith.constant 0 : i32
    %c0_i32_1 = arith.constant 0 : i32
    return %c0_i32, %c0_i32_0 : i32, i32
  }
  func.func @transform_9(%arg0: i32, %arg1: i32) -> (i32, i32) {
    %c0_i32 = arith.constant 0 : i32
    %c0_i32_0 = arith.constant 0 : i32
    %c0_i32_1 = arith.constant 0 : i32
    return %c0_i32, %c0_i32_0 : i32, i32
  }
  func.func @transform_10(%arg0: i32, %arg1: i32) -> (i32, i32) {
    %c0_i32 = arith.constant 0 : i32
    %c0_i32_0 = arith.constant 0 : i32
    %c0_i32_1 = arith.constant 0 : i32
    return %c0_i32, %c0_i32_0 : i32, i32
  }
  func.func @transform_11(%arg0: i32, %arg1: i32) -> (i32, i32) {
    %c0_i32 = arith.constant 0 : i32
    %c0_i32_0 = arith.constant 0 : i32
    %c0_i32_1 = arith.constant 0 : i32
    return %c0_i32, %c0_i32_0 : i32, i32
  }
  func.func @transform_12(%arg0: i32, %arg1: i32) -> (i32, i32) {
    %c0_i32 = arith.constant 0 : i32
    %c0_i32_0 = arith.constant 0 : i32
    %c0_i32_1 = arith.constant 0 : i32
    return %c0_i32, %c0_i32_0 : i32, i32
  }
  func.func @transform_13(%arg0: i32, %arg1: i32) -> (i32, i32) {
    %c0_i32 = arith.constant 0 : i32
    %c0_i32_0 = arith.constant 0 : i32
    %c0_i32_1 = arith.constant 0 : i32
    return %c0_i32, %c0_i32_0 : i32, i32
  }
  func.func @transform_14(%arg0: i32, %arg1: i32) -> (i32, i32) {
    %c0_i32 = arith.constant 0 : i32
    %c0_i32_0 = arith.constant 0 : i32
    %c0_i32_1 = arith.constant 0 : i32
    return %c0_i32, %c0_i32_0 : i32, i32
  }
  func.func @transform_15(%arg0: i32, %arg1: i32) -> (i32, i32) {
    %c0_i32 = arith.constant 0 : i32
    %c0_i32_0 = arith.constant 0 : i32
    %c0_i32_1 = arith.constant 0 : i32
    return %c0_i32, %c0_i32_0 : i32, i32
  }
  func.func @transform_16(%arg0: i32, %arg1: i32) -> (i32, i32) {
    %c0_i32 = arith.constant 0 : i32
    %c0_i32_0 = arith.constant 0 : i32
    %c0_i32_1 = arith.constant 0 : i32
    return %c0_i32, %c0_i32_0 : i32, i32
  }
  func.func @transform_17(%arg0: i32, %arg1: i32) -> (i32, i32) {
    %c0_i32 = arith.constant 0 : i32
    %c0_i32_0 = arith.constant 0 : i32
    %c0_i32_1 = arith.constant 0 : i32
    return %c0_i32, %c0_i32_0 : i32, i32
  }
  func.func @transform_18(%arg0: i32, %arg1: i32) -> (i32, i32) {
    %c0_i32 = arith.constant 0 : i32
    %c0_i32_0 = arith.constant 0 : i32
    %c0_i32_1 = arith.constant 0 : i32
    return %c0_i32, %c0_i32_0 : i32, i32
  }
  func.func @transform_19(%arg0: i32, %arg1: i32) -> (i32, i32) {
    %c0_i32 = arith.constant 0 : i32
    %c0_i32_0 = arith.constant 0 : i32
    %c0_i32_1 = arith.constant 0 : i32
    return %c0_i32, %c0_i32_0 : i32, i32
  }
  func.func @transform_20(%arg0: i32, %arg1: i32) -> (i32, i32) {
    %c0_i32 = arith.constant 0 : i32
    %c0_i32_0 = arith.constant 0 : i32
    %c0_i32_1 = arith.constant 0 : i32
    return %c0_i32, %c0_i32_0 : i32, i32
  }
  func.func @transform_21(%arg0: i32, %arg1: i32) -> (i32, i32) {
    %c0_i32 = arith.constant 0 : i32
    %c0_i32_0 = arith.constant 0 : i32
    %c0_i32_1 = arith.constant 0 : i32
    return %c0_i32, %c0_i32_0 : i32, i32
  }
  func.func @transform_22(%arg0: i32, %arg1: i32) -> (i32, i32) {
    %c0_i32 = arith.constant 0 : i32
    %c0_i32_0 = arith.constant 0 : i32
    %c0_i32_1 = arith.constant 0 : i32
    return %c0_i32, %c0_i32_0 : i32, i32
  }
  func.func @transform_23(%arg0: i32, %arg1: i32) -> (i32, i32) {
    %c0_i32 = arith.constant 0 : i32
    %c0_i32_0 = arith.constant 0 : i32
    %c0_i32_1 = arith.constant 0 : i32
    return %c0_i32, %c0_i32_0 : i32, i32
  }
  func.func @transform_24(%arg0: i32, %arg1: i32) -> (i32, i32) {
    %c0_i32 = arith.constant 0 : i32
    %c0_i32_0 = arith.constant 0 : i32
    %c0_i32_1 = arith.constant 0 : i32
    return %c0_i32, %c0_i32_0 : i32, i32
  }
  func.func @transform_25(%arg0: i32, %arg1: i32) -> (i32, i32) {
    %c0_i32 = arith.constant 0 : i32
    %c0_i32_0 = arith.constant 0 : i32
    %c0_i32_1 = arith.constant 0 : i32
    return %c0_i32, %c0_i32_0 : i32, i32
  }
  func.func @transform_26(%arg0: i32, %arg1: i32) -> (i32, i32) {
    %c0_i32 = arith.constant 0 : i32
    %c0_i32_0 = arith.constant 0 : i32
    %c0_i32_1 = arith.constant 0 : i32
    return %c0_i32, %c0_i32_0 : i32, i32
  }
  func.func @transform_27(%arg0: i32, %arg1: i32) -> (i32, i32) {
    %c0_i32 = arith.constant 0 : i32
    %c0_i32_0 = arith.constant 0 : i32
    %c0_i32_1 = arith.constant 0 : i32
    return %c0_i32, %c0_i32_0 : i32, i32
  }
  func.func @transform_28(%arg0: i32, %arg1: i32) -> (i32, i32) {
    %c0_i32 = arith.constant 0 : i32
    %c0_i32_0 = arith.constant 0 : i32
    %c0_i32_1 = arith.constant 0 : i32
    return %c0_i32, %c0_i32_0 : i32, i32
  }
  func.func @transform_29(%arg0: i32, %arg1: i32) -> (i32, i32) {
    %c0_i32 = arith.constant 0 : i32
    %c0_i32_0 = arith.constant 0 : i32
    %c0_i32_1 = arith.constant 0 : i32
    return %c0_i32, %c0_i32_0 : i32, i32
  }
  func.func @transform_30(%arg0: i32, %arg1: i32) -> (i32, i32, i32) {
    %c0_i32 = arith.constant 0 : i32
    %c0_i32_0 = arith.constant 0 : i32
    return %arg0, %arg1, %c0_i32 : i32, i32, i32
  }
  func.func @transform_31(%arg0: i32, %arg1: i32) -> (i32, i32, i32) {
    %c0_i32 = arith.constant 0 : i32
    %c0_i32_0 = arith.constant 0 : i32
    return %arg0, %c0_i32, %arg1 : i32, i32, i32
  }
}

</mosaic_0001>

<bundles_post_ra>
// kernel: custom-call.8
= control target key start
LH: loop header
LB: loop body
LE: loop exit
PB: predicated region body
PF: predicated region fallthrough
CT: control target
= control target key end

     0   :  { %s6_s0 = inlined_call_operand.vmem [shape: f32[2,64], index: 0, kind: output, shape index: {}]  }

// kernel: point_asnl_forward.1
= control target key start
LH: loop header
LB: loop body
LE: loop exit
PB: predicated region body
PF: predicated region fallthrough
CT: control target
= control target key end

     0   :  { %s14703_s6 = smov 1   ;;  %s14704_s10 = smov 2   ;;  %s19258_s0 = inlined_call_operand.smem [shape: u32[32], index: -1, kind: input, shape index: {}] }
   0x1   :  { %s14795_s5 = sld [smem:[%s19258_s0]]   ;;  %s14705_s14 = smov 3  }
   0x2   :  { %s14800_s9 = sld [smem:[%s19258_s0 + %s14703_s6]]   ;;  %s14706_s18 = smov 4  }
   0x3   :  { %s14805_s13 = sld [smem:[%s19258_s0 + %s14704_s10]]   ;;  %s14707_s22 = smov 5  }
   0x4   :  { %s14810_s17 = sld [smem:[%s19258_s0 + %s14705_s14]]   ;;  %s14708_s26 = smov 6  }
   0x5   :  { %s14815_s21 = sld [smem:[%s19258_s0 + %s14706_s18]]   ;;  %s14709_s30 = smov 7  }
   0x6   :  { %s14820_s25 = sld [smem:[%s19258_s0 + %s14707_s22]]   ;;  %s14710_s4 = smov 8  }
   0x7   :  { %19462 = sst [smem:[#allocation71_spill]] %s14795_s5  ;;  %s14711_s10 = smov 9  }
   0x8   :  { %19463 = sst [smem:[#allocation72_spill]] %s14800_s9  ;;  %s14712_s15 = smov 10  }
   0x9   :  { %19464 = sst [smem:[#allocation73_spill]] %s14805_s13  ;;  %s14713_s20 = smov 11  }
   0xa   :  { %19465 = sst [smem:[#allocation74_spill]] %s14810_s17  ;;  %s14715_s1 = smov 13  }
   0xb   :  { %19466 = sst [smem:[#allocation75_spill]] %s14815_s21  ;;  %s14716_s7 = smov 14  }
   0xc   :  { %19467 = sst [smem:[#allocation76_spill]] %s14820_s25  ;;  %s14718_s22 = smov 16  }
   0xd   :  { %s14825_s29 = sld [smem:[%s19258_s0 + %s14708_s26]]   ;;  %s14714_s26 = smov 12  }
   0xe   :  { %s14830_s3 = sld [smem:[%s19258_s0 + %s14709_s30]]   ;;  %s14719_s28 = smov 17  }
   0xf   :  { %s14835_s8 = sld [smem:[%s19258_s0 + %s14710_s4]]  }
  0x10   :  { %s14840_s14 = sld [smem:[%s19258_s0 + %s14711_s10]]  }
  0x11   :  { %s14845_s19 = sld [smem:[%s19258_s0 + %s14712_s15]]   ;;  %s14717_s15 = smov 15  }
  0x12   :  { %s14850_s24 = sld [smem:[%s19258_s0 + %s14713_s20]]  }
  0x13   :  { %19468 = sst [smem:[#allocation77_spill]] %s14825_s29 }
  0x14   :  { %19469 = sst [smem:[#allocation78_spill]] %s14830_s3 }
  0x15   :  { %19470 = sst [smem:[#allocation79_spill]] %s14835_s8 }
  0x16   :  { %19471 = sst [smem:[#allocation80_spill]] %s14840_s14 }
  0x17   :  { %19472 = sst [smem:[#allocation81_spill]] %s14845_s19 }
  0x18   :  { %19473 = sst [smem:[#allocation82_spill]] %s14850_s24 }
  0x19   :  { %s14855_s30 = sld [smem:[%s19258_s0 + %s14714_s26]]  }
  0x1a   :  { %s14860_s6 = sld [smem:[%s19258_s0 + %s14715_s1]]  }
  0x1b   :  { %s14865_s12 = sld [smem:[%s19258_s0 + %s14716_s7]]   ;;  %s14720_s7 = smov 18  }
  0x1c   :  { %s14870_s20 = sld [smem:[%s19258_s0 + %s14717_s15]]   ;;  %s14721_s15 = smov 19  }
  0x1d   :  { %s14875_s27 = sld [smem:[%s19258_s0 + %s14718_s22]]   ;;  %s14722_s22 = smov 20  }
  0x1e   :  { %s14880_s4 = sld [smem:[%s19258_s0 + %s14719_s28]]   ;;  %s14723_s28 = smov 21  }
  0x1f   :  { %19474 = sst [smem:[#allocation83_spill]] %s14855_s30 }
  0x20   :  { %19475 = sst [smem:[#allocation84_spill]] %s14860_s6 }
  0x21   :  { %19476 = sst [smem:[#allocation85_spill]] %s14865_s12 }
  0x22   :  { %19477 = sst [smem:[#allocation86_spill]] %s14870_s20 }
  0x23   :  { %19478 = sst [smem:[#allocation87_spill]] %s14875_s27 }
  0x24   :  { %19479 = sst [smem:[#allocation88_spill]] %s14880_s4 }
  0x25   :  { %s14885_s17 = sld [smem:[%s19258_s0 + %s14720_s7]]   ;;  %s14724_s7 = smov 22  }
  0x26   :  { %s14890_s13 = sld [smem:[%s19258_s0 + %s14721_s15]]   ;;  %s14725_s15 = smov 23  }
  0x27   :  { %s14895_s5 = sld [smem:[%s19258_s0 + %s14722_s22]]   ;;  %s14726_s22 = smov 24  }
  0x28   :  { %s14900_s27 = sld [smem:[%s19258_s0 + %s14723_s28]]   ;;  %s14727_s28 = smov 25  }
  0x29   :  { %s14910_s12 = sld [smem:[%s19258_s0 + %s14725_s15]]   ;;  %s14729_s15 = smov 27  }
  0x2a   :  { %s14920_s30 = sld [smem:[%s19258_s0 + %s14727_s28]]   ;;  %s14731_s28 = smov 29  }
  0x2b   :  { %19480 = sst [smem:[#allocation89_spill]] %s14885_s17 }
  0x2c   :  { %19481 = sst [smem:[#allocation90_spill]] %s14890_s13 }
  0x2d   :  { %19482 = sst [smem:[#allocation91_spill]] %s14895_s5 }
  0x2e   :  { %19483 = sst [smem:[#allocation92_spill]] %s14900_s27 }
  0x2f   :  { %s14905_s17 = sld [smem:[%s19258_s0 + %s14724_s7]]   ;;  %s14728_s7 = smov 26  }
  0x30   :  { %19485 = sst [smem:[#allocation94_spill]] %s14910_s12 }
  0x31   :  { %s14915_s5 = sld [smem:[%s19258_s0 + %s14726_s22]]   ;;  %s14730_s22 = smov 28  }
  0x32   :  { %19487 = sst [smem:[#allocation96_spill]] %s14920_s30 }
  0x33   :  { %s14930_s19 = sld [smem:[%s19258_s0 + %s14729_s15]]   ;;  %s14733_s15 = smov 31  }
  0x34   :  { %s14940_s8 = sld [smem:[%s19258_s0 + %s14731_s28]]  }
  0x35   :  { %19484 = sst [smem:[#allocation93_spill]] %s14905_s17 }
  0x36   :  { %s14925_s17 = sld [smem:[%s19258_s0 + %s14728_s7]]   ;;  %s14732_s7 = smov 30  }
  0x37   :  { %19486 = sst [smem:[#allocation95_spill]] %s14915_s5 }
  0x38   :  { %s14935_s5 = sld [smem:[%s19258_s0 + %s14730_s22]]  }
  0x39   :  { %19489 = sst [smem:[#allocation98_spill]] %s14930_s19 }
  0x3a   :  { %19491 = sst [smem:[#allocation100_spill]] %s14940_s8 }
  0x3b   :  { %s14950_s29 = sld [smem:[%s19258_s0 + %s14733_s15]]  }
  0x3c   :  { %19488 = sst [smem:[#allocation97_spill]] %s14925_s17 }
  0x3d   :  { %s14945_s17 = sld [smem:[%s19258_s0 + %s14732_s7]]  }
  0x3e   :  { %19490 = sst [smem:[#allocation99_spill]] %s14935_s5 }
  0x41   :  { %19493 = sst [smem:[#allocation102_spill]] %s14950_s29 }
  0x43   :  { %19492 = sst [smem:[#allocation101_spill]] %s14945_s17 }
  0x44   :  { %69 = vsyncpa [#allocation3], 0 }
  0x45   :  { %71 = vsyncpa [#allocation3 + $0x1], 0 }
  0x46   :  { %72 = vsyncpa [#allocation6], 0 }
  0x47   :  { %74 = vsyncpa [#allocation6 + $0x1], 0 }
  0x48   :  { %75 = vsyncpa [#allocation9], 0 }
  0x49   :  { %77 = vsyncpa [#allocation9 + $0x1], 0 }
  0x4a   :  { %78 = vsyncpa [#allocation12], 0 }
  0x4b   :  { %79 = vsyncpa [#allocation15], 0 }
  0x4c   :  { %80 = vsyncpa [#allocation18], 0 }
  0x4d   :  { %81 = vsyncpa [#allocation21], 0 }
  0x4e   :  { %82 = vsyncpa [#allocation24], 0 }
  0x4f   :  { %83 = vsyncpa [#allocation27], 0 }
  0x50   :  { %84 = vsyncpa [#allocation30], 0 }
  0x51   :  { %85 = vsyncpa [#allocation33], 0 }
  0x52   :  { %86 = vsyncpa [#allocation36], 0 }
  0x53   :  { %87 = vsyncpa [#allocation39], 0 }
  0x54   :  { %88 = vsyncpa [#allocation42], 0 }
  0x55   :  { %89 = vsyncpa [#allocation45], 0 }
  0x56   :  { %90 = vsyncpa [#allocation48], 0 }
  0x57   :  { %91 = vsyncpa [#allocation4], 0 }
  0x58   :  { %93 = vsyncpa [#allocation4 + $0x1], 0 }
  0x59   :  { %94 = vsyncpa [#allocation51], 0 }
  0x5a   :  { %96 = vsyncpa [#allocation51 + $0x1], 0  ;;  %s14952_s0 = smov 0   ;;  %s14954_s22 = smov 0  }
  0x5b   :  { %s14956_s23 = smov 0   ;;  %s14958_s26 = smov 0  }
  0x5c   :  { %s14960_s28 = smov 0   ;;  %s14962_s1 = smov 0  }
  0x5d LB: > { %s19494_s8 = sld [smem:[#allocation100_spill]]  ;;  %s19495_s5 = sld [smem:[#allocation99_spill]]  ;;  %s14693_s26 = sphi %s14958_s26, %s19934_s26   ;;  %s14689_s23 = sphi %s14956_s23, %s19933_s23   ;;  %s14685_s22 = sphi %s14954_s22, %s19932_s22   ;;  %s14681_s0 = sphi %s14952_s0, %s19931_s0   ;;  %s14701_s1 = sphi %s14962_s1, %s102_s1   ;;  %s14697_s28 = sphi %s14960_s28, %s19935_s28  }
  0x5e   : > { %s19496_s30 = sld [smem:[#allocation96_spill]]  ;;  %s19497_s27 = sld [smem:[#allocation92_spill]] }
  0x5f   : > { %s19498_s9 = sld [smem:[#allocation72_spill]]  ;;  %s19499_s24 = sld [smem:[#allocation82_spill]] }
  0x60   : > { %s19500_s20 = sld [smem:[#allocation86_spill]]  ;;  %s19501_s19 = sld [smem:[#allocation98_spill]] }
  0x61   : > { %s19502_s14 = sld [smem:[#allocation80_spill]]  ;;  %s19503_s13 = sld [smem:[#allocation90_spill]] }
  0x62   : > { %s19504_s12 = sld [smem:[#allocation94_spill]]  ;;  %s19505_s6 = sld [smem:[#allocation84_spill]] }
  0x63   : > { %s19506_s4 = sld [smem:[#allocation88_spill]]  ;;  %s19507_s3 = sld [smem:[#allocation78_spill]] }
  0x64   : > { %s19508_s25 = sld [smem:[#allocation76_spill]]  ;;  %s19509_s21 = sld [smem:[#allocation75_spill]] }
  0x65   : > { %19510 = sst [smem:[#allocation103_spill]] %s14693_s26  ;;  %s14983_s2 = sadd.s32 4294967295, %s14701_s1  }
  0x66   : > { %p11627_p0 = scmp.ge.s32.totalorder %s14701_s1, 1  ;;  %p19276_p1 = scmp.eq.s32.totalorder %s14983_s2, 0 }
  0x67   : > { %p831_p2 = scmp.lt.s32.totalorder %s14701_s1, 3  ;;  %s14734_s10 = smov [#allocation10]  }
  0x68   : > { %s844_s11 = sshll.u32 %s14734_s10, 4  ;;  %s14735_s15 = smov [#allocation11]   ;;  %s845_s11 = int_to_ptr.vmem [resolvable:$true] %s844_s11 }
  0x69   : > { %p14988_p3 = pnand %p11627_p0, %p831_p2  ;;  %s855_s16 = sshll.u32 %s14735_s15, 4  ;;  %s15001_s16 = int_to_ptr.vmem [resolvable:$true] %s855_s16 }
  0x6a   : > { %s14736_s29 = smov [#allocation14]   ;;  %s13675_s10 = scalar_lea.hbm %s19509_s21, 64 }
  0x6b   : > { %s19511_s7 = scalar_select %p14988_p3, 1, 0 }
  0x6c   : > { %p12691_p5 = pneg %p14988_p3  ;;  %s879_s17 = sshll.u32 %s14736_s29, 4  ;;  %s15003_s17 = int_to_ptr.vmem [resolvable:$true] %s879_s17 }
  0x6d   : > { %p13676_p7 = scmp.ne.s32.totalorder %s19509_s21, %s13675_s10  ;;  %p13682_p11 = scmp.lt.u32.totalorder %s13675_s10, %s19509_s21 }
  0x6e   : > { %p14997_p6 = pnand %p12691_p5, %p19276_p1 }
  0x70   : > { %s19512_s18 = scalar_select %p14997_p6, 1, 0 }
  0x71   : > { %p15009_p8 = pneg %p14997_p6 }
  0x73   : > { %s19513_s26 = scalar_select %p15009_p8, 1, 0 }
  0x74   : > { %p13678_p9 = pnand %p15009_p8, %p13676_p7 }
  0x76   : > { %p13679_p10 = pneg %p13678_p9 }
  0x78   : > { %p13684_p12 = pnand %p13682_p11, %p13679_p10 }
  0x7a   : > { %13687 = shalt.err (!%p13684_p12)
}
  0x7b   : > { %s13688_s15 = scalar_lea.vmem %s845_s11, 64  ;;  %p13696_p5 = scmp.lt.s32.totalorder %s845_s11, %s845_s11 }
  0x7c   : > { %p13689_p13 = scmp.ne.s32.totalorder %s845_s11, %s13688_s15  ;;  %p13697_p4 = scmp.lt.s32.totalorder %s13688_s15, %s13688_s15 }
  0x7e   : > { %p13691_p0 = pnand %p13689_p13, %p15009_p8  ;;  %p13698_p1 = por %p13697_p4, %p13696_p5 }
  0x80   : > { %p13692_p2 = pneg %p13691_p0 }
  0x82   : > { %p13699_p3 = pnand %p13698_p1, %p13692_p2 }
  0x84   : > { %13702 = shalt.err (!%p13699_p3)
}
  0x85   : > { %12694 = dma.hbm_to_vmem [thread:$0]  (!%p14997_p6), %s19509_s21, 64, %s845_s11, [#allocation9]  }
  0x86   : > { %s13703_s29 = scalar_lea.hbm %s19508_s25, 128 }
  0x87   : > { %p13704_p7 = scmp.ne.s32.totalorder %s19508_s25, %s13703_s29  ;;  %p13710_p11 = scmp.lt.u32.totalorder %s13703_s29, %s19508_s25 }
  0x89   : > { %p13706_p9 = pnand %p13704_p7, %p15009_p8 }
  0x8b   : > { %p13707_p10 = pneg %p13706_p9 }
  0x8d   : > { %p13712_p12 = pnand %p13710_p11, %p13707_p10 }
  0x8f   : > { %13715 = shalt.err (!%p13712_p12)
}
  0x90   : > { %s13716_s10 = scalar_lea.vmem %s15001_s16, 128  ;;  %p13724_p13 = scmp.lt.s32.totalorder %s15001_s16, %s15001_s16 }
  0x91   : > { %p13717_p1 = scmp.ne.s32.totalorder %s15001_s16, %s13716_s10  ;;  %p13725_p0 = scmp.lt.s32.totalorder %s13716_s10, %s13716_s10 }
  0x93   : > { %p13719_p3 = pnand %p13717_p1, %p15009_p8  ;;  %p13726_p2 = por %p13725_p0, %p13724_p13 }
  0x95   : > { %p13720_p4 = pneg %p13719_p3 }
  0x97   : > { %p13727_p5 = pnand %p13726_p2, %p13720_p4 }
  0x99   : > { %13730 = shalt.err (!%p13727_p5)
}
  0x9a   : > { %12697 = dma.hbm_to_vmem [thread:$0]  (!%p14997_p6), %s19508_s25, 128, %s15001_s16, [#allocation12]  }
  0x9b   : > { %s13731_s11 = scalar_lea.hbm %s19507_s3, 16 }
  0x9c   : > { %p13732_p7 = scmp.ne.s32.totalorder %s19507_s3, %s13731_s11  ;;  %p13738_p11 = scmp.lt.u32.totalorder %s13731_s11, %s19507_s3 }
  0x9e   : > { %p13734_p9 = pnand %p13732_p7, %p15009_p8 }
  0xa0   : > { %p13735_p10 = pneg %p13734_p9 }
  0xa2   : > { %p13740_p12 = pnand %p13738_p11, %p13735_p10 }
  0xa4   : > { %13743 = shalt.err (!%p13740_p12)
}
  0xa5   : > { %s13744_s15 = scalar_lea.vmem %s15003_s17, 16  ;;  %s13751_s29 = scalar_lea.vmem %s15003_s17, 32 }
  0xa6   : > { %p13745_p1 = scmp.ne.s32.totalorder %s15003_s17, %s13744_s15  ;;  %p13752_p13 = scmp.lt.s32.totalorder %s15003_s17, %s15003_s17 }
  0xa7   : > { %p13753_p0 = scmp.lt.s32.totalorder %s13751_s29, %s13744_s15 }
  0xa8   : > { %p13747_p3 = pnand %p13745_p1, %p15009_p8 }
  0xa9   : > { %p13754_p2 = por %p13753_p0, %p13752_p13 }
  0xaa   : > { %p13748_p4 = pneg %p13747_p3 }
  0xac   : > { %p13755_p5 = pnand %p13754_p2, %p13748_p4 }
  0xae   : > { %13758 = shalt.err (!%p13755_p5)
}
  0xaf   : > { %12703 = dma.hbm_to_vmem [thread:$0]  (!%p14997_p6), %s19507_s3, 16, %s15003_s17, [#allocation15]  }
  0xb0   : > { %s14737_s16 = smov [#allocation17]   ;;  %s14738_s11 = smov [#allocation20]  }
  0xb1   : > { %s903_s10 = sshll.u32 %s14737_s16, 4  ;;  %s925_s21 = sshll.u32 %s14738_s11, 4  ;;  %s904_s10 = int_to_ptr.vmem [resolvable:$true] %s903_s10  ;;  %s926_s21 = int_to_ptr.vmem [resolvable:$true] %s925_s21 }
  0xb2   : > { %s13759_s25 = scalar_lea.hbm %s19502_s14, 16 }
  0xb3   : > { %p13760_p7 = scmp.ne.s32.totalorder %s19502_s14, %s13759_s25  ;;  %p13766_p11 = scmp.lt.u32.totalorder %s13759_s25, %s19502_s14 }
  0xb5   : > { %p13762_p9 = pnand %p13760_p7, %p15009_p8 }
  0xb7   : > { %p13763_p10 = pneg %p13762_p9 }
  0xb9   : > { %p13768_p12 = pnand %p13766_p11, %p13763_p10 }
  0xbb   : > { %13771 = shalt.err (!%p13768_p12)
}
  0xbc   : > { %s13772_s15 = scalar_lea.vmem %s904_s10, 16  ;;  %s13779_s17 = scalar_lea.vmem %s904_s10, 32 }
  0xbd   : > { %p13773_p1 = scmp.ne.s32.totalorder %s904_s10, %s13772_s15  ;;  %p13780_p13 = scmp.lt.s32.totalorder %s904_s10, %s904_s10 }
  0xbe   : > { %p13781_p0 = scmp.lt.s32.totalorder %s13779_s17, %s13772_s15 }
  0xbf   : > { %p13775_p3 = pnand %p13773_p1, %p15009_p8 }
  0xc0   : > { %p13782_p2 = por %p13781_p0, %p13780_p13 }
  0xc1   : > { %p13776_p4 = pneg %p13775_p3 }
  0xc3   : > { %p13783_p5 = pnand %p13782_p2, %p13776_p4 }
  0xc5   : > { %13786 = shalt.err (!%p13783_p5)
}
  0xc6   : > { %12709 = dma.hbm_to_vmem [thread:$0]  (!%p14997_p6), %s19502_s14, 16, %s904_s10, [#allocation18]  }
  0xc7   : > { %s13787_s25 = scalar_lea.hbm %s19499_s24, 64 }
  0xc8   : > { %p13788_p7 = scmp.ne.s32.totalorder %s19499_s24, %s13787_s25  ;;  %p13794_p11 = scmp.lt.u32.totalorder %s13787_s25, %s19499_s24 }
  0xca   : > { %p13790_p9 = pnand %p13788_p7, %p15009_p8 }
  0xcc   : > { %p13791_p10 = pneg %p13790_p9 }
  0xce   : > { %p13796_p12 = pnand %p13794_p11, %p13791_p10 }
  0xd0   : > { %13799 = shalt.err (!%p13796_p12)
}
  0xd1   : > { %s13800_s29 = scalar_lea.vmem %s926_s21, 64  ;;  %p13808_p13 = scmp.lt.s32.totalorder %s926_s21, %s926_s21 }
  0xd2   : > { %p13801_p1 = scmp.ne.s32.totalorder %s926_s21, %s13800_s29  ;;  %p13809_p0 = scmp.lt.s32.totalorder %s13800_s29, %s13800_s29 }
  0xd4   : > { %p13803_p3 = pnand %p13801_p1, %p15009_p8  ;;  %p13810_p2 = por %p13809_p0, %p13808_p13 }
  0xd6   : > { %p13804_p4 = pneg %p13803_p3 }
  0xd8   : > { %p13811_p5 = pnand %p13810_p2, %p13804_p4 }
  0xda   : > { %13814 = shalt.err (!%p13811_p5)
}
  0xdb   : > { %12715 = dma.hbm_to_vmem [thread:$0]  (!%p14997_p6), %s19499_s24, 64, %s926_s21, [#allocation21]  }
  0xdc   : > { %s14739_s16 = smov [#allocation23]   ;;  %s14740_s11 = smov [#allocation26]  }
  0xdd   : > { %s947_s10 = sshll.u32 %s14739_s16, 4  ;;  %s971_s15 = sshll.u32 %s14740_s11, 4  ;;  %s948_s10 = int_to_ptr.vmem [resolvable:$true] %s947_s10  ;;  %s972_s15 = int_to_ptr.vmem [resolvable:$true] %s971_s15 }
  0xde   : > { %s13815_s17 = scalar_lea.hbm %s19505_s6, 16 }
  0xdf   : > { %p13816_p7 = scmp.ne.s32.totalorder %s19505_s6, %s13815_s17  ;;  %p13822_p11 = scmp.lt.u32.totalorder %s13815_s17, %s19505_s6 }
  0xe1   : > { %p13818_p9 = pnand %p13816_p7, %p15009_p8 }
  0xe3   : > { %p13819_p10 = pneg %p13818_p9 }
  0xe5   : > { %p13824_p12 = pnand %p13822_p11, %p13819_p10 }
  0xe7   : > { %13827 = shalt.err (!%p13824_p12)
}
  0xe8   : > { %s13828_s25 = scalar_lea.vmem %s948_s10, 16  ;;  %s13835_s21 = scalar_lea.vmem %s948_s10, 32 }
  0xe9   : > { %p13829_p1 = scmp.ne.s32.totalorder %s948_s10, %s13828_s25  ;;  %p13836_p13 = scmp.lt.s32.totalorder %s948_s10, %s948_s10 }
  0xea   : > { %p13837_p0 = scmp.lt.s32.totalorder %s13835_s21, %s13828_s25 }
  0xeb   : > { %p13831_p3 = pnand %p13829_p1, %p15009_p8 }
  0xec   : > { %p13838_p2 = por %p13837_p0, %p13836_p13 }
  0xed   : > { %p13832_p4 = pneg %p13831_p3 }
  0xef   : > { %p13839_p5 = pnand %p13838_p2, %p13832_p4 }
  0xf1   : > { %13842 = shalt.err (!%p13839_p5)
}
  0xf2   : > { %12721 = dma.hbm_to_vmem [thread:$0]  (!%p14997_p6), %s19505_s6, 16, %s948_s10, [#allocation24]  }
  0xf3   : > { %s13843_s29 = scalar_lea.hbm %s19500_s20, 16 }
  0xf4   : > { %p13844_p7 = scmp.ne.s32.totalorder %s19500_s20, %s13843_s29  ;;  %p13850_p11 = scmp.lt.u32.totalorder %s13843_s29, %s19500_s20 }
  0xf6   : > { %p13846_p9 = pnand %p13844_p7, %p15009_p8 }
  0xf8   : > { %p13847_p10 = pneg %p13846_p9 }
  0xfa   : > { %p13852_p12 = pnand %p13850_p11, %p13847_p10 }
  0xfc   : > { %13855 = shalt.err (!%p13852_p12)
}
  0xfd   : > { %s13856_s16 = scalar_lea.vmem %s972_s15, 16  ;;  %s13863_s11 = scalar_lea.vmem %s972_s15, 32 }
  0xfe   : > { %p13857_p1 = scmp.ne.s32.totalorder %s972_s15, %s13856_s16  ;;  %p13864_p13 = scmp.lt.s32.totalorder %s972_s15, %s972_s15 }
  0xff   : > { %p13865_p0 = scmp.lt.s32.totalorder %s13863_s11, %s13856_s16 }
 0x100   : > { %p13859_p3 = pnand %p13857_p1, %p15009_p8 }
 0x101   : > { %p13866_p2 = por %p13865_p0, %p13864_p13 }
 0x102   : > { %p13860_p4 = pneg %p13859_p3 }
 0x104   : > { %p13867_p5 = pnand %p13866_p2, %p13860_p4 }
 0x106   : > { %13870 = shalt.err (!%p13867_p5)
}
 0x107   : > { %12727 = dma.hbm_to_vmem [thread:$0]  (!%p14997_p6), %s19500_s20, 16, %s972_s15, [#allocation27]  }
 0x108   : > { %s14741_s10 = smov [#allocation29]   ;;  %s14742_s25 = smov [#allocation32]  }
 0x109   : > { %s993_s17 = sshll.u32 %s14741_s10, 4  ;;  %s1017_s21 = sshll.u32 %s14742_s25, 4  ;;  %s994_s17 = int_to_ptr.vmem [resolvable:$true] %s993_s17  ;;  %s1018_s21 = int_to_ptr.vmem [resolvable:$true] %s1017_s21 }
 0x10a   : > { %s13871_s29 = scalar_lea.hbm %s19506_s4, 16 }
 0x10b   : > { %p13872_p7 = scmp.ne.s32.totalorder %s19506_s4, %s13871_s29  ;;  %p13878_p11 = scmp.lt.u32.totalorder %s13871_s29, %s19506_s4 }
 0x10d   : > { %p13874_p9 = pnand %p13872_p7, %p15009_p8 }
 0x10f   : > { %p13875_p10 = pneg %p13874_p9 }
 0x111   : > { %p13880_p12 = pnand %p13878_p11, %p13875_p10 }
 0x113   : > { %13883 = shalt.err (!%p13880_p12)
}
 0x114   : > { %s13884_s16 = scalar_lea.vmem %s994_s17, 16  ;;  %s13891_s15 = scalar_lea.vmem %s994_s17, 32 }
 0x115   : > { %p13885_p1 = scmp.ne.s32.totalorder %s994_s17, %s13884_s16  ;;  %p13892_p13 = scmp.lt.s32.totalorder %s994_s17, %s994_s17 }
 0x116   : > { %p13893_p0 = scmp.lt.s32.totalorder %s13891_s15, %s13884_s16 }
 0x117   : > { %p13887_p3 = pnand %p13885_p1, %p15009_p8 }
 0x118   : > { %p13894_p2 = por %p13893_p0, %p13892_p13 }
 0x119   : > { %p13888_p4 = pneg %p13887_p3 }
 0x11b   : > { %p13895_p5 = pnand %p13894_p2, %p13888_p4 }
 0x11d   : > { %13898 = shalt.err (!%p13895_p5)
}
 0x11e   : > { %12733 = dma.hbm_to_vmem [thread:$0]  (!%p14997_p6), %s19506_s4, 16, %s994_s17, [#allocation30]  }
 0x11f   : > { %s13899_s11 = scalar_lea.hbm %s19503_s13, 16 }
 0x120   : > { %p13900_p7 = scmp.ne.s32.totalorder %s19503_s13, %s13899_s11  ;;  %p13906_p11 = scmp.lt.u32.totalorder %s13899_s11, %s19503_s13 }
 0x122   : > { %p13902_p9 = pnand %p13900_p7, %p15009_p8 }
 0x124   : > { %p13903_p10 = pneg %p13902_p9 }
 0x126   : > { %p13908_p12 = pnand %p13906_p11, %p13903_p10 }
 0x128   : > { %13911 = shalt.err (!%p13908_p12)
}
 0x129   : > { %s13912_s10 = scalar_lea.vmem %s1018_s21, 16  ;;  %s13919_s25 = scalar_lea.vmem %s1018_s21, 32 }
 0x12a   : > { %p13913_p1 = scmp.ne.s32.totalorder %s1018_s21, %s13912_s10  ;;  %p13920_p13 = scmp.lt.s32.totalorder %s1018_s21, %s1018_s21 }
 0x12b   : > { %p13921_p0 = scmp.lt.s32.totalorder %s13919_s25, %s13912_s10 }
 0x12c   : > { %p13915_p3 = pnand %p13913_p1, %p15009_p8 }
 0x12d   : > { %p13922_p2 = por %p13921_p0, %p13920_p13 }
 0x12e   : > { %p13916_p4 = pneg %p13915_p3 }
 0x130   : > { %p13923_p5 = pnand %p13922_p2, %p13916_p4 }
 0x132   : > { %13926 = shalt.err (!%p13923_p5)
}
 0x133   : > { %12739 = dma.hbm_to_vmem [thread:$0]  (!%p14997_p6), %s19503_s13, 16, %s1018_s21, [#allocation33]  }
 0x134   : > { %s14743_s17 = smov [#allocation35]   ;;  %s14744_s16 = smov [#allocation38]  }
 0x135   : > { %s1039_s29 = sshll.u32 %s14743_s17, 4  ;;  %s1061_s15 = sshll.u32 %s14744_s16, 4  ;;  %s1040_s29 = int_to_ptr.vmem [resolvable:$true] %s1039_s29  ;;  %s1062_s15 = int_to_ptr.vmem [resolvable:$true] %s1061_s15 }
 0x136   : > { %s13927_s11 = scalar_lea.hbm %s19497_s27, 64 }
 0x137   : > { %p13928_p7 = scmp.ne.s32.totalorder %s19497_s27, %s13927_s11  ;;  %p13934_p11 = scmp.lt.u32.totalorder %s13927_s11, %s19497_s27 }
 0x139   : > { %p13930_p9 = pnand %p13928_p7, %p15009_p8 }
 0x13b   : > { %p13931_p10 = pneg %p13930_p9 }
 0x13d   : > { %p13936_p12 = pnand %p13934_p11, %p13931_p10 }
 0x13f   : > { %13939 = shalt.err (!%p13936_p12)
}
 0x140   : > { %s13940_s10 = scalar_lea.vmem %s1040_s29, 64  ;;  %p13948_p13 = scmp.lt.s32.totalorder %s1040_s29, %s1040_s29 }
 0x141   : > { %p13941_p1 = scmp.ne.s32.totalorder %s1040_s29, %s13940_s10  ;;  %p13949_p0 = scmp.lt.s32.totalorder %s13940_s10, %s13940_s10 }
 0x143   : > { %p13943_p3 = pnand %p13941_p1, %p15009_p8  ;;  %p13950_p2 = por %p13949_p0, %p13948_p13 }
 0x145   : > { %p13944_p4 = pneg %p13943_p3 }
 0x147   : > { %p13951_p5 = pnand %p13950_p2, %p13944_p4 }
 0x149   : > { %13954 = shalt.err (!%p13951_p5)
}
 0x14a   : > { %12745 = dma.hbm_to_vmem [thread:$0]  (!%p14997_p6), %s19497_s27, 64, %s1040_s29, [#allocation36]  }
 0x14b   : > { %s13955_s21 = scalar_lea.hbm %s19504_s12, 16 }
 0x14c   : > { %p13956_p7 = scmp.ne.s32.totalorder %s19504_s12, %s13955_s21  ;;  %p13962_p11 = scmp.lt.u32.totalorder %s13955_s21, %s19504_s12 }
 0x14e   : > { %p13958_p9 = pnand %p13956_p7, %p15009_p8 }
 0x150   : > { %p13959_p10 = pneg %p13958_p9 }
 0x152   : > { %p13964_p12 = pnand %p13962_p11, %p13959_p10 }
 0x154   : > { %13967 = shalt.err (!%p13964_p12)
}
 0x155   : > { %s13968_s25 = scalar_lea.vmem %s1062_s15, 16  ;;  %s13975_s17 = scalar_lea.vmem %s1062_s15, 32 }
 0x156   : > { %p13969_p1 = scmp.ne.s32.totalorder %s1062_s15, %s13968_s25  ;;  %p13976_p13 = scmp.lt.s32.totalorder %s1062_s15, %s1062_s15 }
 0x157   : > { %p13977_p0 = scmp.lt.s32.totalorder %s13975_s17, %s13968_s25 }
 0x158   : > { %p13971_p3 = pnand %p13969_p1, %p15009_p8 }
 0x159   : > { %p13978_p2 = por %p13977_p0, %p13976_p13 }
 0x15a   : > { %p13972_p4 = pneg %p13971_p3 }
 0x15c   : > { %p13979_p5 = pnand %p13978_p2, %p13972_p4 }
 0x15e   : > { %13982 = shalt.err (!%p13979_p5)
}
 0x15f   : > { %12751 = dma.hbm_to_vmem [thread:$0]  (!%p14997_p6), %s19504_s12, 16, %s1062_s15, [#allocation39]  }
 0x160   : > { %s14745_s29 = smov [#allocation41]   ;;  %s14746_s11 = smov [#allocation44]  }
 0x161   : > { %s1083_s16 = sshll.u32 %s14745_s29, 4  ;;  %s1105_s10 = sshll.u32 %s14746_s11, 4  ;;  %s1084_s16 = int_to_ptr.vmem [resolvable:$true] %s1083_s16  ;;  %s1106_s10 = int_to_ptr.vmem [resolvable:$true] %s1105_s10 }
 0x162   : > { %s13983_s21 = scalar_lea.hbm %s19496_s30, 128 }
 0x163   : > { %p13984_p7 = scmp.ne.s32.totalorder %s19496_s30, %s13983_s21  ;;  %p13990_p11 = scmp.lt.u32.totalorder %s13983_s21, %s19496_s30 }
 0x165   : > { %p13986_p9 = pnand %p13984_p7, %p15009_p8 }
 0x167   : > { %p13987_p10 = pneg %p13986_p9 }
 0x169   : > { %p13992_p12 = pnand %p13990_p11, %p13987_p10 }
 0x16b   : > { %13995 = shalt.err (!%p13992_p12)
}
 0x16c   : > { %s13996_s25 = scalar_lea.vmem %s1084_s16, 128  ;;  %p14004_p13 = scmp.lt.s32.totalorder %s1084_s16, %s1084_s16 }
 0x16d   : > { %p13997_p1 = scmp.ne.s32.totalorder %s1084_s16, %s13996_s25  ;;  %p14005_p0 = scmp.lt.s32.totalorder %s13996_s25, %s13996_s25 }
 0x16f   : > { %p13999_p3 = pnand %p13997_p1, %p15009_p8  ;;  %p14006_p2 = por %p14005_p0, %p14004_p13 }
 0x171   : > { %p14000_p4 = pneg %p13999_p3 }
 0x173   : > { %p14007_p5 = pnand %p14006_p2, %p14000_p4 }
 0x175   : > { %14010 = shalt.err (!%p14007_p5)
}
 0x176   : > { %12757 = dma.hbm_to_vmem [thread:$0]  (!%p14997_p6), %s19496_s30, 128, %s1084_s16, [#allocation42]  }
 0x177   : > { %s14011_s15 = scalar_lea.hbm %s19501_s19, 16 }
 0x178   : > { %p14012_p7 = scmp.ne.s32.totalorder %s19501_s19, %s14011_s15  ;;  %p14018_p11 = scmp.lt.u32.totalorder %s14011_s15, %s19501_s19 }
 0x17a   : > { %p14014_p9 = pnand %p14012_p7, %p15009_p8 }
 0x17c   : > { %p14015_p10 = pneg %p14014_p9 }
 0x17e   : > { %p14020_p12 = pnand %p14018_p11, %p14015_p10 }
 0x180   : > { %14023 = shalt.err (!%p14020_p12)
}
 0x181   : > { %s14024_s17 = scalar_lea.vmem %s1106_s10, 16  ;;  %s14031_s29 = scalar_lea.vmem %s1106_s10, 32 }
 0x182   : > { %p14025_p1 = scmp.ne.s32.totalorder %s1106_s10, %s14024_s17  ;;  %p14032_p13 = scmp.lt.s32.totalorder %s1106_s10, %s1106_s10 }
 0x183   : > { %p14033_p0 = scmp.lt.s32.totalorder %s14031_s29, %s14024_s17 }
 0x184   : > { %p14027_p3 = pnand %p14025_p1, %p15009_p8 }
 0x185   : > { %p14034_p2 = por %p14033_p0, %p14032_p13 }
 0x186   : > { %p14028_p4 = pneg %p14027_p3 }
 0x188   : > { %p14035_p5 = pnand %p14034_p2, %p14028_p4 }
 0x18a   : > { %14038 = shalt.err (!%p14035_p5)
}
 0x18b   : > { %12763 = dma.hbm_to_vmem [thread:$0]  (!%p14997_p6), %s19501_s19, 16, %s1106_s10, [#allocation45]  }
 0x18c   : > { %s11626_s16 = sadd.s32 4294967294, %s14701_s1   ;;  %s114_s11 = sadd.s32 1, %s14697_s28 }
 0x18d   : > { %s123_s21 = sadd.s32 1, %s14689_s23  ;;  %p116_p7 = scmp.ge.s32.totalorder %s114_s11, 2 }
 0x18e   : > { %p130_p9 = scmp.ne.s32.totalorder %s14689_s23, %s14685_s22  ;;  %p131_p10 = scmp.eq.s32.totalorder %s14701_s1, 0 }
 0x18f   : > { %p136_p11 = scmp.ne.s32.totalorder %s14685_s22, %s14681_s0  ;;  %s19937_s11 = smov (%p116_p7, %s114_s11), 0 }
 0x190   : > { %p132_p12 = por %p131_p10, %p130_p9  ;;  %p19514_p1 = scmp.eq.s32.totalorder %s14983_s2, 0 }
 0x191   : > { %s118_s10 = ssub.s32 %s14697_s28, %s19937_s11  ;;  %p790_p4 = scmp.eq.s32.totalorder %s14983_s2, 1 }
 0x192   : > { %p15164_p3 = por %p19514_p1, %p136_p11  ;;  %p121_p13 = scmp.eq.s32.totalorder %s118_s10, 0 }
 0x193   : > { %p796_p0 = scmp.eq.s32.totalorder %s11626_s16, 1  ;;  %p15171_p2 = por %p790_p4, %p130_p9 }
 0x194   : > { %s19515_s25 = scalar_select %p15164_p3, 1, 0 }
 0x195   : > { %s19516_s15 = scalar_select %p15171_p2, 1, 0 }
 0x196   : > { %p12816_p5 = scmp.lt.s32.totalorder %s14701_s1, 2  ;;  %p15179_p7 = por %p796_p0, %p136_p11 }
 0x197   : > { %s15177_s17 = scalar_select %p121_p13, %s14689_s23, %s123_s21  }
 0x198   : > { %s19517_s29 = scalar_select %p15179_p7, 1, 0 }
 0x199   : > { %s15184_s3 = sand.u32 1, %s14689_s23   ;;  %p15186_p10 = pnand %p12816_p5, %p132_p12 }
 0x19a   : > { %s19294_s16 = sand.u32 1, %s14701_s1   ;;  %s11658_s10 = sshll.u32 %s15184_s3, 6 }
 0x19b   : > { %s19518_s4 = scalar_select %p15186_p10, 1, 0 }
 0x19c   : > { %s11844_s6 = sshll.u32 %s14697_s28, 10  ;;  %s1167_s12 = scalar_lea.vmem [#allocation5], %s11658_s10 }
 0x19d   : > { %s1176_s21 = sshll.u32 %s1167_s12, 4  ;;  %s15194_s13 = scalar_lea.hbm %s19498_s9, %s11844_s6  ;;  %s15196_s21 = int_to_ptr.vmem [resolvable:$true] %s1176_s21 }
 0x19e   : > { %s15200_s14 = scalar_lea.sflag [#allocation6], %s19294_s16  ;;  %s14039_s19 = scalar_lea.hbm %s15194_s13, 1024 }
 0x19f   : > { %p14040_p9 = scmp.ne.s32.totalorder %s15194_s13, %s14039_s19  ;;  %p15206_p11 = pneg %p15186_p10 }
 0x1a0   : > { %s14044_s6 = scalar_lea.hbm %s19498_s9, 2048  ;;  %p14045_p4 = scmp.lt.u32.totalorder %s15194_s13, %s19498_s9 }
 0x1a1   : > { %s19519_s20 = scalar_select %p15206_p11, 1, 0 }
 0x1a2   : > { %p14042_p12 = pnand %p15206_p11, %p14040_p9  ;;  %p14046_p13 = scmp.lt.u32.totalorder %s14044_s6, %s14039_s19 }
 0x1a3   : > { %p14048_p5 = scmp.lt.u32.totalorder %s14039_s19, %s15194_s13 }
 0x1a4   : > { %p14043_p1 = pneg %p14042_p12  ;;  %p14047_p0 = por %p14046_p13, %p14045_p4 }
 0x1a6   : > { %p14049_p7 = por %p14048_p5, %p14047_p0 }
 0x1a8   : > { %p14050_p2 = pnand %p14049_p7, %p14043_p1 }
 0x1aa   : > { %14053 = shalt.err (!%p14050_p2)
}
 0x1ab   : > { %s14054_s12 = scalar_lea.vmem %s15196_s21, 1024  ;;  %s14747_s10 = smov [#allocation5]  }
 0x1ac   : > { %p14055_p3 = scmp.ne.s32.totalorder %s15196_s21, %s14054_s12  ;;  %s14059_s16 = sshll.u32 %s14747_s10, 4  ;;  %s14060_s16 = int_to_ptr.vmem [resolvable:$false] %s14059_s16 }
 0x1ad   : > { %s14061_s24 = scalar_lea.vmem %s14060_s16, 2048  ;;  %p14062_p9 = scmp.lt.s32.totalorder %s15196_s21, %s14060_s16 }
 0x1ae   : > { %p14057_p6 = pnand %p14055_p3, %p15206_p11  ;;  %p14063_p12 = scmp.lt.s32.totalorder %s14061_s24, %s14054_s12 }
 0x1b0   : > { %p14058_p8 = pneg %p14057_p6  ;;  %p14064_p4 = por %p14063_p12, %p14062_p9 }
 0x1b2   : > { %p14065_p13 = pnand %p14064_p4, %p14058_p8 }
 0x1b4   : > { %14068 = shalt.err (!%p14065_p13)
}
 0x1b5   : > { %s19299_s19 = smov 64   ;;  %s19520_s6 = sld [smem:[#allocation77_spill]] }
 0x1b6   : > { %s19300_s9 = smov 4   ;;  %s14750_s16 = smov [#allocation13]  }
 0x1b7   : > { %12776 = dma.hbm_to_vmem [thread:$0]  (!%p15186_p10), %s15194_s13, 1024, %s15196_s21, %s15200_s14, %s19299_s19, %s19299_s19, %s19300_s9  }
 0x1b8   : > { %s865_s24 = sshll.u32 %s14750_s16, 4  ;;  %p19521_p8 = scmp.ne.s32.totalorder %s19513_s26, 0  ;;  %s866_s24 = int_to_ptr.vmem [resolvable:$true] %s865_s24 }
 0x1bb   : > { %s14069_s12 = scalar_lea.hbm %s19520_s6, 256 }
 0x1bc   : > { %p14070_p6 = scmp.ne.s32.totalorder %s19520_s6, %s14069_s12  ;;  %p14076_p7 = scmp.lt.u32.totalorder %s14069_s12, %s19520_s6 }
 0x1be   : > { %p14072_p3 = pnand %p14070_p6, %p19521_p8 }
 0x1c0   : > { %p14073_p2 = pneg %p14072_p3 }
 0x1c2   : > { %p14078_p1 = pnand %p14076_p7, %p14073_p2 }
 0x1c4   : > { %14081 = shalt.err (!%p14078_p1)
}
 0x1c5   : > { %s14082_s10 = scalar_lea.vmem %s866_s24, 256  ;;  %p14090_p12 = scmp.lt.s32.totalorder %s866_s24, %s866_s24 }
 0x1c6   : > { %p14083_p0 = scmp.ne.s32.totalorder %s866_s24, %s14082_s10  ;;  %p14091_p4 = scmp.lt.s32.totalorder %s14082_s10, %s14082_s10 }
 0x1c8   : > { %p14085_p5 = pnand %p14083_p0, %p19521_p8  ;;  %p14092_p13 = por %p14091_p4, %p14090_p12 }
 0x1ca   : > { %p14086_p9 = pneg %p14085_p5 }
 0x1cc   : > { %p14093_p10 = pnand %p14092_p13, %p14086_p9 }
 0x1ce   : > { %14096 = shalt.err (!%p14093_p10)
}
 0x1cf   : > { %s19305_s13 = smov 128   ;;  %s19522_s21 = sld [smem:[#allocation79_spill]] }
 0x1d0   : > { %s19307_s16 = smov 8   ;;  %p19523_p6 = scmp.ne.s32.totalorder %s19512_s18, 0 }
 0x1d1   : > { %s14753_s12 = smov [#allocation16]   ;;  %s14754_s9 = smov [#allocation19]  }
 0x1d2   : > { %12700 = dma.hbm_to_vmem [thread:$0]  (!%p19523_p6), %s19520_s6, 256, %s866_s24, [#allocation12], %s19305_s13, %s19305_s13, %s19307_s16  }
 0x1d3   : > { %s889_s19 = sshll.u32 %s14753_s12, 4  ;;  %s914_s10 = sshll.u32 %s14754_s9, 4  ;;  %s890_s19 = int_to_ptr.vmem [resolvable:$true] %s889_s19  ;;  %s15242_s10 = int_to_ptr.vmem [resolvable:$true] %s914_s10 }
 0x1d5   : > { %s14097_s27 = scalar_lea.hbm %s19522_s21, 256 }
 0x1d6   : > { %p14098_p10 = scmp.ne.s32.totalorder %s19522_s21, %s14097_s27  ;;  %p14104_p7 = scmp.lt.u32.totalorder %s14097_s27, %s19522_s21 }
 0x1d8   : > { %p14100_p3 = pnand %p14098_p10, %p19521_p8 }
 0x1da   : > { %p14101_p2 = pneg %p14100_p3 }
 0x1dc   : > { %p14106_p1 = pnand %p14104_p7, %p14101_p2 }
 0x1de   : > { %14109 = shalt.err (!%p14106_p1)
}
 0x1df   : > { %s14110_s30 = scalar_lea.vmem %s890_s19, 256  ;;  %p14118_p12 = scmp.lt.s32.totalorder %s890_s19, %s890_s19 }
 0x1e0   : > { %p14111_p0 = scmp.ne.s32.totalorder %s890_s19, %s14110_s30  ;;  %p14119_p4 = scmp.lt.s32.totalorder %s14110_s30, %s14110_s30 }
 0x1e2   : > { %p14113_p5 = pnand %p14111_p0, %p19521_p8  ;;  %p14120_p13 = por %p14119_p4, %p14118_p12 }
 0x1e4   : > { %p14114_p9 = pneg %p14113_p5 }
 0x1e6   : > { %p14121_p11 = pnand %p14120_p13, %p14114_p9 }
 0x1e8   : > { %14124 = shalt.err (!%p14121_p11)
}
 0x1e9   : > { %s19524_s9 = sld [smem:[#allocation81_spill]] }
 0x1ea   : > { %12706 = dma.hbm_to_vmem [thread:$0]  (!%p19523_p6), %s19522_s21, 256, %s890_s19, [#allocation15], %s19305_s13, %s19305_s13, %s19307_s16  }
 0x1ef   : > { %s14125_s27 = scalar_lea.hbm %s19524_s9, 64 }
 0x1f0   : > { %p14126_p10 = scmp.ne.s32.totalorder %s19524_s9, %s14125_s27  ;;  %p14132_p7 = scmp.lt.u32.totalorder %s14125_s27, %s19524_s9 }
 0x1f2   : > { %p14128_p3 = pnand %p14126_p10, %p19521_p8 }
 0x1f4   : > { %p14129_p2 = pneg %p14128_p3 }
 0x1f6   : > { %p14134_p1 = pnand %p14132_p7, %p14129_p2 }
 0x1f8   : > { %14137 = shalt.err (!%p14134_p1)
}
 0x1f9   : > { %s14138_s30 = scalar_lea.vmem %s15242_s10, 64  ;;  %p14146_p9 = scmp.lt.s32.totalorder %s15242_s10, %s15242_s10 }
 0x1fa   : > { %p14139_p11 = scmp.ne.s32.totalorder %s15242_s10, %s14138_s30  ;;  %p14147_p12 = scmp.lt.s32.totalorder %s14138_s30, %s14138_s30 }
 0x1fc   : > { %p14141_p0 = pnand %p14139_p11, %p19521_p8  ;;  %p14148_p4 = por %p14147_p12, %p14146_p9 }
 0x1fe   : > { %p14142_p5 = pneg %p14141_p0 }
 0x200   : > { %p14149_p13 = pnand %p14148_p4, %p14142_p5 }
 0x202   : > { %14152 = shalt.err (!%p14149_p13)
}
 0x203   : > { %s19525_s19 = sld [smem:[#allocation83_spill]]  ;;  %s14755_s24 = smov [#allocation22]  }
 0x204   : > { %12712 = dma.hbm_to_vmem [thread:$0]  (!%p19523_p6), %s19524_s9, 64, %s15242_s10, [#allocation18]  }
 0x205   : > { %s936_s12 = sshll.u32 %s14755_s24, 4  ;;  %s14756_s27 = smov [#allocation25]   ;;  %s937_s12 = int_to_ptr.vmem [resolvable:$true] %s936_s12 }
 0x206   : > { %s957_s13 = sshll.u32 %s14756_s27, 4  ;;  %s15272_s13 = int_to_ptr.vmem [resolvable:$true] %s957_s13 }
 0x209   : > { %s14153_s30 = scalar_lea.hbm %s19525_s19, 128 }
 0x20a   : > { %p14154_p10 = scmp.ne.s32.totalorder %s19525_s19, %s14153_s30  ;;  %p14160_p7 = scmp.lt.u32.totalorder %s14153_s30, %s19525_s19 }
 0x20c   : > { %p14156_p3 = pnand %p14154_p10, %p19521_p8 }
 0x20e   : > { %p14157_p2 = pneg %p14156_p3 }
 0x210   : > { %p14162_p1 = pnand %p14160_p7, %p14157_p2 }
 0x212   : > { %14165 = shalt.err (!%p14162_p1)
}
 0x213   : > { %s14166_s16 = scalar_lea.vmem %s937_s12, 128  ;;  %p14174_p9 = scmp.lt.s32.totalorder %s937_s12, %s937_s12 }
 0x214   : > { %p14167_p11 = scmp.ne.s32.totalorder %s937_s12, %s14166_s16  ;;  %p14175_p12 = scmp.lt.s32.totalorder %s14166_s16, %s14166_s16 }
 0x216   : > { %p14169_p0 = pnand %p14167_p11, %p19521_p8  ;;  %p14176_p4 = por %p14175_p12, %p14174_p9 }
 0x218   : > { %p14170_p5 = pneg %p14169_p0 }
 0x21a   : > { %p14177_p13 = pnand %p14176_p4, %p14170_p5 }
 0x21c   : > { %14180 = shalt.err (!%p14177_p13)
}
 0x21d   : > { %s19526_s10 = sld [smem:[#allocation85_spill]] }
 0x21e   : > { %12718 = dma.hbm_to_vmem [thread:$0]  (!%p19523_p6), %s19525_s19, 128, %s937_s12, [#allocation21]  }
 0x223   : > { %s14181_s24 = scalar_lea.hbm %s19526_s10, 256 }
 0x224   : > { %p14182_p10 = scmp.ne.s32.totalorder %s19526_s10, %s14181_s24  ;;  %p14188_p7 = scmp.lt.u32.totalorder %s14181_s24, %s19526_s10 }
 0x226   : > { %p14184_p3 = pnand %p14182_p10, %p19521_p8 }
 0x228   : > { %p14185_p2 = pneg %p14184_p3 }
 0x22a   : > { %p14190_p1 = pnand %p14188_p7, %p14185_p2 }
 0x22c   : > { %14193 = shalt.err (!%p14190_p1)
}
 0x22d   : > { %s14194_s16 = scalar_lea.vmem %s15272_s13, 256  ;;  %p14202_p9 = scmp.lt.s32.totalorder %s15272_s13, %s15272_s13 }
 0x22e   : > { %p14195_p11 = scmp.ne.s32.totalorder %s15272_s13, %s14194_s16  ;;  %p14203_p12 = scmp.lt.s32.totalorder %s14194_s16, %s14194_s16 }
 0x230   : > { %p14197_p0 = pnand %p14195_p11, %p19521_p8  ;;  %p14204_p4 = por %p14203_p12, %p14202_p9 }
 0x232   : > { %p14198_p5 = pneg %p14197_p0 }
 0x234   : > { %p14205_p13 = pnand %p14204_p4, %p14198_p5 }
 0x236   : > { %14208 = shalt.err (!%p14205_p13)
}
 0x237   : > { %s19527_s12 = smov 8   ;;  %s19528_s27 = smov 128  }
 0x238   : > { %s19529_s30 = sld [smem:[#allocation87_spill]]  ;;  %s14757_s24 = smov [#allocation28]  }
 0x239   : > { %12724 = dma.hbm_to_vmem [thread:$0]  (!%p19523_p6), %s19526_s10, 256, %s15272_s13, [#allocation24], %s19528_s27, %s19528_s27, %s19527_s12  }
 0x23a   : > { %s982_s6 = sshll.u32 %s14757_s24, 4  ;;  %s14758_s9 = smov [#allocation31]   ;;  %s983_s6 = int_to_ptr.vmem [resolvable:$true] %s982_s6 }
 0x23b   : > { %s1003_s19 = sshll.u32 %s14758_s9, 4  ;;  %s15302_s19 = int_to_ptr.vmem [resolvable:$true] %s1003_s19 }
 0x23e   : > { %s14209_s16 = scalar_lea.hbm %s19529_s30, 64 }
 0x23f   : > { %p14210_p10 = scmp.ne.s32.totalorder %s19529_s30, %s14209_s16  ;;  %p14216_p7 = scmp.lt.u32.totalorder %s14209_s16, %s19529_s30 }
 0x241   : > { %p14212_p3 = pnand %p14210_p10, %p19521_p8 }
 0x243   : > { %p14213_p2 = pneg %p14212_p3 }
 0x245   : > { %p14218_p1 = pnand %p14216_p7, %p14213_p2 }
 0x247   : > { %14221 = shalt.err (!%p14218_p1)
}
 0x248   : > { %s14222_s21 = scalar_lea.vmem %s983_s6, 64  ;;  %p14230_p9 = scmp.lt.s32.totalorder %s983_s6, %s983_s6 }
 0x249   : > { %p14223_p11 = scmp.ne.s32.totalorder %s983_s6, %s14222_s21  ;;  %p14231_p12 = scmp.lt.s32.totalorder %s14222_s21, %s14222_s21 }
 0x24b   : > { %p14225_p0 = pnand %p14223_p11, %p19521_p8  ;;  %p14232_p4 = por %p14231_p12, %p14230_p9 }
 0x24d   : > { %p14226_p5 = pneg %p14225_p0 }
 0x24f   : > { %p14233_p13 = pnand %p14232_p4, %p14226_p5 }
 0x251   : > { %14236 = shalt.err (!%p14233_p13)
}
 0x252   : > { %s19530_s13 = sld [smem:[#allocation89_spill]] }
 0x253   : > { %12730 = dma.hbm_to_vmem [thread:$0]  (!%p19523_p6), %s19529_s30, 64, %s983_s6, [#allocation27]  }
 0x258   : > { %s14237_s9 = scalar_lea.hbm %s19530_s13, 16384 }
 0x259   : > { %p14238_p10 = scmp.ne.s32.totalorder %s19530_s13, %s14237_s9  ;;  %p14244_p7 = scmp.lt.u32.totalorder %s14237_s9, %s19530_s13 }
 0x25b   : > { %p14240_p3 = pnand %p14238_p10, %p19521_p8 }
 0x25d   : > { %p14241_p2 = pneg %p14240_p3 }
 0x25f   : > { %p14246_p1 = pnand %p14244_p7, %p14241_p2 }
 0x261   : > { %14249 = shalt.err (!%p14246_p1)
}
 0x262   : > { %s14250_s21 = scalar_lea.vmem %s15302_s19, 16384  ;;  %p14258_p9 = scmp.lt.s32.totalorder %s15302_s19, %s15302_s19 }
 0x263   : > { %p14251_p11 = scmp.ne.s32.totalorder %s15302_s19, %s14250_s21  ;;  %p14259_p12 = scmp.lt.s32.totalorder %s14250_s21, %s14250_s21 }
 0x265   : > { %p14253_p0 = pnand %p14251_p11, %p19521_p8  ;;  %p14260_p4 = por %p14259_p12, %p14258_p9 }
 0x267   : > { %p14254_p5 = pneg %p14253_p0 }
 0x269   : > { %p14261_p13 = pnand %p14260_p4, %p14254_p5 }
 0x26b   : > { %14264 = shalt.err (!%p14261_p13)
}
 0x26c   : > { %s19531_s6 = sld [smem:[#allocation91_spill]]  ;;  %s14759_s24 = smov [#allocation34]  }
 0x26d   : > { %12736 = dma.hbm_to_vmem [thread:$0]  (!%p19523_p6), %s19530_s13, 16384, %s15302_s19, [#allocation30], %s19528_s27, %s19528_s27, %s19527_s12  }
 0x26e   : > { %s1028_s16 = sshll.u32 %s14759_s24, 4  ;;  %s14760_s9 = smov [#allocation37]   ;;  %s1029_s16 = int_to_ptr.vmem [resolvable:$true] %s1028_s16 }
 0x26f   : > { %s1050_s10 = sshll.u32 %s14760_s9, 4  ;;  %s15332_s10 = int_to_ptr.vmem [resolvable:$true] %s1050_s10 }
 0x272   : > { %s14265_s21 = scalar_lea.hbm %s19531_s6, 64 }
 0x273   : > { %p14266_p10 = scmp.ne.s32.totalorder %s19531_s6, %s14265_s21  ;;  %p14272_p7 = scmp.lt.u32.totalorder %s14265_s21, %s19531_s6 }
 0x275   : > { %p14268_p3 = pnand %p14266_p10, %p19521_p8 }
 0x277   : > { %p14269_p2 = pneg %p14268_p3 }
 0x279   : > { %p14274_p1 = pnand %p14272_p7, %p14269_p2 }
 0x27b   : > { %14277 = shalt.err (!%p14274_p1)
}
 0x27c   : > { %s14278_s30 = scalar_lea.vmem %s1029_s16, 64  ;;  %p14286_p9 = scmp.lt.s32.totalorder %s1029_s16, %s1029_s16 }
 0x27d   : > { %p14279_p11 = scmp.ne.s32.totalorder %s1029_s16, %s14278_s30  ;;  %p14287_p12 = scmp.lt.s32.totalorder %s14278_s30, %s14278_s30 }
 0x27f   : > { %p14281_p0 = pnand %p14279_p11, %p19521_p8  ;;  %p14288_p4 = por %p14287_p12, %p14286_p9 }
 0x281   : > { %p14282_p5 = pneg %p14281_p0 }
 0x283   : > { %p14289_p13 = pnand %p14288_p4, %p14282_p5 }
 0x285   : > { %14292 = shalt.err (!%p14289_p13)
}
 0x286   : > { %s19532_s19 = sld [smem:[#allocation93_spill]] }
 0x287   : > { %12742 = dma.hbm_to_vmem [thread:$0]  (!%p19523_p6), %s19531_s6, 64, %s1029_s16, [#allocation33]  }
 0x28c   : > { %s14293_s24 = scalar_lea.hbm %s19532_s19, 128 }
 0x28d   : > { %p14294_p10 = scmp.ne.s32.totalorder %s19532_s19, %s14293_s24  ;;  %p14300_p7 = scmp.lt.u32.totalorder %s14293_s24, %s19532_s19 }
 0x28f   : > { %p14296_p3 = pnand %p14294_p10, %p19521_p8 }
 0x291   : > { %p14297_p2 = pneg %p14296_p3 }
 0x293   : > { %p14302_p1 = pnand %p14300_p7, %p14297_p2 }
 0x295   : > { %14305 = shalt.err (!%p14302_p1)
}
 0x296   : > { %s14306_s30 = scalar_lea.vmem %s15332_s10, 128  ;;  %p14314_p9 = scmp.lt.s32.totalorder %s15332_s10, %s15332_s10 }
 0x297   : > { %p14307_p11 = scmp.ne.s32.totalorder %s15332_s10, %s14306_s30  ;;  %p14315_p12 = scmp.lt.s32.totalorder %s14306_s30, %s14306_s30 }
 0x299   : > { %p14309_p0 = pnand %p14307_p11, %p19521_p8  ;;  %p14316_p4 = por %p14315_p12, %p14314_p9 }
 0x29b   : > { %p14310_p5 = pneg %p14309_p0 }
 0x29d   : > { %p14317_p13 = pnand %p14316_p4, %p14310_p5 }
 0x29f   : > { %14320 = shalt.err (!%p14317_p13)
}
 0x2a0   : > { %s19533_s16 = sld [smem:[#allocation95_spill]]  ;;  %s14761_s9 = smov [#allocation40]  }
 0x2a1   : > { %12748 = dma.hbm_to_vmem [thread:$0]  (!%p19523_p6), %s19532_s19, 128, %s15332_s10, [#allocation36]  }
 0x2a2   : > { %s1072_s21 = sshll.u32 %s14761_s9, 4  ;;  %s14762_s24 = smov [#allocation43]   ;;  %s1073_s21 = int_to_ptr.vmem [resolvable:$true] %s1072_s21 }
 0x2a3   : > { %s1094_s6 = sshll.u32 %s14762_s24, 4  ;;  %s15359_s6 = int_to_ptr.vmem [resolvable:$true] %s1094_s6 }
 0x2a6   : > { %s14321_s30 = scalar_lea.hbm %s19533_s16, 128 }
 0x2a7   : > { %p14322_p10 = scmp.ne.s32.totalorder %s19533_s16, %s14321_s30  ;;  %p14328_p7 = scmp.lt.u32.totalorder %s14321_s30, %s19533_s16 }
 0x2a9   : > { %p14324_p3 = pnand %p14322_p10, %p19521_p8 }
 0x2ab   : > { %p14325_p2 = pneg %p14324_p3 }
 0x2ad   : > { %p14330_p1 = pnand %p14328_p7, %p14325_p2 }
 0x2af   : > { %14333 = shalt.err (!%p14330_p1)
}
 0x2b0   : > { %s14334_s13 = scalar_lea.vmem %s1073_s21, 128  ;;  %p14342_p9 = scmp.lt.s32.totalorder %s1073_s21, %s1073_s21 }
 0x2b1   : > { %p14335_p11 = scmp.ne.s32.totalorder %s1073_s21, %s14334_s13  ;;  %p14343_p12 = scmp.lt.s32.totalorder %s14334_s13, %s14334_s13 }
 0x2b3   : > { %p14337_p0 = pnand %p14335_p11, %p19521_p8  ;;  %p14344_p4 = por %p14343_p12, %p14342_p9 }
 0x2b5   : > { %p14338_p5 = pneg %p14337_p0 }
 0x2b7   : > { %p14345_p13 = pnand %p14344_p4, %p14338_p5 }
 0x2b9   : > { %14348 = shalt.err (!%p14345_p13)
}
 0x2ba   : > { %s19534_s10 = sld [smem:[#allocation97_spill]] }
 0x2bb   : > { %12754 = dma.hbm_to_vmem [thread:$0]  (!%p19523_p6), %s19533_s16, 128, %s1073_s21, [#allocation39]  }
 0x2c0   : > { %s14349_s9 = scalar_lea.hbm %s19534_s10, 128 }
 0x2c1   : > { %p14350_p10 = scmp.ne.s32.totalorder %s19534_s10, %s14349_s9  ;;  %p14356_p7 = scmp.lt.u32.totalorder %s14349_s9, %s19534_s10 }
 0x2c3   : > { %p14352_p3 = pnand %p14350_p10, %p19521_p8 }
 0x2c5   : > { %p14353_p2 = pneg %p14352_p3 }
 0x2c7   : > { %p14358_p1 = pnand %p14356_p7, %p14353_p2 }
 0x2c9   : > { %14361 = shalt.err (!%p14358_p1)
}
 0x2ca   : > { %s14362_s13 = scalar_lea.vmem %s15359_s6, 128  ;;  %p14370_p9 = scmp.lt.s32.totalorder %s15359_s6, %s15359_s6 }
 0x2cb   : > { %p14363_p11 = scmp.ne.s32.totalorder %s15359_s6, %s14362_s13  ;;  %p14371_p12 = scmp.lt.s32.totalorder %s14362_s13, %s14362_s13 }
 0x2cd   : > { %p14365_p0 = pnand %p14363_p11, %p19521_p8  ;;  %p14372_p4 = por %p14371_p12, %p14370_p9 }
 0x2cf   : > { %p14366_p5 = pneg %p14365_p0 }
 0x2d1   : > { %p14373_p13 = pnand %p14372_p4, %p14366_p5 }
 0x2d3   : > { %14376 = shalt.err (!%p14373_p13)
}
 0x2d4   : > { %12760 = dma.hbm_to_vmem [thread:$0]  (!%p19523_p6), %s19534_s10, 128, %s15359_s6, [#allocation42]  }
 0x2d5   : > { %s14763_s21 = smov [#allocation46]   ;;  %s14764_s30 = smov [#allocation47]  }
 0x2d6   : > { %s1115_s24 = sshll.u32 %s14763_s21, 4  ;;  %s1129_s9 = sshll.u32 %s14764_s30, 4  ;;  %s1116_s24 = int_to_ptr.vmem [resolvable:$true] %s1115_s24  ;;  %s15386_s9 = int_to_ptr.vmem [resolvable:$true] %s1129_s9 }
 0x2d7   : > { %s14377_s13 = scalar_lea.hbm %s19495_s5, 512 }
 0x2d8   : > { %p14378_p10 = scmp.ne.s32.totalorder %s19495_s5, %s14377_s13  ;;  %p14384_p7 = scmp.lt.u32.totalorder %s14377_s13, %s19495_s5 }
 0x2da   : > { %p14380_p3 = pnand %p14378_p10, %p19521_p8 }
 0x2dc   : > { %p14381_p2 = pneg %p14380_p3 }
 0x2de   : > { %p14386_p1 = pnand %p14384_p7, %p14381_p2 }
 0x2e0   : > { %14389 = shalt.err (!%p14386_p1)
}
 0x2e1   : > { %s14390_s16 = scalar_lea.vmem %s1116_s24, 512  ;;  %p14398_p9 = scmp.lt.s32.totalorder %s1116_s24, %s1116_s24 }
 0x2e2   : > { %p14391_p11 = scmp.ne.s32.totalorder %s1116_s24, %s14390_s16  ;;  %p14399_p12 = scmp.lt.s32.totalorder %s14390_s16, %s14390_s16 }
 0x2e4   : > { %p14393_p0 = pnand %p14391_p11, %p19521_p8  ;;  %p14400_p4 = por %p14399_p12, %p14398_p9 }
 0x2e6   : > { %p14394_p5 = pneg %p14393_p0 }
 0x2e8   : > { %p14401_p13 = pnand %p14400_p4, %p14394_p5 }
 0x2ea   : > { %14404 = shalt.err (!%p14401_p13)
}
 0x2eb   : > { %12766 = dma.hbm_to_vmem [thread:$0]  (!%p19523_p6), %s19495_s5, 512, %s1116_s24, [#allocation45], %s19528_s27, %s19528_s27, %s19527_s12  }
 0x2ec   : > { %s14405_s6 = scalar_lea.hbm %s19494_s8, 16 }
 0x2ed   : > { %p14406_p10 = scmp.ne.s32.totalorder %s19494_s8, %s14405_s6  ;;  %p14412_p7 = scmp.lt.u32.totalorder %s14405_s6, %s19494_s8 }
 0x2ef   : > { %p14408_p3 = pnand %p14406_p10, %p19521_p8 }
 0x2f1   : > { %p14409_p2 = pneg %p14408_p3 }
 0x2f3   : > { %p14414_p1 = pnand %p14412_p7, %p14409_p2 }
 0x2f5   : > { %14417 = shalt.err (!%p14414_p1)
}
 0x2f6   : > { %s14418_s16 = scalar_lea.vmem %s15386_s9, 16  ;;  %s14425_s21 = scalar_lea.vmem %s15386_s9, 32 }
 0x2f7   : > { %p14419_p11 = scmp.ne.s32.totalorder %s15386_s9, %s14418_s16  ;;  %p14426_p9 = scmp.lt.s32.totalorder %s15386_s9, %s15386_s9 }
 0x2f8   : > { %p14427_p12 = scmp.lt.s32.totalorder %s14425_s21, %s14418_s16 }
 0x2f9   : > { %p14421_p0 = pnand %p14419_p11, %p19521_p8 }
 0x2fa   : > { %p14428_p4 = por %p14427_p12, %p14426_p9 }
 0x2fb   : > { %p14422_p5 = pneg %p14421_p0 }
 0x2fd   : > { %p14429_p13 = pnand %p14428_p4, %p14422_p5 }
 0x2ff   : > { %14432 = shalt.err (!%p14429_p13)
}
 0x300   : > { %s19535_s24 = sld [smem:[#allocation71_spill]]  ;;  %s11655_s26 = sshll.u32 %s15184_s3, 7 }
 0x301   : > { %12769 = dma.hbm_to_vmem [thread:$0]  (!%p19523_p6), %s19494_s8, 16, %s15386_s9, [#allocation48]  }
 0x302   : > { %s11843_s30 = sshll.u32 %s14697_s28, 11  ;;  %s1144_s18 = scalar_lea.vmem [#allocation2], %s11655_s26 }
 0x303   : > { %s1153_s6 = sshll.u32 %s1144_s18, 4  ;;  %s1141_s21 = scalar_lea.sflag [#allocation3], %s15184_s3  ;;  %s15422_s6 = int_to_ptr.vmem [resolvable:$true] %s1153_s6 }
 0x304   : > { %p19536_p10 = scmp.ne.s32.totalorder %s19519_s20, 0 }
 0x306   : > { %s15420_s13 = scalar_lea.hbm %s19535_s24, %s11843_s30  ;;  %s14438_s9 = scalar_lea.hbm %s19535_s24, 4096 }
 0x307   : > { %s14433_s5 = scalar_lea.hbm %s15420_s13, 2048  ;;  %p14439_p6 = scmp.lt.u32.totalorder %s15420_s13, %s19535_s24 }
 0x308   : > { %p14434_p8 = scmp.ne.s32.totalorder %s15420_s13, %s14433_s5  ;;  %p14440_p7 = scmp.lt.u32.totalorder %s14438_s9, %s14433_s5 }
 0x309   : > { %p14442_p11 = scmp.lt.u32.totalorder %s14433_s5, %s15420_s13 }
 0x30a   : > { %p14436_p3 = pnand %p14434_p8, %p19536_p10  ;;  %p14441_p1 = por %p14440_p7, %p14439_p6 }
 0x30c   : > { %p14437_p2 = pneg %p14436_p3  ;;  %p14443_p0 = por %p14442_p11, %p14441_p1 }
 0x30e   : > { %p14444_p5 = pnand %p14443_p0, %p14437_p2 }
 0x310   : > { %14447 = shalt.err (!%p14444_p5)
}
 0x311   : > { %s14448_s26 = scalar_lea.vmem %s15422_s6, 2048  ;;  %s14765_s30 = smov [#allocation2]  }
 0x312   : > { %p14449_p9 = scmp.ne.s32.totalorder %s15422_s6, %s14448_s26  ;;  %s14453_s18 = sshll.u32 %s14765_s30, 4  ;;  %s14454_s18 = int_to_ptr.vmem [resolvable:$false] %s14453_s18 }
 0x313   : > { %s14455_s16 = scalar_lea.vmem %s14454_s18, 4096  ;;  %p14456_p13 = scmp.lt.s32.totalorder %s15422_s6, %s14454_s18 }
 0x314   : > { %p14451_p12 = pnand %p14449_p9, %p19536_p10  ;;  %p14457_p8 = scmp.lt.s32.totalorder %s14455_s16, %s14448_s26 }
 0x316   : > { %p14452_p4 = pneg %p14451_p12  ;;  %p14458_p3 = por %p14457_p8, %p14456_p13 }
 0x318   : > { %p14459_p6 = pnand %p14458_p3, %p14452_p4 }
 0x31a   : > { %14462 = shalt.err (!%p14459_p6)
}
 0x31b   : > { %p19537_p2 = scmp.ne.s32.totalorder %s19518_s4, 0  ;;  %s19538_s5 = sld [smem:[#allocation73_spill]] }
 0x31c   : > { %s11845_s16 = sshll.u32 %s14697_s28, 8  ;;  %s19539_s26 = sshll.u32 %s15184_s3, 4 }
 0x31d   : > { %12773 = dma.hbm_to_vmem [thread:$0]  (!%p19537_p2), %s15420_s13, 2048, %s15422_s6, %s1141_s21, %s19528_s27, %s19528_s27, %s19527_s12  }
 0x31e   : > { %s1190_s30 = scalar_lea.vmem [#allocation7], %s19539_s26  ;;  %s11664_s8 = sshll.u32 %s15184_s3, 5 }
 0x31f   : > { %s1199_s18 = sshll.u32 %s1190_s30, 4  ;;  %s15454_s18 = int_to_ptr.vmem [resolvable:$true] %s1199_s18 }
 0x321   : > { %s15450_s9 = scalar_lea.hbm %s19538_s5, %s11845_s16  ;;  %s14468_s19 = scalar_lea.hbm %s19538_s5, 512 }
 0x322   : > { %s14463_s10 = scalar_lea.hbm %s15450_s9, 256  ;;  %p14469_p0 = scmp.lt.u32.totalorder %s15450_s9, %s19538_s5 }
 0x323   : > { %p14464_p7 = scmp.ne.s32.totalorder %s15450_s9, %s14463_s10  ;;  %p14470_p5 = scmp.lt.u32.totalorder %s14468_s19, %s14463_s10 }
 0x324   : > { %p14472_p12 = scmp.lt.u32.totalorder %s14463_s10, %s15450_s9 }
 0x325   : > { %p14466_p1 = pnand %p14464_p7, %p19536_p10  ;;  %p14471_p9 = por %p14470_p5, %p14469_p0 }
 0x327   : > { %p14467_p11 = pneg %p14466_p1  ;;  %p14473_p4 = por %p14472_p12, %p14471_p9 }
 0x329   : > { %p14474_p13 = pnand %p14473_p4, %p14467_p11 }
 0x32b   : > { %14477 = shalt.err (!%p14474_p13)
}
 0x32c   : > { %s14478_s13 = scalar_lea.vmem %s15454_s18, 256  ;;  %s14766_s6 = smov [#allocation7]  }
 0x32d   : > { %p14479_p8 = scmp.ne.s32.totalorder %s15454_s18, %s14478_s13  ;;  %s14483_s21 = sshll.u32 %s14766_s6, 4  ;;  %s14484_s21 = int_to_ptr.vmem [resolvable:$false] %s14483_s21 }
 0x32e   : > { %s14485_s16 = scalar_lea.vmem %s14484_s21, 512  ;;  %p14486_p7 = scmp.lt.s32.totalorder %s15454_s18, %s14484_s21 }
 0x32f   : > { %p14481_p3 = pnand %p14479_p8, %p19536_p10  ;;  %p14487_p1 = scmp.lt.s32.totalorder %s14485_s16, %s14478_s13 }
 0x331   : > { %p14482_p6 = pneg %p14481_p3  ;;  %p14488_p0 = por %p14487_p1, %p14486_p7 }
 0x333   : > { %p14489_p5 = pnand %p14488_p0, %p14482_p6 }
 0x335   : > { %14492 = shalt.err (!%p14489_p5)
}
 0x336   : > { %s19540_s19 = sld [smem:[#allocation74_spill]]  ;;  %s11846_s10 = sshll.u32 %s14697_s28, 9 }
 0x337   : > { %12779 = dma.hbm_to_vmem [thread:$0]  (!%p19537_p2), %s15450_s9, 256, %s15454_s18, %s15200_s14, %s19528_s27, %s19528_s27, %s19527_s12  }
 0x338   : > { %s1213_s30 = scalar_lea.vmem [#allocation8], %s11664_s8  ;;  %s19541_s6 = sand.u32 1, %s14701_s1  }
 0x339   : > { %s1220_s13 = sshll.u32 %s1213_s30, 4  ;;  %s15488_s21 = scalar_lea.sflag [#allocation9], %s19541_s6  ;;  %s15484_s13 = int_to_ptr.vmem [resolvable:$true] %s1220_s13 }
 0x33c   : > { %s15480_s26 = scalar_lea.hbm %s19540_s19, %s11846_s10  ;;  %s14498_s14 = scalar_lea.hbm %s19540_s19, 1024 }
 0x33d   : > { %s14493_s16 = scalar_lea.hbm %s15480_s26, 512  ;;  %p14499_p4 = scmp.lt.u32.totalorder %s15480_s26, %s19540_s19 }
 0x33e   : > { %p14494_p11 = scmp.ne.s32.totalorder %s15480_s26, %s14493_s16  ;;  %p14500_p13 = scmp.lt.u32.totalorder %s14498_s14, %s14493_s16 }
 0x33f   : > { %p14502_p3 = scmp.lt.u32.totalorder %s14493_s16, %s15480_s26 }
 0x340   : > { %p14496_p9 = pnand %p14494_p11, %p19536_p10  ;;  %p14501_p8 = por %p14500_p13, %p14499_p4 }
 0x342   : > { %p14497_p12 = pneg %p14496_p9  ;;  %p14503_p6 = por %p14502_p3, %p14501_p8 }
 0x344   : > { %p14504_p7 = pnand %p14503_p6, %p14497_p12 }
 0x346   : > { %14507 = shalt.err (!%p14504_p7)
}
 0x347   : > { %s14508_s3 = scalar_lea.vmem %s15484_s13, 512  ;;  %s14767_s8 = smov [#allocation8]  }
 0x348   : > { %p14509_p1 = scmp.ne.s32.totalorder %s15484_s13, %s14508_s3  ;;  %s14513_s12 = sshll.u32 %s14767_s8, 4  ;;  %s14514_s12 = int_to_ptr.vmem [resolvable:$false] %s14513_s12 }
 0x349   : > { %s14515_s27 = scalar_lea.vmem %s14514_s12, 1024  ;;  %p14516_p11 = scmp.lt.s32.totalorder %s15484_s13, %s14514_s12 }
 0x34a   : > { %p14511_p0 = pnand %p14509_p1, %p19536_p10  ;;  %p14517_p9 = scmp.lt.s32.totalorder %s14515_s27, %s14508_s3 }
 0x34c   : > { %p14512_p5 = pneg %p14511_p0  ;;  %p14518_p4 = por %p14517_p9, %p14516_p11 }
 0x34e   : > { %p14519_p13 = pnand %p14518_p4, %p14512_p5 }
 0x350   : > { %14522 = shalt.err (!%p14519_p13)
}
 0x351   : > { %s19542_s9 = smov 4   ;;  %s19543_s18 = smov 64  }
 0x352   : > { %12782 = dma.hbm_to_vmem [thread:$0]  (!%p19537_p2), %s15480_s26, 512, %s15484_s13, %s15488_s21, %s19543_s18, %s19543_s18, %s19542_s9  }
 0x353   : > { %p19544_p10 = scmp.ne.s32.totalorder %s19511_s7, 0 }
 0x355   : > { %1232 = sbr.rel (%p19544_p10) target bundleno = 5031 (0x13a7), region = 140 }
 0x35c   : > { %s15514_s20 = sand.u32 1, %s14685_s22   ;;  %p19545_p12 = scmp.ne.s32.totalorder %s19515_s25, 0 }
 0x35d   : > { %s11668_s10 = sshll.u32 %s15514_s20, 7  ;;  %s1235_s30 = scalar_lea.sflag [#allocation3], %s15514_s20 }
 0x35e   : > { %s15518_s6 = scalar_lea.vmem [#allocation2], %s11668_s10 }
 0x35f   : > { %14604 = dma.done.wait (%p19545_p12), %s1235_s30, 2048  }
 0x360   : > { %14606 = vsyncadd (%p19545_p12), %s1235_s30, 4294965248  ;;  %s1243_s4 = sand.u32 1, %s14983_s2   ;;  %s11669_s7 = sshll.u32 %s15514_s20, 6 }
 0x361   : > { %s1244_s26 = scalar_lea.sflag [#allocation6], %s1243_s4  ;;  %s15526_s13 = scalar_lea.vmem [#allocation5], %s11669_s7 }
 0x362   : > { %14608 = dma.done.wait (%p19545_p12), %s1244_s26, 1280  }
 0x363   : > { %14610 = vsyncadd (%p19545_p12), %s1244_s26, 4294966016  ;;  %s11670_s21 = sshll.u32 %s15514_s20, 4  ;;  %s11671_s16 = sshll.u32 %s15514_s20, 5 }
 0x364   : > { %s15536_s14 = scalar_lea.vmem [#allocation7], %s11670_s21  ;;  %s1262_s3 = scalar_lea.sflag [#allocation9], %s1243_s4 }
 0x365   : > { %s15540_s8 = scalar_lea.vmem [#allocation8], %s11671_s16 }
 0x366   : > { %14612 = dma.done.wait (%p19545_p12), %s1262_s3, 512  }
 0x367   : > { %14614 = vsyncadd (%p19545_p12), %s1262_s3, 4294966784  ;;  %p19546_p2 = scmp.eq.s32.totalorder %s14983_s2, 0 }
 0x369   : > { %14616 = dma.done.wait (%p19546_p2), [#allocation9], 64   ;;  %p19547_p8 = pmov %p19546_p2 }
 0x36a   : > { %p19548_p3 = pmov %p19546_p2 }
 0x36b   : > { %14618 = vsyncadd (%p19547_p8), [#allocation9], 4294967232 }
 0x36c   : > { %14620 = dma.done.wait (%p19548_p3), [#allocation12], 384   ;;  %p19549_p6 = pmov %p19546_p2 }
 0x36d   : > { %p19550_p7 = pmov %p19546_p2 }
 0x36e   : > { %14622 = vsyncadd (%p19549_p6), [#allocation12], 4294966912 }
 0x36f   : > { %14624 = dma.done.wait (%p19550_p7), [#allocation15], 272   ;;  %p19551_p1 = pmov %p19546_p2 }
 0x371   : > { %14626 = vsyncadd (%p19551_p1), [#allocation15], 4294967024  ;;  %p19552_p0 = pmov %p19551_p1 }
 0x373   : > { %14628 = dma.done.wait (%p19552_p0), [#allocation18], 80   ;;  %p19553_p5 = pmov %p19552_p0 }
 0x374   : > { %p19554_p11 = pmov %p19552_p0 }
 0x375   : > { %14630 = vsyncadd (%p19553_p5), [#allocation18], 4294967216 }
 0x376   : > { %14632 = dma.done.wait (%p19554_p11), [#allocation21], 192   ;;  %p19555_p9 = pmov %p19552_p0 }
 0x377   : > { %p19556_p4 = pmov %p19552_p0 }
 0x378   : > { %14634 = vsyncadd (%p19555_p9), [#allocation21], 4294967104 }
 0x379   : > { %14636 = dma.done.wait (%p19556_p4), [#allocation24], 272   ;;  %p19557_p13 = pmov %p19552_p0 }
 0x37a   : > { %p19558_p10 = pmov %p19552_p0 }
 0x37b   : > { %14638 = vsyncadd (%p19557_p13), [#allocation24], 4294967024 }
 0x37c   : > { %14640 = dma.done.wait (%p19558_p10), [#allocation27], 80   ;;  %p19559_p12 = pmov %p19552_p0 }
 0x37d   : > { %p19560_p2 = pmov %p19552_p0 }
 0x37e   : > { %14642 = vsyncadd (%p19559_p12), [#allocation27], 4294967216 }
 0x37f   : > { %14644 = dma.done.wait (%p19560_p2), [#allocation30], 16400   ;;  %p19561_p8 = pmov %p19552_p0 }
 0x380   : > { %p19562_p3 = pmov %p19552_p0 }
 0x381   : > { %14646 = vsyncadd (%p19561_p8), [#allocation30], 4294950896 }
 0x382   : > { %14648 = dma.done.wait (%p19562_p3), [#allocation33], 80   ;;  %p19563_p6 = pmov %p19552_p0 }
 0x383   : > { %p19564_p7 = pmov %p19552_p0 }
 0x384   : > { %14650 = vsyncadd (%p19563_p6), [#allocation33], 4294967216 }
 0x385   : > { %14652 = dma.done.wait (%p19564_p7), [#allocation36], 192   ;;  %p19565_p1 = pmov %p19552_p0 }
 0x387   : > { %14654 = vsyncadd (%p19565_p1), [#allocation36], 4294967104 }
 0x388   : > { %14656 = dma.done.wait (%p19552_p0), [#allocation39], 144   ;;  %p19566_p5 = pmov %p19552_p0 }
 0x389   : > { %p19567_p11 = pmov %p19552_p0 }
 0x38a   : > { %14658 = vsyncadd (%p19566_p5), [#allocation39], 4294967152 }
 0x38b   : > { %14660 = dma.done.wait (%p19567_p11), [#allocation42], 256   ;;  %p19568_p9 = pmov %p19552_p0 }
 0x38c   : > { %p19569_p4 = pmov %p19552_p0 }
 0x38d   : > { %14662 = vsyncadd (%p19568_p9), [#allocation42], 4294967040 }
 0x38e   : > { %14664 = dma.done.wait (%p19569_p4), [#allocation45], 528   ;;  %p19570_p13 = pmov %p19552_p0 }
 0x38f   : > { %p19571_p10 = pmov %p19552_p0 }
 0x390   : > { %14666 = vsyncadd (%p19570_p13), [#allocation45], 4294966768 }
 0x391   : > { %14668 = dma.done.wait (%p19571_p10), [#allocation48], 16   ;;  %p19572_p12 = pmov %p19552_p0 }
 0x392   : > { %v19326_v0 = vmov 2   ;;  %v14769_v1 = vmov 1966171168   ;;  %v1514_v3 = vlaneseq  ;;  %v19322_v6 = vmov 0   ;;  %v2005_v7 = vld [vmem:[#allocation11] sm:$0x3f] }
 0x393   : > { %14670 = vsyncadd (%p19572_p12), [#allocation48], 4294967280  ;;  %12972 = vset.pattern.permute.xlu1 %v19326_v0  ;;  %v1512_v2 = vunpack.c.l.s4 %v14769_v1  ;;  %12970 = vset.pattern.permute.xlu0 %v19322_v6  ;;  %vm2072_vm0 = vcmask 1042432   ;;  %vm2047_vm1 = vcmask 48128   ;;  %vm5843_vm2 = vcmask 44032   ;;  %v15624_v22 = vld [vmem:[%s15536_s14] sm:$0xff] }
 0x394   : > { %v15603_v5 = vshrl.u32 %v1514_v3, 7  ;;  %v1490_v8 = vld [vmem:[%s15526_s13] sm:$0xf]  ;;  %v1491_v9 = vld [vmem:[%s15526_s13 + $0x4] sm:$0xf]  ;;  %v2006_v10 = vpack.c.bf16 %v2005_v7, %v2005_v7  ;;  %v1475_v48 = vld [vmem:[%s15518_s6 + $0x8] sm:$0xff] }
 0x395   : > { %v1513_v4 = vunpack.c.0.s8 %v1512_v2  ;;  %v15608_v11 = vcombine.low %v1490_v8, %v1491_v9  ;;  %v1492_v12 = vld [vmem:[%s15526_s13 + $0x8] sm:$0xf]  ;;  %v1493_v13 = vld [vmem:[%s15526_s13 + $0xc] sm:$0xf]  ;;  %v5846_v15 = vsel %vm5843_vm2, %v1490_v8, 4286644096 }
 0x396   : > { %19573 = vst [vmem:[#allocation104_spill] sm:$0xff] %v15603_v5  ;;  %v5859_v16 = vsel %vm5843_vm2, %v1491_v9, 4286644096  ;;  %v15617_v17 = vcombine.low %v1492_v12, %v1493_v13  ;;  %12556 = vmatprep.subr.msk.bf16.mxu0 %vm2072_vm0, %v2006_v10  ;;  %v2074_v18 = vsel %vm2072_vm0, %v2006_v10, 0  ;;  %v5848_v19 = vunpack.i.l.bf16 %v5846_v15  ;;  %v1494_v23 = vld [vmem:[%s15526_s13 + $0x10] sm:$0xf] }
 0x397   : > { %v15613_v14 = vsub.s32 %v1513_v4, %v15603_v5  ;;  %12120 = vmatprep.mubr.msk.bf16.mxu0 %vm2047_vm1, %v15608_v11  ;;  %v5849_v20 = vunpack.i.h.bf16 %v5846_v15  ;;  %v5861_v21 = vunpack.i.l.bf16 %v5859_v16  ;;  %v1495_v24 = vld [vmem:[%s15526_s13 + $0x14] sm:$0xf]  ;;  %12119 = vmatpush3.bf16.msra.mxu0 %v2074_v18  ;;  %v5862_v25 = vunpack.i.h.bf16 %v5859_v16  ;;  %v1474_v34 = vld [vmem:[%s15518_s6] sm:$0xff]  ;;  %v1496_v38 = vld [vmem:[%s15526_s13 + $0x18] sm:$0xf]  ;;  %s14774_s2 = smov 112  }
 0x398   : > { %v15631_v28 = vsub.s32 0, %v15603_v5  ;;  %v15633_v30 = vcombine.low %v1494_v23, %v1495_v24  ;;  %v1497_v39 = vld [vmem:[%s15526_s13 + $0x1c] sm:$0xf]  ;;  %v19324_v54 = vmov 1   ;;  %v1498_v59 = vld [vmem:[%s15526_s13 + $0x20] sm:$0xf]  ;;  %v1510_v15 = vcombine.high %v15624_v22, %v15624_v22 }
 0x399   : > { %v5850_v26 = vmax.f32 %v5848_v19, %v5849_v20  ;;  %v1517_v27 = vrot.slane %v15624_v22, %v15613_v14  ;;  %v5863_v29 = vmax.f32 %v5861_v21, %v5862_v25  ;;  %v15645_v46 = vcombine.low %v1496_v38, %v1497_v39  ;;  %v1499_v60 = vld [vmem:[%s15526_s13 + $0x24] sm:$0xf]  ;;  %v1476_v1 = vld [vmem:[%s15518_s6 + $0x10] sm:$0xff]  ;;  %v1500_v4 = vld [vmem:[%s15526_s13 + $0x28] sm:$0xf]  ;;  %s14775_s25 = smov 96  }
 0x39a   : > { %19574 = vst [vmem:[#allocation105_spill] sm:$0xff] %v15631_v28  ;;  %12121 = vmatmul.mubr.msk.bf16.vlgmr.msra.gmra.mrb[0].mxu0 %vm2047_vm1, %v15617_v17  ;;  %vm6087_vm3 = vcmask 1041409   ;;  %v15660_v2 = vcombine.low %v1498_v59, %v1499_v60  ;;  %v1501_v7 = vld [vmem:[%s15526_s13 + $0x2c] sm:$0xf]  ;;  %v1477_v12 = vld [vmem:[%s15518_s6 + $0x18] sm:$0xff]  ;;  %v1524_v20 = vrot.slane %v1510_v15, %v15613_v14  ;;  %vm14773_vm4 = vmmov 0  }
 0x39b   : > { %v5851_v31 = vrot.slane %v5850_v26, 4  ;;  %v1533_v32 = vrot.slane %v1517_v27, %v15613_v14  ;;  %v5864_v33 = vrot.slane %v5863_v29, 4  ;;  %12124 = vmatprep.mubr.msk.bf16.mxu0 %vm2047_vm1, %v15633_v30  ;;  %v1525_v42 = vcombine.high %v1517_v27, %v1517_v27  ;;  %v1502_v16 = vld [vmem:[%s15526_s13 + $0x30] sm:$0xf]  ;;  %v1503_v18 = vld [vmem:[%s15526_s13 + $0x34] sm:$0xf] }
 0x39c   : > { %v15668_v9 = vcombine.low %v1500_v4, %v1501_v7  ;;  %v15680_v21 = vcombine.low %v1502_v16, %v1503_v18  ;;  %v1540_v23 = vrot.slane %v1524_v20, %v15613_v14  ;;  %v1504_v25 = vld [vmem:[%s15526_s13 + $0x38] sm:$0xf]  ;;  %v1505_v22 = vld [vmem:[%s15526_s13 + $0x3c] sm:$0xf]  ;;  %v1484_v7 = vld [vmem:[%s15518_s6 + $0x50] sm:$0xff]  ;;  %vm19461_vm5 = vcmask 130048  }
 0x39d   : > { %v5852_v35 = vmax.f32 %v5850_v26, %v5851_v31  ;;  %v1611_v36 = vrot.slane %v1533_v32, %v15631_v28  ;;  %v5865_v37 = vmax.f32 %v5863_v29, %v5864_v33  ;;  %v1547_v45 = vrot.slane %v1525_v42, %v15613_v14  ;;  %v1478_v26 = vld [vmem:[%s15518_s6 + $0x20] sm:$0xff]  ;;  %v1479_v33 = vld [vmem:[%s15518_s6 + $0x28] sm:$0xff]  ;;  %s16884_s12 = scalar_lea.vmem [#allocation49], %s11670_s21  ;;  %s14776_s27 = smov 1  }
 0x39e   : > { %v1555_v62 = vcombine.high %v1533_v32, %v1533_v32  ;;  %v1627_v24 = vrot.slane %v1540_v23, %v15631_v28  ;;  %v15692_v27 = vcombine.low %v1504_v25, %v1505_v22  ;;  %v1526_v31 = vcombine.high %v1524_v20, %v1524_v20  ;;  %v1487_v20 = vld [vmem:[%s15518_s6 + $0x68] sm:$0xff]  ;;  %s14779_s9 = smov 32   ;;  %s14780_s18 = smov 64  }
 0x39f   : > { %v5853_v40 = vrot.slane %v5852_v35, 2  ;;  %v1688_v41 = vsub.f32 %v1474_v34, %v1611_v36  ;;  %v5866_v43 = vrot.slane %v5865_v37, 2  ;;  %v1615_v50 = vrot.slane %v1547_v45, %v15631_v28  ;;  %v1507_v34 = vld [vmem:[%s15536_s14 + $0x8] sm:$0xff]  ;;  %s14781_s10 = smov 127   ;;  %s14782_s30 = smov 120  }
 0x3a0   : > { %v1619_v3 = vrot.slane %v1555_v62, %v15631_v28  ;;  %v1557_v10 = vcombine.high %v1547_v45, %v1547_v45  ;;  %v1692_v29 = vsub.f32 %v1478_v26, %v1627_v24  ;;  %v1554_v32 = vrot.slane %v1526_v31, %v15613_v14  ;;  %v1482_v62 = vld [vmem:[%s15518_s6 + $0x40] sm:$0xff]  ;;  %v1489_v24 = vld [vmem:[%s15518_s6 + $0x78] sm:$0xff]  ;;  %s19922_s4 = sld [smem:[#allocation101_spill]]  ;;  %s11117_s21 = scalar_lea.sflag [#allocation4], %s15514_s20 }
 0x3a1   : > { %v5854_v44 = vmax.f32 %v5852_v35, %v5853_v40  ;;  %1906 = vperm.xlu1 %12972, %v1688_v41   ;;  %1707 = vperm.xlu0 %12970, %v1688_v41   ;;  %v5867_v47 = vmax.f32 %v5865_v37, %v5866_v43  ;;  %v1689_v53 = vsub.f32 %v1475_v48, %v1615_v50  ;;  %v1483_v48 = vld [vmem:[%s15518_s6 + $0x48] sm:$0xff]  ;;  %vm3188_vm6 = vcmask 1043456   ;;  %p19923_p8 = scmp.ne.s32.totalorder %s19516_s15, 0  ;;  %s14783_s3 = smov [#allocation49]  }
 0x3a2   : > { %12125 = vmatmul.mubr.msk.bf16.gmra.mrb[4].mxu0 %vm2047_vm1, %v15645_v46  ;;  %v1690_v8 = vsub.f32 %v1476_v1, %v1619_v3  ;;  %v1623_v13 = vrot.slane %v1557_v10, %v15631_v28  ;;  %v1631_v35 = vrot.slane %v1554_v32, %v15631_v28  ;;  %v1558_v36 = vcombine.high %v1554_v32, %v1554_v32 }
 0x3a3   : > { %v5855_v49 = vrot.slane %v5854_v44, 1  ;;  %v5868_v51 = vrot.slane %v5867_v47, 1  ;;  %12128 = vmatprep.mubr.msk.bf16.mxu0 %vm2047_vm1, %v15660_v2  ;;  %v1556_v38 = vcombine.high %v1540_v23, %v1540_v23  ;;  %v1566_v40 = vrot.slane %v1507_v34, %v15613_v14 }
 0x3a4   : > { %v1691_v19 = vsub.f32 %v1477_v12, %v1623_v13  ;;  %v1693_v37 = vsub.f32 %v1479_v33, %v1631_v35  ;;  %v1639_v39 = vrot.slane %v1558_v36, %v15631_v28  ;;  %v1486_v13 = vld [vmem:[%s15518_s6 + $0x60] sm:$0xff]  ;;  %vm2990_vm7 = vcmask 64512  }
 0x3a5   : > { %v5856_v52 = vmax.f32 %v5854_v44, %v5855_v49  ;;  %12973 = vset.pattern.permute.xlu1 %v19322_v6  ;;  %12971 = vset.pattern.permute.xlu0 %v19324_v54  ;;  %v5869_v55 = vmax.f32 %v5867_v47, %v5868_v51  ;;  %v1574_v42 = vcombine.high %v1566_v40, %v1566_v40  ;;  %v1480_v47 = vld [vmem:[%s15518_s6 + $0x30] sm:$0xff]  ;;  %v1485_v51 = vld [vmem:[%s15518_s6 + $0x58] sm:$0xff]  ;;  %vm4262_vm8 = vcmask 56320  }
 0x3a6   : > { %1806 = vperm.xlu0 %12971, %v1688_v41   ;;  %1712 = vperm.xlu1 %12973, %v1689_v53   ;;  %v1481_v41 = vld [vmem:[%s15518_s6 + $0x38] sm:$0xff]  ;;  %v1635_v43 = vrot.slane %v1556_v38, %v15631_v28  ;;  %vm4663_vm9 = vcmask 23552   ;;  %vm6089_vm10 = vcmask 1042434   ;;  %vm6091_vm11 = vcmask 1043459  }
 0x3a7   : > { %v5857_v56 = vpack.i.bf16 %v5856_v52, %v5856_v52  ;;  %v5870_v57 = vpack.i.bf16 %v5869_v55, %v5869_v55  ;;  %v1695_v44 = vsub.f32 %v1481_v41, %v1639_v39  ;;  %v1596_v45 = vrot.slane %v1574_v42, %v15613_v14 }
 0x3a8   : > { %v1694_v52 = vsub.f32 %v1480_v47, %v1635_v43  ;;  %vm6093_vm12 = vcmask 1044484   ;;  %vm6095_vm13 = vcmask 1045509   ;;  %vm6097_vm14 = vcmask 1046534  }
 0x3a9   : > { %v6071_v58 = vunpack.c.l.b16 %v5857_v56  ;;  %v6072_v61 = vunpack.c.l.b16 %v5870_v57  ;;  %v1647_v49 = vrot.slane %v1596_v45, %v15631_v28  ;;  %v1606_v50 = vcombine.high %v1596_v45, %v1596_v45 }
 0x3aa   : > { %12974 = vset.pattern.permute.xlu1 %v19324_v54  ;;  %12129 = vmatmul.mubr.msk.bf16.gmra.mrb[8].mxu0 %vm2047_vm1, %v15668_v9  ;;  %v1582_v57 = vrot.slane %v1566_v40, %v15613_v14  ;;  %vm6099_vm15 = vcmask 1047559  }
 0x3ab   : > { %v15657_v63 = vsel %vm6087_vm3, %v6072_v61, %v6071_v58  ;;  %1810 = vperm.xlu1 %12974, %v1689_v53   ;;  %1818 = vperm.xlu0 %12971, %v1691_v19   ;;  %v1655_v55 = vrot.slane %v1606_v50, %v15631_v28  ;;  %v1559_v58 = vcombine.high %v1507_v34, %v1507_v34 }
 0x3ac   : > { %12132 = vmatprep.mubr.msk.bf16.mxu0 %vm2047_vm1, %v15680_v21  ;;  %v1643_v59 = vrot.slane %v1582_v57, %v15631_v28  ;;  %v1604_v60 = vcombine.high %v1582_v57, %v1582_v57 }
 0x3ad   : > { %v1699_v56 = vsub.f32 %v1485_v51, %v1655_v55  ;;  %v1573_v61 = vrot.slane %v1559_v58, %v15613_v14  ;;  %v15752_v55 = vsub.s32 1, %v15603_v5  ;;  %v15755_v58 = vsub.s32 2, %v15603_v5 }
 0x3ae   : > { %v1696_v1 = vsub.f32 %v1482_v62, %v1643_v59  ;;  %v1651_v3 = vrot.slane %v1604_v60, %v15631_v28 }
 0x3af   : > { %12975 = vset.pattern.permute.xlu1 %v19322_v6  ;;  %12978 = vset.pattern.permute.xlu0 %v19326_v0  ;;  %v1589_v4 = vrot.slane %v1573_v61, %v15613_v14  ;;  %19575 = vst [vmem:[#allocation106_spill] sm:$0xff] %v15752_v55  ;;  %19576 = vst [vmem:[#allocation107_spill] sm:$0xff] %v15755_v58 }
 0x3b0   : > { %1717 = vperm.xlu1 %12975, %v1690_v8   ;;  %1910 = vperm.xlu0 %12978, %v1689_v53   ;;  %v1697_v53 = vsub.f32 %v1483_v48, %v1647_v49  ;;  %v1698_v10 = vsub.f32 %v1484_v7, %v1651_v3 }
 0x3b1   : > { %v1659_v12 = vrot.slane %v1589_v4, %v15631_v28 }
 0x3b2   : > { %12133 = vmatmul.mubr.msk.bf16.gmra.mrb[12].mxu0 %vm2047_vm1, %v15692_v27 }
 0x3b3   : > { %v1700_v18 = vsub.f32 %v1486_v13, %v1659_v12 }
 0x3b4   : > { %12976 = vset.pattern.permute.xlu1 %v19324_v54  ;;  %1914 = vperm.xlu0 %12978, %v1690_v8  }
 0x3b5   : > { %1814 = vperm.xlu1 %12976, %v1690_v8   ;;  %v1575_v8 = vcombine.high %v1573_v61, %v1573_v61 }
 0x3b7   : > { %v1603_v15 = vrot.slane %v1575_v8, %v15613_v14  ;;  %v1605_v14 = vcombine.high %v1589_v4, %v1589_v4 }
 0x3b8   : > { %1922 = vperm.xlu0 %12978, %v1692_v29  }
 0x3b9   : > { %12977 = vset.pattern.permute.xlu1 %v19322_v6  ;;  %v1607_v16 = vcombine.high %v1603_v15, %v1603_v15  ;;  %v1667_v26 = vrot.slane %v1605_v14, %v15631_v28 }
 0x3ba   : > { %1722 = vperm.xlu1 %12977, %v1691_v19  }
 0x3bb   : > { %v1671_v23 = vrot.slane %v1607_v16, %v15631_v28  ;;  %v19328_v16 = vmov 0.0  }
 0x3bc   : > { %12982 = vset.pattern.permute.xlu0 %v19322_v6  ;;  %12136 = vmatprep.subr.bf16.mxu1 %v19328_v16 }
 0x3bd   : > { %1732 = vperm.xlu0 %12982, %v1693_v37   ;;  %v1703_v22 = vsub.f32 %v1489_v24, %v1671_v23  ;;  %12160 = vmatprep.subr.bf16.mxu0 %v19328_v16 }
 0x3be   : > { %12979 = vset.pattern.permute.xlu1 %v19326_v0  ;;  %12138 = vmatprep.mubr.msk.bf16.mxu1 %vm14773_vm4, %v19328_v16 }
 0x3bf   : > { %1918 = vperm.xlu1 %12979, %v1691_v19   ;;  %v1663_v19 = vrot.slane %v1603_v15, %v15631_v28  ;;  %12162 = vmatprep.mubr.msk.bf16.mxu0 %vm14773_vm4, %v19328_v16 }
 0x3c1   : > { %1742 = vperm.xlu0 %12982, %v1695_v44   ;;  %v1701_v25 = vsub.f32 %v1487_v20, %v1663_v19 }
 0x3c3   : > { %12980 = vset.pattern.permute.xlu1 %v19322_v6 }
 0x3c4   : > { %1727 = vperm.xlu1 %12980, %v1692_v29  }
 0x3c5   : > { %1752 = vperm.xlu0 %12982, %v1697_v53  }
 0x3c8   : > { %12981 = vset.pattern.permute.xlu1 %v19324_v54 }
 0x3c9   : > { %1822 = vperm.xlu1 %12981, %v1692_v29   ;;  %1762 = vperm.xlu0 %12982, %v1699_v56   ;;  %v1488_v29 = vld [vmem:[%s15518_s6 + $0x70] sm:$0xff] }
 0x3ca   : > { %v1702_v31 = vsub.f32 %v1488_v29, %v1667_v26 }
 0x3cd   : > { %1826 = vperm.xlu1 %12981, %v1693_v37   ;;  %12991 = vset.pattern.permute.xlu0 %v19326_v0 }
 0x3ce   : > { %1930 = vperm.xlu0 %12991, %v1694_v52  }
 0x3d1   : > { %12983 = vset.pattern.permute.xlu1 %v19326_v0 }
 0x3d2   : > { %1926 = vperm.xlu1 %12983, %v1693_v37   ;;  %1938 = vperm.xlu0 %12991, %v1696_v1  }
 0x3d6   : > { %12984 = vset.pattern.permute.xlu1 %v19322_v6  ;;  %1946 = vperm.xlu0 %12991, %v1698_v10  }
 0x3d7   : > { %1737 = vperm.xlu1 %12984, %v1694_v52  }
 0x3da   : > { %1954 = vperm.xlu0 %12991, %v1700_v18  }
 0x3db   : > { %12985 = vset.pattern.permute.xlu1 %v19324_v54 }
 0x3dc   : > { %1830 = vperm.xlu1 %12985, %v1694_v52  }
 0x3de   : > { %12996 = vset.pattern.permute.xlu0 %v19322_v6 }
 0x3df   : > { %1772 = vperm.xlu0 %12996, %v1701_v25  }
 0x3e0   : > { %1834 = vperm.xlu1 %12985, %v1695_v44  }
 0x3e3   : > { %1782 = vperm.xlu0 %12996, %v1703_v22  }
 0x3e4   : > { %12986 = vset.pattern.permute.xlu1 %v19326_v0 }
 0x3e5   : > { %1934 = vperm.xlu1 %12986, %v1695_v44  }
 0x3e7   : > { %13000 = vset.pattern.permute.xlu0 %v19326_v0 }
 0x3e8   : > { %1962 = vperm.xlu0 %13000, %v1702_v31  }
 0x3e9   : > { %12987 = vset.pattern.permute.xlu1 %v19322_v6 }
 0x3ea   : > { %1747 = vperm.xlu1 %12987, %v1696_v1  }
 0x3ee   : > { %12988 = vset.pattern.permute.xlu1 %v19324_v54 }
 0x3ef   : > { %1838 = vperm.xlu1 %12988, %v1696_v1  }
 0x3f3   : > { %1842 = vperm.xlu1 %12988, %v1697_v53  }
 0x3f7   : > { %12989 = vset.pattern.permute.xlu1 %v19326_v0 }
 0x3f8   : > { %1942 = vperm.xlu1 %12989, %v1697_v53  }
 0x3fc   : > { %12990 = vset.pattern.permute.xlu1 %v19322_v6 }
 0x3fd   : > { %1757 = vperm.xlu1 %12990, %v1698_v10  }
 0x401   : > { %12992 = vset.pattern.permute.xlu1 %v19324_v54 }
 0x402   : > { %1846 = vperm.xlu1 %12992, %v1698_v10  }
 0x406   : > { %1850 = vperm.xlu1 %12992, %v1699_v56  }
 0x40a   : > { %12993 = vset.pattern.permute.xlu1 %v19326_v0 }
 0x40b   : > { %1950 = vperm.xlu1 %12993, %v1699_v56   ;;  %v1704_v56 = vld [vmem:[#allocation10] sm:$0x7] }
 0x40c   : > { %v15758_v59 = vrot.slane %v1704_v56, %v15631_v28  ;;  %v15761_v60 = vrot.slane %v1704_v56, %v15752_v55  ;;  %v15766_v62 = vrot.slane %v1704_v56, %v15755_v58 }
 0x40f   : > { %12994 = vset.pattern.permute.xlu1 %v19322_v6 }
 0x410   : > { %1767 = vperm.xlu1 %12994, %v1700_v18  }
 0x414   : > { %12995 = vset.pattern.permute.xlu1 %v19324_v54 }
 0x415   : > { %1854 = vperm.xlu1 %12995, %v1700_v18  }
 0x419   : > { %1858 = vperm.xlu1 %12995, %v1701_v25  }
 0x41d   : > { %12997 = vset.pattern.permute.xlu1 %v19326_v0 }
 0x41e   : > { %1958 = vperm.xlu1 %12997, %v1701_v25  }
 0x420   : > { %v1907_v32 = vpop.permute.xlu1 %1906  ;;  %v1708_v37 = vpop.permute.xlu0 %1707 }
 0x421   : > { %v1789_v3 = vmul.f32 %v15758_v59, %v1708_v37  ;;  %v1973_v19 = vmul.f32 %v15766_v62, %v1907_v32 }
 0x422   : > { %12998 = vset.pattern.permute.xlu1 %v19322_v6 }
 0x423   : > { %1777 = vperm.xlu1 %12998, %v1702_v31  }
 0x425   : > { %v1713_v33 = vpop.permute.xlu1 %1712  ;;  %v1807_v39 = vpop.permute.xlu0 %1806 }
 0x426   : > { %v1790_v1 = vmul.f32 %v15758_v59, %v1713_v33  ;;  %v1873_v4 = vmul.f32 %v15761_v60, %v1807_v39 }
 0x427   : > { %12999 = vset.pattern.permute.xlu1 %v19324_v54 }
 0x428   : > { %1862 = vperm.xlu1 %12999, %v1702_v31   ;;  %v1889_v24 = vadd.f32 %v1873_v4, %v1789_v3 }
 0x42a   : > { %v1811_v34 = vpop.permute.xlu1 %1810  ;;  %v1819_v41 = vpop.permute.xlu0 %1818 }
 0x42b   : > { %v1874_v8 = vmul.f32 %v15761_v60, %v1811_v34  ;;  %v1876_v15 = vmul.f32 %v15761_v60, %v1819_v41 }
 0x42c   : > { %1866 = vperm.xlu1 %12999, %v1703_v22  }
 0x42d   : > { %v1890_v20 = vadd.f32 %v1874_v8, %v1790_v1 }
 0x42f   : > { %v1718_v35 = vpop.permute.xlu1 %1717  ;;  %v1911_v43 = vpop.permute.xlu0 %1910 }
 0x430   : > { %13001 = vset.pattern.permute.xlu1 %v19326_v0  ;;  %v1791_v10 = vmul.f32 %v15758_v59, %v1718_v35  ;;  %v1974_v26 = vmul.f32 %v15766_v62, %v1911_v43 }
 0x431   : > { %1966 = vperm.xlu1 %13001, %v1703_v22  }
 0x432   : > { %v1990_v43 = vadd.f32 %v1974_v26, %v1890_v20 }
 0x433   : > { %v1915_v45 = vpop.permute.xlu0 %1914 }
 0x434   : > { %v1815_v36 = vpop.permute.xlu1 %1814  ;;  %v1975_v29 = vmul.f32 %v15766_v62, %v1915_v45 }
 0x435   : > { %13002 = vset.pattern.permute.xlu1 %v19322_v6  ;;  %v1875_v12 = vmul.f32 %v15761_v60, %v1815_v36 }
 0x437   : > { %v1923_v48 = vpop.permute.xlu0 %1922  ;;  %v1891_v23 = vadd.f32 %v1875_v12, %v1791_v10 }
 0x439   : > { %v1723_v38 = vpop.permute.xlu1 %1722 }
 0x43a   : > { %v1792_v13 = vmul.f32 %v15758_v59, %v1723_v38  ;;  %v1989_v38 = vadd.f32 %v1973_v19, %v1889_v24 }
 0x43c   : > { %v1733_v50 = vpop.permute.xlu0 %1732  ;;  %v1892_v14 = vadd.f32 %v1876_v15, %v1792_v13 }
 0x43e   : > { %v1919_v40 = vpop.permute.xlu1 %1918 }
 0x43f   : > { %v1976_v22 = vmul.f32 %v15766_v62, %v1919_v40  ;;  %v1991_v40 = vadd.f32 %v1975_v29, %v1891_v23 }
 0x440   : > { %v1743_v53 = vpop.permute.xlu0 %1742 }
 0x441   : > { %v1796_v34 = vmul.f32 %v15758_v59, %v1743_v53 }
 0x443   : > { %v1728_v42 = vpop.permute.xlu1 %1727 }
 0x444   : > { %v15763_v61 = vpop.permute.xlu0 %1752  ;;  %v1793_v31 = vmul.f32 %v15758_v59, %v1728_v42  ;;  %v1992_v42 = vadd.f32 %v1976_v22, %v1892_v14 }
 0x448   : > { %v1823_v44 = vpop.permute.xlu1 %1822  ;;  %v15778_v18 = vpop.permute.xlu0 %1762 }
 0x449   : > { %v1877_v33 = vmul.f32 %v15761_v60, %v1823_v44 }
 0x44c   : > { %v1827_v47 = vpop.permute.xlu1 %1826 }
 0x44d   : > { %v1931_v39 = vpop.permute.xlu0 %1930  ;;  %v1878_v45 = vmul.f32 %v15761_v60, %v1827_v47 }
 0x44e   : > { %v1979_v8 = vmul.f32 %v15766_v62, %v1931_v39 }
 0x451   : > { %v15749_v49 = vpop.permute.xlu1 %1926 }
 0x452   : > { %v1978_v47 = vmul.f32 %v15766_v62, %v15749_v49 }
 0x456   : > { %v1738_v51 = vpop.permute.xlu1 %1737 }
 0x457   : > { %v1795_v35 = vmul.f32 %v15758_v59, %v1738_v51  ;;  %v1977_v51 = vmul.f32 %v15766_v62, %v1923_v48 }
 0x45b   : > { %v1831_v52 = vpop.permute.xlu1 %1830 }
 0x45c   : > { %v1879_v32 = vmul.f32 %v15761_v60, %v1831_v52  ;;  %v1794_v52 = vmul.f32 %v15758_v59, %v1733_v50 }
 0x45e   : > { %v1895_v1 = vadd.f32 %v1879_v32, %v1795_v35  ;;  %v1894_v48 = vadd.f32 %v1878_v45, %v1794_v52 }
 0x45f   : > { %v1835_v57 = vpop.permute.xlu1 %1834 }
 0x460   : > { %v1880_v36 = vmul.f32 %v15761_v60, %v1835_v57  ;;  %v1893_v57 = vadd.f32 %v1877_v33, %v1793_v31  ;;  %v1995_v24 = vadd.f32 %v1979_v8, %v1895_v1  ;;  %v1994_v33 = vadd.f32 %v1978_v47, %v1894_v48 }
 0x462   : > { %v1896_v3 = vadd.f32 %v1880_v36, %v1796_v34  ;;  %v1993_v14 = vadd.f32 %v1977_v51, %v1893_v57 }
 0x464   : > { %v1935_v7 = vpop.permute.xlu1 %1934 }
 0x465   : > { %v1980_v10 = vmul.f32 %v15766_v62, %v1935_v7 }
 0x467   : > { %v1996_v22 = vadd.f32 %v1980_v10, %v1896_v3 }
 0x469   : > { %v1748_v25 = vpop.permute.xlu1 %1747 }
 0x46a   : > { %v1797_v39 = vmul.f32 %v15758_v59, %v1748_v25 }
 0x46d   : > { %v12122_v37 = vpop.f32.mrb[0].mxu0 }
 0x46e   : > { %v2110_v41 = vpop.f32.mrb[1].mxu0  ;;  %v1839_v44 = vpop.permute.xlu1 %1838  ;;  %v2175_v12 = vadd.f32 %v12122_v37, %v1991_v40 }
 0x46f   : > { %v2173_v53 = vadd.f32 %v2110_v41, %v1989_v38  ;;  %v12123_v56 = vpop.f32.mrb[2].mxu0  ;;  %v1881_v40 = vmul.f32 %v15761_v60, %v1839_v44 }
 0x470   : > { %v2113_v4 = vpop.f32.mrb[3].mxu0  ;;  %v2176_v50 = vadd.f32 %v12123_v56, %v1992_v42  ;;  %v15807_v23 = vpack.c.bf16 %v2175_v12, %v2175_v12  ;;  %v1939_v42 = vpop.permute.xlu0 %1938 }
 0x471   : > { %v15799_v13 = vpack.c.bf16 %v2173_v53, %v2173_v53  ;;  %v2174_v15 = vadd.f32 %v2113_v4, %v1990_v43  ;;  %v1798_v43 = vmul.f32 %v15758_v59, %v15763_v61  ;;  %v1897_v25 = vadd.f32 %v1881_v40, %v1797_v39 }
 0x472   : > { %v1843_v19 = vpop.permute.xlu1 %1842  ;;  %v15811_v29 = vpack.c.bf16 %v2176_v50, %v2176_v50  ;;  %v1981_v44 = vmul.f32 %v15766_v62, %v1939_v42 }
 0x473   : > { %v15803_v20 = vpack.c.bf16 %v2174_v15, %v2174_v15  ;;  %2206 = vrot.lane.b32.xlu1 %v15799_v13, %s14774_s2  ;;  %v1882_v45 = vmul.f32 %v15761_v60, %v1843_v19 }
 0x474   : > { %v1947_v56 = vpop.permute.xlu0 %1946  ;;  %v1997_v8 = vadd.f32 %v1981_v44, %v1897_v25 }
 0x475   : > { %v12126_v7 = vpop.f32.mrb[4].mxu0  ;;  %2256 = vrot.lane.b32.xlu0 %v15803_v20, %s14774_s2  ;;  %v1898_v57 = vadd.f32 %v1882_v45, %v1798_v43  ;;  %v1983_v10 = vmul.f32 %v15766_v62, %v1947_v56 }
 0x476   : > { %v2126_v26 = vpop.f32.mrb[5].mxu0  ;;  %v2179_v32 = vadd.f32 %v12126_v7, %v1995_v24 }
 0x477   : > { %v2177_v49 = vadd.f32 %v2126_v26, %v1993_v14  ;;  %v12127_v31 = vpop.f32.mrb[6].mxu0  ;;  %2305 = vrot.lane.b32.xlu1 %v15807_v23, %s14774_s2  ;;  %v1943_v34 = vpop.permute.xlu1 %1942 }
 0x478   : > { %v2129_v35 = vpop.f32.mrb[7].mxu0  ;;  %v2180_v37 = vadd.f32 %v12127_v31, %v1996_v22  ;;  %v15828_v52 = vpack.c.bf16 %v2179_v32, %v2179_v32  ;;  %v1982_v61 = vmul.f32 %v15766_v62, %v1943_v34  ;;  %v1955_v45 = vpop.permute.xlu0 %1954 }
 0x479   : > { %v15815_v36 = vpack.c.bf16 %v2177_v49, %v2177_v49  ;;  %v2178_v38 = vadd.f32 %v2129_v35, %v1994_v33  ;;  %2354 = vrot.lane.b32.xlu0 %v15811_v29, %s14774_s2  ;;  %v1800_v33 = vmul.f32 %v15758_v59, %v15778_v18 }
 0x47a   : > { %v15830_v53 = vpack.c.bf16 %v2180_v37, %v2180_v37  ;;  %v1998_v19 = vadd.f32 %v1982_v61, %v1898_v57 }
 0x47b   : > { %v15821_v41 = vpack.c.bf16 %v2178_v38, %v2178_v38  ;;  %2403 = vrot.lane.b32.xlu1 %v15815_v36, %s14774_s2 }
 0x47c   : > { %v1758_v51 = vpop.permute.xlu1 %1757 }
 0x47d   : > { %2452 = vrot.lane.b32.xlu0 %v15821_v41, %s14774_s2  ;;  %v1799_v1 = vmul.f32 %v15758_v59, %v1758_v51  ;;  %v12130_v15 = vpop.f32.mrb[8].mxu0 }
 0x47e   : > { %v2142_v48 = vpop.f32.mrb[9].mxu0 }
 0x47f   : > { %2501 = vrot.lane.b32.xlu1 %v15828_v52, %s14774_s2  ;;  %v2181_v50 = vadd.f32 %v2142_v48, %v1997_v8  ;;  %v12131_v24 = vpop.f32.mrb[10].mxu0 }
 0x480   : > { %v2145_v22 = vpop.f32.mrb[11].mxu0 }
 0x481   : > { %v1847_v3 = vpop.permute.xlu1 %1846  ;;  %2550 = vrot.lane.b32.xlu0 %v15830_v53, %s14774_s2  ;;  %v15844_v26 = vpack.c.bf16 %v2181_v50, %v2181_v50  ;;  %v2182_v49 = vadd.f32 %v2145_v22, %v1998_v19 }
 0x482   : > { %v1883_v4 = vmul.f32 %v15761_v60, %v1847_v3  ;;  %v1773_v3 = vpop.permute.xlu0 %1772 }
 0x483   : > { %v15848_v34 = vpack.c.bf16 %v2182_v49, %v2182_v49  ;;  %2599 = vrot.lane.b32.xlu1 %v15844_v26, %s14774_s2 }
 0x484   : > { %v1899_v12 = vadd.f32 %v1883_v4, %v1799_v1  ;;  %v1985_v1 = vmul.f32 %v15766_v62, %v1955_v45 }
 0x485   : > { %v1851_v47 = vpop.permute.xlu1 %1850  ;;  %2648 = vrot.lane.b32.xlu0 %v15848_v34, %s14774_s2  ;;  %v12134_v25 = vpop.f32.mrb[12].mxu0 }
 0x486   : > { %v1999_v7 = vadd.f32 %v1983_v10, %v1899_v12  ;;  %v1884_v14 = vmul.f32 %v15761_v60, %v1851_v47  ;;  %v2158_v56 = vpop.f32.mrb[13].mxu0  ;;  %v1802_v10 = vmul.f32 %v15758_v59, %v1773_v3 }
 0x487   : > { %v12135_v57 = vpop.f32.mrb[14].mxu0 }
 0x488   : > { %v2183_v31 = vadd.f32 %v12130_v15, %v1999_v7  ;;  %v1900_v37 = vadd.f32 %v1884_v14, %v1800_v33  ;;  %v2161_v4 = vpop.f32.mrb[15].mxu0  ;;  %v1783_v7 = vpop.permute.xlu0 %1782 }
 0x48a   : > { %v1951_v35 = vpop.permute.xlu1 %1950  ;;  %v15852_v32 = vpack.c.bf16 %v2183_v31, %v2183_v31 }
 0x48b   : > { %v1984_v38 = vmul.f32 %v15766_v62, %v1951_v35 }
 0x48c   : > { %2697 = vrot.lane.b32.xlu1 %v15852_v32, %s14774_s2  ;;  %v1963_v33 = vpop.permute.xlu0 %1962 }
 0x48d   : > { %v2000_v39 = vadd.f32 %v1984_v38, %v1900_v37 }
 0x48f   : > { %v1768_v40 = vpop.permute.xlu1 %1767  ;;  %v2184_v18 = vadd.f32 %v12131_v24, %v2000_v39  ;;  %v1987_v39 = vmul.f32 %v15766_v62, %v1963_v33 }
 0x490   : > { %v1801_v43 = vmul.f32 %v15758_v59, %v1768_v40 }
 0x491   : > { %v15859_v42 = vpack.c.bf16 %v2184_v18, %v2184_v18  ;;  %v1804_v18 = vmul.f32 %v15758_v59, %v1783_v7 }
 0x493   : > { %2746 = vrot.lane.b32.xlu0 %v15859_v42, %s14774_s2 }
 0x494   : > { %v1855_v51 = vpop.permute.xlu1 %1854 }
 0x495   : > { %v1885_v44 = vmul.f32 %v15761_v60, %v1855_v51 }
 0x497   : > { %v1901_v61 = vadd.f32 %v1885_v44, %v1801_v43 }
 0x498   : > { %v1859_v8 = vpop.permute.xlu1 %1858 }
 0x499   : > { %v2001_v12 = vadd.f32 %v1985_v1, %v1901_v61  ;;  %v1886_v15 = vmul.f32 %v15761_v60, %v1859_v8 }
 0x49b   : > { %v2185_v19 = vadd.f32 %v2158_v56, %v2001_v12  ;;  %v1902_v47 = vadd.f32 %v1886_v15, %v1802_v10 }
 0x49d   : > { %v15868_v48 = vpack.c.bf16 %v2185_v19, %v2185_v19  ;;  %v1959_v50 = vpop.permute.xlu1 %1958 }
 0x49e   : > { %v1986_v24 = vmul.f32 %v15766_v62, %v1959_v50 }
 0x49f   : > { %2795 = vrot.lane.b32.xlu1 %v15868_v48, %s14774_s2 }
 0x4a0   : > { %v2002_v14 = vadd.f32 %v1986_v24, %v1902_v47 }
 0x4a2   : > { %v1778_v22 = vpop.permute.xlu1 %1777  ;;  %v2186_v49 = vadd.f32 %v2161_v4, %v2002_v14 }
 0x4a3   : > { %v1803_v35 = vmul.f32 %v15758_v59, %v1778_v22 }
 0x4a4   : > { %v15873_v31 = vpack.c.bf16 %v2186_v49, %v2186_v49 }
 0x4a6   : > { %2844 = vrot.lane.b32.xlu0 %v15873_v31, %s14774_s2 }
 0x4a7   : > { %v1863_v37 = vpop.permute.xlu1 %1862 }
 0x4a8   : > { %v1887_v38 = vmul.f32 %v15761_v60, %v1863_v37 }
 0x4aa   : > { %v1903_v40 = vadd.f32 %v1887_v38, %v1803_v35 }
 0x4ab   : > { %v1867_v43 = vpop.permute.xlu1 %1866 }
 0x4ac   : > { %v2003_v45 = vadd.f32 %v1987_v39, %v1903_v40  ;;  %v1888_v51 = vmul.f32 %v15761_v60, %v1867_v43 }
 0x4ae   : > { %v2187_v44 = vadd.f32 %v12134_v25, %v2003_v45  ;;  %v1904_v56 = vadd.f32 %v1888_v51, %v1804_v18 }
 0x4b0   : > { %v1967_v61 = vpop.permute.xlu1 %1966  ;;  %v15882_v1 = vpack.c.bf16 %v2187_v44, %v2187_v44 }
 0x4b1   : > { %v1988_v3 = vmul.f32 %v15766_v62, %v1967_v61 }
 0x4b2   : > { %2893 = vrot.lane.b32.xlu1 %v15882_v1, %s14774_s2 }
 0x4b3   : > { %v2004_v4 = vadd.f32 %v1988_v3, %v1904_v56 }
 0x4b5   : > { %v2188_v8 = vadd.f32 %v12135_v57, %v2004_v4 }
 0x4b6   : > { %3232 = vrot.lane.b32.xlu1 %v15803_v20, %s14775_s25 }
 0x4b7   : > { %v15889_v59 = vpack.c.bf16 %v2188_v8, %v2188_v8 }
 0x4b9   : > { %2942 = vrot.lane.b32.xlu0 %v15889_v59, %s14774_s2 }
 0x4ba   : > { %3328 = vrot.lane.b32.xlu1 %v15811_v29, %s14775_s25 }
 0x4bd   : > { %3183 = vrot.lane.b32.xlu0 %v15799_v13, %s14775_s25 }
 0x4be   : > { %3424 = vrot.lane.b32.xlu1 %v15821_v41, %s14775_s25 }
 0x4c1   : > { %3280 = vrot.lane.b32.xlu0 %v15807_v23, %s14775_s25 }
 0x4c2   : > { %3520 = vrot.lane.b32.xlu1 %v15830_v53, %s14775_s25 }
 0x4c5   : > { %3376 = vrot.lane.b32.xlu0 %v15815_v36, %s14775_s25 }
 0x4c6   : > { %3616 = vrot.lane.b32.xlu1 %v15848_v34, %s14775_s25 }
 0x4c9   : > { %3472 = vrot.lane.b32.xlu0 %v15828_v52, %s14775_s25 }
 0x4cd   : > { %3568 = vrot.lane.b32.xlu0 %v15844_v26, %s14775_s25 }
 0x4e5   : > { %v2207_v60 = vpop.permute.xlu1 %2206 }
 0x4e6   : > { %v2213_v62 = vsel %vm19461_vm5, %v2207_v60, 0 }
 0x4e7   : > { %12137 = vmatpush3.bf16.xpose.msra.mxu1 %v2213_v62  ;;  %v2257_v57 = vpop.permute.xlu0 %2256 }
 0x4e8   : > { %12142 = vmatprep.subr.bf16.mxu1 %v19328_v16  ;;  %v2262_v12 = vsel %vm19461_vm5, %v2257_v57, 0 }
 0x4e9   : > { %v2306_v25 = vpop.permute.xlu1 %2305 }
 0x4ea   : > { %v2311_v47 = vsel %vm19461_vm5, %v2306_v25, 0 }
 0x4ed   : > { %v2404_v10 = vpop.permute.xlu1 %2403 }
 0x4ee   : > { %v2409_v15 = vsel %vm19461_vm5, %v2404_v10, 0  ;;  %12139 = vmatmul.mubr.msk.bf16.vlgmr.msra.gmra.mrb[0].mxu1 %vm19461_vm5, %v15799_v13  ;;  %v2355_v13 = vpop.permute.xlu0 %2354 }
 0x4ef   : > { %12143 = vmatpush3.bf16.xpose.msra.mxu1 %v2262_v12  ;;  %12161 = vmatpush3.bf16.xpose.msra.mxu0 %v2409_v15 }
 0x4f0   : > { %12144 = vmatprep.mubr.msk.bf16.mxu1 %vm14773_vm4, %v19328_v16  ;;  %12148 = vmatprep.subr.bf16.mxu1 %v19328_v16 }
 0x4f1   : > { %12172 = vmatprep.subr.bf16.mxu0 %v19328_v16  ;;  %v2502_v19 = vpop.permute.xlu1 %2501 }
 0x4f2   : > { %v2507_v50 = vsel %vm19461_vm5, %v2502_v19, 0  ;;  %v2453_v14 = vpop.permute.xlu0 %2452 }
 0x4f5   : > { %v2600_v24 = vpop.permute.xlu1 %2599 }
 0x4f6   : > { %12145 = vmatmul.mubr.msk.bf16.vlgmr.msra.gmra.mrb[4].mxu1 %vm19461_vm5, %v15803_v20  ;;  %12163 = vmatmul.mubr.msk.bf16.vlgmr.msra.gmra.mrb[16].mxu0 %vm19461_vm5, %v15815_v36  ;;  %v2605_v7 = vsel %vm19461_vm5, %v2600_v24, 0  ;;  %v2360_v20 = vsel %vm19461_vm5, %v2355_v13, 0 }
 0x4f7   : > { %12149 = vmatpush3.bf16.xpose.msra.mxu1 %v2311_v47  ;;  %12173 = vmatpush3.bf16.xpose.msra.mxu0 %v2507_v50 }
 0x4f8   : > { %12174 = vmatprep.mubr.msk.bf16.mxu0 %vm14773_vm4, %v19328_v16  ;;  %12150 = vmatprep.mubr.msk.bf16.mxu1 %vm14773_vm4, %v19328_v16 }
 0x4f9   : > { %12154 = vmatprep.subr.bf16.mxu1 %v19328_v16  ;;  %12184 = vmatprep.subr.bf16.mxu0 %v19328_v16 }
 0x4fe   : > { %12151 = vmatmul.mubr.msk.bf16.vlgmr.msra.gmra.mrb[8].mxu1 %vm19461_vm5, %v15807_v23  ;;  %12175 = vmatmul.mubr.msk.bf16.vlgmr.msra.gmra.mrb[20].mxu0 %vm19461_vm5, %v15828_v52  ;;  %v2698_v36 = vpop.permute.xlu1 %2697  ;;  %v2458_v23 = vsel %vm19461_vm5, %v2453_v14, 0  ;;  %v2551_v52 = vpop.permute.xlu0 %2550 }
 0x4ff   : > { %12155 = vmatpush3.bf16.xpose.msra.mxu1 %v2360_v20  ;;  %12185 = vmatpush3.bf16.xpose.msra.mxu0 %v2605_v7  ;;  %v2703_v22 = vsel %vm19461_vm5, %v2698_v36, 0  ;;  %v2556_v49 = vsel %vm19461_vm5, %v2551_v52, 0 }
 0x500   : > { %12186 = vmatprep.mubr.msk.bf16.mxu0 %vm14773_vm4, %v19328_v16  ;;  %12156 = vmatprep.mubr.msk.bf16.mxu1 %vm14773_vm4, %v19328_v16 }
 0x501   : > { %12166 = vmatprep.subr.bf16.mxu1 %v19328_v16  ;;  %12196 = vmatprep.subr.bf16.mxu0 %v19328_v16 }
 0x502   : > { %v2649_v33 = vpop.permute.xlu0 %2648 }
 0x506   : > { %12157 = vmatmul.mubr.msk.bf16.vlgmr.msra.gmra.mrb[12].mxu1 %vm19461_vm5, %v15811_v29  ;;  %12187 = vmatmul.mubr.msk.bf16.vlgmr.msra.gmra.mrb[24].mxu0 %vm19461_vm5, %v15844_v26  ;;  %v2747_v35 = vpop.permute.xlu0 %2746 }
 0x507   : > { %12167 = vmatpush3.bf16.xpose.msra.mxu1 %v2458_v23  ;;  %12197 = vmatpush3.bf16.xpose.msra.mxu0 %v2703_v22  ;;  %v2752_v37 = vsel %vm19461_vm5, %v2747_v35, 0 }
 0x508   : > { %12198 = vmatprep.mubr.msk.bf16.mxu0 %vm14773_vm4, %v19328_v16  ;;  %12168 = vmatprep.mubr.msk.bf16.mxu1 %vm14773_vm4, %v19328_v16 }
 0x509   : > { %12178 = vmatprep.subr.bf16.mxu1 %v19328_v16  ;;  %12208 = vmatprep.subr.bf16.mxu0 %v19328_v16 }
 0x50e   : > { %12169 = vmatmul.mubr.msk.bf16.vlgmr.msra.gmra.mrb[16].mxu1 %vm19461_vm5, %v15821_v41  ;;  %12199 = vmatmul.mubr.msk.bf16.vlgmr.msra.gmra.mrb[28].mxu0 %vm19461_vm5, %v15852_v32  ;;  %v2654_v41 = vsel %vm19461_vm5, %v2649_v33, 0 }
 0x50f   : > { %12179 = vmatpush3.bf16.xpose.msra.mxu1 %v2556_v49  ;;  %12180 = vmatprep.mubr.msk.bf16.mxu1 %vm14773_vm4, %v19328_v16 }
 0x510   : > { %12210 = vmatprep.mubr.msk.bf16.mxu0 %vm14773_vm4, %v19328_v16  ;;  %12190 = vmatprep.subr.bf16.mxu1 %v19328_v16 }
 0x511   : > { %v2796_v29 = vpop.permute.xlu1 %2795 }
 0x512   : > { %v2801_v26 = vsel %vm19461_vm5, %v2796_v29, 0 }
 0x513   : > { %12209 = vmatpush3.bf16.xpose.msra.mxu0 %v2801_v26 }
 0x514   : > { %12220 = vmatprep.subr.bf16.mxu0 %v19328_v16 }
 0x516   : > { %12181 = vmatmul.mubr.msk.bf16.vlgmr.msra.gmra.mrb[20].mxu1 %vm19461_vm5, %v15830_v53 }
 0x517   : > { %12191 = vmatpush3.bf16.xpose.msra.mxu1 %v2654_v41  ;;  %12192 = vmatprep.mubr.msk.bf16.mxu1 %vm14773_vm4, %v19328_v16 }
 0x518   : > { %12202 = vmatprep.subr.bf16.mxu1 %v19328_v16  ;;  %v2845_v53 = vpop.permute.xlu0 %2844 }
 0x519   : > { %v2850_v39 = vsel %vm19461_vm5, %v2845_v53, 0 }
 0x51a   : > { %12211 = vmatmul.mubr.msk.bf16.vlgmr.msra.gmra.mrb[32].mxu0 %vm19461_vm5, %v15868_v48 }
 0x51b   : > { %12222 = vmatprep.mubr.msk.bf16.mxu0 %vm14773_vm4, %v19328_v16 }
 0x51e   : > { %12193 = vmatmul.mubr.msk.bf16.vlgmr.msra.gmra.mrb[24].mxu1 %vm19461_vm5, %v15848_v34 }
 0x51f   : > { %12203 = vmatpush3.bf16.xpose.msra.mxu1 %v2752_v37  ;;  %12204 = vmatprep.mubr.msk.bf16.mxu1 %vm14773_vm4, %v19328_v16 }
 0x520   : > { %12214 = vmatprep.subr.bf16.mxu1 %v19328_v16 }
 0x524   : > { %v2894_v38 = vpop.permute.xlu1 %2893 }
 0x525   : > { %v2899_v40 = vsel %vm19461_vm5, %v2894_v38, 0 }
 0x526   : > { %12221 = vmatpush3.bf16.xpose.msra.mxu0 %v2899_v40  ;;  %12205 = vmatmul.mubr.msk.bf16.vlgmr.msra.gmra.mrb[28].mxu1 %vm19461_vm5, %v15859_v42 }
 0x527   : > { %12215 = vmatpush3.bf16.xpose.msra.mxu1 %v2850_v39  ;;  %12232 = vmatprep.subr.bf16.mxu0 %v19328_v16 }
 0x528   : > { %12216 = vmatprep.mubr.msk.bf16.mxu1 %vm14773_vm4, %v19328_v16  ;;  %12226 = vmatprep.subr.bf16.mxu1 %v19328_v16  ;;  %v3233_v51 = vpop.permute.xlu1 %3232 }
 0x529   : > { %v3238_v44 = vsel %vm3188_vm6, %v3233_v51, 0 }
 0x52b   : > { %v2943_v34 = vpop.permute.xlu0 %2942 }
 0x52c   : > { %v2948_v18 = vsel %vm19461_vm5, %v2943_v34, 0 }
 0x52d   : > { %12223 = vmatmul.mubr.msk.bf16.vlgmr.msra.gmra.mrb[36].mxu0 %vm19461_vm5, %v15882_v1 }
 0x52e   : > { %12217 = vmatmul.mubr.msk.bf16.vlgmr.msra.gmra.mrb[32].mxu1 %vm19461_vm5, %v15873_v31  ;;  %12234 = vmatprep.mubr.msk.bf16.mxu0 %vm14773_vm4, %v19328_v16 }
 0x52f   : > { %v3184_v43 = vpop.permute.xlu0 %3183  ;;  %12227 = vmatpush3.bf16.xpose.msra.mxu1 %v2948_v18  ;;  %12228 = vmatprep.mubr.msk.bf16.mxu1 %vm14773_vm4, %v19328_v16 }
 0x530   : > { %v3190_v45 = vsel %vm3188_vm6, %v3184_v43, 0  ;;  %12238 = vmatprep.subr.bf16.mxu1 %v19328_v16 }
 0x531   : > { %12233 = vmatpush3.bf16.msra.mxu0 %v3190_v45 }
 0x532   : > { %12244 = vmatprep.subr.bf16.mxu0 %v19328_v16 }
 0x536   : > { %12229 = vmatmul.mubr.msk.bf16.vlgmr.msra.gmra.mrb[36].mxu1 %vm19461_vm5, %v15889_v59 }
 0x537   : > { %12239 = vmatpush3.bf16.msra.mxu1 %v3238_v44  ;;  %12240 = vmatprep.mubr.msk.bf16.mxu1 %vm14773_vm4, %v19328_v16 }
 0x538   : > { %12250 = vmatprep.subr.bf16.mxu1 %v19328_v16 }
 0x5c1   : > { %v16011_v56 = vpop.f32.mrb[0].mxu1 }
 0x5c2   : > { %v12140_v61 = vpop.f32.mrb[1].mxu1  ;;  %v2991_v3 = vsel %vm2990_vm7, %v16011_v56, -inf }
 0x5c3   : > { %v2252_v4 = vpop.f32.mrb[2].mxu1  ;;  %2992 = vmax.xlane.f32.xlu1 %v2991_v3 }
 0x5c4   : > { %v12141_v8 = vpop.f32.mrb[3].mxu1 }
 0x5c9   : > { %v16015_v60 = vpop.f32.mrb[4].mxu1  ;;  %v16017_v62 = vpop.f32.mrb[16].mxu0 }
 0x5ca   : > { %v12146_v25 = vpop.f32.mrb[5].mxu1  ;;  %v12164_v57 = vpop.f32.mrb[17].mxu0  ;;  %v2994_v10 = vsel %vm2990_vm7, %v16015_v60, -inf  ;;  %v3003_v50 = vsel %vm2990_vm7, %v16017_v62, -inf }
 0x5cb   : > { %v2448_v12 = vpop.f32.mrb[18].mxu0  ;;  %2995 = vmax.xlane.f32.xlu0 %v2994_v10  ;;  %v2301_v15 = vpop.f32.mrb[6].mxu1 }
 0x5cc   : > { %v12147_v19 = vpop.f32.mrb[7].mxu1  ;;  %v12165_v47 = vpop.f32.mrb[19].mxu0 }
 0x5cf   : > { %3004 = vmax.xlane.f32.xlu0 %v3003_v50 }
 0x5d1   : > { %v16023_v13 = vpop.f32.mrb[8].mxu1  ;;  %v16025_v24 = vpop.f32.mrb[20].mxu0 }
 0x5d2   : > { %v12152_v7 = vpop.f32.mrb[9].mxu1  ;;  %v12176_v20 = vpop.f32.mrb[21].mxu0  ;;  %v2997_v36 = vsel %vm2990_vm7, %v16023_v13, -inf  ;;  %v3009_v49 = vsel %vm2990_vm7, %v16025_v24, -inf }
 0x5d3   : > { %v2546_v14 = vpop.f32.mrb[22].mxu0  ;;  %2998 = vmax.xlane.f32.xlu0 %v2997_v36  ;;  %v2350_v22 = vpop.f32.mrb[10].mxu1 }
 0x5d4   : > { %v12153_v23 = vpop.f32.mrb[11].mxu1  ;;  %v12177_v52 = vpop.f32.mrb[23].mxu0 }
 0x5d7   : > { %3010 = vmax.xlane.f32.xlu0 %v3009_v49 }
 0x5d9   : > { %v16031_v29 = vpop.f32.mrb[12].mxu1  ;;  %v16033_v26 = vpop.f32.mrb[24].mxu0 }
 0x5da   : > { %v12158_v33 = vpop.f32.mrb[13].mxu1  ;;  %v12188_v41 = vpop.f32.mrb[25].mxu0  ;;  %v3015_v35 = vsel %vm2990_vm7, %v16033_v26, -inf  ;;  %v3000_v37 = vsel %vm2990_vm7, %v16031_v29, -inf }
 0x5db   : > { %v2644_v53 = vpop.f32.mrb[26].mxu0  ;;  %3016 = vmax.xlane.f32.xlu0 %v3015_v35  ;;  %3001 = vmax.xlane.f32.xlu1 %v3000_v37  ;;  %v2399_v38 = vpop.f32.mrb[14].mxu1 }
 0x5dc   : > { %v12159_v39 = vpop.f32.mrb[15].mxu1  ;;  %v12189_v40 = vpop.f32.mrb[27].mxu0 }
 0x5e1   : > { %v16039_v34 = vpop.f32.mrb[16].mxu1  ;;  %v16041_v18 = vpop.f32.mrb[28].mxu0 }
 0x5e2   : > { %v12170_v43 = vpop.f32.mrb[17].mxu1  ;;  %v12200_v45 = vpop.f32.mrb[29].mxu0  ;;  %v3021_v51 = vsel %vm2990_vm7, %v16041_v18, -inf  ;;  %v3006_v44 = vsel %vm2990_vm7, %v16039_v34, -inf }
 0x5e3   : > { %v2742_v61 = vpop.f32.mrb[30].mxu0  ;;  %3022 = vmax.xlane.f32.xlu0 %v3021_v51  ;;  %3007 = vmax.xlane.f32.xlu1 %v3006_v44  ;;  %v2497_v3 = vpop.f32.mrb[18].mxu1 }
 0x5e4   : > { %v12171_v4 = vpop.f32.mrb[19].mxu1  ;;  %v12201_v8 = vpop.f32.mrb[31].mxu0 }
 0x5e9   : > { %v16047_v25 = vpop.f32.mrb[20].mxu1 }
 0x5ea   : > { %v12182_v57 = vpop.f32.mrb[21].mxu1  ;;  %v3012_v10 = vsel %vm2990_vm7, %v16047_v25, -inf }
 0x5eb   : > { %3013 = vmax.xlane.f32.xlu1 %v3012_v10  ;;  %v2595_v12 = vpop.f32.mrb[22].mxu1 }
 0x5ec   : > { %v12183_v15 = vpop.f32.mrb[23].mxu1 }
 0x5ed   : > { %v16051_v19 = vpop.f32.mrb[32].mxu0  ;;  %v16079_v15 = vpop.permute.xlu1 %3328 }
 0x5ee   : > { %v12212_v47 = vpop.f32.mrb[33].mxu0  ;;  %v3027_v50 = vsel %vm2990_vm7, %v16051_v19, -inf }
 0x5ef   : > { %v2840_v7 = vpop.f32.mrb[34].mxu0  ;;  %3028 = vmax.xlane.f32.xlu0 %v3027_v50  ;;  %v16083_v50 = vpop.permute.xlu0 %3280 }
 0x5f0   : > { %v12213_v20 = vpop.f32.mrb[35].mxu0 }
 0x5f1   : > { %v16055_v36 = vpop.f32.mrb[24].mxu1  ;;  %v16081_v47 = vpop.permute.xlu1 %3424 }
 0x5f2   : > { %v12194_v14 = vpop.f32.mrb[25].mxu1  ;;  %v3018_v22 = vsel %vm2990_vm7, %v16055_v36, -inf }
 0x5f3   : > { %3019 = vmax.xlane.f32.xlu1 %v3018_v22  ;;  %v2693_v23 = vpop.f32.mrb[26].mxu1 }
 0x5f4   : > { %v12195_v52 = vpop.f32.mrb[27].mxu1 }
 0x5f5   : > { %v16085_v7 = vpop.permute.xlu1 %3520 }
 0x5f9   : > { %v16059_v49 = vpop.f32.mrb[28].mxu1  ;;  %v16089_v20 = vpop.permute.xlu1 %3616 }
 0x5fa   : > { %v12206_v33 = vpop.f32.mrb[29].mxu1  ;;  %v3024_v41 = vsel %vm2990_vm7, %v16059_v49, -inf }
 0x5fb   : > { %3025 = vmax.xlane.f32.xlu1 %v3024_v41  ;;  %v2791_v35 = vpop.f32.mrb[30].mxu1 }
 0x5fc   : > { %v12207_v37 = vpop.f32.mrb[31].mxu1 }
 0x600   : > { %v16063_v53 = vpop.f32.mrb[36].mxu0 }
 0x601   : > { %v12224_v38 = vpop.f32.mrb[37].mxu0  ;;  %v3033_v39 = vsel %vm2990_vm7, %v16063_v53, -inf  ;;  %v16067_v40 = vpop.f32.mrb[32].mxu1 }
 0x602   : > { %v2938_v43 = vpop.f32.mrb[38].mxu0  ;;  %3034 = vmax.xlane.f32.xlu0 %v3033_v39  ;;  %v12218_v45 = vpop.f32.mrb[33].mxu1  ;;  %v3030_v10 = vsel %vm2990_vm7, %v16067_v40, -inf }
 0x603   : > { %v12225_v51 = vpop.f32.mrb[39].mxu0  ;;  %v2889_v44 = vpop.f32.mrb[34].mxu1 }
 0x604   : > { %v12219_v61 = vpop.f32.mrb[35].mxu1 }
 0x609   : > { %v16069_v3 = vpop.f32.mrb[36].mxu1 }
 0x60a   : > { %v12230_v4 = vpop.f32.mrb[37].mxu1  ;;  %v3036_v12 = vsel %vm2990_vm7, %v16069_v3, -inf }
 0x60b   : > { %v2987_v8 = vpop.f32.mrb[38].mxu1 }
 0x60c   : > { %3664 = vrot.lane.b32.xlu1 %v15852_v32, %s14775_s25  ;;  %v12231_v57 = vpop.f32.mrb[39].mxu1  ;;  %v16087_v32 = vpop.permute.xlu0 %3376 }
 0x618   : > { %3712 = vrot.lane.b32.xlu0 %v15859_v42, %s14775_s25  ;;  %v16091_v42 = vpop.permute.xlu0 %3472 }
 0x61c   : > { %v16094_v52 = vpop.permute.xlu0 %3568 }
 0x630   : > { %3031 = vmax.xlane.f32.xlu1 %v3030_v10 }
 0x634   : > { %3037 = vmax.xlane.f32.xlu1 %v3036_v12 }
 0x650   : > { %v2993_v14 = vpop.xlane.xlu1 %2992 }
 0x651   : > { %v3039_v22 = vsub.f32 %v16011_v56, %v2993_v14 }
 0x653   : > { %v3055_v23 = vmul.f32 1.442695, %v3039_v22 }
 0x655   : > { %13457 = vpow2.f32 %v3055_v23 }
 0x658   : > { %v2996_v33 = vpop.xlane.xlu0 %2995 }
 0x659   : > { %v3040_v41 = vsub.f32 %v16015_v60, %v2996_v33 }
 0x65b   : > { %v3057_v35 = vmul.f32 1.442695, %v3040_v41 }
 0x65c   : > { %v3005_v37 = vpop.xlane.xlu0 %3004 }
 0x65d   : > { %13459 = vpow2.f32 %v3057_v35  ;;  %v3043_v38 = vsub.f32 %v16017_v62, %v3005_v37 }
 0x65f   : > { %v16098_v39 = vpop.eup %13457  ;;  %v3063_v43 = vmul.f32 1.442695, %v3043_v38 }
 0x660   : > { %v2999_v45 = vpop.xlane.xlu0 %2998  ;;  %v3087_v51 = vsel %vm2990_vm7, %v16098_v39, 0.0 }
 0x661   : > { %13461 = vpow2.f32 %v3063_v43  ;;  %v3041_v56 = vsub.f32 %v16023_v13, %v2999_v45  ;;  %3088 = vadd.xlane.f32.xlu0 %v3087_v51 }
 0x663   : > { %v3059_v44 = vmul.f32 1.442695, %v3041_v56 }
 0x664   : > { %v3011_v61 = vpop.xlane.xlu0 %3010 }
 0x665   : > { %13463 = vpow2.f32 %v3059_v44  ;;  %v3045_v60 = vsub.f32 %v16025_v24, %v3011_v61 }
 0x667   : > { %v16104_v4 = vpop.eup %13459  ;;  %v3067_v8 = vmul.f32 1.442695, %v3045_v60 }
 0x668   : > { %v3002_v62 = vpop.xlane.xlu1 %3001  ;;  %v3017_v57 = vpop.xlane.xlu0 %3016  ;;  %v3090_v10 = vsel %vm2990_vm7, %v16104_v4, 0.0 }
 0x669   : > { %13465 = vpow2.f32 %v3067_v8  ;;  %v3042_v12 = vsub.f32 %v16031_v29, %v3002_v62  ;;  %v3047_v14 = vsub.f32 %v16033_v26, %v3017_v57  ;;  %3091 = vadd.xlane.f32.xlu1 %v3090_v10 }
 0x66b   : > { %v16110_v13 = vpop.eup %13461  ;;  %v3061_v22 = vmul.f32 1.442695, %v3042_v12  ;;  %v3071_v23 = vmul.f32 1.442695, %v3047_v14 }
 0x66c   : > { %v3099_v24 = vsel %vm2990_vm7, %v16110_v13, 0.0 }
 0x66d   : > { %13467 = vpow2.f32 %v3061_v22  ;;  %3100 = vadd.xlane.f32.xlu0 %v3099_v24 }
 0x66e   : > { %13469 = vpow2.f32 %v3071_v23 }
 0x66f   : > { %v16114_v33 = vpop.eup %13463 }
 0x670   : > { %v3008_v41 = vpop.xlane.xlu1 %3007  ;;  %v3023_v35 = vpop.xlane.xlu0 %3022  ;;  %v3093_v29 = vsel %vm2990_vm7, %v16114_v33, 0.0 }
 0x671   : > { %v3044_v26 = vsub.f32 %v16039_v34, %v3008_v41  ;;  %v3049_v37 = vsub.f32 %v16041_v18, %v3023_v35  ;;  %3094 = vadd.xlane.f32.xlu0 %v3093_v29 }
 0x673   : > { %v16120_v38 = vpop.eup %13465  ;;  %v3065_v43 = vmul.f32 1.442695, %v3044_v26  ;;  %v3075_v45 = vmul.f32 1.442695, %v3049_v37 }
 0x674   : > { %v3105_v51 = vsel %vm2990_vm7, %v16120_v38, 0.0 }
 0x675   : > { %13471 = vpow2.f32 %v3065_v43  ;;  %3106 = vadd.xlane.f32.xlu0 %v3105_v51 }
 0x676   : > { %13473 = vpow2.f32 %v3075_v45 }
 0x677   : > { %v16124_v56 = vpop.eup %13467 }
 0x678   : > { %v3014_v44 = vpop.xlane.xlu1 %3013  ;;  %v3096_v61 = vsel %vm2990_vm7, %v16124_v56, 0.0  ;;  %v16128_v34 = vpop.eup %13469 }
 0x679   : > { %v3046_v18 = vsub.f32 %v16047_v25, %v3014_v44  ;;  %3097 = vadd.xlane.f32.xlu1 %v3096_v61  ;;  %v3111_v8 = vsel %vm2990_vm7, %v16128_v34, 0.0 }
 0x67b   : > { %v3069_v60 = vmul.f32 1.442695, %v3046_v18 }
 0x67c   : > { %v3029_v45 = vpop.xlane.xlu0 %3028 }
 0x67d   : > { %13475 = vpow2.f32 %v3069_v60  ;;  %3112 = vadd.xlane.f32.xlu1 %v3111_v8 }
 0x67f   : > { %v16133_v62 = vpop.eup %13471 }
 0x680   : > { %v3020_v57 = vpop.xlane.xlu1 %3019  ;;  %v3102_v10 = vsel %vm2990_vm7, %v16133_v62, 0.0  ;;  %v16137_v12 = vpop.eup %13473 }
 0x681   : > { %v3048_v14 = vsub.f32 %v16055_v36, %v3020_v57  ;;  %3103 = vadd.xlane.f32.xlu1 %v3102_v10  ;;  %v3117_v25 = vsel %vm2990_vm7, %v16137_v12, 0.0 }
 0x683   : > { %v3073_v22 = vmul.f32 1.442695, %v3048_v14 }
 0x685   : > { %13477 = vpow2.f32 %v3073_v22  ;;  %3118 = vadd.xlane.f32.xlu1 %v3117_v25 }
 0x687   : > { %v16142_v23 = vpop.eup %13475 }
 0x688   : > { %v3026_v24 = vpop.xlane.xlu1 %3025  ;;  %v3108_v41 = vsel %vm2990_vm7, %v16142_v23, 0.0 }
 0x689   : > { %v3050_v35 = vsub.f32 %v16059_v49, %v3026_v24  ;;  %3109 = vadd.xlane.f32.xlu1 %v3108_v41  ;;  %v3051_v49 = vsub.f32 %v16051_v19, %v3029_v45 }
 0x68b   : > { %v3077_v29 = vmul.f32 1.442695, %v3050_v35  ;;  %v3079_v44 = vmul.f32 1.442695, %v3051_v49 }
 0x68c   : > { %v16161_v60 = vpop.permute.xlu1 %3664 }
 0x68d   : > { %13479 = vpow2.f32 %v3077_v29  ;;  %v16186_v29 = vld [vmem:[%s15518_s6 + $0x8] sm:$0xff] }
 0x68e   : > { %13481 = vpow2.f32 %v3079_v44 }
 0x68f   : > { %v16147_v26 = vpop.eup %13477  ;;  %v3035_v51 = vpop.xlane.xlu0 %3034 }
 0x690   : > { %v3114_v36 = vsel %vm2990_vm7, %v16147_v26, 0.0  ;;  %v3053_v61 = vsub.f32 %v16063_v53, %v3035_v51  ;;  %v16208_v51 = vld [vmem:[%s15518_s6 + $0x48] sm:$0xff] }
 0x691   : > { %3115 = vadd.xlane.f32.xlu0 %v3114_v36  ;;  %v13599_v36 = vld [vmem:[%s15518_s6 + $0x10] sm:$0xff] }
 0x692   : > { %v3083_v18 = vmul.f32 1.442695, %v3053_v61 }
 0x694   : > { %13483 = vpow2.f32 %v3083_v18 }
 0x697   : > { %v16151_v37 = vpop.eup %13479 }
 0x698   : > { %v3120_v43 = vsel %vm2990_vm7, %v16151_v37, 0.0  ;;  %v16163_v8 = vpop.eup %13481 }
 0x699   : > { %3121 = vadd.xlane.f32.xlu0 %v3120_v43  ;;  %v16198_v43 = vld [vmem:[%s15518_s6 + $0x18] sm:$0xff] }
 0x69a   : > { %3760 = vrot.lane.b32.xlu1 %v15868_v48, %s14775_s25  ;;  %v3123_v48 = vsel %vm2990_vm7, %v16163_v8, 0.0 }
 0x69e   : > { %v16167_v10 = vpop.eup %13483 }
 0x6af   : > { %3808 = vrot.lane.b32.xlu0 %v15873_v31, %s14775_s25  ;;  %v3129_v31 = vsel %vm2990_vm7, %v16167_v10, 0.0 }
 0x6bd   : > { %v3032_v57 = vpop.xlane.xlu1 %3031 }
 0x6be   : > { %v3052_v19 = vsub.f32 %v16067_v40, %v3032_v57  ;;  %3124 = vadd.xlane.f32.xlu1 %v3123_v48  ;;  %v16214_v57 = vld [vmem:[%s15518_s6 + $0x58] sm:$0xff]  ;;  %v13604_v48 = vld [vmem:[%s15518_s6 + $0x28] sm:$0xff] }
 0x6c0   : > { %v3081_v53 = vmul.f32 1.442695, %v3052_v19 }
 0x6c1   : > { %v3038_v14 = vpop.xlane.xlu1 %3037 }
 0x6c2   : > { %13485 = vpow2.f32 %v3081_v53  ;;  %v3054_v22 = vsub.f32 %v16069_v3, %v3038_v14  ;;  %3130 = vadd.xlane.f32.xlu1 %v3129_v31  ;;  %v13597_v3 = vld [vmem:[%s15518_s6] sm:$0xff]  ;;  %v3286_v53 = vsel %vm3188_vm6, %v16083_v50, 0 }
 0x6c3   : > { %v16226_v31 = vld [vmem:[%s15518_s6 + $0x20] sm:$0xff] }
 0x6c4   : > { %v3085_v25 = vmul.f32 1.442695, %v3054_v22 }
 0x6c6   : > { %13487 = vpow2.f32 %v3085_v25  ;;  %v3334_v25 = vsel %vm3188_vm6, %v16079_v15, 0 }
 0x6cc   : > { %v16173_v24 = vpop.eup %13485 }
 0x6cd   : > { %v3126_v40 = vsel %vm2990_vm7, %v16173_v24, 0.0 }
 0x6ce   : > { %3127 = vadd.xlane.f32.xlu0 %v3126_v40 }
 0x6d0   : > { %v16177_v41 = vpop.eup %13487 }
 0x6d1   : > { %v3132_v35 = vsel %vm2990_vm7, %v16177_v41, 0.0 }
 0x6d2   : > { %3133 = vadd.xlane.f32.xlu0 %v3132_v35  ;;  %v13606_v35 = vld [vmem:[%s15518_s6 + $0x38] sm:$0xff] }
 0x6d3   : > { %3856 = vrot.lane.b32.xlu1 %v15882_v1, %s14775_s25  ;;  %v16194_v1 = vpop.permute.xlu0 %3712 }
 0x6d7   : > { %6547 = vperm.xlu1 %13002, %v13597_v3  }
 0x6db   : > { %13003 = vset.pattern.permute.xlu1 %v19324_v54 }
 0x6dc   : > { %6646 = vperm.xlu1 %13003, %v13597_v3  }
 0x6e0   : > { %6650 = vperm.xlu1 %13003, %v16186_v29  }
 0x6e4   : > { %13004 = vset.pattern.permute.xlu1 %v19322_v6 }
 0x6e5   : > { %6557 = vperm.xlu1 %13004, %v13599_v36  }
 0x6e8   : > { %3904 = vrot.lane.b32.xlu0 %v15889_v59, %s14775_s25  ;;  %v16204_v59 = vld [vmem:[%s15518_s6 + $0x30] sm:$0xff] }
 0x6e9   : > { %13005 = vset.pattern.permute.xlu1 %v19324_v54 }
 0x6ea   : > { %6654 = vperm.xlu1 %13005, %v13599_v36  }
 0x6ec   : > { %6750 = vperm.xlu0 %13000, %v16186_v29  }
 0x6ee   : > { %6658 = vperm.xlu1 %13005, %v16198_v43   ;;  %v3089_v45 = vpop.xlane.xlu0 %3088 }
 0x6ef   : > { %13489 = vrcp.f32 %v3089_v45 }
 0x6f0   : > { %6758 = vperm.xlu0 %13000, %v16198_v43  }
 0x6f2   : > { %13006 = vset.pattern.permute.xlu1 %v19326_v0 }
 0x6f3   : > { %6746 = vperm.xlu1 %13006, %v13597_v3  }
 0x6f4   : > { %6770 = vperm.xlu0 %13000, %v16204_v59  }
 0x6f6   : > { %v3092_v49 = vpop.xlane.xlu1 %3091 }
 0x6f7   : > { %13491 = vrcp.f32 %v3092_v49  ;;  %6754 = vperm.xlu1 %13006, %v13599_v36   ;;  %v16241_v36 = vld [vmem:[%s15518_s6 + $0x40] sm:$0xff] }
 0x6f8   : > { %6782 = vperm.xlu0 %13000, %v16208_v51  }
 0x6f9   : > { %v13490_v44 = vpop.eup %13489 }
 0x6fa   : > { %v3101_v61 = vpop.xlane.xlu0 %3100  ;;  %v3151_v18 = vmul.f32 %v13490_v44, %v16098_v39 }
 0x6fb   : > { %13007 = vset.pattern.permute.xlu1 %v19322_v6 }
 0x6fc   : > { %6790 = vperm.xlu0 %13000, %v16214_v57   ;;  %6572 = vperm.xlu1 %13007, %v13604_v48   ;;  %v3167_v19 = vpack.c.bf16 %v3151_v18, %v3151_v18  ;;  %v3382_v18 = vsel %vm3188_vm6, %v16087_v32, 0 }
 0x6fe   : > { %12235 = vmatmul.mubr.msk.bf16.vlgmr.msra.gmra.mrb[40].mxu0 %vm2990_vm7, %v3167_v19  ;;  %v3095_v14 = vpop.xlane.xlu0 %3094 }
 0x6ff   : > { %12245 = vmatpush3.bf16.msra.mxu0 %v3286_v53  ;;  %13493 = vrcp.f32 %v3095_v14  ;;  %12246 = vmatprep.mubr.msk.bf16.mxu0 %vm14773_vm4, %v19328_v16  ;;  %v16259_v14 = vld [vmem:[%s15518_s6 + $0x60] sm:$0xff] }
 0x700   : > { %13017 = vset.pattern.permute.xlu0 %v19324_v54  ;;  %13008 = vset.pattern.permute.xlu1 %v19324_v54  ;;  %13495 = vrcp.f32 %v3101_v61  ;;  %v16247_v61 = vld [vmem:[%s15518_s6 + $0x50] sm:$0xff] }
 0x701   : > { %v13492_v39 = vpop.eup %13491  ;;  %6662 = vperm.xlu0 %13017, %v16226_v31   ;;  %6666 = vperm.xlu1 %13008, %v13604_v48  }
 0x702   : > { %v3152_v50 = vmul.f32 %v13492_v39, %v16104_v4  ;;  %12256 = vmatprep.subr.bf16.mxu0 %v19328_v16  ;;  %v3107_v3 = vpop.xlane.xlu0 %3106 }
 0x704   : > { %v3168_v22 = vpack.c.bf16 %v3152_v50, %v3152_v50 }
 0x705   : > { %6670 = vperm.xlu0 %13017, %v16204_v59   ;;  %13009 = vset.pattern.permute.xlu1 %v19322_v6 }
 0x706   : > { %12241 = vmatmul.mubr.msk.bf16.vlgmr.msra.gmra.mrb[40].mxu1 %vm2990_vm7, %v3168_v22  ;;  %v3098_v40 = vpop.xlane.xlu1 %3097  ;;  %6582 = vperm.xlu1 %13009, %v13606_v35  }
 0x707   : > { %12251 = vmatpush3.bf16.msra.mxu1 %v3334_v25  ;;  %13497 = vrcp.f32 %v3098_v40  ;;  %12252 = vmatprep.mubr.msk.bf16.mxu1 %vm14773_vm4, %v19328_v16  ;;  %v16265_v25 = vld [vmem:[%s15518_s6 + $0x70] sm:$0xff] }
 0x708   : > { %12262 = vmatprep.subr.bf16.mxu1 %v19328_v16  ;;  %13499 = vrcp.f32 %v3107_v3 }
 0x709   : > { %v13494_v4 = vpop.eup %13493  ;;  %6678 = vperm.xlu0 %13017, %v16241_v36  }
 0x70a   : > { %v3113_v15 = vpop.xlane.xlu1 %3112  ;;  %13010 = vset.pattern.permute.xlu1 %v19324_v54  ;;  %v3153_v45 = vmul.f32 %v13494_v4, %v16114_v33  ;;  %v13496_v44 = vpop.eup %13495  ;;  %v3478_v4 = vsel %vm3188_vm6, %v16091_v42, 0 }
 0x70b   : > { %6674 = vperm.xlu1 %13010, %v13606_v35   ;;  %v3155_v33 = vmul.f32 %v13496_v44, %v16110_v13  ;;  %v3430_v13 = vsel %vm3188_vm6, %v16081_v47, 0 }
 0x70c   : > { %v3169_v49 = vpack.c.bf16 %v3153_v45, %v3153_v45 }
 0x70d   : > { %6686 = vperm.xlu0 %13017, %v16247_v61   ;;  %v3171_v22 = vpack.c.bf16 %v3155_v33, %v3155_v33 }
 0x70e   : > { %v3104_v19 = vpop.xlane.xlu1 %3103  ;;  %12247 = vmatmul.mubr.msk.bf16.vlgmr.msra.gmra.mrb[44].mxu0 %vm2990_vm7, %v3169_v49  ;;  %v3622_v49 = vsel %vm3188_vm6, %v16089_v20, 0 }
 0x70f   : > { %13501 = vrcp.f32 %v3104_v19  ;;  %12257 = vmatpush3.bf16.msra.mxu0 %v3382_v18  ;;  %13011 = vset.pattern.permute.xlu1 %v19326_v0  ;;  %v3718_v19 = vsel %vm3188_vm6, %v16194_v1, 0 }
 0x710   : > { %6762 = vperm.xlu1 %13011, %v16226_v31   ;;  %12258 = vmatprep.mubr.msk.bf16.mxu0 %vm14773_vm4, %v19328_v16  ;;  %13503 = vrcp.f32 %v3113_v15  ;;  %v3526_v15 = vsel %vm3188_vm6, %v16085_v7, 0 }
 0x711   : > { %v13498_v53 = vpop.eup %13497  ;;  %6694 = vperm.xlu0 %13017, %v16259_v14   ;;  %12268 = vmatprep.subr.bf16.mxu0 %v19328_v16 }
 0x712   : > { %v3119_v32 = vpop.xlane.xlu1 %3118  ;;  %v3154_v39 = vmul.f32 %v13498_v53, %v16124_v56  ;;  %v13500_v40 = vpop.eup %13499 }
 0x713   : > { %v3157_v47 = vmul.f32 %v13500_v40, %v16120_v38 }
 0x714   : > { %6766 = vperm.xlu1 %13011, %v13604_v48   ;;  %v3170_v50 = vpack.c.bf16 %v3154_v39, %v3154_v39 }
 0x715   : > { %6702 = vperm.xlu0 %13017, %v16265_v25  }
 0x716   : > { %12253 = vmatmul.mubr.msk.bf16.vlgmr.msra.gmra.mrb[44].mxu1 %vm2990_vm7, %v3170_v50  ;;  %v3110_v3 = vpop.xlane.xlu1 %3109  ;;  %12259 = vmatmul.mubr.msk.bf16.vlgmr.msra.gmra.mrb[48].mxu0 %vm2990_vm7, %v3171_v22  ;;  %v13612_v50 = vld [vmem:[%s15518_s6 + $0x78] sm:$0xff] }
 0x717   : > { %12263 = vmatpush3.bf16.msra.mxu1 %v3430_v13  ;;  %13505 = vrcp.f32 %v3110_v3  ;;  %12269 = vmatpush3.bf16.msra.mxu0 %v3478_v4 }
 0x718   : > { %6774 = vperm.xlu1 %13011, %v13606_v35   ;;  %12264 = vmatprep.mubr.msk.bf16.mxu1 %vm14773_vm4, %v19328_v16  ;;  %13507 = vrcp.f32 %v3119_v32  ;;  %v3173_v35 = vpack.c.bf16 %v3157_v47, %v3157_v47 }
 0x719   : > { %v13502_v56 = vpop.eup %13501  ;;  %13021 = vset.pattern.permute.xlu0 %v19322_v6  ;;  %12274 = vmatprep.subr.bf16.mxu1 %v19328_v16 }
 0x71a   : > { %6552 = vperm.xlu0 %13021, %v16186_v29   ;;  %12270 = vmatprep.mubr.msk.bf16.mxu0 %vm14773_vm4, %v19328_v16  ;;  %v3156_v42 = vmul.f32 %v13502_v56, %v16133_v62  ;;  %v13504_v29 = vpop.eup %13503  ;;  %v3574_v62 = vsel %vm3188_vm6, %v16094_v52, 0 }
 0x71b   : > { %12280 = vmatprep.subr.bf16.mxu0 %v19328_v16  ;;  %v3159_v52 = vmul.f32 %v13504_v29, %v16128_v34  ;;  %v3670_v34 = vsel %vm3188_vm6, %v16161_v60, 0 }
 0x71c   : > { %13012 = vset.pattern.permute.xlu1 %v19322_v6  ;;  %v3172_v48 = vpack.c.bf16 %v3156_v42, %v3156_v42 }
 0x71d   : > { %6587 = vperm.xlu1 %13012, %v16241_v36  }
 0x71e   : > { %6562 = vperm.xlu0 %13021, %v16198_v43   ;;  %12265 = vmatmul.mubr.msk.bf16.vlgmr.msra.gmra.mrb[48].mxu1 %vm2990_vm7, %v3172_v48  ;;  %v3116_v38 = vpop.xlane.xlu0 %3115 }
 0x71f   : > { %12271 = vmatmul.mubr.msk.bf16.vlgmr.msra.gmra.mrb[52].mxu0 %vm2990_vm7, %v3173_v35  ;;  %12275 = vmatpush3.bf16.msra.mxu1 %v3526_v15  ;;  %13509 = vrcp.f32 %v3116_v38  ;;  %v3952_v15 = vld [vmem:[#allocation13] sm:$0xff]  ;;  %v3953_v38 = vld [vmem:[#allocation13 + $0x8] sm:$0xff] }
 0x720   : > { %12281 = vmatpush3.bf16.msra.mxu0 %v3574_v62  ;;  %12276 = vmatprep.mubr.msk.bf16.mxu1 %vm14773_vm4, %v19328_v16  ;;  %v3962_v29 = vpack.c.bf16 %v3953_v38, %v3952_v15 }
 0x721   : > { %v13506_v45 = vpop.eup %13505  ;;  %6592 = vperm.xlu1 %13012, %v16208_v51   ;;  %12286 = vmatprep.subr.bf16.mxu1 %v19328_v16 }
 0x722   : > { %6567 = vperm.xlu0 %13021, %v16226_v31   ;;  %12282 = vmatprep.mubr.msk.bf16.mxu0 %vm14773_vm4, %v19328_v16  ;;  %v3158_v7 = vmul.f32 %v13506_v45, %v16142_v23  ;;  %v3175_v31 = vpack.c.bf16 %v3159_v52, %v3159_v52  ;;  %v13508_v18 = vpop.eup %13507 }
 0x723   : > { %12292 = vmatprep.subr.bf16.mxu0 %v19328_v16 }
 0x724   : > { %v3174_v43 = vpack.c.bf16 %v3158_v7, %v3158_v7 }
 0x725   : > { %13013 = vset.pattern.permute.xlu1 %v19324_v54 }
 0x726   : > { %6577 = vperm.xlu0 %13021, %v16204_v59   ;;  %12277 = vmatmul.mubr.msk.bf16.vlgmr.msra.gmra.mrb[52].mxu1 %vm2990_vm7, %v3174_v43  ;;  %v3122_v44 = vpop.xlane.xlu0 %3121  ;;  %v3161_v59 = vmul.f32 %v13508_v18, %v16137_v12 }
 0x727   : > { %12287 = vmatpush3.bf16.msra.mxu1 %v3622_v49  ;;  %6682 = vperm.xlu1 %13013, %v16208_v51   ;;  %13511 = vrcp.f32 %v3122_v44  ;;  %v3761_v51 = vpop.permute.xlu1 %3760 }
 0x728   : > { %12283 = vmatmul.mubr.msk.bf16.vlgmr.msra.gmra.mrb[56].mxu0 %vm2990_vm7, %v3175_v31  ;;  %12288 = vmatprep.mubr.msk.bf16.mxu1 %vm14773_vm4, %v19328_v16  ;;  %v3177_v33 = vpack.c.bf16 %v3161_v59, %v3161_v59  ;;  %v3766_v12 = vsel %vm3188_vm6, %v3761_v51, 0 }
 0x729   : > { %v13510_v20 = vpop.eup %13509  ;;  %12293 = vmatpush3.bf16.msra.mxu0 %v3670_v34  ;;  %12294 = vmatprep.mubr.msk.bf16.mxu0 %vm14773_vm4, %v19328_v16 }
 0x72a   : > { %12298 = vmatprep.subr.bf16.mxu1 %v19328_v16  ;;  %12304 = vmatprep.subr.bf16.mxu0 %v19328_v16  ;;  %v3160_v23 = vmul.f32 %v13510_v20, %v16147_v26  ;;  %v3809_v1 = vpop.permute.xlu0 %3808 }
 0x72b   : > { %13014 = vset.pattern.permute.xlu1 %v19322_v6  ;;  %6607 = vperm.xlu0 %13021, %v16259_v14   ;;  %v3814_v39 = vsel %vm3188_vm6, %v3809_v1, 0 }
 0x72c   : > { %6597 = vperm.xlu1 %13014, %v16247_v61   ;;  %v3176_v60 = vpack.c.bf16 %v3160_v23, %v3160_v23 }
 0x72e   : > { %12289 = vmatmul.mubr.msk.bf16.vlgmr.msra.gmra.mrb[56].mxu1 %vm2990_vm7, %v3176_v60 }
 0x72f   : > { %12299 = vmatpush3.bf16.msra.mxu1 %v3718_v19  ;;  %12300 = vmatprep.mubr.msk.bf16.mxu1 %vm14773_vm4, %v19328_v16 }
 0x730   : > { %12295 = vmatmul.mubr.msk.bf16.vlgmr.msra.gmra.mrb[60].mxu0 %vm2990_vm7, %v3177_v33  ;;  %6602 = vperm.xlu1 %13014, %v16214_v57  }
 0x731   : > { %v13512_v26 = vpop.eup %13511  ;;  %12305 = vmatpush3.bf16.msra.mxu0 %v3766_v12  ;;  %12310 = vmatprep.subr.bf16.mxu1 %v19328_v16 }
 0x732   : > { %v3162_v53 = vmul.f32 %v13512_v26, %v16151_v37  ;;  %12306 = vmatprep.mubr.msk.bf16.mxu0 %vm14773_vm4, %v19328_v16  ;;  %12316 = vmatprep.subr.bf16.mxu0 %v19328_v16  ;;  %v13611_v37 = vld [vmem:[%s15518_s6 + $0x68] sm:$0xff] }
 0x733   : > { %6617 = vperm.xlu0 %13021, %v16265_v25  }
 0x734   : > { %13015 = vset.pattern.permute.xlu1 %v19324_v54  ;;  %v3178_v32 = vpack.c.bf16 %v3162_v53, %v3162_v53 }
 0x735   : > { %6690 = vperm.xlu1 %13015, %v16214_v57  }
 0x736   : > { %12301 = vmatmul.mubr.msk.bf16.vlgmr.msra.gmra.mrb[60].mxu1 %vm2990_vm7, %v3178_v32 }
 0x737   : > { %12311 = vmatpush3.bf16.msra.mxu1 %v3814_v39  ;;  %12312 = vmatprep.mubr.msk.bf16.mxu1 %vm14773_vm4, %v19328_v16 }
 0x738   : > { %12322 = vmatprep.subr.bf16.mxu1 %v19328_v16 }
 0x739   : > { %13016 = vset.pattern.permute.xlu1 %v19326_v0 }
 0x73a   : > { %6778 = vperm.xlu1 %13016, %v16241_v36  }
 0x73e   : > { %6786 = vperm.xlu1 %13016, %v16247_v61  }
 0x742   : > { %13018 = vset.pattern.permute.xlu1 %v19322_v6 }
 0x743   : > { %6612 = vperm.xlu1 %13018, %v13611_v37  }
 0x747   : > { %13019 = vset.pattern.permute.xlu1 %v19324_v54 }
 0x748   : > { %6698 = vperm.xlu1 %13019, %v13611_v37  }
 0x74b   : > { %v3125_v57 = vpop.xlane.xlu1 %3124 }
 0x74c   : > { %13513 = vrcp.f32 %v3125_v57  ;;  %13020 = vset.pattern.permute.xlu1 %v19322_v6 }
 0x74d   : > { %6622 = vperm.xlu1 %13020, %v13612_v50  }
 0x74f   : > { %v3131_v22 = vpop.xlane.xlu1 %3130 }
 0x750   : > { %13515 = vrcp.f32 %v3131_v22 }
 0x751   : > { %13022 = vset.pattern.permute.xlu1 %v19324_v54 }
 0x752   : > { %6706 = vperm.xlu1 %13022, %v13612_v50  }
 0x753   : > { %v3857_v36 = vpop.permute.xlu1 %3856 }
 0x754   : > { %v3862_v3 = vsel %vm3188_vm6, %v3857_v36, 0 }
 0x756   : > { %v13514_v61 = vpop.eup %13513  ;;  %13023 = vset.pattern.permute.xlu1 %v19326_v0 }
 0x757   : > { %v3163_v25 = vmul.f32 %v13514_v61, %v16163_v8  ;;  %v16355_v40 = vpop.permute.xlu1 %6547  ;;  %6794 = vperm.xlu1 %13023, %v16259_v14  }
 0x759   : > { %v3179_v13 = vpack.c.bf16 %v3163_v25, %v3163_v25 }
 0x75a   : > { %v13516_v4 = vpop.eup %13515 }
 0x75b   : > { %12307 = vmatmul.mubr.msk.bf16.vlgmr.msra.gmra.mrb[64].mxu0 %vm2990_vm7, %v3179_v13  ;;  %v3128_v56 = vpop.xlane.xlu0 %3127  ;;  %v16360_v47 = vpop.permute.xlu1 %6646  ;;  %6798 = vperm.xlu1 %13023, %v13611_v37   ;;  %v3165_v8 = vmul.f32 %v13516_v4, %v16167_v10  ;;  %v6544_v13 = vld [vmem:[#allocation20] sm:$0x7] }
 0x75c   : > { %12317 = vmatpush3.bf16.msra.mxu0 %v3862_v3  ;;  %13517 = vrcp.f32 %v3128_v56  ;;  %12318 = vmatprep.mubr.msk.bf16.mxu0 %vm14773_vm4, %v19328_v16  ;;  %v16426_v56 = vrot.slane %v6544_v13, %v15752_v55  ;;  %v16433_v15 = vrot.slane %v6544_v13, %v15755_v58 }
 0x75d   : > { %v3181_v14 = vpack.c.bf16 %v3165_v8, %v3165_v8  ;;  %12328 = vmatprep.subr.bf16.mxu0 %v3962_v29  ;;  %v16429_v8 = vrot.slane %v6544_v13, %v15631_v28 }
 0x75e   : > { %19598 = vst [vmem:[#allocation129_spill] sm:$0xff] %v16433_v15 }
 0x75f   : > { %v3134_v42 = vpop.xlane.xlu0 %3133  ;;  %v16365_v48 = vpop.permute.xlu1 %6650  ;;  %13024 = vset.pattern.permute.xlu1 %v19322_v6 }
 0x760   : > { %19577 = vst [vmem:[#allocation108_spill] sm:$0xff] %v16365_v48  ;;  %13519 = vrcp.f32 %v3134_v42 }
 0x763   : > { %12319 = vmatmul.mubr.msk.bf16.vlgmr.msra.gmra.mrb[68].mxu0 %vm2990_vm7, %v3181_v14  ;;  %v3905_v7 = vpop.permute.xlu0 %3904 }
 0x764   : > { %v16369_v35 = vpop.permute.xlu1 %6557  ;;  %12329 = vmatpush3.bf16.msra.mxu0 %v3962_v29  ;;  %v3910_v49 = vsel %vm3188_vm6, %v3905_v7, 0 }
 0x765   : > { %12364 = vmatprep.subr.bf16.mxu0 %v19328_v16 }
 0x766   : > { %v13518_v62 = vpop.eup %13517 }
 0x767   : > { %v3164_v45 = vmul.f32 %v13518_v62, %v16173_v24 }
 0x769   : > { %v3180_v10 = vpack.c.bf16 %v3164_v45, %v3164_v45  ;;  %v16372_v52 = vpop.permute.xlu1 %6654 }
 0x76a   : > { %v13520_v43 = vpop.eup %13519 }
 0x76b   : > { %12313 = vmatmul.mubr.msk.bf16.vlgmr.msra.gmra.mrb[64].mxu1 %vm2990_vm7, %v3180_v10  ;;  %v16377_v31 = vpop.permute.xlu0 %6750  ;;  %v3166_v24 = vmul.f32 %v13520_v43, %v16177_v41 }
 0x76c   : > { %19578 = vst [vmem:[#allocation109_spill] sm:$0xff] %v16377_v31  ;;  %12323 = vmatpush3.bf16.msra.mxu1 %v3910_v49  ;;  %12324 = vmatprep.mubr.msk.bf16.mxu1 %vm14773_vm4, %v19328_v16 }
 0x76d   : > { %v16382_v44 = vpop.permute.xlu1 %6658  ;;  %v3182_v34 = vpack.c.bf16 %v3166_v24, %v3166_v24 }
 0x76e   : > { %19579 = vst [vmem:[#allocation110_spill] sm:$0xff] %v16382_v44 }
 0x76f   : > { %v16384_v18 = vpop.permute.xlu0 %6758 }
 0x770   : > { %19580 = vst [vmem:[#allocation111_spill] sm:$0xff] %v16384_v18 }
 0x772   : > { %v16386_v20 = vpop.permute.xlu1 %6746 }
 0x773   : > { %19581 = vst [vmem:[#allocation112_spill] sm:$0xff] %v16386_v20  ;;  %12325 = vmatmul.mubr.msk.bf16.vlgmr.msra.gmra.mrb[68].mxu1 %vm2990_vm7, %v3182_v34  ;;  %v6771_v23 = vpop.permute.xlu0 %6770 }
 0x774   : > { %v6819_v62 = vmul.f32 %v16433_v15, %v6771_v23 }
 0x776   : > { %v16389_v59 = vpop.permute.xlu1 %6754 }
 0x777   : > { %v16391_v60 = vpop.permute.xlu0 %6782 }
 0x778   : > { %19582 = vst [vmem:[#allocation113_spill] sm:$0xff] %v16391_v60 }
 0x77b   : > { %v16393_v51 = vpop.permute.xlu1 %6572  ;;  %v6791_v19 = vpop.permute.xlu0 %6790 }
 0x77c   : > { %19583 = vst [vmem:[#allocation114_spill] sm:$0xff] %v16393_v51  ;;  %v6824_v6 = vmul.f32 %v16433_v15, %v6791_v19 }
 0x780   : > { %v16395_v33 = vpop.permute.xlu0 %6662  ;;  %v16397_v41 = vpop.permute.xlu1 %6666 }
 0x781   : > { %19584 = vst [vmem:[#allocation115_spill] sm:$0xff] %v16395_v33  ;;  %19585 = vst [vmem:[#allocation116_spill] sm:$0xff] %v16397_v41 }
 0x784   : > { %v6671_v12 = vpop.permute.xlu0 %6670 }
 0x785   : > { %v16399_v26 = vpop.permute.xlu1 %6582  ;;  %v6719_v42 = vmul.f32 %v16426_v56, %v6671_v12 }
 0x786   : > { %19586 = vst [vmem:[#allocation117_spill] sm:$0xff] %v16399_v26 }
 0x788   : > { %v16401_v53 = vpop.permute.xlu0 %6678 }
 0x789   : > { %19587 = vst [vmem:[#allocation118_spill] sm:$0xff] %v16401_v53 }
 0x78a   : > { %v16403_v1 = vpop.permute.xlu1 %6674 }
 0x78b   : > { %19588 = vst [vmem:[#allocation119_spill] sm:$0xff] %v16403_v1 }
 0x78c   : > { %v6687_v32 = vpop.permute.xlu0 %6686 }
 0x78d   : > { %v6723_v7 = vmul.f32 %v16426_v56, %v6687_v32 }
 0x78f   : > { %v16405_v39 = vpop.permute.xlu1 %6762 }
 0x790   : > { %19589 = vst [vmem:[#allocation120_spill] sm:$0xff] %v16405_v39  ;;  %v16407_v37 = vpop.permute.xlu0 %6694 }
 0x793   : > { %v16409_v57 = vpop.permute.xlu1 %6766 }
 0x794   : > { %19590 = vst [vmem:[#allocation121_spill] sm:$0xff] %v16409_v57  ;;  %v16411_v50 = vpop.permute.xlu0 %6702 }
 0x795   : > { %19591 = vst [vmem:[#allocation122_spill] sm:$0xff] %v16411_v50 }
 0x797   : > { %v16413_v22 = vpop.permute.xlu1 %6774 }
 0x798   : > { %19592 = vst [vmem:[#allocation123_spill] sm:$0xff] %v16413_v22 }
 0x799   : > { %v16415_v36 = vpop.permute.xlu0 %6552 }
 0x79a   : > { %19593 = vst [vmem:[#allocation124_spill] sm:$0xff] %v16415_v36  ;;  %v16795_v36 = vld [vmem:[%s15518_s6 + $0x28] sm:$0xff] }
 0x79c   : > { %v16417_v61 = vpop.permute.xlu1 %6587 }
 0x79d   : > { %19594 = vst [vmem:[#allocation125_spill] sm:$0xff] %v16417_v61  ;;  %v16419_v25 = vpop.permute.xlu0 %6562 }
 0x79e   : > { %19595 = vst [vmem:[#allocation126_spill] sm:$0xff] %v16419_v25 }
 0x7a0   : > { %v16421_v4 = vpop.permute.xlu1 %6592 }
 0x7a1   : > { %19596 = vst [vmem:[#allocation127_spill] sm:$0xff] %v16421_v4  ;;  %v16423_v3 = vpop.permute.xlu0 %6567 }
 0x7a2   : > { %19597 = vst [vmem:[#allocation128_spill] sm:$0xff] %v16423_v3 }
 0x7a5   : > { %v6578_v14 = vpop.permute.xlu0 %6577 }
 0x7a6   : > { %v6635_v38 = vmul.f32 %v16429_v8, %v6578_v14  ;;  %v16436_v29 = vpop.permute.xlu1 %6682 }
 0x7a7   : > { %19599 = vst [vmem:[#allocation130_spill] sm:$0xff] %v16436_v29 }
 0x7a8   : > { %v6735_v45 = vadd.f32 %v6719_v42, %v6635_v38 }
 0x7aa   : > { %v16440_v10 = vadd.f32 %v6819_v62, %v6735_v45 }
 0x7ab   : > { %v6598_v43 = vpop.permute.xlu1 %6597 }
 0x7ac   : > { %19600 = vst [vmem:[#allocation131_spill] sm:$0xff] %v16440_v10  ;;  %v6639_v49 = vmul.f32 %v16429_v8, %v6598_v43 }
 0x7ae   : > { %v16443_v24 = vadd.f32 %v6723_v7, %v6639_v49 }
 0x7af   : > { %v6603_v34 = vpop.permute.xlu1 %6602 }
 0x7b0   : > { %v6640_v12 = vmul.f32 %v16429_v8, %v6603_v34 }
 0x7b4   : > { %v6691_v13 = vpop.permute.xlu1 %6690 }
 0x7b5   : > { %v6724_v14 = vmul.f32 %v16426_v56, %v6691_v13 }
 0x7b7   : > { %v6740_v54 = vadd.f32 %v6724_v14, %v6640_v12 }
 0x7b9   : > { %v16448_v23 = vadd.f32 %v6824_v6, %v6740_v54 }
 0x7bb   : > { %19601 = vst [vmem:[#allocation132_spill] sm:$0xff] %v16448_v23 }
 0x7d1   : > { %v3226_v42 = vpop.f32.mrb[40].mxu0 }
 0x7d2   : > { %v12236_v32 = vpop.f32.mrb[41].mxu0 }
 0x7d3   : > { %v3229_v38 = vpop.f32.mrb[42].mxu0 }
 0x7d4   : > { %v12237_v62 = vpop.f32.mrb[43].mxu0 }
 0x7d9   : > { %v3274_v45 = vpop.f32.mrb[40].mxu1 }
 0x7da   : > { %v3954_v0 = vpack.c.bf16 %v3274_v45, %v3226_v42  ;;  %v12242_v43 = vpop.f32.mrb[41].mxu1 }
 0x7db   : > { %v3277_v7 = vpop.f32.mrb[42].mxu1 }
 0x7dc   : > { %v12243_v49 = vpop.f32.mrb[43].mxu1  ;;  %12330 = vmatprep.mubr.msk.bf16.mxu0 %vm19461_vm5, %v3954_v0 }
 0x7e1   : > { %v3322_v34 = vpop.f32.mrb[44].mxu0 }
 0x7e2   : > { %v12248_v16 = vpop.f32.mrb[45].mxu0 }
 0x7e3   : > { %v3325_v5 = vpop.f32.mrb[46].mxu0 }
 0x7e4   : > { %v12249_v13 = vpop.f32.mrb[47].mxu0 }
 0x7e9   : > { %v3370_v50 = vpop.f32.mrb[44].mxu1  ;;  %v3418_v19 = vpop.f32.mrb[48].mxu0 }
 0x7ea   : > { %v3955_v12 = vpack.c.bf16 %v3370_v50, %v3322_v34  ;;  %v12254_v6 = vpop.f32.mrb[45].mxu1  ;;  %v12260_v54 = vpop.f32.mrb[49].mxu0 }
 0x7eb   : > { %v3373_v14 = vpop.f32.mrb[46].mxu1  ;;  %v3421_v32 = vpop.f32.mrb[50].mxu0 }
 0x7ec   : > { %v12255_v38 = vpop.f32.mrb[47].mxu1  ;;  %v12261_v62 = vpop.f32.mrb[51].mxu0  ;;  %12331 = vmatmul.mubr.msk.bf16.vlgmr.msra.gmra.mrb[72].mxu0 %vm19461_vm5, %v3955_v12 }
 0x7f1   : > { %v3466_v42 = vpop.f32.mrb[48].mxu1 }
 0x7f2   : > { %v3956_v45 = vpack.c.bf16 %v3466_v42, %v3418_v19  ;;  %v3514_v43 = vpop.f32.mrb[52].mxu0  ;;  %v12266_v7 = vpop.f32.mrb[49].mxu1 }
 0x7f3   : > { %v12272_v0 = vpop.f32.mrb[53].mxu0  ;;  %v3469_v49 = vpop.f32.mrb[50].mxu1 }
 0x7f4   : > { %v3517_v16 = vpop.f32.mrb[54].mxu0  ;;  %v12267_v5 = vpop.f32.mrb[51].mxu1  ;;  %12334 = vmatprep.mubr.msk.bf16.mxu0 %vm19461_vm5, %v3956_v45 }
 0x7f5   : > { %v12273_v13 = vpop.f32.mrb[55].mxu0 }
 0x7f9   : > { %v3562_v50 = vpop.f32.mrb[52].mxu1 }
 0x7fa   : > { %v3957_v34 = vpack.c.bf16 %v3562_v50, %v3514_v43  ;;  %v12278_v6 = vpop.f32.mrb[53].mxu1 }
 0x7fb   : > { %v3610_v54 = vpop.f32.mrb[56].mxu0  ;;  %v3565_v14 = vpop.f32.mrb[54].mxu1 }
 0x7fc   : > { %v12284_v32 = vpop.f32.mrb[57].mxu0  ;;  %v12279_v38 = vpop.f32.mrb[55].mxu1  ;;  %12335 = vmatmul.mubr.msk.bf16.gmra.mrb[76].mxu0 %vm19461_vm5, %v3957_v34 }
 0x7fd   : > { %v3613_v12 = vpop.f32.mrb[58].mxu0 }
 0x7fe   : > { %v12285_v19 = vpop.f32.mrb[59].mxu0 }
 0x801   : > { %v3658_v62 = vpop.f32.mrb[56].mxu1 }
 0x802   : > { %v3958_v42 = vpack.c.bf16 %v3658_v62, %v3610_v54  ;;  %v12290_v7 = vpop.f32.mrb[57].mxu1 }
 0x803   : > { %v3706_v0 = vpop.f32.mrb[60].mxu0  ;;  %v3661_v49 = vpop.f32.mrb[58].mxu1 }
 0x804   : > { %v12296_v16 = vpop.f32.mrb[61].mxu0  ;;  %v12291_v5 = vpop.f32.mrb[59].mxu1  ;;  %12338 = vmatprep.mubr.msk.bf16.mxu0 %vm19461_vm5, %v3958_v42 }
 0x805   : > { %v3709_v45 = vpop.f32.mrb[62].mxu0 }
 0x806   : > { %v12297_v43 = vpop.f32.mrb[63].mxu0 }
 0x809   : > { %v3754_v13 = vpop.f32.mrb[60].mxu1 }
 0x80a   : > { %v3959_v50 = vpack.c.bf16 %v3754_v13, %v3706_v0  ;;  %v12302_v6 = vpop.f32.mrb[61].mxu1 }
 0x80b   : > { %v3757_v14 = vpop.f32.mrb[62].mxu1 }
 0x80c   : > { %v12303_v32 = vpop.f32.mrb[63].mxu1  ;;  %12339 = vmatmul.mubr.msk.bf16.gmra.mrb[80].mxu0 %vm19461_vm5, %v3959_v50  ;;  %v4107_v14 = vld [vmem:[#allocation16] sm:$0xff]  ;;  %v4108_v50 = vld [vmem:[#allocation16 + $0x8] sm:$0xff] }
 0x82e   : > { %v3802_v34 = vpop.f32.mrb[64].mxu0 }
 0x82f   : > { %v12308_v38 = vpop.f32.mrb[65].mxu0 }
 0x830   : > { %v3805_v12 = vpop.f32.mrb[66].mxu0  ;;  %v4117_v38 = vpack.c.bf16 %v4108_v50, %v4107_v14 }
 0x831   : > { %v12309_v54 = vpop.f32.mrb[67].mxu0 }
 0x832   : > { %12346 = vmatprep.subr.bf16.mxu1 %v4117_v38  ;;  %v19602_v54 = vmov 0.0  }
 0x833   : > { %12347 = vmatpush3.bf16.msra.mxu1 %v4117_v38 }
 0x836   : > { %v3898_v19 = vpop.f32.mrb[68].mxu0 }
 0x837   : > { %v12320_v62 = vpop.f32.mrb[69].mxu0 }
 0x838   : > { %v3901_v7 = vpop.f32.mrb[70].mxu0 }
 0x839   : > { %v12321_v49 = vpop.f32.mrb[71].mxu0 }
 0x83e   : > { %v3850_v16 = vpop.f32.mrb[64].mxu1 }
 0x83f   : > { %v3960_v5 = vpack.c.bf16 %v3850_v16, %v3802_v34  ;;  %v12314_v42 = vpop.f32.mrb[65].mxu1  ;;  %v11748_v34 = vld [vmem:[#allocation14] ss:$0 sm:$0xff] }
 0x840   : > { %v3853_v45 = vpop.f32.mrb[66].mxu1 }
 0x841   : > { %v12315_v43 = vpop.f32.mrb[67].mxu1  ;;  %12342 = vmatprep.mubr.msk.bf16.mxu0 %vm19461_vm5, %v3960_v5 }
 0x846   : > { %v3946_v0 = vpop.f32.mrb[68].mxu1 }
 0x847   : > { %v3961_v13 = vpack.c.bf16 %v3946_v0, %v3898_v19  ;;  %v12326_v6 = vpop.f32.mrb[69].mxu1 }
 0x848   : > { %v3949_v32 = vpop.f32.mrb[70].mxu1 }
 0x849   : > { %v12327_v12 = vpop.f32.mrb[71].mxu1  ;;  %12343 = vmatmul.mubr.msk.bf16.gmra.mrb[84].mxu0 %vm19461_vm5, %v3961_v13 }
 0x84a   : > { %12366 = vmatprep.mubr.msk.bf16.mxu0 %vm14773_vm4, %v19602_v54 }
 0x8bf   : > { %v12332_v62 = vpop.f32.mrb[72].mxu0 }
 0x8c0   : > { %v4037_v7 = vadd.f32 %v12332_v62, %v11748_v34  ;;  %v4028_v49 = vpop.f32.mrb[73].mxu0 }
 0x8c1   : > { %v4029_v16 = vadd.f32 %v11748_v34, %v4028_v49  ;;  %v12333_v5 = vpop.f32.mrb[74].mxu0 }
 0x8c2   : > { %v4040_v19 = vadd.f32 %v12333_v5, %v11748_v34  ;;  %v4031_v42 = vpop.f32.mrb[75].mxu0  ;;  %v4093_v43 = vmax.f32 %v4037_v7, 0.0 }
 0x8c3   : > { %v4032_v45 = vadd.f32 %v11748_v34, %v4031_v42  ;;  %v4091_v6 = vmax.f32 %v4029_v16, 0.0 }
 0x8c4   : > { %v4094_v0 = vmax.f32 %v4040_v19, 0.0 }
 0x8c5   : > { %v4092_v14 = vmax.f32 %v4032_v45, 0.0 }
 0x8c6   : > { %v4110_v50 = vpack.c.bf16 %v4094_v0, %v4093_v43 }
 0x8c7   : > { %v4109_v13 = vpack.c.bf16 %v4092_v14, %v4091_v6 }
 0x8c9   : > { %12348 = vmatprep.mubr.msk.bf16.mxu1 %vm19461_vm5, %v4109_v13 }
 0x8ca   : > { %12349 = vmatmul.mubr.msk.bf16.vlgmr.msra.gmra.mrb[72].mxu1 %vm19461_vm5, %v4110_v50 }
 0x8cf   : > { %v12336_v32 = vpop.f32.mrb[76].mxu0 }
 0x8d0   : > { %v4053_v38 = vadd.f32 %v12336_v32, %v11748_v34  ;;  %v4044_v12 = vpop.f32.mrb[77].mxu0 }
 0x8d1   : > { %v4045_v62 = vadd.f32 %v11748_v34, %v4044_v12  ;;  %v12337_v54 = vpop.f32.mrb[78].mxu0 }
 0x8d2   : > { %v4056_v49 = vadd.f32 %v12337_v54, %v11748_v34  ;;  %v4047_v23 = vpop.f32.mrb[79].mxu0  ;;  %v4097_v60 = vmax.f32 %v4053_v38, 0.0 }
 0x8d3   : > { %v4048_v5 = vadd.f32 %v11748_v34, %v4047_v23  ;;  %v4095_v7 = vmax.f32 %v4045_v62, 0.0 }
 0x8d4   : > { %v4098_v42 = vmax.f32 %v4056_v49, 0.0 }
 0x8d5   : > { %v4096_v19 = vmax.f32 %v4048_v5, 0.0 }
 0x8d6   : > { %v4112_v16 = vpack.c.bf16 %v4098_v42, %v4097_v60 }
 0x8d7   : > { %v4111_v45 = vpack.c.bf16 %v4096_v19, %v4095_v7 }
 0x8d9   : > { %12352 = vmatprep.mubr.msk.bf16.mxu1 %vm19461_vm5, %v4111_v45 }
 0x8da   : > { %12353 = vmatmul.mubr.msk.bf16.gmra.mrb[76].mxu1 %vm19461_vm5, %v4112_v16 }
 0x8df   : > { %v12340_v43 = vpop.f32.mrb[80].mxu0 }
 0x8e0   : > { %v4069_v0 = vadd.f32 %v12340_v43, %v11748_v34  ;;  %v4060_v6 = vpop.f32.mrb[81].mxu0 }
 0x8e1   : > { %v4061_v14 = vadd.f32 %v11748_v34, %v4060_v6  ;;  %v12341_v50 = vpop.f32.mrb[82].mxu0 }
 0x8e2   : > { %v4072_v13 = vadd.f32 %v12341_v50, %v11748_v34  ;;  %v4063_v32 = vpop.f32.mrb[83].mxu0  ;;  %v4101_v12 = vmax.f32 %v4069_v0, 0.0 }
 0x8e3   : > { %v4064_v54 = vadd.f32 %v11748_v34, %v4063_v32  ;;  %v4099_v38 = vmax.f32 %v4061_v14, 0.0 }
 0x8e4   : > { %v4102_v23 = vmax.f32 %v4072_v13, 0.0 }
 0x8e5   : > { %v4100_v49 = vmax.f32 %v4064_v54, 0.0 }
 0x8e6   : > { %v4114_v62 = vpack.c.bf16 %v4102_v23, %v4101_v12  ;;  %v16470_v12 = vld [vmem:[#allocation17] ss:$0 sm:$0xff] }
 0x8e7   : > { %v4113_v5 = vpack.c.bf16 %v4100_v49, %v4099_v38 }
 0x8e9   : > { %12356 = vmatprep.mubr.msk.bf16.mxu1 %vm19461_vm5, %v4113_v5 }
 0x8ea   : > { %12357 = vmatmul.mubr.msk.bf16.gmra.mrb[80].mxu1 %vm19461_vm5, %v4114_v62 }
 0x91c   : > { %v12344_v60 = vpop.f32.mrb[84].mxu0 }
 0x91d   : > { %v4085_v42 = vadd.f32 %v12344_v60, %v11748_v34  ;;  %v4076_v7 = vpop.f32.mrb[85].mxu0 }
 0x91e   : > { %v4077_v19 = vadd.f32 %v11748_v34, %v4076_v7  ;;  %v12345_v16 = vpop.f32.mrb[86].mxu0 }
 0x91f   : > { %v4088_v45 = vadd.f32 %v12345_v16, %v11748_v34  ;;  %v4079_v43 = vpop.f32.mrb[87].mxu0  ;;  %v4105_v50 = vmax.f32 %v4085_v42, 0.0 }
 0x920   : > { %v4080_v6 = vadd.f32 %v11748_v34, %v4079_v43  ;;  %v4103_v0 = vmax.f32 %v4077_v19, 0.0 }
 0x921   : > { %v4106_v32 = vmax.f32 %v4088_v45, 0.0 }
 0x922   : > { %v4104_v13 = vmax.f32 %v4080_v6, 0.0 }
 0x923   : > { %v4116_v14 = vpack.c.bf16 %v4106_v32, %v4105_v50  ;;  %v16478_v50 = vpop.permute.xlu1 %6778 }
 0x924   : > { %v4115_v54 = vpack.c.bf16 %v4104_v13, %v4103_v0  ;;  %19603 = vst [vmem:[#allocation133_spill] sm:$0xff] %v16478_v50 }
 0x926   : > { %12360 = vmatprep.mubr.msk.bf16.mxu1 %vm19461_vm5, %v4115_v54 }
 0x927   : > { %12361 = vmatmul.mubr.msk.bf16.gmra.mrb[84].mxu1 %vm19461_vm5, %v4116_v14 }
 0x928   : > { %12372 = vmatprep.mubr.msk.bf16.mxu1 %vm2047_vm1, %v15608_v11 }
 0x99d   : > { %v12350_v23 = vpop.f32.mrb[72].mxu1 }
 0x99e   : > { %v4192_v38 = vadd.f32 %v12350_v23, %v16470_v12  ;;  %v4183_v49 = vpop.f32.mrb[73].mxu1  ;;  %v6861_v23 = vld [vmem:[#allocation22] sm:$0x3f] }
 0x99f   : > { %v4184_v34 = vadd.f32 %v16470_v12, %v4183_v49  ;;  %v12351_v62 = vpop.f32.mrb[74].mxu1 }
 0x9a0   : > { %v4248_v5 = vmax.f32 %v4192_v38, 0.0  ;;  %v4195_v60 = vadd.f32 %v12351_v62, %v16470_v12  ;;  %v4186_v42 = vpop.f32.mrb[75].mxu1 }
 0x9a1   : > { %v4246_v7 = vmax.f32 %v4184_v34, 0.0  ;;  %v4187_v19 = vadd.f32 %v16470_v12, %v4186_v42  ;;  %v6862_v34 = vpack.c.bf16 %v6861_v23, %v6861_v23 }
 0x9a2   : > { %v4277_v16 = vsel %vm4262_vm8, %v4248_v5, -inf  ;;  %v4249_v11 = vmax.f32 %v4195_v60, 0.0  ;;  %v6787_v60 = vpop.permute.xlu1 %6786 }
 0x9a3   : > { %v4278_v45 = vrot.slane %v4277_v16, 4  ;;  %v4263_v43 = vsel %vm4262_vm8, %v4246_v7, -inf  ;;  %v4247_v6 = vmax.f32 %v4187_v19, 0.0  ;;  %12557 = vmatprep.subr.msk.bf16.mxu1 %vm2072_vm0, %v6862_v34  ;;  %v6864_v19 = vsel %vm2072_vm0, %v6862_v34, 0 }
 0x9a4   : > { %v4264_v32 = vrot.slane %v4263_v43, 4  ;;  %v4284_v0 = vsel %vm4262_vm8, %v4249_v11, -inf  ;;  %v6823_v50 = vmul.f32 %v16433_v15, %v6787_v60  ;;  %12371 = vmatpush3.bf16.msra.mxu1 %v6864_v19 }
 0x9a5   : > { %v4279_v13 = vmax.f32 %v4277_v16, %v4278_v45  ;;  %v4285_v14 = vrot.slane %v4284_v0, 4  ;;  %v4270_v54 = vsel %vm4262_vm8, %v4247_v6, -inf }
 0x9a6   : > { %v4265_v38 = vmax.f32 %v4263_v43, %v4264_v32  ;;  %v4271_v49 = vrot.slane %v4270_v54, 4  ;;  %v16486_v43 = vadd.f32 %v6823_v50, %v16443_v24  ;;  %v6613_v50 = vpop.permute.xlu1 %6612 }
 0x9a7   : > { %v4280_v62 = vrot.slane %v4279_v13, 2  ;;  %v4286_v42 = vmax.f32 %v4284_v0, %v4285_v14  ;;  %12373 = vmatmul.mubr.msk.bf16.vlgmr.msra.gmra.mrb[88].mxu1 %vm2047_vm1, %v15617_v17  ;;  %v6642_v17 = vmul.f32 %v16429_v8, %v6613_v50 }
 0x9a8   : > { %v4266_v29 = vrot.slane %v4265_v38, 2  ;;  %v4272_v4 = vmax.f32 %v4270_v54, %v4271_v49  ;;  %19604 = vst [vmem:[#allocation134_spill] sm:$0xff] %v16486_v43  ;;  %12376 = vmatprep.mubr.msk.bf16.mxu1 %vm2047_vm1, %v15633_v30 }
 0x9a9   : > { %v4281_v61 = vmax.f32 %v4279_v13, %v4280_v62  ;;  %v4287_v16 = vrot.slane %v4286_v42, 2 }
 0x9aa   : > { %v4267_v45 = vmax.f32 %v4265_v38, %v4266_v29  ;;  %v4273_v53 = vrot.slane %v4272_v4, 2 }
 0x9ab   : > { %v4282_v32 = vrot.slane %v4281_v61, 1  ;;  %v4288_v23 = vmax.f32 %v4286_v42, %v4287_v16 }
 0x9ac   : > { %v4268_v0 = vrot.slane %v4267_v45, 1  ;;  %v4274_v14 = vmax.f32 %v4272_v4, %v4273_v53 }
 0x9ad   : > { %v4283_v54 = vmax.f32 %v4281_v61, %v4282_v32  ;;  %v4289_v49 = vrot.slane %v4288_v23, 1  ;;  %v12354_v34 = vpop.f32.mrb[76].mxu1 }
 0x9ae   : > { %v4269_v13 = vmax.f32 %v4267_v45, %v4268_v0  ;;  %v4275_v62 = vrot.slane %v4274_v14, 1  ;;  %v16493_v29 = vadd.f32 %v12354_v34, %v16470_v12  ;;  %v4199_v24 = vpop.f32.mrb[77].mxu1 }
 0x9af   : > { %v4377_v38 = vsub.f32 %v4248_v5, %v4283_v54  ;;  %v4290_v42 = vmax.f32 %v4288_v23, %v4289_v49  ;;  %v16496_v53 = vadd.f32 %v16470_v12, %v4199_v24  ;;  %v12355_v4 = vpop.f32.mrb[78].mxu1  ;;  %12377 = vmatmul.mubr.msk.bf16.gmra.mrb[92].mxu1 %vm2047_vm1, %v15645_v46 }
 0x9b0   : > { %v4375_v61 = vsub.f32 %v4246_v7, %v4269_v13  ;;  %v4276_v60 = vmax.f32 %v4274_v14, %v4275_v62  ;;  %v4252_v19 = vmax.f32 %v16493_v29, 0.0  ;;  %v16501_v30 = vadd.f32 %v12355_v4, %v16470_v12  ;;  %v4202_v16 = vpop.f32.mrb[79].mxu1  ;;  %12380 = vmatprep.mubr.msk.bf16.mxu1 %vm2047_vm1, %v15660_v2 }
 0x9b1   : > { %v4395_v45 = vmul.f32 1.442695, %v4377_v38  ;;  %v4378_v32 = vsub.f32 %v4249_v11, %v4290_v42  ;;  %v4250_v0 = vmax.f32 %v16496_v53, 0.0  ;;  %v16505_v5 = vadd.f32 %v16470_v12, %v4202_v16  ;;  %v6699_v38 = vpop.permute.xlu1 %6698 }
 0x9b2   : > { %v4391_v23 = vmul.f32 1.442695, %v4375_v61  ;;  %v4376_v54 = vsub.f32 %v4247_v6, %v4276_v60  ;;  %v4305_v49 = vsel %vm4262_vm8, %v4252_v19, -inf  ;;  %v19333_v7 = vmax.f32 %v16501_v30, 0.0 }
 0x9b3   : > { %13521 = vpow2.f32 %v4395_v45  ;;  %v4397_v14 = vmul.f32 1.442695, %v4378_v32  ;;  %v4306_v34 = vrot.slane %v4305_v49, 4  ;;  %v4291_v13 = vsel %vm4262_vm8, %v4250_v0, -inf }
 0x9b4   : > { %13523 = vpow2.f32 %v4391_v23  ;;  %v4393_v62 = vmul.f32 1.442695, %v4376_v54  ;;  %v4292_v29 = vrot.slane %v4291_v13, 4  ;;  %v4312_v11 = vsel %vm4262_vm8, %v19333_v7, -inf }
 0x9b5   : > { %13525 = vpow2.f32 %v4397_v14  ;;  %v4307_v6 = vmax.f32 %v4305_v49, %v4306_v34  ;;  %v4313_v24 = vrot.slane %v4312_v11, 4  ;;  %v19332_v50 = vmax.f32 %v16505_v5, 0.0 }
 0x9b6   : > { %13527 = vpow2.f32 %v4393_v62  ;;  %v4293_v42 = vmax.f32 %v4291_v13, %v4292_v29  ;;  %v6726_v53 = vmul.f32 %v16426_v56, %v6699_v38  ;;  %v16530_v29 = vmul.f32 %v16426_v56, %v16407_v37 }
 0x9b7   : > { %v4308_v4 = vrot.slane %v4307_v6, 2  ;;  %v4314_v61 = vmax.f32 %v4312_v11, %v4313_v24  ;;  %v4298_v60 = vsel %vm4262_vm8, %v19332_v50, -inf  ;;  %12381 = vmatmul.mubr.msk.bf16.gmra.mrb[96].mxu1 %vm2047_vm1, %v15668_v9 }
 0x9b8   : > { %v4294_v46 = vrot.slane %v4293_v42, 2  ;;  %v4299_v16 = vrot.slane %v4298_v60, 4  ;;  %v16522_v45 = vadd.f32 %v6726_v53, %v6642_v17  ;;  %12384 = vmatprep.mubr.msk.bf16.mxu1 %vm2047_vm1, %v15680_v21 }
 0x9b9   : > { %v4309_v32 = vmax.f32 %v4307_v6, %v4308_v4  ;;  %v4315_v23 = vrot.slane %v4314_v61, 2 }
 0x9ba   : > { %19605 = vst [vmem:[#allocation135_spill] sm:$0xff] %v16522_v45  ;;  %v4295_v54 = vmax.f32 %v4293_v42, %v4294_v46  ;;  %v4300_v49 = vmax.f32 %v4298_v60, %v4299_v16 }
 0x9bb   : > { %v4310_v14 = vrot.slane %v4309_v32, 1  ;;  %v4316_v2 = vmax.f32 %v4314_v61, %v4315_v23 }
 0x9bc   : > { %v4296_v34 = vrot.slane %v4295_v54, 1  ;;  %v4301_v13 = vrot.slane %v4300_v49, 2 }
 0x9bd   : > { %v16526_v62 = vpop.eup %13521  ;;  %v4311_v11 = vmax.f32 %v4309_v32, %v4310_v14  ;;  %v4317_v17 = vrot.slane %v4316_v2, 1  ;;  %v12358_v24 = vpop.f32.mrb[80].mxu1 }
 0x9be   : > { %v16534_v6 = vpop.eup %13523  ;;  %v4437_v38 = vsel %vm4262_vm8, %v16526_v62, 0.0  ;;  %v4297_v42 = vmax.f32 %v4295_v54, %v4296_v34  ;;  %v4302_v53 = vmax.f32 %v4300_v49, %v4301_v13  ;;  %v16539_v9 = vadd.f32 %v12358_v24, %v16470_v12  ;;  %v4215_v4 = vpop.f32.mrb[81].mxu1 }
 0x9bf   : > { %v16541_v61 = vpop.eup %13525  ;;  %v4438_v37 = vrot.slane %v4437_v38, 4  ;;  %v4423_v60 = vsel %vm4262_vm8, %v16534_v6, 0.0  ;;  %v4381_v46 = vsub.f32 %v4252_v19, %v4311_v11  ;;  %v4318_v16 = vmax.f32 %v4316_v2, %v4317_v17  ;;  %v12359_v21 = vpop.f32.mrb[82].mxu1  ;;  %12385 = vmatmul.mubr.msk.bf16.gmra.mrb[100].mxu1 %vm2047_vm1, %v15692_v27 }
 0x9c0   : > { %v16545_v32 = vpop.eup %13527  ;;  %v4424_v23 = vrot.slane %v4423_v60, 4  ;;  %v4444_v54 = vsel %vm4262_vm8, %v16541_v61, 0.0  ;;  %v4379_v49 = vsub.f32 %v4250_v0, %v4297_v42  ;;  %v4303_v14 = vrot.slane %v4302_v53, 1  ;;  %v4218_v34 = vpop.f32.mrb[83].mxu1 }
 0x9c1   : > { %v4439_v13 = vadd.f32 %v4438_v37, %v4437_v38  ;;  %v4445_v24 = vrot.slane %v4444_v54, 4  ;;  %v4430_v50 = vsel %vm4262_vm8, %v16545_v32, 0.0  ;;  %v4403_v7 = vmul.f32 1.442695, %v4381_v46 }
 0x9c2   : > { %v4425_v45 = vadd.f32 %v4424_v23, %v4423_v60  ;;  %v4431_v43 = vrot.slane %v4430_v50, 4  ;;  %v4399_v19 = vmul.f32 1.442695, %v4379_v49  ;;  %v19606_v2 = vmax.f32 %v16501_v30, 0.0 }
 0x9c3   : > { %v4440_v17 = vrot.slane %v4439_v13, 2  ;;  %v4446_v57 = vadd.f32 %v4445_v24, %v4444_v54  ;;  %13529 = vpow2.f32 %v4403_v7  ;;  %v4304_v41 = vmax.f32 %v4302_v53, %v4303_v14 }
 0x9c4   : > { %v4382_v11 = vsub.f32 %v19606_v2, %v4318_v16  ;;  %v4426_v51 = vrot.slane %v4425_v45, 2  ;;  %v4432_v0 = vadd.f32 %v4431_v43, %v4430_v50  ;;  %13531 = vpow2.f32 %v4399_v19 }
 0x9c5   : > { %v4441_v38 = vadd.f32 %v4440_v17, %v4439_v13  ;;  %v4447_v37 = vrot.slane %v4446_v57, 2  ;;  %v19607_v60 = vmax.f32 %v16505_v5, 0.0  ;;  %v19337_v23 = vmax.f32 %v16539_v9, 0.0 }
 0x9c6   : > { %v4405_v42 = vmul.f32 1.442695, %v4382_v11  ;;  %v4427_v30 = vadd.f32 %v4426_v51, %v4425_v45  ;;  %v4433_v16 = vrot.slane %v4432_v0, 2  ;;  %v16559_v7 = vadd.f32 %v16470_v12, %v4215_v4 }
 0x9c7   : > { %v4380_v46 = vsub.f32 %v19607_v60, %v4304_v41  ;;  %v4442_v53 = vrot.slane %v4441_v38, 1  ;;  %v4448_v43 = vadd.f32 %v4447_v37, %v4446_v57  ;;  %v4333_v27 = vsel %vm4262_vm8, %v19337_v23, -inf }
 0x9c8   : > { %13533 = vpow2.f32 %v4405_v42  ;;  %v4428_v54 = vrot.slane %v4427_v30, 1  ;;  %v4434_v49 = vadd.f32 %v4433_v16, %v4432_v0  ;;  %v4334_v14 = vrot.slane %v4333_v27, 4 }
 0x9c9   : > { %v4401_v50 = vmul.f32 1.442695, %v4380_v46  ;;  %v19336_v41 = vmax.f32 %v16559_v7, 0.0  ;;  %v4449_v5 = vrot.slane %v4448_v43, 1  ;;  %v16566_v51 = vadd.f32 %v12359_v21, %v16470_v12 }
 0x9ca   : > { %v16569_v45 = vadd.f32 %v16470_v12, %v4218_v34  ;;  %v4435_v4 = vrot.slane %v4434_v49, 1  ;;  %v4335_v57 = vmax.f32 %v4333_v27, %v4334_v14  ;;  %v4443_v24 = vadd.f32 %v4442_v53, %v4441_v38 }
 0x9cb   : > { %13535 = vpow2.f32 %v4401_v50  ;;  %v4319_v13 = vsel %vm4262_vm8, %v19336_v41, -inf  ;;  %v19335_v2 = vmax.f32 %v16566_v51, 0.0  ;;  %v4429_v17 = vadd.f32 %v4428_v54, %v4427_v30 }
 0x9cc   : > { %v4320_v19 = vrot.slane %v4319_v13, 4  ;;  %v19334_v11 = vmax.f32 %v16569_v45, 0.0  ;;  %v4336_v0 = vrot.slane %v4335_v57, 2  ;;  %13537 = vrcp.f32 %v4443_v24  ;;  %v6608_v24 = vpop.permute.xlu0 %6607 }
 0x9cd   : > { %v4436_v21 = vadd.f32 %v4435_v4, %v4434_v49  ;;  %v4450_v42 = vadd.f32 %v4449_v5, %v4448_v43  ;;  %v16576_v37 = vpop.eup %13529  ;;  %v4340_v60 = vsel %vm4262_vm8, %v19335_v2, -inf  ;;  %13539 = vrcp.f32 %v4429_v17 }
 0x9ce   : > { %v4321_v34 = vmax.f32 %v4319_v13, %v4320_v19  ;;  %v4326_v38 = vsel %vm4262_vm8, %v19334_v11, -inf  ;;  %v16584_v46 = vpop.eup %13531  ;;  %v4465_v30 = vsel %vm4262_vm8, %v16576_v37, 0.0  ;;  %v4337_v16 = vmax.f32 %v4335_v57, %v4336_v0  ;;  %v16594_v0 = vpop.permute.xlu1 %6622 }
 0x9cf   : > { %v4341_v53 = vrot.slane %v4340_v60, 4  ;;  %v4327_v43 = vrot.slane %v4326_v38, 4  ;;  %v4466_v50 = vrot.slane %v4465_v30, 4  ;;  %v4451_v27 = vsel %vm4262_vm8, %v16584_v46, 0.0  ;;  %19608 = vst [vmem:[#allocation136_spill] sm:$0xff] %v16594_v0 }
 0x9d0   : > { %v4322_v54 = vrot.slane %v4321_v34, 2  ;;  %13541 = vrcp.f32 %v4436_v21  ;;  %v4452_v14 = vrot.slane %v4451_v27, 4  ;;  %v4338_v5 = vrot.slane %v4337_v16, 1 }
 0x9d1   : > { %v4342_v4 = vmax.f32 %v4340_v60, %v4341_v53  ;;  %v4328_v13 = vmax.f32 %v4326_v38, %v4327_v43  ;;  %v4467_v19 = vadd.f32 %v4466_v50, %v4465_v30  ;;  %v6641_v11 = vmul.f32 %v16429_v8, %v6608_v24 }
 0x9d2   : > { %v16590_v49 = vpop.eup %13533  ;;  %v4323_v57 = vmax.f32 %v4321_v34, %v4322_v54  ;;  %v4453_v2 = vadd.f32 %v4452_v14, %v4451_v27  ;;  %v4339_v23 = vmax.f32 %v4337_v16, %v4338_v5  ;;  %13543 = vrcp.f32 %v4450_v42  ;;  %v16605_v31 = vpop.permute.xlu1 %6706 }
 0x9d3   : > { %v4472_v17 = vsel %vm4262_vm8, %v16590_v49, 0.0  ;;  %v4343_v21 = vrot.slane %v4342_v4, 2  ;;  %v4468_v1 = vrot.slane %v4467_v19, 2  ;;  %v4329_v60 = vrot.slane %v4328_v13, 2  ;;  %19611 = vst [vmem:[#allocation137_spill] sm:$0xff] %v16605_v31 }
 0x9d4   : > { %v4473_v41 = vrot.slane %v4472_v17, 4  ;;  %v4324_v26 = vrot.slane %v4323_v57, 1  ;;  %v4454_v38 = vrot.slane %v4453_v2, 2  ;;  %v19609_v34 = vmax.f32 %v16539_v9, 0.0 }
 0x9d5   : > { %v16597_v22 = vpop.eup %13535  ;;  %v4469_v50 = vadd.f32 %v4468_v1, %v4467_v19  ;;  %v4344_v14 = vmax.f32 %v4342_v4, %v4343_v21  ;;  %v4330_v39 = vmax.f32 %v4328_v13, %v4329_v60 }
 0x9d6   : > { %v4474_v30 = vadd.f32 %v4473_v41, %v4472_v17  ;;  %v4458_v53 = vsel %vm4262_vm8, %v16597_v22, 0.0  ;;  %v4385_v43 = vsub.f32 %v19609_v34, %v4339_v23  ;;  %v4325_v27 = vmax.f32 %v4323_v57, %v4324_v26  ;;  %v13538_v16 = vpop.eup %13537 }
 0x9d7   : > { %v4459_v54 = vrot.slane %v4458_v53, 4  ;;  %v4455_v5 = vadd.f32 %v4454_v38, %v4453_v2  ;;  %v13540_v3 = vpop.eup %13539  ;;  %v4470_v33 = vrot.slane %v4469_v50, 1  ;;  %v19610_v41 = vmax.f32 %v16559_v7, 0.0 }
 0x9d8   : > { %v4475_v24 = vrot.slane %v4474_v30, 2  ;;  %v4411_v0 = vmul.f32 1.442695, %v4385_v43  ;;  %v4345_v10 = vrot.slane %v4344_v14, 1  ;;  %v4331_v1 = vrot.slane %v4330_v39, 1 }
 0x9d9   : > { %v4460_v42 = vadd.f32 %v4459_v54, %v4458_v53  ;;  %v4383_v17 = vsub.f32 %v19610_v41, %v4325_v27  ;;  %v4456_v9 = vrot.slane %v4455_v5, 1  ;;  %v16608_v57 = vmul.f32 %v13538_v16, %v16526_v62  ;;  %v6795_v27 = vpop.permute.xlu1 %6794 }
 0x9da   : > { %v4476_v23 = vadd.f32 %v4475_v24, %v4474_v30  ;;  %13545 = vpow2.f32 %v4411_v0  ;;  %v13542_v26 = vpop.eup %13541  ;;  %v4346_v2 = vmax.f32 %v4344_v14, %v4345_v10  ;;  %v4332_v21 = vmax.f32 %v4330_v39, %v4331_v1 }
 0x9db   : > { %v4461_v4 = vrot.slane %v4460_v42, 2  ;;  %v4407_v19 = vmul.f32 1.442695, %v4383_v17  ;;  %19612 = vst [vmem:[#allocation138_spill] sm:$0xff] %v16608_v57  ;;  %v16611_v60 = vmul.f32 %v13542_v26, %v16545_v32  ;;  %v19614_v38 = vmax.f32 %v16566_v51, 0.0  ;;  %4579 = vperm.xlu1 %13024, %v16608_v57   ;;  %v16736_v57 = vld [vmem:[%s15518_s6] sm:$0xff] }
 0x9dc   : > { %v4477_v13 = vrot.slane %v4476_v23, 1  ;;  %v4471_v0 = vadd.f32 %v4470_v33, %v4469_v50  ;;  %v19615_v30 = vmax.f32 %v16569_v45, 0.0  ;;  %v16620_v10 = vmul.f32 %v13540_v3, %v16534_v6  ;;  %v13544_v32 = vpop.eup %13543 }
 0x9dd   : > { %19613 = vst [vmem:[#allocation139_spill] sm:$0xff] %v16611_v60  ;;  %v4462_v7 = vadd.f32 %v4461_v4, %v4460_v42  ;;  %13547 = vpow2.f32 %v4407_v19  ;;  %v4386_v53 = vsub.f32 %v19614_v38, %v4346_v2  ;;  %4574 = vperm.xlu0 %13021, %v16611_v60   ;;  %v4457_v62 = vadd.f32 %v4456_v9, %v4455_v5 }
 0x9de   : > { %v4384_v34 = vsub.f32 %v19615_v30, %v4332_v21  ;;  %19616 = vst [vmem:[#allocation140_spill] sm:$0xff] %v16620_v10  ;;  %v4478_v39 = vadd.f32 %v4477_v13, %v4476_v23  ;;  %13549 = vrcp.f32 %v4471_v0  ;;  %v6741_v51 = vadd.f32 %v16530_v29, %v6641_v11 }
 0x9df   : > { %v4463_v43 = vrot.slane %v4462_v7, 1  ;;  %v4413_v54 = vmul.f32 1.442695, %v4386_v53  ;;  %v6825_v33 = vmul.f32 %v16433_v15, %v6795_v27  ;;  %4569 = vperm.xlu1 %13024, %v16620_v10   ;;  %v16628_v6 = vmul.f32 %v13544_v32, %v16541_v61 }
 0x9e0   : > { %v4409_v14 = vmul.f32 1.442695, %v4384_v34  ;;  %13551 = vrcp.f32 %v4478_v39 }
 0x9e1   : > { %13553 = vpow2.f32 %v4413_v54  ;;  %v4464_v45 = vadd.f32 %v4463_v43, %v4462_v7  ;;  %v16625_v3 = vadd.f32 %v6825_v33, %v6741_v51  ;;  %19618 = vst [vmem:[#allocation142_spill] sm:$0xff] %v16628_v6 }
 0x9e2   : > { %13555 = vpow2.f32 %v4409_v14 }
 0x9e3   : > { %19617 = vst [vmem:[#allocation141_spill] sm:$0xff] %v16625_v3  ;;  %13557 = vrcp.f32 %v4457_v62  ;;  %4584 = vperm.xlu1 %13024, %v16628_v6   ;;  %v13628_v6 = vld [vmem:[%s15526_s13 + $0x34] sm:$0xf]  ;;  %v16791_v3 = vld [vmem:[%s15518_s6 + $0x20] sm:$0xff] }
 0x9e4   : > { %v13546_v50 = vpop.eup %13545  ;;  %13559 = vrcp.f32 %v4464_v45 }
 0x9e5   : > { %v4493_v29 = vsel %vm4262_vm8, %v13546_v50, 0.0 }
 0x9e6   : > { %v4494_v11 = vrot.slane %v4493_v29, 4 }
 0x9e7   : > { %v13548_v16 = vpop.eup %13547 }
 0x9e8   : > { %v4495_v5 = vadd.f32 %v4494_v11, %v4493_v29  ;;  %v4479_v24 = vsel %vm4262_vm8, %v13548_v16, 0.0  ;;  %v13550_v42 = vpop.eup %13549 }
 0x9e9   : > { %v4480_v41 = vrot.slane %v4479_v24, 4  ;;  %v16634_v23 = vmul.f32 %v13550_v42, %v16576_v37 }
 0x9ea   : > { %v13552_v17 = vpop.eup %13551  ;;  %v4496_v9 = vrot.slane %v4495_v5, 2 }
 0x9eb   : > { %19619 = vst [vmem:[#allocation143_spill] sm:$0xff] %v16634_v23  ;;  %v13554_v61 = vpop.eup %13553  ;;  %v4481_v1 = vadd.f32 %v4480_v41, %v4479_v24  ;;  %v16637_v26 = vmul.f32 %v13552_v17, %v16590_v49  ;;  %4599 = vperm.xlu0 %13021, %v16634_v23   ;;  %v13621_v23 = vld [vmem:[%s15526_s13 + $0x28] sm:$0xf] }
 0x9ec   : > { %v16639_v4 = vpop.eup %13555  ;;  %v4497_v19 = vadd.f32 %v4496_v9, %v4495_v5  ;;  %v4500_v2 = vsel %vm4262_vm8, %v13554_v61, 0.0 }
 0x9ed   : > { %19620 = vst [vmem:[#allocation144_spill] sm:$0xff] %v16637_v26  ;;  %v13558_v13 = vpop.eup %13557  ;;  %v4482_v21 = vrot.slane %v4481_v1, 2  ;;  %v4501_v7 = vrot.slane %v4500_v2, 4  ;;  %v4486_v38 = vsel %vm4262_vm8, %v16639_v4, 0.0  ;;  %4604 = vperm.xlu1 %13024, %v16637_v26  }
 0x9ee   : > { %v13560_v37 = vpop.eup %13559  ;;  %v4498_v53 = vrot.slane %v4497_v19, 1  ;;  %v4487_v0 = vrot.slane %v4486_v38, 4  ;;  %v16647_v49 = vmul.f32 %v13558_v13, %v16584_v46 }
 0x9ef   : > { %v4483_v30 = vadd.f32 %v4482_v21, %v4481_v1  ;;  %v4502_v34 = vadd.f32 %v4501_v7, %v4500_v2  ;;  %v16650_v39 = vmul.f32 %v13560_v37, %v16597_v22 }
 0x9f0   : > { %19621 = vst [vmem:[#allocation145_spill] sm:$0xff] %v16647_v49  ;;  %v4488_v62 = vadd.f32 %v4487_v0, %v4486_v38  ;;  %4589 = vperm.xlu0 %13021, %v16647_v49   ;;  %v4499_v32 = vadd.f32 %v4498_v53, %v4497_v19  ;;  %v16721_v49 = vld [vmem:[%s15518_s6 + $0x10] sm:$0xff] }
 0x9f1   : > { %19622 = vst [vmem:[#allocation146_spill] sm:$0xff] %v16650_v39  ;;  %v4484_v43 = vrot.slane %v4483_v30, 1  ;;  %v4503_v54 = vrot.slane %v4502_v34, 2  ;;  %4594 = vperm.xlu1 %13024, %v16650_v39  }
 0x9f2   : > { %v4489_v51 = vrot.slane %v4488_v62, 2  ;;  %13561 = vrcp.f32 %v4499_v32 }
 0x9f3   : > { %v4504_v27 = vadd.f32 %v4503_v54, %v4502_v34  ;;  %v4485_v14 = vadd.f32 %v4484_v43, %v4483_v30 }
 0x9f4   : > { %v4490_v33 = vadd.f32 %v4489_v51, %v4488_v62 }
 0x9f5   : > { %v4505_v46 = vrot.slane %v4504_v27, 1  ;;  %13563 = vrcp.f32 %v4485_v14 }
 0x9f6   : > { %v4491_v45 = vrot.slane %v4490_v33, 1 }
 0x9f7   : > { %v4506_v29 = vadd.f32 %v4505_v46, %v4504_v27 }
 0x9f8   : > { %v4492_v11 = vadd.f32 %v4491_v45, %v4490_v33 }
 0x9f9   : > { %13565 = vrcp.f32 %v4506_v29 }
 0x9fa   : > { %13567 = vrcp.f32 %v4492_v11  ;;  %v12362_v5 = vpop.f32.mrb[84].mxu1 }
 0x9fb   : > { %v4240_v42 = vadd.f32 %v12362_v5, %v16470_v12  ;;  %v4231_v41 = vpop.f32.mrb[85].mxu1 }
 0x9fc   : > { %v13562_v22 = vpop.eup %13561  ;;  %v4232_v17 = vadd.f32 %v16470_v12, %v4231_v41  ;;  %v12363_v9 = vpop.f32.mrb[86].mxu1 }
 0x9fd   : > { %v16654_v24 = vmul.f32 %v13562_v22, %v13546_v50  ;;  %v4260_v19 = vmax.f32 %v4240_v42, 0.0  ;;  %v4243_v2 = vadd.f32 %v12363_v9, %v16470_v12  ;;  %v4234_v13 = vpop.f32.mrb[87].mxu1 }
 0x9fe   : > { %v4258_v21 = vmax.f32 %v4232_v17, 0.0  ;;  %v4235_v7 = vadd.f32 %v16470_v12, %v4234_v13 }
 0x9ff   : > { %19623 = vst [vmem:[#allocation147_spill] sm:$0xff] %v16654_v24  ;;  %v13564_v1 = vpop.eup %13563  ;;  %4619 = vperm.xlu0 %13021, %v16654_v24   ;;  %v4361_v38 = vsel %vm4262_vm8, %v4260_v19, -inf  ;;  %v4261_v50 = vmax.f32 %v4243_v2, 0.0 }
 0xa00   : > { %v16662_v37 = vmul.f32 %v13564_v1, %v13548_v16  ;;  %v4362_v53 = vrot.slane %v4361_v38, 4  ;;  %v4347_v0 = vsel %vm4262_vm8, %v4258_v21, -inf  ;;  %v4259_v30 = vmax.f32 %v4235_v7, 0.0 }
 0xa01   : > { %v4348_v62 = vrot.slane %v4347_v0, 4  ;;  %v4368_v32 = vsel %vm4262_vm8, %v4261_v50, -inf }
 0xa02   : > { %19624 = vst [vmem:[#allocation148_spill] sm:$0xff] %v16662_v37  ;;  %v4363_v43 = vmax.f32 %v4361_v38, %v4362_v53  ;;  %v4369_v51 = vrot.slane %v4368_v32, 4  ;;  %v4354_v12 = vsel %vm4262_vm8, %v4259_v30, -inf }
 0xa03   : > { %v13566_v34 = vpop.eup %13565  ;;  %4609 = vperm.xlu0 %13021, %v16662_v37   ;;  %v4349_v14 = vmax.f32 %v4347_v0, %v4348_v62  ;;  %v4355_v16 = vrot.slane %v4354_v12, 4  ;;  %v16774_v37 = vld [vmem:[%s15518_s6 + $0x30] sm:$0xff] }
 0xa04   : > { %v16667_v54 = vmul.f32 %v13566_v34, %v13554_v61  ;;  %v13568_v27 = vpop.eup %13567  ;;  %v4364_v33 = vrot.slane %v4363_v43, 2  ;;  %v4370_v46 = vmax.f32 %v4368_v32, %v4369_v51 }
 0xa05   : > { %v4350_v45 = vrot.slane %v4349_v14, 2  ;;  %v4356_v29 = vmax.f32 %v4354_v12, %v4355_v16  ;;  %v16672_v5 = vmul.f32 %v13568_v27, %v16639_v4 }
 0xa06   : > { %19625 = vst [vmem:[#allocation149_spill] sm:$0xff] %v16667_v54  ;;  %4624 = vperm.xlu1 %13024, %v16667_v54   ;;  %v4365_v11 = vmax.f32 %v4363_v43, %v4364_v33  ;;  %v4371_v22 = vrot.slane %v4370_v46, 2 }
 0xa07   : > { %19626 = vst [vmem:[#allocation150_spill] sm:$0xff] %v16672_v5  ;;  %v4351_v42 = vmax.f32 %v4349_v14, %v4350_v45  ;;  %v4357_v61 = vrot.slane %v4356_v29, 2 }
 0xa08   : > { %v4366_v41 = vrot.slane %v4365_v11, 1  ;;  %v4372_v17 = vmax.f32 %v4370_v46, %v4371_v22 }
 0xa09   : > { %v4352_v9 = vrot.slane %v4351_v42, 1  ;;  %v4358_v1 = vmax.f32 %v4356_v29, %v4357_v61 }
 0xa0a   : > { %4614 = vperm.xlu1 %13024, %v16672_v5   ;;  %v4367_v2 = vmax.f32 %v4365_v11, %v4366_v41  ;;  %v4373_v13 = vrot.slane %v4372_v17, 1 }
 0xa0b   : > { %v4353_v7 = vmax.f32 %v4351_v42, %v4352_v9  ;;  %v4359_v38 = vrot.slane %v4358_v1, 1 }
 0xa0c   : > { %v4389_v53 = vsub.f32 %v4260_v19, %v4367_v2  ;;  %v4374_v0 = vmax.f32 %v4372_v17, %v4373_v13 }
 0xa0d   : > { %v4387_v34 = vsub.f32 %v4258_v21, %v4353_v7  ;;  %v4360_v62 = vmax.f32 %v4358_v1, %v4359_v38 }
 0xa0e   : > { %v4419_v32 = vmul.f32 1.442695, %v4389_v53  ;;  %v4390_v43 = vsub.f32 %v4261_v50, %v4374_v0 }
 0xa0f   : > { %v4415_v4 = vmul.f32 1.442695, %v4387_v34  ;;  %v4388_v51 = vsub.f32 %v4259_v30, %v4360_v62 }
 0xa10   : > { %13569 = vpow2.f32 %v4419_v32  ;;  %v4421_v12 = vmul.f32 1.442695, %v4390_v43 }
 0xa11   : > { %13571 = vpow2.f32 %v4415_v4  ;;  %v4417_v27 = vmul.f32 1.442695, %v4388_v51 }
 0xa12   : > { %13573 = vpow2.f32 %v4421_v12 }
 0xa13   : > { %13575 = vpow2.f32 %v4417_v27 }
 0xa1a   : > { %v13570_v14 = vpop.eup %13569 }
 0xa1b   : > { %v13572_v16 = vpop.eup %13571  ;;  %v4521_v33 = vsel %vm4262_vm8, %v13570_v14, 0.0 }
 0xa1c   : > { %v13574_v46 = vpop.eup %13573  ;;  %v4522_v45 = vrot.slane %v4521_v33, 4  ;;  %v4507_v19 = vsel %vm4262_vm8, %v13572_v16, 0.0 }
 0xa1d   : > { %v13576_v21 = vpop.eup %13575  ;;  %v4508_v29 = vrot.slane %v4507_v19, 4  ;;  %v4528_v50 = vsel %vm4262_vm8, %v13574_v46, 0.0 }
 0xa1e   : > { %v4523_v11 = vadd.f32 %v4522_v45, %v4521_v33  ;;  %v4529_v30 = vrot.slane %v4528_v50, 4  ;;  %v4514_v22 = vsel %vm4262_vm8, %v13576_v21, 0.0  ;;  %vm10073_vm8 = vcmask 261120  }
 0xa1f   : > { %v4509_v42 = vadd.f32 %v4508_v29, %v4507_v19  ;;  %v4515_v61 = vrot.slane %v4514_v22, 4 }
 0xa20   : > { %v4524_v41 = vrot.slane %v4523_v11, 2  ;;  %v4530_v17 = vadd.f32 %v4529_v30, %v4528_v50 }
 0xa21   : > { %v4510_v9 = vrot.slane %v4509_v42, 2  ;;  %v4516_v1 = vadd.f32 %v4515_v61, %v4514_v22  ;;  %v13613_v22 = vld [vmem:[%s15526_s13 + $0x8] sm:$0xf] }
 0xa22   : > { %v4525_v2 = vadd.f32 %v4524_v41, %v4523_v11  ;;  %v4531_v13 = vrot.slane %v4530_v17, 2 }
 0xa23   : > { %v4511_v7 = vadd.f32 %v4510_v9, %v4509_v42  ;;  %v4517_v38 = vrot.slane %v4516_v1, 2  ;;  %v5872_v42 = vsel %vm5843_vm2, %v13613_v22, 4286644096  ;;  %v13618_v22 = vld [vmem:[%s15526_s13 + $0x18] sm:$0xf] }
 0xa24   : > { %v4526_v53 = vrot.slane %v4525_v2, 1  ;;  %v4532_v0 = vadd.f32 %v4531_v13, %v4530_v17  ;;  %v5875_v41 = vunpack.i.h.bf16 %v5872_v42  ;;  %v13614_v17 = vld [vmem:[%s15526_s13 + $0xc] sm:$0xf]  ;;  %v13615_v13 = vld [vmem:[%s15526_s13 + $0x10] sm:$0xf] }
 0xa25   : > { %v4512_v34 = vrot.slane %v4511_v7, 1  ;;  %v4518_v62 = vadd.f32 %v4517_v38, %v4516_v1 }
 0xa26   : > { %v4533_v32 = vrot.slane %v4532_v0, 1  ;;  %v4527_v43 = vadd.f32 %v4526_v53, %v4525_v2 }
 0xa27   : > { %v4519_v4 = vrot.slane %v4518_v62, 1  ;;  %v4513_v51 = vadd.f32 %v4512_v34, %v4511_v7  ;;  %v5898_v7 = vsel %vm5843_vm2, %v13615_v13, 4286644096 }
 0xa28   : > { %13577 = vrcp.f32 %v4527_v43  ;;  %v4534_v12 = vadd.f32 %v4533_v32, %v4532_v0  ;;  %v5900_v53 = vunpack.i.l.bf16 %v5898_v7  ;;  %v5901_v0 = vunpack.i.h.bf16 %v5898_v7 }
 0xa29   : > { %13579 = vrcp.f32 %v4513_v51  ;;  %v4520_v27 = vadd.f32 %v4519_v4, %v4518_v62  ;;  %v13616_v62 = vld [vmem:[%s15526_s13 + $0x14] sm:$0xf] }
 0xa2a   : > { %13581 = vrcp.f32 %v4534_v12  ;;  %v5911_v32 = vsel %vm5843_vm2, %v13616_v62, 4286644096  ;;  %v5902_v4 = vmax.f32 %v5900_v53, %v5901_v0  ;;  %v13620_v53 = vld [vmem:[%s15526_s13 + $0x1c] sm:$0xf] }
 0xa2b   : > { %13583 = vrcp.f32 %v4520_v27  ;;  %v5913_v51 = vunpack.i.l.bf16 %v5911_v32  ;;  %v5914_v12 = vunpack.i.h.bf16 %v5911_v32  ;;  %v5937_v0 = vsel %vm5843_vm2, %v13620_v53, 4286644096  ;;  %v16712_v53 = vpop.permute.xlu1 %6798 }
 0xa2c   : > { %19632 = vst [vmem:[#allocation155_spill] sm:$0xff] %v16712_v53 }
 0xa32   : > { %v13578_v33 = vpop.eup %13577 }
 0xa33   : > { %v13580_v45 = vpop.eup %13579  ;;  %v16679_v19 = vmul.f32 %v13578_v33, %v13570_v14  ;;  %v5874_v14 = vunpack.i.l.bf16 %v5872_v42  ;;  %v5924_v42 = vsel %vm5843_vm2, %v13618_v22, 4286644096  ;;  %v5940_v22 = vunpack.i.h.bf16 %v5937_v0 }
 0xa34   : > { %v13582_v29 = vpop.eup %13581  ;;  %v16685_v30 = vmul.f32 %v13580_v45, %v13572_v16  ;;  %v19631_v16 = vmov 2   ;;  %v13617_v45 = vld [vmem:[%s15526_s13 + $0x20] sm:$0xf]  ;;  %v5926_v13 = vunpack.i.l.bf16 %v5924_v42  ;;  %v5927_v7 = vunpack.i.h.bf16 %v5924_v42 }
 0xa35   : > { %19627 = vst [vmem:[#allocation151_spill] sm:$0xff] %v16679_v19  ;;  %4639 = vperm.xlu0 %13021, %v16679_v19   ;;  %v16682_v50 = vmul.f32 %v13582_v29, %v13574_v46  ;;  %v13584_v11 = vpop.eup %13583  ;;  %v5885_v46 = vsel %vm5843_vm2, %v13614_v17, 4286644096  ;;  %v5876_v2 = vmax.f32 %v5874_v14, %v5875_v41  ;;  %v5950_v29 = vsel %vm5843_vm2, %v13617_v45, 4286644096 }
 0xa36   : > { %19629 = vst [vmem:[#allocation153_spill] sm:$0xff] %v16685_v30  ;;  %v16690_v61 = vmul.f32 %v13584_v11, %v13576_v21  ;;  %v5887_v9 = vunpack.i.l.bf16 %v5885_v46  ;;  %v5888_v1 = vunpack.i.h.bf16 %v5885_v46  ;;  %v5903_v11 = vrot.slane %v5902_v4, 4 }
 0xa37   : > { %19628 = vst [vmem:[#allocation152_spill] sm:$0xff] %v16682_v50  ;;  %4644 = vperm.xlu1 %13024, %v16682_v50   ;;  %v5877_v21 = vrot.slane %v5876_v2, 4  ;;  %v5915_v14 = vmax.f32 %v5913_v51, %v5914_v12  ;;  %v5952_v17 = vunpack.i.l.bf16 %v5950_v29  ;;  %v5953_v46 = vunpack.i.h.bf16 %v5950_v29 }
 0xa38   : > { %19630 = vst [vmem:[#allocation154_spill] sm:$0xff] %v16690_v61  ;;  %v5889_v38 = vmax.f32 %v5887_v9, %v5888_v1  ;;  %v13619_v9 = vld [vmem:[%s15526_s13 + $0x24] sm:$0xf]  ;;  %v5928_v45 = vmax.f32 %v5926_v13, %v5927_v7  ;;  %v5939_v29 = vunpack.i.l.bf16 %v5937_v0 }
 0xa39   : > { %4629 = vperm.xlu0 %13021, %v16685_v30   ;;  %v5878_v43 = vmax.f32 %v5876_v2, %v5877_v21  ;;  %v5963_v1 = vsel %vm5843_vm2, %v13619_v9, 4286644096  ;;  %v5916_v21 = vrot.slane %v5915_v14, 4  ;;  %v5954_v51 = vmax.f32 %v5952_v17, %v5953_v46  ;;  %v16714_v46 = vpop.permute.xlu0 %6617 }
 0xa3a   : > { %v5890_v34 = vrot.slane %v5889_v38, 4  ;;  %v5966_v62 = vunpack.i.h.bf16 %v5963_v1  ;;  %v5976_v9 = vsel %vm5843_vm2, %v13621_v23, 4286644096  ;;  %19633 = vst [vmem:[#allocation156_spill] sm:$0xff] %v16714_v46  ;;  %v5929_v7 = vrot.slane %v5928_v45, 4 }
 0xa3b   : > { %4634 = vperm.xlu1 %13024, %v16690_v61   ;;  %v5879_v33 = vrot.slane %v5878_v43, 2  ;;  %v5955_v26 = vrot.slane %v5954_v51, 4  ;;  %v5941_v23 = vmax.f32 %v5939_v29, %v5940_v22 }
 0xa3c   : > { %v5891_v27 = vmax.f32 %v5889_v38, %v5890_v34  ;;  %v5904_v38 = vmax.f32 %v5902_v4, %v5903_v11  ;;  %v5965_v34 = vunpack.i.l.bf16 %v5963_v1  ;;  %v5917_v4 = vmax.f32 %v5915_v14, %v5916_v21 }
 0xa3d   : > { %v5880_v2 = vmax.f32 %v5878_v43, %v5879_v33  ;;  %v13622_v43 = vld [vmem:[%s15526_s13 + $0x2c] sm:$0xf]  ;;  %v5978_v1 = vunpack.i.l.bf16 %v5976_v9  ;;  %v5956_v21 = vmax.f32 %v5954_v51, %v5955_v26  ;;  %v5930_v29 = vmax.f32 %v5928_v45, %v5929_v7 }
 0xa3e   : > { %v5892_v41 = vrot.slane %v5891_v27, 2  ;;  %v5989_v33 = vsel %vm5843_vm2, %v13622_v43, 4286644096  ;;  %v5905_v42 = vrot.slane %v5904_v38, 2  ;;  %v5967_v11 = vmax.f32 %v5965_v34, %v5966_v62 }
 0xa3f   : > { %13026 = vset.pattern.permute.xlu1 %v19631_v16  ;;  %v5881_v12 = vrot.slane %v5880_v2, 1  ;;  %v5992_v17 = vunpack.i.h.bf16 %v5989_v33  ;;  %v5918_v43 = vrot.slane %v5917_v4, 2  ;;  %v5942_v22 = vrot.slane %v5941_v23, 4 }
 0xa40   : > { %v5893_v32 = vmax.f32 %v5891_v27, %v5892_v41  ;;  %v5979_v27 = vunpack.i.h.bf16 %v5976_v9  ;;  %v5991_v41 = vunpack.i.l.bf16 %v5989_v33  ;;  %v16716_v0 = vmax.f32 %v5904_v38, %v5905_v42  ;;  %v16725_v38 = vld [vmem:[%s15518_s6 + $0x8] sm:$0xff] }
 0xa41   : > { %v5882_v13 = vmax.f32 %v5880_v2, %v5881_v12  ;;  %v5968_v14 = vrot.slane %v5967_v11, 4 }
 0xa42   : > { %v5894_v19 = vrot.slane %v5893_v32, 1  ;;  %v5980_v9 = vmax.f32 %v5978_v1, %v5979_v27  ;;  %v5993_v50 = vmax.f32 %v5991_v41, %v5992_v17  ;;  %v5957_v1 = vrot.slane %v5956_v21, 2  ;;  %v13625_v27 = vld [vmem:[%s15526_s13 + $0x30] sm:$0xf] }
 0xa43   : > { %v5883_v12 = vpack.i.bf16 %v5882_v13, %v5882_v13  ;;  %v6002_v41 = vsel %vm5843_vm2, %v13625_v27, 4286644096 }
 0xa44   : > { %v16718_v62 = vmax.f32 %v5893_v32, %v5894_v19  ;;  %v16729_v19 = vmax.f32 %v5917_v4, %v5918_v43  ;;  %v5969_v32 = vmax.f32 %v5967_v11, %v5968_v14  ;;  %v5981_v7 = vrot.slane %v5980_v9, 4 }
 0xa45   : > { %v5931_v11 = vrot.slane %v5930_v29, 2  ;;  %v16741_v43 = vmax.f32 %v5941_v23, %v5942_v22  ;;  %v6004_v27 = vunpack.i.l.bf16 %v6002_v41  ;;  %v6005_v51 = vunpack.i.h.bf16 %v6002_v41  ;;  %v16753_v22 = vld [vmem:[%s15518_s6 + $0x18] sm:$0xff] }
 0xa46   : > { %v16744_v24 = vunpack.c.l.b16 %v5883_v12  ;;  %v16746_v10 = vmax.f32 %v5956_v21, %v5957_v1  ;;  %v16748_v4 = vmax.f32 %v5980_v9, %v5981_v7  ;;  %v6015_v9 = vsel %vm5843_vm2, %v13628_v6, 4286644096 }
 0xa47   : > { %v16756_v41 = vmax.f32 %v5930_v29, %v5931_v11 }
 0xa5a   : > { %v4580_v34 = vpop.permute.xlu1 %4579 }
 0xa5b   : > { %v4649_v33 = vmul.f32 %v16721_v49, %v4580_v34  ;;  %v5994_v34 = vrot.slane %v5993_v50, 4 }
 0xa5c   : > { %v4575_v2 = vpop.permute.xlu0 %4574 }
 0xa5d   : > { %v4648_v26 = vmul.f32 %v16725_v38, %v4575_v2  ;;  %v4678_v42 = vsel %vm4663_vm9, %v4649_v33, 0.0  ;;  %v5970_v33 = vrot.slane %v5969_v32, 2  ;;  %v16750_v61 = vmax.f32 %v5993_v50, %v5994_v34 }
 0xa5e   : > { %v4679_v17 = vrot.slane %v4678_v42, 4  ;;  %v4570_v13 = vpop.permute.xlu1 %4569 }
 0xa5f   : > { %v4671_v45 = vsel %vm4663_vm9, %v4648_v26, 0.0  ;;  %v4647_v2 = vmul.f32 %v16736_v57, %v4570_v13  ;;  %v16759_v1 = vmax.f32 %v5969_v32, %v5970_v33 }
 0xa60   : > { %v4672_v30 = vrot.slane %v4671_v45, 4  ;;  %v4680_v14 = vadd.f32 %v4679_v17, %v4678_v42 }
 0xa61   : > { %v4664_v26 = vsel %vm4663_vm9, %v4647_v2, 0.0  ;;  %v6006_v2 = vmax.f32 %v6004_v27, %v6005_v51  ;;  %v13630_v51 = vld [vmem:[%s15526_s13 + $0x3c] sm:$0xf] }
 0xa62   : > { %v4681_v39 = vrot.slane %v4680_v14, 2  ;;  %v4665_v13 = vrot.slane %v4664_v26, 4  ;;  %v4585_v60 = vpop.permute.xlu1 %4584  ;;  %v4673_v23 = vadd.f32 %v4672_v30, %v4671_v45  ;;  %v13629_v30 = vld [vmem:[%s15526_s13 + $0x38] sm:$0xf] }
 0xa63   : > { %v4650_v42 = vmul.f32 %v16753_v22, %v4585_v60  ;;  %v6028_v45 = vsel %vm5843_vm2, %v13629_v30, 4286644096 }
 0xa64   : > { %v4682_v17 = vadd.f32 %v4681_v39, %v4680_v14  ;;  %v4666_v21 = vadd.f32 %v4665_v13, %v4664_v26  ;;  %v4674_v11 = vrot.slane %v4673_v23, 2  ;;  %v6041_v14 = vsel %vm5843_vm2, %v13630_v51, 4286644096 }
 0xa65   : > { %v4685_v50 = vsel %vm4663_vm9, %v4650_v42, 0.0  ;;  %v6007_v26 = vrot.slane %v6006_v2, 4  ;;  %v6017_v13 = vunpack.i.l.bf16 %v6015_v9  ;;  %v6018_v42 = vunpack.i.h.bf16 %v6015_v9 }
 0xa66   : > { %v4683_v7 = vrot.slane %v4682_v17, 1  ;;  %v4667_v60 = vrot.slane %v4666_v21, 2  ;;  %v4686_v29 = vrot.slane %v4685_v50, 4  ;;  %v6030_v30 = vunpack.i.l.bf16 %v6028_v45 }
 0xa67   : > { %v6031_v34 = vunpack.i.h.bf16 %v6028_v45  ;;  %v5972_v45 = vrot.slane %v16759_v1, 1  ;;  %vm4872_vm2 = vcmask 56328  }
 0xa68   : > { %v16771_v6 = vadd.f32 %v4683_v7, %v4682_v17  ;;  %v4668_v33 = vadd.f32 %v4667_v60, %v4666_v21  ;;  %v4687_v27 = vadd.f32 %v4686_v29, %v4685_v50  ;;  %v6043_v7 = vunpack.i.l.bf16 %v6041_v14  ;;  %v16782_v50 = vld [vmem:[%s15518_s6 + $0x38] sm:$0xff] }
 0xa69   : > { %v6044_v21 = vunpack.i.h.bf16 %v6041_v14  ;;  %v4675_v60 = vadd.f32 %v4674_v11, %v4673_v23  ;;  %v6032_v31 = vmax.f32 %v6030_v30, %v6031_v34  ;;  %v19635_v30 = vmov 1  }
 0xa6a   : > { %v4600_v12 = vpop.permute.xlu0 %4599  ;;  %v4688_v54 = vrot.slane %v4687_v27, 2  ;;  %v16779_v39 = vsub.f32 %v16721_v49, %v16771_v6  ;;  %v4669_v29 = vrot.slane %v4668_v33, 1  ;;  %v6008_v49 = vmax.f32 %v6006_v2, %v6007_v26 }
 0xa6b   : > { %v4653_v32 = vmul.f32 %v16774_v37, %v4600_v12  ;;  %v6019_v12 = vmax.f32 %v6017_v13, %v6018_v42  ;;  %v4676_v46 = vrot.slane %v4675_v60, 1 }
 0xa6c   : > { %19634 = vst [vmem:[#allocation157_spill] sm:$0xff] %v16779_v39  ;;  %v4605_v17 = vpop.permute.xlu1 %4604  ;;  %v4689_v51 = vadd.f32 %v4688_v54, %v4687_v27  ;;  %6256 = vperm.xlu0 %13021, %v16779_v39   ;;  %6453 = vperm.xlu1 %13026, %v16779_v39   ;;  %v4670_v26 = vadd.f32 %v4669_v29, %v4668_v33  ;;  %v19638_v33 = vrot.slane %v16746_v10, 1 }
 0xa6d   : > { %v4654_v9 = vmul.f32 %v16782_v50, %v4605_v17  ;;  %v4706_v5 = vsel %vm4663_vm9, %v4653_v32, 0.0  ;;  %v6045_v32 = vmax.f32 %v6043_v7, %v6044_v21  ;;  %v6033_v21 = vrot.slane %v6032_v31, 4 }
 0xa6e   : > { %v4707_v14 = vrot.slane %v4706_v5, 4  ;;  %v4690_v53 = vrot.slane %v4689_v51, 1  ;;  %v16809_v29 = vmax.f32 %v16746_v10, %v19638_v33  ;;  %v4677_v25 = vadd.f32 %v4676_v46, %v4675_v60 }
 0xa6f   : > { %v4713_v23 = vsel %vm4663_vm9, %v4654_v9, 0.0  ;;  %v4590_v11 = vpop.permute.xlu0 %4589  ;;  %v19636_v9 = vmov 0   ;;  %v6009_v10 = vrot.slane %v6008_v49, 2  ;;  %v16833_v60 = vmax.f32 %v16759_v1, %v5972_v45 }
 0xa70   : > { %v4714_v17 = vrot.slane %v4713_v23, 4  ;;  %v4651_v54 = vmul.f32 %v16791_v3, %v4590_v11  ;;  %v4595_v27 = vpop.permute.xlu1 %4594  ;;  %v4708_v18 = vadd.f32 %v4707_v14, %v4706_v5  ;;  %v4691_v13 = vadd.f32 %v4690_v53, %v4689_v51  ;;  %13025 = vset.pattern.permute.xlu0 %v19635_v30  ;;  %13030 = vset.pattern.permute.xlu1 %v19636_v9 }
 0xa71   : > { %v4652_v2 = vmul.f32 %v16795_v36, %v4595_v27  ;;  %v6020_v11 = vrot.slane %v6019_v12, 4  ;;  %6353 = vperm.xlu0 %13025, %v16779_v39   ;;  %v19639_v51 = vrot.slane %v16748_v4, 2 }
 0xa72   : > { %v4715_v42 = vadd.f32 %v4714_v17, %v4713_v23  ;;  %v4692_v34 = vsel %vm4663_vm9, %v4651_v54, 0.0  ;;  %v4709_v48 = vrot.slane %v4708_v18, 2  ;;  %v16804_v53 = vsub.f32 %v16753_v22, %v4691_v13 }
 0xa73   : > { %v4693_v7 = vrot.slane %v4692_v34, 4  ;;  %v4699_v5 = vsel %vm4663_vm9, %v4652_v2, 0.0  ;;  %v5984_v23 = vmax.f32 %v16748_v4, %v19639_v51  ;;  %v6046_v17 = vrot.slane %v6045_v32, 4 }
 0xa74   : > { %v4716_v14 = vrot.slane %v4715_v42, 2  ;;  %v4700_v27 = vrot.slane %v4699_v5, 4  ;;  %19637 = vst [vmem:[#allocation158_spill] sm:$0xff] %v16804_v53  ;;  %v19640_v2 = vrot.slane %v16750_v61, 2  ;;  %6261 = vperm.xlu1 %13030, %v16804_v53   ;;  %v16821_v22 = vsub.f32 %v16736_v57, %v4670_v26 }
 0xa75   : > { %v4694_v54 = vadd.f32 %v4693_v7, %v4692_v34  ;;  %v6021_v33 = vmax.f32 %v6019_v12, %v6020_v11  ;;  %v4710_v44 = vadd.f32 %v4709_v48, %v4708_v18  ;;  %13027 = vset.pattern.permute.xlu0 %v19636_v9  ;;  %v19642_v4 = vrot.slane %v16741_v43, 2 }
 0xa76   : > { %v16817_v39 = vmax.f32 %v16750_v61, %v19640_v2  ;;  %v4701_v20 = vadd.f32 %v4700_v27, %v4699_v5  ;;  %19641 = vst [vmem:[#allocation159_spill] sm:$0xff] %v16821_v22  ;;  %v6034_v61 = vmax.f32 %v6032_v31, %v6033_v21  ;;  %v4717_v7 = vadd.f32 %v4716_v14, %v4715_v42 }
 0xa77   : > { %v4695_v15 = vrot.slane %v4694_v54, 2  ;;  %v16827_v34 = vmax.f32 %v16741_v43, %v19642_v4  ;;  %6246 = vperm.xlu0 %13027, %v16821_v22   ;;  %v5961_v57 = vpack.i.bf16 %v16809_v29, %v16809_v29  ;;  %v6047_v48 = vmax.f32 %v6045_v32, %v6046_v17 }
 0xa78   : > { %v4702_v46 = vrot.slane %v4701_v20, 2  ;;  %v5985_v12 = vrot.slane %v5984_v23, 1  ;;  %v5998_v11 = vrot.slane %v16817_v39, 1  ;;  %v11062_v5 = vsel %vm6087_vm3, %v4677_v25, %v4670_v26  ;;  %13031 = vset.pattern.permute.xlu1 %v19635_v30 }
 0xa79   : > { %v4696_v18 = vadd.f32 %v4695_v15, %v4694_v54  ;;  %v6010_v31 = vmax.f32 %v6008_v49, %v6009_v10  ;;  %v6022_v42 = vrot.slane %v6021_v33, 2  ;;  %v4711_v21 = vrot.slane %v4710_v44, 1  ;;  %6357 = vperm.xlu1 %13031, %v16804_v53  }
 0xa7a   : > { %v4703_v43 = vadd.f32 %v4702_v46, %v4701_v20  ;;  %v6035_v27 = vrot.slane %v6034_v61, 2  ;;  %v4718_v51 = vrot.slane %v4717_v7, 1  ;;  %v6048_v15 = vrot.slane %v6047_v48, 2 }
 0xa7b   : > { %v4697_v14 = vrot.slane %v4696_v18, 1  ;;  %13028 = vset.pattern.permute.xlu0 %v19635_v30  ;;  %v11063_v45 = vsel %vm6089_vm10, %v16771_v6, %v11062_v5  ;;  %v16849_v17 = vsub.f32 %v16725_v38, %v4677_v25  ;;  %v4712_v54 = vadd.f32 %v4711_v21, %v4710_v44  ;;  %v16854_v6 = vld [vmem:[%s15518_s6 + $0x50] sm:$0xff] }
 0xa7c   : > { %v4704_v1 = vrot.slane %v4703_v43, 1  ;;  %6345 = vperm.xlu0 %13028, %v16821_v22   ;;  %v11064_v49 = vsel %vm6091_vm11, %v4691_v13, %v11063_v45  ;;  %v5986_v4 = vmax.f32 %v5984_v23, %v5985_v12  ;;  %v6023_v13 = vmax.f32 %v6021_v33, %v6022_v42  ;;  %v16868_v23 = vpop.f32.mrb[88].mxu1 }
 0xa7d   : > { %v16842_v20 = vadd.f32 %v4697_v14, %v4696_v18  ;;  %19643 = vst [vmem:[#allocation160_spill] sm:$0xff] %v16849_v17  ;;  %13032 = vset.pattern.permute.xlu1 %v19636_v9  ;;  %v16858_v46 = vadd.f32 %v4718_v51, %v4717_v7  ;;  %v5974_v44 = vpack.i.bf16 %v16833_v60, %v16833_v60  ;;  %v19644_v33 = vrot.slane %v16716_v0, 1 }
 0xa7e   : > { %v16846_v32 = vadd.f32 %v4704_v1, %v4703_v43  ;;  %v4620_v26 = vpop.permute.xlu0 %4619  ;;  %6251 = vperm.xlu1 %13032, %v16849_v17   ;;  %v6036_v25 = vmax.f32 %v6034_v61, %v6035_v27  ;;  %v6011_v12 = vrot.slane %v6010_v31, 1  ;;  %v6049_v43 = vmax.f32 %v6047_v48, %v6048_v15  ;;  %v16879_v27 = vld [vmem:[%s15518_s6 + $0x40] sm:$0xff] }
 0xa7f   : > { %v11065_v2 = vsel %vm6093_vm12, %v16842_v20, %v11064_v49  ;;  %v4657_v10 = vmul.f32 %v16854_v6, %v4620_v26  ;;  %v5908_v7 = vmax.f32 %v16716_v0, %v19644_v33  ;;  %v5920_v61 = vrot.slane %v16729_v19, 1 }
 0xa80   : > { %v11066_v18 = vsel %vm6095_vm13, %v16846_v32, %v11065_v2  ;;  %13029 = vset.pattern.permute.xlu0 %v19631_v16  ;;  %v5999_v21 = vmax.f32 %v16817_v39, %v5998_v11  ;;  %v5933_v0 = vrot.slane %v16756_v41, 1  ;;  %v5946_v48 = vrot.slane %v16827_v34, 1 }
 0xa81   : > { %v11067_v38 = vsel %vm6097_vm14, %v4712_v54, %v11066_v18  ;;  %v4734_v5 = vsel %vm4663_vm9, %v4657_v10, 0.0  ;;  %6445 = vperm.xlu0 %13029, %v16821_v22   ;;  %v5987_v1 = vpack.i.bf16 %v5986_v4, %v5986_v4  ;;  %v6024_v15 = vrot.slane %v6023_v13, 1 }
 0xa82   : > { %v11068_v42 = vsel %vm6099_vm15, %v16858_v46, %v11067_v38  ;;  %v4610_v60 = vpop.permute.xlu0 %4609  ;;  %v4735_v14 = vrot.slane %v4734_v5, 4  ;;  %13033 = vset.pattern.permute.xlu1 %v19635_v30  ;;  %v6079_v39 = vunpack.c.l.b16 %v5961_v57  ;;  %v6080_v11 = vunpack.c.l.b16 %v5974_v44 }
 0xa83   : > { %v4655_v51 = vmul.f32 %v16879_v27, %v4610_v60  ;;  %11078 = vst.msk [vmem:[%s16884_s12] sm:$0xff] %vm4663_vm9, %v11068_v42  ;;  %v6037_v45 = vrot.slane %v6036_v25, 1  ;;  %6349 = vperm.xlu1 %13033, %v16849_v17   ;;  %v19645_v26 = vpack.i.bf16 %v16718_v62, %v16718_v62  ;;  %v5909_v10 = vpack.i.bf16 %v5908_v7, %v5908_v7 }
 0xa84   : > { %v6012_v18 = vmax.f32 %v6010_v31, %v6011_v12  ;;  %v6050_v4 = vrot.slane %v6049_v43, 1  ;;  %v5921_v38 = vmax.f32 %v16729_v19, %v5920_v61  ;;  %v6000_v29 = vpack.i.bf16 %v5999_v21, %v5999_v21  ;;  %v16912_v61 = vld [vmem:[%s15518_s6 + $0x58] sm:$0xff]  ;;  %v16918_v21 = vpop.f32.mrb[89].mxu1 }
 0xa85   : > { %v4720_v49 = vsel %vm4663_vm9, %v4655_v51, 0.0  ;;  %v6074_v2 = vunpack.c.l.b16 %v19645_v26  ;;  %6457 = vperm.xlu0 %13029, %v16804_v53   ;;  %v4736_v57 = vadd.f32 %v4735_v14, %v4734_v5  ;;  %v4625_v44 = vpop.permute.xlu1 %4624  ;;  %v5934_v42 = vmax.f32 %v16756_v41, %v5933_v0 }
 0xa86   : > { %v4721_v33 = vrot.slane %v4720_v49, 4  ;;  %v6081_v60 = vunpack.c.l.b16 %v5987_v1  ;;  %v6025_v51 = vmax.f32 %v6023_v13, %v6024_v15  ;;  %v16903_v22 = vsub.f32 %v16774_v37, %v4712_v54 }
 0xa87   : > { %v6090_v62 = vsel %vm6089_vm10, %v16744_v24, %v15657_v63  ;;  %v5947_v31 = vmax.f32 %v16827_v34, %v5946_v48  ;;  %v6101_v19 = vsel %vm6087_vm3, %v6080_v11, %v6079_v39  ;;  %v6038_v7 = vmax.f32 %v6036_v25, %v6037_v45  ;;  %13034 = vset.pattern.permute.xlu1 %v19631_v16 }
 0xa88   : > { %19646 = vst [vmem:[#allocation161_spill] sm:$0xff] %v16903_v22  ;;  %v6013_v5 = vpack.i.bf16 %v6012_v18, %v6012_v18  ;;  %v6051_v12 = vmax.f32 %v6049_v43, %v6050_v4  ;;  %v4658_v41 = vmul.f32 %v16912_v61, %v4625_v44  ;;  %6449 = vperm.xlu1 %13034, %v16849_v17   ;;  %v6082_v54 = vunpack.c.l.b16 %v6000_v29 }
 0xa89   : > { %6469 = vperm.xlu0 %13029, %v16903_v22   ;;  %v5922_v37 = vpack.i.bf16 %v5921_v38, %v5921_v38  ;;  %v4737_v63 = vrot.slane %v4736_v57, 2  ;;  %v4722_v24 = vadd.f32 %v4721_v33, %v4720_v49  ;;  %v5935_v34 = vpack.i.bf16 %v5934_v42, %v5934_v42  ;;  %v4615_v29 = vpop.permute.xlu1 %4614  ;;  %v6053_v33 = vld [vmem:[#allocation37] sm:$0x3f] }
 0xa8a   : > { %v6102_v13 = vsel %vm6089_vm10, %v6081_v60, %v6101_v19  ;;  %v6026_v25 = vpack.i.bf16 %v6025_v51, %v6025_v51  ;;  %v6092_v43 = vsel %vm6091_vm11, %v6074_v2, %v6090_v62  ;;  %v5948_v14 = vpack.i.bf16 %v5947_v31, %v5947_v31 }
 0xa8b   : > { %v6039_v0 = vpack.i.bf16 %v6038_v7, %v6038_v7  ;;  %v16923_v48 = vsub.f32 %v16782_v50, %v16858_v46  ;;  %v6075_v1 = vunpack.c.l.b16 %v5909_v10  ;;  %v6083_v15 = vunpack.c.l.b16 %v6013_v5  ;;  %v16931_v10 = vpop.f32.mrb[90].mxu1  ;;  %v13638_v5 = vld [vmem:[%s15518_s6 + $0x48] sm:$0xff] }
 0xa8c   : > { %v6052_v39 = vpack.i.bf16 %v6051_v12, %v6051_v12  ;;  %v4741_v11 = vsel %vm4663_vm9, %v4658_v41, 0.0  ;;  %13035 = vset.pattern.permute.xlu1 %v19636_v9  ;;  %v6076_v45 = vunpack.c.l.b16 %v5922_v37  ;;  %v6103_v49 = vsel %vm6091_vm11, %v6082_v54, %v6102_v13  ;;  %v16941_v19 = vpop.f32.mrb[91].mxu1 }
 0xa8d   : > { %19647 = vst [vmem:[#allocation162_spill] sm:$0xff] %v16923_v48  ;;  %13040 = vset.pattern.permute.xlu0 %v19636_v9  ;;  %v4738_v26 = vadd.f32 %v4737_v63, %v4736_v57  ;;  %v4723_v2 = vrot.slane %v4722_v24, 2  ;;  %6276 = vperm.xlu1 %13035, %v16903_v22   ;;  %v6077_v50 = vunpack.c.l.b16 %v5935_v34  ;;  %v6084_v46 = vunpack.c.l.b16 %v6026_v25 }
 0xa8e   : > { %6281 = vperm.xlu0 %13040, %v16923_v48   ;;  %v6078_v18 = vunpack.c.l.b16 %v5948_v14  ;;  %v6085_v4 = vunpack.c.l.b16 %v6039_v0  ;;  %v4742_v38 = vrot.slane %v4741_v11, 4  ;;  %v16935_v44 = vsub.f32 %v16795_v36, %v16846_v32 }
 0xa8f   : > { %v6086_v57 = vunpack.c.l.b16 %v6052_v39  ;;  %v6054_v42 = vpack.c.bf16 %v6053_v33, %v6053_v33  ;;  %v6094_v60 = vsel %vm6093_vm12, %v6075_v1, %v6092_v43  ;;  %v6104_v51 = vsel %vm6093_vm12, %v6083_v15, %v6103_v49  ;;  %v7018_v1 = vld [vmem:[#allocation25] sm:$0xff]  ;;  %v7019_v15 = vld [vmem:[#allocation25 + $0x8] sm:$0xff] }
 0xa90   : > { %19648 = vst [vmem:[#allocation163_spill] sm:$0xff] %v16935_v44  ;;  %v4739_v62 = vrot.slane %v4738_v26, 1  ;;  %v4724_v31 = vadd.f32 %v4723_v2, %v4722_v24  ;;  %v6096_v7 = vsel %vm6095_vm13, %v6076_v45, %v6094_v60  ;;  %v4656_v36 = vmul.f32 %v13638_v5, %v4615_v29 }
 0xa91   : > { %13036 = vset.pattern.permute.xlu1 %v19635_v30  ;;  %v6113_v32 = vsel %vm2072_vm0, %v6054_v42, 0  ;;  %v6098_v12 = vsel %vm6097_vm14, %v6077_v50, %v6096_v7  ;;  %v6105_v41 = vsel %vm6095_vm13, %v6084_v46, %v6104_v51  ;;  %v4743_v37 = vadd.f32 %v4742_v38, %v4741_v11  ;;  %v16964_v11 = vpop.f32.mrb[92].mxu1 }
 0xa92   : > { %6271 = vperm.xlu0 %13040, %v16935_v44   ;;  %6369 = vperm.xlu1 %13036, %v16903_v22   ;;  %v6100_v54 = vsel %vm6099_vm15, %v6078_v18, %v6098_v12  ;;  %v6106_v63 = vsel %vm6097_vm14, %v6085_v4, %v6105_v41  ;;  %v16952_v34 = vadd.f32 %v4739_v62, %v4738_v26  ;;  %v4725_v13 = vrot.slane %v4724_v31, 1  ;;  %v16994_v4 = vpop.f32.mrb[93].mxu1  ;;  %v17026_v41 = vld [vmem:[%s15518_s6 + $0x60] sm:$0xff] }
 0xa93   : > { %12365 = vmatpush3.bf16.msra.mxu0 %v6113_v32  ;;  %v6107_v24 = vsel %vm6099_vm15, %v6086_v57, %v6106_v63  ;;  %v16957_v25 = vsub.f32 %v16791_v3, %v16842_v20  ;;  %v4727_v14 = vsel %vm4663_vm9, %v4656_v36, 0.0  ;;  %v4744_v0 = vrot.slane %v4743_v37, 2  ;;  %v17009_v57 = vld [vmem:[%s15518_s6 + $0x70] sm:$0xff]  ;;  %v17012_v51 = vpop.f32.mrb[94].mxu1 }
 0xa94   : > { %v6108_v43 = vpack.c.b16 %v6107_v24, %v6100_v54  ;;  %v7028_v39 = vpack.c.bf16 %v7019_v15, %v7018_v1  ;;  %v16966_v45 = vadd.f32 %v4725_v13, %v4724_v31  ;;  %v4728_v3 = vrot.slane %v4727_v14, 4  ;;  %v17016_v31 = vld [vmem:[%s15518_s6 + $0x78] sm:$0xff] }
 0xa95   : > { %19649 = vst [vmem:[#allocation164_spill] sm:$0xff] %v16957_v25  ;;  %v16970_v20 = vsub.f32 %v16854_v6, %v16952_v34  ;;  %v4745_v49 = vadd.f32 %v4744_v0, %v4743_v37 }
 0xa96   : > { %13044 = vset.pattern.permute.xlu0 %v19631_v16  ;;  %13037 = vset.pattern.permute.xlu1 %v19636_v9  ;;  %v4729_v26 = vadd.f32 %v4728_v3, %v4727_v14  ;;  %v16978_v2 = vsub.f32 %v16879_v27, %v16966_v45 }
 0xa97   : > { %6465 = vperm.xlu0 %13044, %v16935_v44   ;;  %6266 = vperm.xlu1 %13037, %v16957_v25   ;;  %19650 = vst [vmem:[#allocation165_spill] sm:$0xff] %v16970_v20  ;;  %v4746_v50 = vrot.slane %v4745_v49, 1 }
 0xa98   : > { %12367 = vmatmul.mubr.msk.bf16.vlgmr.msra.gmra.mrb[88].mxu0 %vm2047_vm1, %v6108_v43  ;;  %12388 = vmatprep.subr.bf16.mxu0 %v7028_v39  ;;  %19651 = vst [vmem:[#allocation166_spill] sm:$0xff] %v16978_v2  ;;  %v4730_v6 = vrot.slane %v4729_v26, 2  ;;  %v13642_v43 = vld [vmem:[%s15518_s6 + $0x68] sm:$0xff] }
 0xa99   : > { %12389 = vmatpush3.bf16.msra.mxu0 %v7028_v39  ;;  %v16983_v46 = vadd.f32 %v4746_v50, %v4745_v49 }
 0xa9a   : > { %v4731_v18 = vadd.f32 %v4730_v6, %v4729_v26 }
 0xa9b   : > { %13045 = vset.pattern.permute.xlu0 %v19636_v9  ;;  %13038 = vset.pattern.permute.xlu1 %v19635_v30  ;;  %v16991_v27 = vsub.f32 %v16912_v61, %v16983_v46 }
 0xa9c   : > { %6296 = vperm.xlu0 %13045, %v16970_v20   ;;  %6361 = vperm.xlu1 %13038, %v16957_v25   ;;  %v4732_v38 = vrot.slane %v4731_v18, 1 }
 0xa9d   : > { %19652 = vst [vmem:[#allocation167_spill] sm:$0xff] %v16991_v27 }
 0xa9e   : > { %v4733_v29 = vadd.f32 %v4732_v38, %v4731_v18 }
 0xaa0   : > { %6286 = vperm.xlu0 %13045, %v16978_v2   ;;  %13039 = vset.pattern.permute.xlu1 %v19631_v16  ;;  %v17003_v61 = vsub.f32 %v13638_v5, %v4733_v29  ;;  %v17020_v5 = vpop.f32.mrb[95].mxu1 }
 0xaa1   : > { %6461 = vperm.xlu1 %13039, %v16957_v25  }
 0xaa2   : > { %19653 = vst [vmem:[#allocation168_spill] sm:$0xff] %v17003_v61 }
 0xaa4   : > { %13048 = vset.pattern.permute.xlu0 %v19631_v16 }
 0xaa5   : > { %6477 = vperm.xlu0 %13048, %v16978_v2   ;;  %13041 = vset.pattern.permute.xlu1 %v19635_v30 }
 0xaa6   : > { %6373 = vperm.xlu1 %13041, %v16923_v48  }
 0xaa9   : > { %13050 = vset.pattern.permute.xlu0 %v19635_v30 }
 0xaaa   : > { %6389 = vperm.xlu0 %13050, %v16991_v27   ;;  %13042 = vset.pattern.permute.xlu1 %v19631_v16 }
 0xaab   : > { %6473 = vperm.xlu1 %13042, %v16923_v48   ;;  %v19659_v48 = vld [vmem:[#allocation110_spill] sm:$0xff] }
 0xaac   : > { %v6716_v22 = vmul.f32 %v16426_v56, %v19659_v48 }
 0xaae   : > { %13051 = vset.pattern.permute.xlu0 %v19631_v16 }
 0xaaf   : > { %6489 = vperm.xlu0 %13051, %v16991_v27   ;;  %13043 = vset.pattern.permute.xlu1 %v19635_v30 }
 0xab0   : > { %6365 = vperm.xlu1 %13043, %v16935_v44  }
 0xab3   : > { %13052 = vset.pattern.permute.xlu0 %v19635_v30 }
 0xab4   : > { %6381 = vperm.xlu0 %13052, %v17003_v61   ;;  %6385 = vperm.xlu1 %13043, %v16970_v20   ;;  %v4640_v33 = vpop.permute.xlu0 %4639 }
 0xab5   : > { %v4661_v42 = vmul.f32 %v17009_v57, %v4640_v33 }
 0xab6   : > { %v4645_v60 = vpop.permute.xlu1 %4644 }
 0xab7   : > { %v4762_v62 = vsel %vm4663_vm9, %v4661_v42, 0.0  ;;  %v4662_v7 = vmul.f32 %v17016_v31, %v4645_v60  ;;  %v11069_v42 = vsel %vm6087_vm3, %v4733_v29, %v16966_v45 }
 0xab8   : > { %13056 = vset.pattern.permute.xlu0 %v19631_v16  ;;  %v4763_v36 = vrot.slane %v4762_v62, 4  ;;  %13046 = vset.pattern.permute.xlu1 %v19631_v16  ;;  %v4630_v32 = vpop.permute.xlu0 %4629 }
 0xab9   : > { %v4769_v12 = vsel %vm4663_vm9, %v4662_v7, 0.0  ;;  %6485 = vperm.xlu1 %13046, %v16970_v20   ;;  %v4659_v37 = vmul.f32 %v17026_v41, %v4630_v32  ;;  %v11070_v32 = vsel %vm6089_vm10, %v16952_v34, %v11069_v42  ;;  %v19664_v20 = vld [vmem:[#allocation111_spill] sm:$0xff] }
 0xaba   : > { %v4764_v54 = vadd.f32 %v4763_v36, %v4762_v62  ;;  %v4770_v63 = vrot.slane %v4769_v12, 4  ;;  %v4635_v24 = vpop.permute.xlu1 %4634 }
 0xabb   : > { %v4748_v13 = vsel %vm4663_vm9, %v4659_v37, 0.0  ;;  %v4660_v14 = vmul.f32 %v13642_v43, %v4635_v24 }
 0xabc   : > { %v4765_v0 = vrot.slane %v4764_v54, 2  ;;  %v4771_v1 = vadd.f32 %v4770_v63, %v4769_v12  ;;  %v4749_v15 = vrot.slane %v4748_v13, 4  ;;  %v17043_v63 = vpop.f32.mrb[96].mxu1 }
 0xabd   : > { %v4755_v39 = vsel %vm4663_vm9, %v4660_v14, 0.0  ;;  %13047 = vset.pattern.permute.xlu1 %v19635_v30 }
 0xabe   : > { %v4766_v3 = vadd.f32 %v4765_v0, %v4764_v54  ;;  %v4772_v49 = vrot.slane %v4771_v1, 2  ;;  %v4750_v26 = vadd.f32 %v4749_v15, %v4748_v13  ;;  %v4756_v50 = vrot.slane %v4755_v39, 4  ;;  %6377 = vperm.xlu1 %13047, %v16978_v2   ;;  %v19663_v2 = vld [vmem:[#allocation124_spill] sm:$0xff] }
 0xabf   : > { %v11071_v13 = vsel %vm6091_vm11, %v16983_v46, %v11070_v32  ;;  %v6713_v32 = vmul.f32 %v16426_v56, %v16360_v47 }
 0xac0   : > { %v4767_v6 = vrot.slane %v4766_v3, 1  ;;  %v4773_v18 = vadd.f32 %v4772_v49, %v4771_v1  ;;  %v4751_v38 = vrot.slane %v4750_v26, 2  ;;  %v4757_v33 = vadd.f32 %v4756_v50, %v4755_v39  ;;  %v17053_v1 = vpop.f32.mrb[97].mxu1 }
 0xac1   : > { %v17057_v39 = vpop.f32.mrb[98].mxu1 }
 0xac2   : > { %v4768_v60 = vadd.f32 %v4767_v6, %v4766_v3  ;;  %v4774_v62 = vrot.slane %v4773_v18, 1  ;;  %v4752_v7 = vadd.f32 %v4751_v38, %v4750_v26  ;;  %v4758_v36 = vrot.slane %v4757_v33, 2  ;;  %13049 = vset.pattern.permute.xlu1 %v19636_v9  ;;  %v17071_v26 = vpop.f32.mrb[99].mxu1  ;;  %v6243_v38 = vld [vmem:[#allocation19] sm:$0x7] }
 0xac3   : > { %6301 = vperm.xlu1 %13049, %v16991_v27   ;;  %v17085_v50 = vpop.f32.mrb[100].mxu1 }
 0xac4   : > { %v4753_v12 = vrot.slane %v4752_v7, 1  ;;  %v4759_v37 = vadd.f32 %v4758_v36, %v4757_v33  ;;  %v17041_v54 = vsub.f32 %v17009_v57, %v4768_v60  ;;  %v4775_v24 = vadd.f32 %v4774_v62, %v4773_v18 }
 0xac5   : > { %v17102_v33 = vrot.slane %v6243_v38, %v15752_v55  ;;  %v6629_v36 = vmul.f32 %v16429_v8, %v16355_v40 }
 0xac6   : > { %19654 = vst [vmem:[#allocation169_spill] sm:$0xff] %v17041_v54  ;;  %v4754_v45 = vadd.f32 %v4753_v12, %v4752_v7  ;;  %v4760_v29 = vrot.slane %v4759_v37, 1  ;;  %6501 = vperm.xlu0 %13056, %v17041_v54   ;;  %v17051_v0 = vsub.f32 %v17016_v31, %v4775_v24 }
 0xac7   : > { %6291 = vperm.xlu1 %13049, %v17003_v61  }
 0xac8   : > { %v11072_v34 = vsel %vm6093_vm12, %v4754_v45, %v11071_v13  ;;  %v4761_v14 = vadd.f32 %v4760_v29, %v4759_v37  ;;  %19655 = vst [vmem:[#allocation170_spill] sm:$0xff] %v17051_v0  ;;  %v6631_v37 = vmul.f32 %v16429_v8, %v16369_v35  ;;  %v7173_v13 = vld [vmem:[#allocation28] sm:$0x7] }
 0xac9   : > { %v19658_v35 = vld [vmem:[#allocation129_spill] sm:$0xff]  ;;  %v17153_v48 = vrot.slane %v7173_v13, %v15631_v28 }
 0xaca   : > { %v11073_v15 = vsel %vm6095_vm13, %v4761_v14, %v11072_v34  ;;  %13060 = vset.pattern.permute.xlu0 %v19636_v9  ;;  %v17064_v49 = vsub.f32 %v13642_v43, %v4761_v14  ;;  %v17079_v43 = vsub.f32 %v17026_v41, %v4754_v45  ;;  %v17093_v41 = vpop.f32.mrb[101].mxu1  ;;  %v17125_v45 = vrot.slane %v6243_v38, %v15755_v58 }
 0xacb   : > { %v11074_v3 = vsel %vm6097_vm14, %v4768_v60, %v11073_v15  ;;  %13053 = vset.pattern.permute.xlu1 %v19631_v16  ;;  %6321 = vperm.xlu0 %13060, %v17051_v0   ;;  %v17109_v60 = vrot.slane %v6243_v38, %v15631_v28  ;;  %v6729_v14 = vadd.f32 %v6713_v32, %v6629_v36  ;;  %v17135_v38 = vpop.f32.mrb[102].mxu1  ;;  %v19661_v32 = vld [vmem:[#allocation126_spill] sm:$0xff] }
 0xacc   : > { %v11075_v46 = vsel %vm6099_vm15, %v4775_v24, %v11074_v3  ;;  %6481 = vperm.xlu1 %13053, %v17003_v61   ;;  %19656 = vst [vmem:[#allocation171_spill] sm:$0xff] %v17064_v49  ;;  %19657 = vst [vmem:[#allocation172_spill] sm:$0xff] %v17079_v43  ;;  %v6715_v24 = vmul.f32 %v16426_v56, %v16372_v52  ;;  %v6815_v3 = vmul.f32 %v19658_v35, %v16389_v59  ;;  %v10180_v61 = vld [vmem:[#allocation31 + $0x1c0] sm:$0xff] }
 0xacd   : > { %11079 = vst.msk [vmem:[%s16884_s12 + $0x8] sm:$0xff] %vm4663_vm9, %v11075_v46  ;;  %v6632_v59 = vmul.f32 %v16429_v8, %v19661_v32  ;;  %v6816_v17 = vmul.f32 %v19658_v35, %v19664_v20 }
 0xace   : > { %v6731_v15 = vadd.f32 %v6715_v24, %v6631_v37  ;;  %v17148_v37 = vrot.slane %v7173_v13, %v15755_v58  ;;  %v6630_v58 = vmul.f32 %v16429_v8, %v19663_v2 }
 0xacf   : > { %6311 = vperm.xlu0 %13060, %v17064_v49   ;;  %v6732_v27 = vadd.f32 %v6716_v22, %v6632_v59 }
 0xad0   : > { %13054 = vset.pattern.permute.xlu1 %v19636_v9  ;;  %v6831_v32 = vadd.f32 %v6815_v3, %v6731_v15 }
 0xad1   : > { %6316 = vperm.xlu1 %13054, %v17041_v54  }
 0xad3   : > { %13064 = vset.pattern.permute.xlu0 %v19631_v16 }
 0xad4   : > { %6497 = vperm.xlu0 %13064, %v17064_v49  }
 0xad5   : > { %13055 = vset.pattern.permute.xlu1 %v19635_v30 }
 0xad6   : > { %6401 = vperm.xlu1 %13055, %v17041_v54  }
 0xad8   : > { %6802 = vperm.xlu0 %13064, %v17009_v57  }
 0xada   : > { %13057 = vset.pattern.permute.xlu1 %v19636_v9 }
 0xadb   : > { %6306 = vperm.xlu1 %13057, %v17079_v43  }
 0xadf   : > { %13058 = vset.pattern.permute.xlu1 %v19635_v30 }
 0xae0   : > { %6393 = vperm.xlu1 %13058, %v17079_v43  }
 0xae4   : > { %13059 = vset.pattern.permute.xlu1 %v19631_v16 }
 0xae5   : > { %6493 = vperm.xlu1 %13059, %v17079_v43  }
 0xae9   : > { %13061 = vset.pattern.permute.xlu1 %v19635_v30 }
 0xaea   : > { %6405 = vperm.xlu1 %13061, %v17051_v0  }
 0xaeb   : > { %v17091_v57 = vpop.permute.xlu0 %6256  ;;  %v17096_v6 = vpop.permute.xlu1 %6453 }
 0xaec   : > { %v6330_v29 = vmul.f32 %v17109_v60, %v17091_v57  ;;  %v6514_v52 = vmul.f32 %v17125_v45, %v17096_v6 }
 0xaee   : > { %13062 = vset.pattern.permute.xlu1 %v19631_v16 }
 0xaef   : > { %6505 = vperm.xlu1 %13062, %v17051_v0   ;;  %v19662_v0 = vld [vmem:[#allocation108_spill] sm:$0xff] }
 0xaf0   : > { %v17099_v18 = vpop.permute.xlu0 %6353  ;;  %v6714_v54 = vmul.f32 %v16426_v56, %v19662_v0 }
 0xaf1   : > { %v6414_v7 = vmul.f32 %v17102_v33, %v17099_v18 }
 0xaf3   : > { %v17104_v42 = vpop.permute.xlu1 %6261  ;;  %13063 = vset.pattern.permute.xlu1 %v19635_v30  ;;  %v6430_v47 = vadd.f32 %v6414_v7, %v6330_v29  ;;  %v17142_v29 = vrot.slane %v7173_v13, %v15752_v55 }
 0xaf4   : > { %6397 = vperm.xlu1 %13063, %v17064_v49  }
 0xaf5   : > { %v6530_v24 = vadd.f32 %v6514_v52, %v6430_v47  ;;  %v6331_v47 = vmul.f32 %v17109_v60, %v17104_v42  ;;  %v17163_v52 = vpop.f32.mrb[103].mxu1 }
 0xaf6   : > { %v6247_v62 = vpop.permute.xlu0 %6246 }
 0xaf7   : > { %v6328_v36 = vmul.f32 %v17109_v60, %v6247_v62  ;;  %v7178_v13 = vmul.f32 %v17153_v48, %v6247_v62  ;;  %v6847_v44 = vadd.f32 %v6831_v32, %v6530_v24  ;;  %v6730_v62 = vadd.f32 %v6714_v54, %v6630_v58  ;;  %v17177_v32 = vld [vmem:[#allocation23] ss:$0 sm:$0xff]  ;;  %v17181_v54 = vld [vmem:[#allocation29] ss:$0 sm:$0xff] }
 0xaf8   : > { %v17117_v12 = vpop.permute.xlu1 %6357  ;;  %13065 = vset.pattern.permute.xlu1 %v19631_v16 }
 0xaf9   : > { %6806 = vperm.xlu1 %13065, %v17016_v31   ;;  %v19660_v31 = vld [vmem:[#allocation112_spill] sm:$0xff]  ;;  %v6415_v49 = vmul.f32 %v17102_v33, %v17117_v12  ;;  %v6965_v59 = vadd.f32 %v16868_v23, %v6847_v44 }
 0xafa   : > { %v6813_v7 = vmul.f32 %v19658_v35, %v19660_v31 }
 0xafb   : > { %v6346_v40 = vpop.permute.xlu0 %6345  ;;  %v6431_v25 = vadd.f32 %v6415_v49, %v6331_v47  ;;  %v19665_v49 = vld [vmem:[#allocation109_spill] sm:$0xff] }
 0xafc   : > { %v6412_v34 = vmul.f32 %v17102_v33, %v6346_v40  ;;  %v7198_v55 = vmul.f32 %v17142_v29, %v6346_v40  ;;  %v6829_v28 = vadd.f32 %v6813_v7, %v6729_v14 }
 0xafd   : > { %v6252_v46 = vpop.permute.xlu1 %6251 }
 0xafe   : > { %v6428_v31 = vadd.f32 %v6412_v34, %v6328_v36  ;;  %v7214_v15 = vadd.f32 %v7198_v55, %v7178_v13  ;;  %v6814_v55 = vmul.f32 %v19658_v35, %v19665_v49 }
 0xb00   : > { %v6446_v43 = vpop.permute.xlu0 %6445 }
 0xb01   : > { %v6512_v16 = vmul.f32 %v17125_v45, %v6446_v43  ;;  %v7234_v34 = vmul.f32 %v17148_v37, %v6446_v43  ;;  %v6329_v43 = vmul.f32 %v17109_v60, %v6252_v46 }
 0xb02   : > { %v6350_v36 = vpop.permute.xlu1 %6349 }
 0xb03   : > { %v6528_v40 = vadd.f32 %v6512_v16, %v6428_v31  ;;  %v6413_v3 = vmul.f32 %v17102_v33, %v6350_v36  ;;  %v7199_v2 = vmul.f32 %v17142_v29, %v6350_v36  ;;  %v7179_v16 = vmul.f32 %v17153_v48, %v6252_v46 }
 0xb04   : > { %v6458_v0 = vpop.permute.xlu0 %6457  ;;  %v7250_v14 = vadd.f32 %v7234_v34, %v7214_v15  ;;  %v6832_v31 = vadd.f32 %v6816_v17, %v6732_v27  ;;  %v6988_v17 = vadd.f32 %v17177_v32, %v6965_v59 }
 0xb05   : > { %v6515_v53 = vmul.f32 %v17125_v45, %v6458_v0  ;;  %v6845_v22 = vadd.f32 %v6829_v28, %v6528_v40  ;;  %v6429_v47 = vadd.f32 %v6413_v3, %v6329_v43  ;;  %v7215_v13 = vadd.f32 %v7199_v2, %v7179_v16 }
 0xb06   : > { %v6830_v28 = vadd.f32 %v6814_v55, %v6730_v62  ;;  %v7200_v3 = vmul.f32 %v17142_v29, %v17099_v18  ;;  %v7201_v2 = vmul.f32 %v17142_v29, %v17117_v12  ;;  %v7237_v18 = vmul.f32 %v17148_v37, %v6458_v0 }
 0xb07   : > { %v6531_v7 = vadd.f32 %v6515_v53, %v6431_v25  ;;  %v6450_v24 = vpop.permute.xlu1 %6449  ;;  %v7273_v53 = vadd.f32 %v17181_v54, %v7250_v14  ;;  %v6963_v25 = vadd.f32 %v16918_v21, %v6845_v22  ;;  %v7181_v22 = vmul.f32 %v17153_v48, %v17104_v42 }
 0xb08   : > { %v6513_v58 = vmul.f32 %v17125_v45, %v6450_v24  ;;  %v7235_v20 = vmul.f32 %v17148_v37, %v6450_v24  ;;  %v17186_v44 = vpop.permute.xlu0 %6469  ;;  %v7236_v42 = vmul.f32 %v17148_v37, %v17096_v6 }
 0xb09   : > { %v6848_v46 = vadd.f32 %v6832_v31, %v6531_v7  ;;  %v7289_v62 = vmax.f32 %v7273_v53, 0.0  ;;  %v6986_v43 = vadd.f32 %v17177_v32, %v6963_v25  ;;  %v7004_v7 = vmax.f32 %v6988_v17, 0.0 }
 0xb0a   : > { %v7251_v34 = vadd.f32 %v7235_v20, %v7215_v13  ;;  %v6529_v23 = vadd.f32 %v6513_v58, %v6429_v47  ;;  %v7217_v24 = vadd.f32 %v7201_v2, %v7181_v22  ;;  %v6518_v0 = vmul.f32 %v17125_v45, %v17186_v44  ;;  %v19667_v2 = vld [vmem:[#allocation115_spill] sm:$0xff] }
 0xb0b   : > { %v6966_v27 = vadd.f32 %v16931_v10, %v6848_v46  ;;  %v7180_v10 = vmul.f32 %v17153_v48, %v17091_v57  ;;  %v7002_v58 = vmax.f32 %v6986_v43, 0.0 }
 0xb0c   : > { %v7274_v36 = vadd.f32 %v17181_v54, %v7251_v34  ;;  %v6277_v40 = vpop.permute.xlu1 %6276  ;;  %v6846_v15 = vadd.f32 %v6830_v28, %v6529_v23  ;;  %v7253_v46 = vadd.f32 %v7237_v18, %v7217_v24 }
 0xb0d   : > { %v6989_v21 = vadd.f32 %v17177_v32, %v6966_v27  ;;  %v7216_v59 = vadd.f32 %v7200_v3, %v7180_v10  ;;  %v6282_v47 = vpop.permute.xlu0 %6281 }
 0xb0e   : > { %v7290_v16 = vmax.f32 %v7274_v36, 0.0  ;;  %v6964_v14 = vadd.f32 %v16941_v19, %v6846_v15  ;;  %v6334_v19 = vmul.f32 %v17109_v60, %v6277_v40  ;;  %v7276_v27 = vadd.f32 %v17181_v54, %v7253_v46  ;;  %v19666_v36 = vld [vmem:[#allocation131_spill] sm:$0xff]  ;;  %v19670_v46 = vld [vmem:[#allocation117_spill] sm:$0xff] }
 0xb0f   : > { %v7005_v49 = vmax.f32 %v6989_v21, 0.0  ;;  %v7252_v25 = vadd.f32 %v7236_v42, %v7216_v59  ;;  %v6717_v21 = vmul.f32 %v16426_v56, %v19667_v2 }
 0xb10   : > { %v6987_v12 = vadd.f32 %v17177_v32, %v6964_v14  ;;  %v13066_v55 = vpack.i.bf16 %v7290_v16, %v7289_v62  ;;  %v19668_v62 = vld [vmem:[#allocation128_spill] sm:$0xff]  ;;  %v7292_v14 = vmax.f32 %v7276_v27, 0.0  ;;  %v7240_v27 = vmul.f32 %v17148_v37, %v17186_v44  ;;  %v13644_v44 = vld [vmem:[%s15526_s13 + $0x4] sm:$0xf] }
 0xb11   : > { %v7021_v31 = vpack.c.bf16 %v7005_v49, %v7004_v7  ;;  %v6370_v13 = vpop.permute.xlu1 %6369  ;;  %v17210_v17 = vpop.permute.xlu0 %6271  ;;  %v7275_v6 = vadd.f32 %v17181_v54, %v7252_v25  ;;  %v6633_v43 = vmul.f32 %v16429_v8, %v19668_v62  ;;  %v19669_v49 = vld [vmem:[#allocation120_spill] sm:$0xff]  ;;  %v19672_v62 = vld [vmem:[#allocation123_spill] sm:$0xff] }
 0xb12   : > { %v7003_v20 = vmax.f32 %v6987_v12, 0.0  ;;  %v6418_v57 = vmul.f32 %v17102_v33, %v6370_v13  ;;  %13067 = vxpose.xlu0.b32.start.end [1/1] (short) (narrow) %v13066_v55, 32  ;;  %v6817_v18 = vmul.f32 %v19658_v35, %v19669_v49  ;;  %v7204_v24 = vmul.f32 %v17142_v29, %v6370_v13 }
 0xb13   : > { %v7291_v7 = vmax.f32 %v7275_v6, 0.0  ;;  %v6733_v12 = vadd.f32 %v6717_v21, %v6633_v43  ;;  %v13643_v6 = vld [vmem:[%s15526_s13] sm:$0xf]  ;;  %v6820_v43 = vmul.f32 %v19658_v35, %v19672_v62 }
 0xb14   : > { %v7020_v28 = vpack.c.bf16 %v7003_v20, %v7002_v58  ;;  %v6434_v53 = vadd.f32 %v6418_v57, %v6334_v19  ;;  %v7184_v19 = vmul.f32 %v17153_v48, %v6277_v40  ;;  %v4776_v2 = vunpack.c.l.bf16 %v13643_v6 }
 0xb15   : > { %v13088_v59 = vpack.i.bf16 %v7292_v14, %v7291_v7  ;;  %v6833_v42 = vadd.f32 %v6817_v18, %v6733_v12  ;;  %v6335_v14 = vmul.f32 %v17109_v60, %v6282_v47  ;;  %v4777_v18 = vunpack.c.l.bf16 %v13644_v44  ;;  %v19673_v12 = vld [vmem:[#allocation114_spill] sm:$0xff] }
 0xb16   : > { %v6267_v34 = vpop.permute.xlu1 %6266  ;;  %12390 = vmatprep.mubr.msk.bf16.mxu0 %vm19461_vm5, %v7020_v28  ;;  %v6534_v23 = vadd.f32 %v6518_v0, %v6434_v53  ;;  %v17223_v10 = vpop.permute.xlu0 %6465  ;;  %v6636_v0 = vmul.f32 %v16429_v8, %v19670_v46  ;;  %v19671_v28 = vld [vmem:[#allocation119_spill] sm:$0xff]  ;;  %v7220_v25 = vadd.f32 %v7204_v24, %v7184_v19 }
 0xb17   : > { %12391 = vmatmul.mubr.msk.bf16.vlgmr.msra.gmra.mrb[92].mxu0 %vm19461_vm5, %v7021_v31  ;;  %v6720_v53 = vmul.f32 %v16426_v56, %v19671_v28 }
 0xb18   : > { %v6851_v15 = vadd.f32 %v19666_v36, %v6534_v23  ;;  %v7256_v7 = vadd.f32 %v7240_v27, %v7220_v25 }
 0xb19   : > { %v6736_v21 = vadd.f32 %v6720_v53, %v6636_v0 }
 0xb1a   : > { %v17217_v3 = vadd.f32 %v16964_v11, %v6851_v15  ;;  %v6332_v11 = vmul.f32 %v17109_v60, %v6267_v34  ;;  %v7279_v28 = vadd.f32 %v17181_v54, %v7256_v7 }
 0xb1b   : > { %v6362_v16 = vpop.permute.xlu1 %6361  ;;  %v17232_v20 = vpop.permute.xlu0 %6296  ;;  %v6836_v0 = vadd.f32 %v6820_v43, %v6736_v21  ;;  %v7183_v21 = vmul.f32 %v17153_v48, %v17210_v17 }
 0xb1c   : > { %v6416_v22 = vmul.f32 %v17102_v33, %v6362_v16  ;;  %v7202_v24 = vmul.f32 %v17142_v29, %v6362_v16  ;;  %v6992_v7 = vadd.f32 %v17177_v32, %v17217_v3 }
 0xb1e   : > { %v6432_v31 = vadd.f32 %v6416_v22, %v6332_v11  ;;  %v7185_v22 = vmul.f32 %v17153_v48, %v6282_v47  ;;  %v6634_v11 = vmul.f32 %v16429_v8, %v19673_v12 }
 0xb1f   : > { %v17250_v49 = vpop.permute.xlu0 %6286 }
 0xb20   : > { %v6462_v55 = vpop.permute.xlu1 %6461 }
 0xb21   : > { %v6516_v58 = vmul.f32 %v17125_v45, %v6462_v55  ;;  %v7238_v46 = vmul.f32 %v17148_v37, %v6462_v55  ;;  %v17270_v55 = vpack.i.bf16 %v4777_v18, %v4776_v2  ;;  %v7239_v2 = vmul.f32 %v17148_v37, %v17223_v10 }
 0xb22   : > { %13089 = vxpose.xlu1.b32.start.end [1/1] (short) (narrow) %v13088_v59, 32 }
 0xb23   : > { %v6532_v57 = vadd.f32 %v6516_v58, %v6432_v31 }
 0xb25   : > { %v6374_v13 = vpop.permute.xlu1 %6373  ;;  %v6849_v23 = vadd.f32 %v6833_v42, %v6532_v57  ;;  %v7182_v42 = vmul.f32 %v17153_v48, %v6267_v34 }
 0xb26   : > { %v6419_v36 = vmul.f32 %v17102_v33, %v6374_v13  ;;  %v7205_v40 = vmul.f32 %v17142_v29, %v6374_v13 }
 0xb27   : > { %v17243_v15 = vadd.f32 %v16994_v4, %v6849_v23  ;;  %v19674_v4 = vld [vmem:[#allocation116_spill] sm:$0xff]  ;;  %v19675_v23 = vld [vmem:[#allocation121_spill] sm:$0xff]  ;;  %v7218_v27 = vadd.f32 %v7202_v24, %v7182_v42 }
 0xb28   : > { %v6718_v59 = vmul.f32 %v16426_v56, %v19674_v4  ;;  %v6435_v58 = vadd.f32 %v6419_v36, %v6335_v14  ;;  %v7221_v19 = vadd.f32 %v7205_v40, %v7185_v22  ;;  %v6818_v16 = vmul.f32 %v19658_v35, %v19675_v23  ;;  %v17267_v40 = vpop.permute.xlu0 %6477 }
 0xb29   : > { %v6333_v36 = vmul.f32 %v17109_v60, %v17210_v17  ;;  %v7254_v43 = vadd.f32 %v7238_v46, %v7218_v27  ;;  %v6517_v4 = vmul.f32 %v17125_v45, %v17223_v10 }
 0xb2a   : > { %v6474_v31 = vpop.permute.xlu1 %6473  ;;  %v6734_v13 = vadd.f32 %v6718_v59, %v6634_v11  ;;  %v7295_v11 = vmax.f32 %v7279_v28, 0.0  ;;  %v6338_v28 = vmul.f32 %v17109_v60, %v17232_v20 }
 0xb2b   : > { %v6519_v57 = vmul.f32 %v17125_v45, %v6474_v31  ;;  %v7241_v47 = vmul.f32 %v17148_v37, %v6474_v31 }
 0xb2d   : > { %v7257_v53 = vadd.f32 %v7241_v47, %v7221_v19  ;;  %v6535_v25 = vadd.f32 %v6519_v57, %v6435_v58  ;;  %v6834_v58 = vadd.f32 %v6818_v16, %v6734_v13  ;;  %v7277_v19 = vadd.f32 %v17181_v54, %v7254_v43 }
 0xb2e   : > { %v7008_v47 = vmax.f32 %v6992_v7, 0.0  ;;  %v6990_v13 = vadd.f32 %v17177_v32, %v17243_v15  ;;  %v19676_v7 = vld [vmem:[#allocation118_spill] sm:$0xff] }
 0xb2f   : > { %v7280_v6 = vadd.f32 %v17181_v54, %v7257_v53  ;;  %v6366_v34 = vpop.permute.xlu1 %6365  ;;  %v6852_v62 = vadd.f32 %v6836_v0, %v6535_v25  ;;  %v7293_v25 = vmax.f32 %v7277_v19, 0.0  ;;  %v6336_v19 = vmul.f32 %v17109_v60, %v17250_v49 }
 0xb30   : > { %v6417_v14 = vmul.f32 %v17102_v33, %v6366_v34  ;;  %v7203_v22 = vmul.f32 %v17142_v29, %v6366_v34 }
 0xb31   : > { %v7296_v44 = vmax.f32 %v7280_v6, 0.0  ;;  %v6970_v12 = vadd.f32 %v17012_v51, %v6852_v62  ;;  %v6390_v51 = vpop.permute.xlu0 %6389 }
 0xb32   : > { %v6433_v18 = vadd.f32 %v6417_v14, %v6333_v36  ;;  %v7219_v17 = vadd.f32 %v7203_v22, %v7183_v21  ;;  %v7006_v14 = vmax.f32 %v6990_v13, 0.0 }
 0xb33   : > { %v6993_v59 = vadd.f32 %v17177_v32, %v6970_v12  ;;  %v6386_v24 = vpop.permute.xlu1 %6385  ;;  %v13132_v31 = vpack.i.bf16 %v7296_v44, %v7295_v11  ;;  %v6721_v44 = vmul.f32 %v16426_v56, %v19676_v7  ;;  %v19677_v12 = vld [vmem:[#allocation125_spill] sm:$0xff] }
 0xb34   : > { %v7255_v3 = vadd.f32 %v7239_v2, %v7219_v17  ;;  %v6533_v57 = vadd.f32 %v6517_v4, %v6433_v18  ;;  %v6422_v46 = vmul.f32 %v17102_v33, %v6386_v24  ;;  %v6637_v15 = vmul.f32 %v16429_v8, %v19677_v12  ;;  %v19678_v4 = vld [vmem:[#allocation134_spill] sm:$0xff] }
 0xb35   : > { %v7009_v42 = vmax.f32 %v6993_v59, 0.0  ;;  %13133 = vxpose.xlu1.b32.start.end [1/1] (short) (narrow) %v13132_v31, 32  ;;  %v6490_v21 = vpop.permute.xlu0 %6489  ;;  %v7188_v59 = vmul.f32 %v17153_v48, %v17232_v20 }
 0xb36   : > { %v7278_v0 = vadd.f32 %v17181_v54, %v7255_v3  ;;  %v6850_v10 = vadd.f32 %v6834_v58, %v6533_v57  ;;  %v6438_v36 = vadd.f32 %v6422_v46, %v6338_v28  ;;  %v6737_v3 = vadd.f32 %v6721_v44, %v6637_v15 }
 0xb37   : > { %v7023_v53 = vpack.c.bf16 %v7009_v42, %v7008_v47  ;;  %v19679_v47 = vld [vmem:[#allocation127_spill] sm:$0xff]  ;;  %v6423_v46 = vmul.f32 %v17102_v33, %v6390_v51 }
 0xb38   : > { %v6968_v23 = vadd.f32 %v17020_v5, %v6850_v10  ;;  %v6486_v16 = vpop.permute.xlu1 %6485  ;;  %v7294_v27 = vmax.f32 %v7278_v0, 0.0  ;;  %v7208_v5 = vmul.f32 %v17142_v29, %v6386_v24  ;;  %v6638_v42 = vmul.f32 %v16429_v8, %v19679_v47 }
 0xb39   : > { %v6522_v6 = vmul.f32 %v17125_v45, %v6486_v16  ;;  %v7244_v31 = vmul.f32 %v17148_v37, %v6486_v16  ;;  %v6382_v24 = vpop.permute.xlu0 %6381 }
 0xb3a   : > { %v6991_v34 = vadd.f32 %v17177_v32, %v6968_v23  ;;  %v13110_v62 = vpack.i.bf16 %v7294_v27, %v7293_v25  ;;  %v7224_v57 = vadd.f32 %v7208_v5, %v7188_v59  ;;  %v19680_v23 = vld [vmem:[#allocation130_spill] sm:$0xff]  ;;  %v7207_v47 = vmul.f32 %v17142_v29, %v6382_v24 }
 0xb3b   : > { %v6538_v43 = vadd.f32 %v6522_v6, %v6438_v36  ;;  %v6722_v16 = vmul.f32 %v16426_v56, %v19680_v23  ;;  %v7186_v36 = vmul.f32 %v17153_v48, %v17250_v49  ;;  %v6520_v6 = vmul.f32 %v17125_v45, %v17267_v40 }
 0xb3c   : > { %v7007_v22 = vmax.f32 %v6991_v34, 0.0  ;;  %13111 = vxpose.xlu0.b32.start.end [1/1] (short) (narrow) %v13110_v62, 32  ;;  %v7260_v28 = vadd.f32 %v7244_v31, %v7224_v57  ;;  %v6523_v34 = vmul.f32 %v17125_v45, %v6490_v21  ;;  %v7242_v49 = vmul.f32 %v17148_v37, %v17267_v40  ;;  %v19683_v31 = vld [vmem:[#allocation132_spill] sm:$0xff] }
 0xb3d   : > { %v6378_v11 = vpop.permute.xlu1 %6377  ;;  %v6855_v2 = vadd.f32 %v19678_v4, %v6538_v43  ;;  %v6421_v57 = vmul.f32 %v17102_v33, %v6382_v24 }
 0xb3e   : > { %v7022_v18 = vpack.c.bf16 %v7007_v22, %v7006_v14  ;;  %v6420_v17 = vmul.f32 %v17102_v33, %v6378_v11  ;;  %v7206_v0 = vmul.f32 %v17142_v29, %v6378_v11  ;;  %v7283_v12 = vadd.f32 %v17181_v54, %v7260_v28 }
 0xb3f   : > { %v6973_v58 = vadd.f32 %v17043_v63, %v6855_v2  ;;  %v7209_v63 = vmul.f32 %v17142_v29, %v6390_v51  ;;  %v7245_v51 = vmul.f32 %v17148_v37, %v6490_v21  ;;  %v19682_v21 = vld [vmem:[#allocation113_spill] sm:$0xff] }
 0xb40   : > { %12394 = vmatprep.mubr.msk.bf16.mxu0 %vm19461_vm5, %v7022_v18  ;;  %v6436_v20 = vadd.f32 %v6420_v17, %v6336_v19  ;;  %v7222_v22 = vadd.f32 %v7206_v0, %v7186_v36  ;;  %v6822_v18 = vmul.f32 %v19658_v35, %v19682_v21  ;;  %v6738_v17 = vadd.f32 %v6722_v16, %v6638_v42 }
 0xb41   : > { %12395 = vmatmul.mubr.msk.bf16.gmra.mrb[96].mxu0 %vm19461_vm5, %v7023_v53  ;;  %v19681_v53 = vld [vmem:[#allocation133_spill] sm:$0xff]  ;;  %v7299_v40 = vmax.f32 %v7283_v12, 0.0  ;;  %v6996_v0 = vadd.f32 %v17177_v32, %v6973_v58 }
 0xb42   : > { %v6302_v10 = vpop.permute.xlu1 %6301  ;;  %v6821_v27 = vmul.f32 %v19658_v35, %v19681_v53  ;;  %v6536_v7 = vadd.f32 %v6520_v6, %v6436_v20  ;;  %v6838_v53 = vadd.f32 %v6822_v18, %v6738_v17 }
 0xb43   : > { %v6339_v25 = vmul.f32 %v17109_v60, %v6302_v10  ;;  %v7189_v13 = vmul.f32 %v17153_v48, %v6302_v10 }
 0xb44   : > { %v6837_v11 = vadd.f32 %v6821_v27, %v6737_v3  ;;  %v7258_v3 = vadd.f32 %v7242_v49, %v7222_v22  ;;  %v19685_v49 = vld [vmem:[#allocation156_spill] sm:$0xff] }
 0xb45   : > { %v6439_v62 = vadd.f32 %v6423_v46, %v6339_v25  ;;  %v7225_v43 = vadd.f32 %v7209_v63, %v7189_v13  ;;  %v17326_v14 = vpop.permute.xlu0 %6501 }
 0xb46   : > { %v6292_v44 = vpop.permute.xlu1 %6291  ;;  %v6853_v46 = vadd.f32 %v6837_v11, %v6536_v7  ;;  %v7281_v27 = vadd.f32 %v17181_v54, %v7258_v3  ;;  %v19684_v11 = vld [vmem:[#allocation122_spill] sm:$0xff]  ;;  %v6526_v3 = vmul.f32 %v17125_v45, %v17326_v14 }
 0xb47   : > { %v7261_v15 = vadd.f32 %v7245_v51, %v7225_v43  ;;  %v6539_v5 = vadd.f32 %v6523_v34, %v6439_v62  ;;  %v6337_v4 = vmul.f32 %v17109_v60, %v6292_v44  ;;  %v7187_v2 = vmul.f32 %v17153_v48, %v6292_v44 }
 0xb48   : > { %v6971_v36 = vadd.f32 %v17053_v1, %v6853_v46  ;;  %v6727_v1 = vmul.f32 %v16426_v56, %v19684_v11 }
 0xb49   : > { %v7284_v59 = vadd.f32 %v17181_v54, %v7261_v15  ;;  %v6856_v19 = vadd.f32 %v19683_v31, %v6539_v5  ;;  %v6437_v42 = vadd.f32 %v6421_v57, %v6337_v4  ;;  %v7223_v25 = vadd.f32 %v7207_v47, %v7187_v2 }
 0xb4a   : > { %v17339_v20 = vpop.permute.xlu0 %6321  ;;  %v6994_v44 = vadd.f32 %v17177_v32, %v6971_v36  ;;  %v7297_v5 = vmax.f32 %v7281_v27, 0.0  ;;  %v6643_v4 = vmul.f32 %v16429_v8, %v19685_v49 }
 0xb4b   : > { %v6974_v10 = vadd.f32 %v17057_v39, %v6856_v19  ;;  %v6482_v63 = vpop.permute.xlu1 %6481  ;;  %v7300_v28 = vmax.f32 %v7284_v59, 0.0  ;;  %v7012_v39 = vmax.f32 %v6996_v0, 0.0 }
 0xb4c   : > { %v6521_v13 = vmul.f32 %v17125_v45, %v6482_v63  ;;  %v7243_v23 = vmul.f32 %v17148_v37, %v6482_v63  ;;  %v7010_v59 = vmax.f32 %v6994_v44, 0.0 }
 0xb4d   : > { %v6997_v16 = vadd.f32 %v17177_v32, %v6974_v10  ;;  %v13176_v24 = vpack.i.bf16 %v7300_v28, %v7299_v40 }
 0xb4e   : > { %v7259_v6 = vadd.f32 %v7243_v23, %v7223_v25  ;;  %v6537_v58 = vadd.f32 %v6521_v13, %v6437_v42  ;;  %v17348_v34 = vpop.permute.xlu0 %6311 }
 0xb4f   : > { %v7013_v51 = vmax.f32 %v6997_v16, 0.0  ;;  %13177 = vxpose.xlu1.b32.start.end [1/1] (short) (narrow) %v13176_v24, 32 }
 0xb50   : > { %v7282_v62 = vadd.f32 %v17181_v54, %v7259_v6  ;;  %v6317_v43 = vpop.permute.xlu1 %6316  ;;  %v6854_v22 = vadd.f32 %v6838_v53, %v6537_v58 }
 0xb51   : > { %v7025_v7 = vpack.c.bf16 %v7013_v51, %v7012_v39  ;;  %v6342_v31 = vmul.f32 %v17109_v60, %v6317_v43  ;;  %v7192_v6 = vmul.f32 %v17153_v48, %v6317_v43  ;;  %v7193_v43 = vmul.f32 %v17153_v48, %v17339_v20 }
 0xb52   : > { %v7298_v12 = vmax.f32 %v7282_v62, 0.0  ;;  %v6972_v15 = vadd.f32 %v17071_v26, %v6854_v22  ;;  %v6743_v26 = vadd.f32 %v6727_v1, %v6643_v4  ;;  %v19686_v62 = vld [vmem:[#allocation141_spill] sm:$0xff] }
 0xb53   : > { %v17357_v2 = vpop.permute.xlu0 %6497 }
 0xb54   : > { %v6995_v21 = vadd.f32 %v17177_v32, %v6972_v15  ;;  %v13154_v18 = vpack.i.bf16 %v7298_v12, %v7297_v5 }
 0xb55   : > { %v6402_v17 = vpop.permute.xlu1 %6401 }
 0xb56   : > { %v7011_v19 = vmax.f32 %v6995_v21, 0.0  ;;  %v6426_v57 = vmul.f32 %v17102_v33, %v6402_v17  ;;  %13155 = vxpose.xlu0.b32.start.end [1/1] (short) (narrow) %v13154_v18, 32  ;;  %v7212_v53 = vmul.f32 %v17142_v29, %v6402_v17 }
 0xb57   : > { %v6803_v47 = vpop.permute.xlu0 %6802 }
 0xb58   : > { %v7024_v46 = vpack.c.bf16 %v7011_v19, %v7010_v59  ;;  %v6442_v40 = vadd.f32 %v6426_v57, %v6342_v31  ;;  %v6827_v0 = vmul.f32 %v19658_v35, %v6803_v47  ;;  %v7228_v39 = vadd.f32 %v7212_v53, %v7192_v6  ;;  %v19689_v19 = vld [vmem:[#allocation136_spill] sm:$0xff]  ;;  %v19692_v6 = vld [vmem:[#allocation135_spill] sm:$0xff] }
 0xb59   : > { %v6644_v57 = vmul.f32 %v16429_v8, %v19689_v19  ;;  %v7247_v53 = vmul.f32 %v17148_v37, %v17357_v2 }
 0xb5a   : > { %v6307_v10 = vpop.permute.xlu1 %6306  ;;  %12398 = vmatprep.mubr.msk.bf16.mxu0 %vm19461_vm5, %v7024_v46  ;;  %v6843_v63 = vadd.f32 %v6827_v0, %v6743_v26  ;;  %v6542_v28 = vadd.f32 %v6526_v3, %v6442_v40  ;;  %v19690_v26 = vld [vmem:[#allocation155_spill] sm:$0xff]  ;;  %v6341_v3 = vmul.f32 %v17109_v60, %v17348_v34  ;;  %v7191_v0 = vmul.f32 %v17153_v48, %v17348_v34 }
 0xb5b   : > { %12399 = vmatmul.mubr.msk.bf16.gmra.mrb[100].mxu0 %vm19461_vm5, %v7025_v7  ;;  %v6340_v16 = vmul.f32 %v17109_v60, %v6307_v10  ;;  %v7248_v7 = vmul.f32 %v17148_v37, %v17326_v14  ;;  %v7190_v14 = vmul.f32 %v17153_v48, %v6307_v10  ;;  %v6826_v47 = vmul.f32 %v19658_v35, %v19690_v26  ;;  %v13645_v26 = vld [vmem:[%s15526_s13 + $0x20] sm:$0xf] }
 0xb5c   : > { %v6859_v42 = vadd.f32 %v6843_v63, %v6542_v28  ;;  %v6343_v34 = vmul.f32 %v17109_v60, %v17339_v20 }
 0xb5d   : > { %v7264_v11 = vadd.f32 %v7248_v7, %v7228_v39 }
 0xb5e   : > { %v17368_v25 = vadd.f32 %v17085_v50, %v6859_v42  ;;  %v19691_v42 = vld [vmem:[#allocation137_spill] sm:$0xff] }
 0xb5f   : > { %v6394_v13 = vpop.permute.xlu1 %6393  ;;  %v6728_v8 = vmul.f32 %v16426_v56, %v19691_v42  ;;  %v6842_v56 = vadd.f32 %v6826_v47, %v19692_v6  ;;  %v4784_v47 = vunpack.c.l.bf16 %v13645_v26  ;;  %v13648_v42 = vld [vmem:[%s15526_s13 + $0x2c] sm:$0xf]  ;;  %v13652_v6 = vld [vmem:[%s15526_s13 + $0x3c] sm:$0xf] }
 0xb60   : > { %v6424_v23 = vmul.f32 %v17102_v33, %v6394_v13  ;;  %v7210_v49 = vmul.f32 %v17142_v29, %v6394_v13 }
 0xb62   : > { %v6440_v27 = vadd.f32 %v6424_v23, %v6340_v16  ;;  %v7226_v31 = vadd.f32 %v7210_v49, %v7190_v14 }
 0xb64   : > { %v6494_v24 = vpop.permute.xlu1 %6493 }
 0xb65   : > { %v6524_v36 = vmul.f32 %v17125_v45, %v6494_v24  ;;  %v7246_v17 = vmul.f32 %v17148_v37, %v6494_v24  ;;  %v6525_v24 = vmul.f32 %v17125_v45, %v17357_v2 }
 0xb67   : > { %v6540_v58 = vadd.f32 %v6524_v36, %v6440_v27  ;;  %v7262_v10 = vadd.f32 %v7246_v17, %v7226_v31 }
 0xb69   : > { %v6406_v51 = vpop.permute.xlu1 %6405  ;;  %v6857_v22 = vadd.f32 %v19686_v62, %v6540_v58  ;;  %v6744_v62 = vadd.f32 %v6728_v8, %v6644_v57  ;;  %v4787_v8 = vunpack.c.l.bf16 %v13648_v42 }
 0xb6a   : > { %v7213_v44 = vmul.f32 %v17142_v29, %v6406_v51  ;;  %v6427_v13 = vmul.f32 %v17102_v33, %v6406_v51 }
 0xb6b   : > { %v17376_v50 = vpop.f32.mrb[88].mxu0  ;;  %v6975_v12 = vadd.f32 %v17093_v41, %v6857_v22  ;;  %v7287_v41 = vadd.f32 %v17181_v54, %v7264_v11 }
 0xb6c   : > { %19687 = vst [vmem:[#allocation129_spill] sm:$0xff] %v17376_v50  ;;  %v12368_v15 = vpop.f32.mrb[89].mxu0  ;;  %v7229_v21 = vadd.f32 %v7213_v44, %v7193_v43  ;;  %v6443_v22 = vadd.f32 %v6427_v13, %v6343_v34  ;;  %v13649_v13 = vld [vmem:[%s15526_s13 + $0x14] sm:$0xf]  ;;  %v10178_v50 = vld [vmem:[#allocation31 + $0x1b0] sm:$0xff] }
 0xb6d   : > { %v17382_v5 = vpop.f32.mrb[90].mxu0  ;;  %v7303_v16 = vmax.f32 %v7287_v41, 0.0 }
 0xb6e   : > { %19688 = vst [vmem:[#allocation110_spill] sm:$0xff] %v17382_v5  ;;  %v12369_v1 = vpop.f32.mrb[91].mxu0  ;;  %v6506_v4 = vpop.permute.xlu1 %6505 }
 0xb6f   : > { %v7249_v18 = vmul.f32 %v17148_v37, %v6506_v4 }
 0xb71   : > { %v7265_v59 = vadd.f32 %v7249_v18, %v7229_v21 }
 0xb73   : > { %v7288_v46 = vadd.f32 %v17181_v54, %v7265_v59  ;;  %v6398_v40 = vpop.permute.xlu1 %6397 }
 0xb74   : > { %v6425_v63 = vmul.f32 %v17102_v33, %v6398_v40  ;;  %v7211_v28 = vmul.f32 %v17142_v29, %v6398_v40  ;;  %v6527_v29 = vmul.f32 %v17125_v45, %v6506_v4  ;;  %v7285_v33 = vadd.f32 %v17181_v54, %v7262_v10 }
 0xb75   : > { %v7304_v23 = vmax.f32 %v7288_v46, 0.0  ;;  %v6998_v45 = vadd.f32 %v17177_v32, %v6975_v12  ;;  %v7000_v4 = vadd.f32 %v17177_v32, %v17368_v25 }
 0xb76   : > { %v6441_v27 = vadd.f32 %v6425_v63, %v6341_v3  ;;  %v7227_v48 = vadd.f32 %v7211_v28, %v7191_v0  ;;  %v6543_v60 = vadd.f32 %v6527_v29, %v6443_v22  ;;  %v7301_v20 = vmax.f32 %v7285_v33, 0.0  ;;  %v13646_v3 = vld [vmem:[%s15526_s13 + $0x24] sm:$0xf]  ;;  %v13647_v63 = vld [vmem:[%s15526_s13 + $0xc] sm:$0xf] }
 0xb77   : > { %v13220_v36 = vpack.i.bf16 %v7304_v23, %v7303_v16  ;;  %v7014_v21 = vmax.f32 %v6998_v45, 0.0  ;;  %v7016_v12 = vmax.f32 %v7000_v4, 0.0  ;;  %v4785_v46 = vunpack.c.l.bf16 %v13646_v3  ;;  %v13650_v16 = vld [vmem:[%s15526_s13 + $0x34] sm:$0xf]  ;;  %v13651_v29 = vld [vmem:[%s15526_s13 + $0x1c] sm:$0xf] }
 0xb78   : > { %v7263_v58 = vadd.f32 %v7247_v53, %v7227_v48  ;;  %v6807_v39 = vpop.permute.xlu1 %6806  ;;  %v6541_v51 = vadd.f32 %v6525_v24, %v6441_v27  ;;  %v4779_v28 = vunpack.c.l.bf16 %v13647_v63  ;;  %v4781_v23 = vunpack.c.l.bf16 %v13649_v13  ;;  %v13654_v22 = vld [vmem:[%s15526_s13 + $0x28] sm:$0xf] }
 0xb79   : > { %v6828_v7 = vmul.f32 %v19658_v35, %v6807_v39  ;;  %13221 = vxpose.xlu1.b32.start.end [1/1] (short) (narrow) %v13220_v36, 32  ;;  %v13247_v0 = vpack.i.bf16 %v4785_v46, %v4784_v47  ;;  %v4789_v24 = vunpack.c.l.bf16 %v13650_v16  ;;  %v4783_v36 = vunpack.c.l.bf16 %v13651_v29 }
 0xb7a   : > { %v7286_v37 = vadd.f32 %v17181_v54, %v7263_v58  ;;  %v6858_v2 = vadd.f32 %v6842_v56, %v6541_v51  ;;  %v13257_v27 = vpack.i.bf16 %v4787_v8, %v4779_v28  ;;  %v4791_v56 = vunpack.c.l.bf16 %v13652_v6  ;;  %v13653_v51 = vld [vmem:[%s15526_s13 + $0x8] sm:$0xf] }
 0xb7b   : > { %v6844_v44 = vadd.f32 %v6828_v7, %v6744_v62  ;;  %v13267_v48 = vpack.i.bf16 %v4789_v24, %v4781_v23  ;;  %v4778_v62 = vunpack.c.l.bf16 %v13653_v51  ;;  %v4786_v7 = vunpack.c.l.bf16 %v13654_v22 }
 0xb7c   : > { %v6976_v15 = vadd.f32 %v17163_v52, %v6858_v2  ;;  %v7302_v43 = vmax.f32 %v7286_v37, 0.0  ;;  %v13277_v58 = vpack.i.bf16 %v4791_v56, %v4783_v36  ;;  %v13655_v2 = vld [vmem:[%s15526_s13 + $0x10] sm:$0xf] }
 0xb7d   : > { %v6860_v11 = vadd.f32 %v6844_v44, %v6543_v60  ;;  %v13252_v37 = vpack.i.bf16 %v4786_v7, %v4778_v62  ;;  %v4780_v44 = vunpack.c.l.bf16 %v13655_v2  ;;  %v13656_v60 = vld [vmem:[%s15526_s13 + $0x30] sm:$0xf] }
 0xb7e   : > { %v6999_v1 = vadd.f32 %v17177_v32, %v6976_v15  ;;  %v13198_v49 = vpack.i.bf16 %v7302_v43, %v7301_v20  ;;  %v4788_v20 = vunpack.c.l.bf16 %v13656_v60  ;;  %v13657_v43 = vld [vmem:[%s15526_s13 + $0x18] sm:$0xf] }
 0xb7f   : > { %v6978_v35 = vadd.f32 %v17135_v38, %v6860_v11  ;;  %v4782_v11 = vunpack.c.l.bf16 %v13657_v43 }
 0xb80   : > { %v7015_v54 = vmax.f32 %v6999_v1, 0.0  ;;  %13199 = vxpose.xlu0.b32.start.end [1/1] (short) (narrow) %v13198_v49, 32  ;;  %v13262_v15 = vpack.i.bf16 %v4788_v20, %v4780_v44  ;;  %v13658_v1 = vld [vmem:[%s15526_s13 + $0x38] sm:$0xf]  ;;  %s11137_s13 = sshll.u32 %s16884_s12, 4  ;;  %s19175_s13 = int_to_ptr.vmem [resolvable:$true] %s11137_s13 }
 0xb81   : > { %v7001_v18 = vadd.f32 %v17177_v32, %v6978_v35  ;;  %v4790_v49 = vunpack.c.l.bf16 %v13658_v1  ;;  %s14523_s14 = scalar_lea.vmem %s19175_s13, 256 }
 0xb82   : > { %v7026_v14 = vpack.c.bf16 %v7015_v54, %v7014_v21  ;;  %p14524_p2 = scmp.ne.s32.totalorder %s19175_s13, %s14523_s14 }
 0xb83   : > { %v7017_v52 = vmax.f32 %v7001_v18, 0.0 }
 0xb84   : > { %12402 = vmatprep.mubr.msk.bf16.mxu0 %vm19461_vm5, %v7026_v14  ;;  %p14525_p3 = pnand %p14524_p2, %p19923_p8 }
 0xb85   : > { %v7027_v17 = vpack.c.bf16 %v7017_v52, %v7016_v12 }
 0xb86   : > { %p14526_p6 = pneg %p14525_p3 }
 0xb87   : > { %12403 = vmatmul.mubr.msk.bf16.gmra.mrb[104].mxu0 %vm19461_vm5, %v7027_v17  ;;  %vm10079_vm5 = vcmask 785408  }
 0xb92   : > { %v13068_v41 = vpop.trf.xlu0 }
 0xb93   : > { %v13072_v59 = vunpack.i.h.bf16 %v13068_v41  ;;  %v13069_v25 = vunpack.i.l.bf16 %v13068_v41 }
 0xb96   : > { %v13073_v38 = vpop.trf.xlu0 }
 0xb97   : > { %v13077_v31 = vunpack.i.h.bf16 %v13073_v38  ;;  %v13074_v19 = vunpack.i.l.bf16 %v13073_v38  ;;  %13402 = vset.pattern.permute.xlu1 %v19636_v9 }
 0xb99   : > { %v7817_v32 = vpack.c.bf16 %v13074_v19, %v13069_v25  ;;  %v7819_v57 = vpack.c.bf16 %v13077_v31, %v13072_v59 }
 0xb9a   : > { %v17428_v40 = vpop.trf.xlu0 }
 0xb9b   : > { %12408 = vmatprep.mubr.msk.bf16.mxu1 %vm2990_vm7, %v7817_v32  ;;  %12414 = vmatprep.mubr.msk.bf16.mxu0 %vm2990_vm7, %v7819_v57  ;;  %v17496_v32 = vld [vmem:[#allocation26] ss:$0 sm:$0xff]  ;;  %v13079_v28 = vunpack.i.l.bf16 %v17428_v40 }
 0xb9e   : > { %v17432_v10 = vpop.trf.xlu0 }
 0xb9f   : > { %v13084_v23 = vunpack.i.l.bf16 %v17432_v10  ;;  %v13087_v6 = vunpack.i.h.bf16 %v17432_v10 }
 0xba1   : > { %v7818_v22 = vpack.c.bf16 %v13084_v23, %v13079_v28 }
 0xba2   : > { %v17438_v53 = vpop.trf.xlu1 }
 0xba3   : > { %13248 = vrot.lane.b32.xlu1 %v13247_v0, %s14776_s27  ;;  %v13091_v16 = vunpack.i.l.bf16 %v17438_v53  ;;  %v13094_v56 = vunpack.i.h.bf16 %v17438_v53 }
 0xba6   : > { %v17441_v34 = vpop.trf.xlu1 }
 0xba7   : > { %13258 = vrot.lane.b32.xlu1 %v13257_v27, %s14776_s27  ;;  %v13096_v24 = vunpack.i.l.bf16 %v17441_v34  ;;  %v13082_v27 = vunpack.i.h.bf16 %v17428_v40 }
 0xba9   : > { %13408 = vset.pattern.permute.xlu0 %v19635_v30  ;;  %v7820_v40 = vpack.c.bf16 %v13087_v6, %v13082_v27  ;;  %v10163_v30 = vld [vmem:[#allocation31 + $0x138] sm:$0xff] }
 0xbaa   : > { %v17447_v33 = vpop.trf.xlu1 }
 0xbab   : > { %13268 = vrot.lane.b32.xlu1 %v13267_v48, %s14776_s27  ;;  %v13104_v43 = vunpack.i.h.bf16 %v17447_v33 }
 0xbae   : > { %v17450_v39 = vpop.trf.xlu1 }
 0xbaf   : > { %13278 = vrot.lane.b32.xlu1 %v13277_v58, %s14776_s27  ;;  %v13099_v58 = vunpack.i.h.bf16 %v17441_v34  ;;  %v13101_v34 = vunpack.i.l.bf16 %v17447_v33  ;;  %v13106_v44 = vunpack.i.l.bf16 %v17450_v39 }
 0xbb1   : > { %v7823_v53 = vpack.c.bf16 %v13099_v58, %v13094_v56 }
 0xbb5   : > { %13243 = vrot.lane.b32.xlu0 %v17270_v55, %s14776_s27  ;;  %v17459_v45 = vpop.trf.xlu1  ;;  %v13272_v55 = vpack.i.bf16 %v4790_v49, %v4782_v11  ;;  %v13109_v11 = vunpack.i.h.bf16 %v17450_v39 }
 0xbb6   : > { %v13135_v58 = vunpack.i.l.bf16 %v17459_v45 }
 0xbb9   : > { %13253 = vrot.lane.b32.xlu0 %v13252_v37, %s14776_s27  ;;  %v17464_v4 = vpop.trf.xlu1  ;;  %v7821_v37 = vpack.c.bf16 %v13096_v24, %v13091_v16 }
 0xbbc   : > { %v17466_v35 = vpop.trf.xlu0 }
 0xbbd   : > { %13263 = vrot.lane.b32.xlu0 %v13262_v15, %s14776_s27  ;;  %v17469_v21 = vpop.trf.xlu1  ;;  %v13113_v20 = vunpack.i.l.bf16 %v17466_v35  ;;  %v13116_v49 = vunpack.i.h.bf16 %v17466_v35 }
 0xbc0   : > { %v17471_v54 = vpop.trf.xlu0 }
 0xbc1   : > { %13273 = vrot.lane.b32.xlu0 %v13272_v55, %s14776_s27  ;;  %v17474_v18 = vpop.trf.xlu1  ;;  %v13118_v15 = vunpack.i.l.bf16 %v17471_v54  ;;  %v13121_v55 = vunpack.i.h.bf16 %v17471_v54 }
 0xbc3   : > { %v7827_v33 = vpack.c.bf16 %v13121_v55, %v13116_v49  ;;  %v13148_v55 = vunpack.i.h.bf16 %v17469_v21 }
 0xbc4   : > { %v17476_v14 = vpop.trf.xlu0 }
 0xbc5   : > { %v13123_v24 = vunpack.i.l.bf16 %v17476_v14 }
 0xbc8   : > { %v17478_v12 = vpop.trf.xlu0 }
 0xbcf   : > { %v17480_v52 = vpop.trf.xlu1 }
 0xbd3   : > { %v17482_v17 = vpop.trf.xlu1 }
 0xbd6   : > { %v17484_v41 = vpop.trf.xlu0 }
 0xbd7   : > { %v17486_v59 = vpop.trf.xlu1 }
 0xbda   : > { %v17488_v25 = vpop.trf.xlu0 }
 0xbdb   : > { %v17490_v38 = vpop.trf.xlu1  ;;  %v13162_v49 = vunpack.i.l.bf16 %v17488_v25 }
 0xbde   : > { %v17492_v31 = vpop.trf.xlu0 }
 0xbe2   : > { %v17494_v19 = vpop.trf.xlu0 }
 0xbea   : > { %v12392_v57 = vpop.f32.mrb[92].mxu0 }
 0xbeb   : > { %v7103_v26 = vadd.f32 %v12392_v57, %v17496_v32  ;;  %v7094_v47 = vpop.f32.mrb[93].mxu0 }
 0xbec   : > { %v7095_v3 = vadd.f32 %v17496_v32, %v7094_v47  ;;  %v12393_v46 = vpop.f32.mrb[94].mxu0  ;;  %v7825_v47 = vpack.c.bf16 %v13118_v15, %v13113_v20 }
 0xbed   : > { %v7106_v0 = vadd.f32 %v12393_v46, %v17496_v32  ;;  %v7097_v63 = vpop.f32.mrb[95].mxu0  ;;  %v7159_v42 = vmax.f32 %v7103_v26, 0.0  ;;  %v7822_v26 = vpack.c.bf16 %v13106_v44, %v13101_v34 }
 0xbee   : > { %v7157_v8 = vmax.f32 %v7095_v3, 0.0  ;;  %v7098_v13 = vadd.f32 %v17496_v32, %v7097_v63  ;;  %v7824_v3 = vpack.c.bf16 %v13109_v11, %v13104_v43  ;;  %v13150_v43 = vunpack.i.l.bf16 %v17474_v18 }
 0xbef   : > { %v7160_v29 = vmax.f32 %v7106_v0, 0.0  ;;  %v7851_v51 = vpack.c.bf16 %v7159_v42, %v7159_v42 }
 0xbf0   : > { %v7849_v48 = vpack.c.bf16 %v7157_v8, %v7157_v8  ;;  %v7158_v36 = vmax.f32 %v7098_v13, 0.0 }
 0xbf1   : > { %v7852_v2 = vpack.c.bf16 %v7160_v29, %v7160_v29  ;;  %v7988_v60 = vsel %vm3188_vm6, %v7851_v51, 0  ;;  %v13128_v29 = vunpack.i.l.bf16 %v17478_v12 }
 0xbf2   : > { %v7850_v62 = vpack.c.bf16 %v7158_v36, %v7158_v36  ;;  %12558 = vmatprep.subr.msk.bf16.mxu1 %vm3188_vm6, %v7849_v48  ;;  %v7872_v7 = vsel %vm3188_vm6, %v7849_v48, 0 }
 0xbf3   : > { %12407 = vmatpush3.bf16.msra.mxu1 %v7872_v7  ;;  %v8046_v1 = vsel %vm3188_vm6, %v7852_v2, 0 }
 0xbf4   : > { %12559 = vmatprep.subr.msk.bf16.mxu0 %vm3188_vm6, %v7850_v62  ;;  %12560 = vmatprep.subr.msk.bf16.mxu1 %vm3188_vm6, %v7851_v51  ;;  %v7930_v10 = vsel %vm3188_vm6, %v7850_v62, 0  ;;  %v13140_v51 = vunpack.i.l.bf16 %v17464_v4  ;;  %v13126_v62 = vunpack.i.h.bf16 %v17476_v14 }
 0xbf5   : > { %12413 = vmatpush3.bf16.msra.mxu0 %v7930_v10  ;;  %v13143_v10 = vunpack.i.h.bf16 %v17464_v4  ;;  %v13145_v4 = vunpack.i.l.bf16 %v17469_v21 }
 0xbf6   : > { %12561 = vmatprep.subr.msk.bf16.mxu0 %vm3188_vm6, %v7852_v2  ;;  %12409 = vmatmul.mubr.msk.bf16.vlgmr.msra.gmra.mrb[104].mxu1 %vm2990_vm7, %v7818_v22  ;;  %v13131_v22 = vunpack.i.h.bf16 %v17478_v12  ;;  %v7829_v20 = vpack.c.bf16 %v13140_v51, %v13135_v58 }
 0xbf7   : > { %12419 = vmatpush3.bf16.msra.mxu1 %v7988_v60  ;;  %12420 = vmatprep.mubr.msk.bf16.mxu1 %vm2990_vm7, %v7821_v37 }
 0xbf8   : > { %12415 = vmatmul.mubr.msk.bf16.vlgmr.msra.gmra.mrb[108].mxu0 %vm2990_vm7, %v7820_v40  ;;  %v13138_v40 = vunpack.i.h.bf16 %v17459_v45  ;;  %v7828_v15 = vpack.c.bf16 %v13131_v22, %v13126_v62  ;;  %v13179_v62 = vunpack.i.l.bf16 %v17480_v52  ;;  %v13184_v22 = vunpack.i.l.bf16 %v17482_v17 }
 0xbf9   : > { %12425 = vmatpush3.bf16.msra.mxu0 %v8046_v1  ;;  %v17529_v57 = vpop.trf.xlu1  ;;  %12426 = vmatprep.mubr.msk.bf16.mxu0 %vm2990_vm7, %v7823_v53  ;;  %v7826_v53 = vpack.c.bf16 %v13128_v29, %v13123_v24  ;;  %v13157_v1 = vunpack.i.l.bf16 %v17484_v41 }
 0xbfa   : > { %v7831_v45 = vpack.c.bf16 %v13143_v10, %v13138_v40  ;;  %v13182_v10 = vunpack.i.h.bf16 %v17480_v52  ;;  %v13189_v52 = vunpack.i.l.bf16 %v17486_v59 }
 0xbfd   : > { %v17532_v46 = vpop.trf.xlu1 }
 0xbfe   : > { %12421 = vmatmul.mubr.msk.bf16.vlgmr.msra.gmra.mrb[108].mxu1 %vm2990_vm7, %v7822_v26  ;;  %v13153_v26 = vunpack.i.h.bf16 %v17474_v18 }
 0xbff   : > { %12432 = vmatprep.mubr.msk.bf16.mxu1 %vm2990_vm7, %v7825_v47 }
 0xc00   : > { %v17536_v39 = vpop.trf.xlu0  ;;  %12427 = vmatmul.mubr.msk.bf16.vlgmr.msra.gmra.mrb[112].mxu0 %vm2990_vm7, %v7824_v3  ;;  %v13160_v3 = vunpack.i.h.bf16 %v17484_v41 }
 0xc01   : > { %v17539_v35 = vpop.trf.xlu1  ;;  %12438 = vmatprep.mubr.msk.bf16.mxu0 %vm2990_vm7, %v7827_v33  ;;  %v13165_v33 = vunpack.i.h.bf16 %v17488_v25 }
 0xc04   : > { %v17542_v54 = vpop.trf.xlu0 }
 0xc05   : > { %v17544_v0 = vpop.trf.xlu1 }
 0xc08   : > { %v17546_v63 = vpop.trf.xlu0 }
 0xc0c   : > { %v17548_v28 = vpop.trf.xlu0 }
 0xc14   : > { %v12396_v42 = vpop.f32.mrb[96].mxu0 }
 0xc15   : > { %v7119_v8 = vadd.f32 %v12396_v42, %v17496_v32  ;;  %v7110_v13 = vpop.f32.mrb[97].mxu0  ;;  %v7830_v42 = vpack.c.bf16 %v13150_v43, %v13145_v4  ;;  %v13206_v4 = vunpack.i.l.bf16 %v17542_v54  ;;  %v13192_v43 = vunpack.i.h.bf16 %v17486_v59 }
 0xc16   : > { %v7111_v23 = vadd.f32 %v17496_v32, %v7110_v13  ;;  %v12397_v16 = vpop.f32.mrb[98].mxu0  ;;  %v7832_v13 = vpack.c.bf16 %v13153_v26, %v13148_v55  ;;  %v13209_v55 = vunpack.i.h.bf16 %v17542_v54 }
 0xc17   : > { %v7122_v27 = vadd.f32 %v12397_v16, %v17496_v32  ;;  %v7113_v48 = vpop.f32.mrb[99].mxu0  ;;  %v7163_v36 = vmax.f32 %v7119_v8, 0.0  ;;  %v7833_v8 = vpack.c.bf16 %v13162_v49, %v13157_v1  ;;  %v13204_v49 = vunpack.i.h.bf16 %v17536_v39 }
 0xc18   : > { %v7161_v6 = vmax.f32 %v7111_v23, 0.0  ;;  %v7114_v56 = vadd.f32 %v17496_v32, %v7113_v48  ;;  %v7835_v23 = vpack.c.bf16 %v13165_v33, %v13160_v3 }
 0xc19   : > { %v7164_v37 = vmax.f32 %v7122_v27, 0.0  ;;  %v7855_v34 = vpack.c.bf16 %v7163_v36, %v7163_v36  ;;  %v7843_v33 = vpack.c.bf16 %v13209_v55, %v13204_v49 }
 0xc1a   : > { %v7853_v7 = vpack.c.bf16 %v7161_v6, %v7161_v6  ;;  %v7162_v2 = vmax.f32 %v7114_v56, 0.0  ;;  %v13167_v6 = vunpack.i.l.bf16 %v17492_v31  ;;  %v13172_v56 = vunpack.i.l.bf16 %v17494_v19 }
 0xc1b   : > { %v7856_v14 = vpack.c.bf16 %v7164_v37, %v7164_v37  ;;  %v8220_v11 = vsel %vm3188_vm6, %v7855_v34, 0  ;;  %v13175_v37 = vunpack.i.h.bf16 %v17494_v19  ;;  %v7837_v19 = vpack.c.bf16 %v13184_v22, %v13179_v62 }
 0xc1c   : > { %v7854_v44 = vpack.c.bf16 %v7162_v2, %v7162_v2  ;;  %12562 = vmatprep.subr.msk.bf16.mxu1 %vm3188_vm6, %v7853_v7  ;;  %v8104_v60 = vsel %vm3188_vm6, %v7853_v7, 0  ;;  %v13170_v7 = vunpack.i.h.bf16 %v17492_v31  ;;  %v13231_v62 = vunpack.i.h.bf16 %v17532_v46 }
 0xc1d   : > { %12431 = vmatpush3.bf16.msra.mxu1 %v8104_v60  ;;  %v8278_v47 = vsel %vm3188_vm6, %v7856_v14, 0 }
 0xc1e   : > { %12563 = vmatprep.subr.msk.bf16.mxu0 %vm3188_vm6, %v7854_v44  ;;  %12564 = vmatprep.subr.msk.bf16.mxu1 %vm3188_vm6, %v7855_v34  ;;  %v8162_v12 = vsel %vm3188_vm6, %v7854_v44, 0  ;;  %v7834_v34 = vpack.c.bf16 %v13172_v56, %v13167_v6  ;;  %v13219_v6 = vunpack.i.h.bf16 %v17548_v28 }
 0xc1f   : > { %12437 = vmatpush3.bf16.msra.mxu0 %v8162_v12 }
 0xc20   : > { %12565 = vmatprep.subr.msk.bf16.mxu0 %vm3188_vm6, %v7856_v14  ;;  %12433 = vmatmul.mubr.msk.bf16.vlgmr.msra.gmra.mrb[112].mxu1 %vm2990_vm7, %v7826_v53  ;;  %v13187_v53 = vunpack.i.h.bf16 %v17482_v17  ;;  %v13194_v17 = vunpack.i.l.bf16 %v17490_v38 }
 0xc21   : > { %12443 = vmatpush3.bf16.msra.mxu1 %v8220_v11  ;;  %12444 = vmatprep.mubr.msk.bf16.mxu1 %vm2990_vm7, %v7829_v20  ;;  %v7836_v20 = vpack.c.bf16 %v13175_v37, %v13170_v7  ;;  %v13197_v11 = vunpack.i.h.bf16 %v17490_v38 }
 0xc22   : > { %12439 = vmatmul.mubr.msk.bf16.vlgmr.msra.gmra.mrb[116].mxu0 %vm2990_vm7, %v7828_v15  ;;  %v7839_v14 = vpack.c.bf16 %v13187_v53, %v13182_v10  ;;  %v7838_v26 = vpack.c.bf16 %v13194_v17, %v13189_v52  ;;  %v13236_v53 = vunpack.i.h.bf16 %v17539_v35 }
 0xc23   : > { %12449 = vmatpush3.bf16.msra.mxu0 %v8278_v47  ;;  %12450 = vmatprep.mubr.msk.bf16.mxu0 %vm2990_vm7, %v7831_v45  ;;  %v13201_v45 = vunpack.i.l.bf16 %v17536_v39  ;;  %v7840_v3 = vpack.c.bf16 %v13197_v11, %v13192_v43 }
 0xc25   : > { %v7841_v47 = vpack.c.bf16 %v13206_v4, %v13201_v45 }
 0xc28   : > { %12445 = vmatmul.mubr.msk.bf16.vlgmr.msra.gmra.mrb[116].mxu1 %vm2990_vm7, %v7830_v42 }
 0xc29   : > { %12456 = vmatprep.mubr.msk.bf16.mxu1 %vm2990_vm7, %v7833_v8 }
 0xc2a   : > { %12451 = vmatmul.mubr.msk.bf16.vlgmr.msra.gmra.mrb[120].mxu0 %vm2990_vm7, %v7832_v13 }
 0xc2b   : > { %12462 = vmatprep.mubr.msk.bf16.mxu0 %vm2990_vm7, %v7835_v23 }
 0xc2e   : > { %v12400_v21 = vpop.f32.mrb[100].mxu0 }
 0xc2f   : > { %v7126_v18 = vpop.f32.mrb[101].mxu0  ;;  %v7135_v27 = vadd.f32 %v12400_v21, %v17496_v32 }
 0xc30   : > { %v12401_v41 = vpop.f32.mrb[102].mxu0  ;;  %v7127_v25 = vadd.f32 %v17496_v32, %v7126_v18 }
 0xc31   : > { %v7129_v16 = vpop.f32.mrb[103].mxu0  ;;  %v7138_v29 = vadd.f32 %v12401_v41, %v17496_v32  ;;  %v7167_v58 = vmax.f32 %v7135_v27, 0.0  ;;  %v13211_v41 = vunpack.i.l.bf16 %v17546_v63 }
 0xc32   : > { %v7165_v24 = vmax.f32 %v7127_v25, 0.0  ;;  %v7130_v36 = vadd.f32 %v17496_v32, %v7129_v16  ;;  %v13216_v16 = vunpack.i.l.bf16 %v17548_v28 }
 0xc33   : > { %v7168_v2 = vmax.f32 %v7138_v29, 0.0  ;;  %v7859_v44 = vpack.c.bf16 %v7167_v58, %v7167_v58  ;;  %v13228_v29 = vunpack.i.l.bf16 %v17532_v46 }
 0xc34   : > { %v7857_v48 = vpack.c.bf16 %v7165_v24, %v7165_v24  ;;  %v7166_v51 = vmax.f32 %v7130_v36, 0.0  ;;  %v13214_v36 = vunpack.i.h.bf16 %v17546_v63  ;;  %v7842_v22 = vpack.c.bf16 %v13216_v16, %v13211_v41 }
 0xc35   : > { %v7860_v15 = vpack.c.bf16 %v7168_v2, %v7168_v2  ;;  %v8452_v12 = vsel %vm3188_vm6, %v7859_v44, 0  ;;  %v13233_v2 = vunpack.i.l.bf16 %v17539_v35 }
 0xc36   : > { %12566 = vmatprep.subr.msk.bf16.mxu1 %vm3188_vm6, %v7857_v48  ;;  %v7858_v40 = vpack.c.bf16 %v7166_v51, %v7166_v51  ;;  %v8336_v60 = vsel %vm3188_vm6, %v7857_v48, 0  ;;  %v13223_v48 = vunpack.i.l.bf16 %v17529_v57  ;;  %v13226_v51 = vunpack.i.h.bf16 %v17529_v57 }
 0xc37   : > { %12455 = vmatpush3.bf16.msra.mxu1 %v8336_v60  ;;  %v8510_v1 = vsel %vm3188_vm6, %v7860_v15, 0  ;;  %v7844_v37 = vpack.c.bf16 %v13219_v6, %v13214_v36 }
 0xc38   : > { %12567 = vmatprep.subr.msk.bf16.mxu0 %vm3188_vm6, %v7858_v40  ;;  %12568 = vmatprep.subr.msk.bf16.mxu1 %vm3188_vm6, %v7859_v44  ;;  %v8394_v31 = vsel %vm3188_vm6, %v7858_v40, 0  ;;  %v7845_v28 = vpack.c.bf16 %v13228_v29, %v13223_v48  ;;  %v7847_v46 = vpack.c.bf16 %v13231_v62, %v13226_v51  ;;  %v13238_v40 = vunpack.i.l.bf16 %v17544_v0 }
 0xc39   : > { %12461 = vmatpush3.bf16.msra.mxu0 %v8394_v31 }
 0xc3a   : > { %12569 = vmatprep.subr.msk.bf16.mxu0 %vm3188_vm6, %v7860_v15  ;;  %12457 = vmatmul.mubr.msk.bf16.vlgmr.msra.gmra.mrb[120].mxu1 %vm2990_vm7, %v7834_v34  ;;  %v13241_v34 = vunpack.i.h.bf16 %v17544_v0  ;;  %v7846_v44 = vpack.c.bf16 %v13238_v40, %v13233_v2 }
 0xc3b   : > { %12467 = vmatpush3.bf16.msra.mxu1 %v8452_v12  ;;  %12468 = vmatprep.mubr.msk.bf16.mxu1 %vm2990_vm7, %v7837_v19 }
 0xc3c   : > { %12463 = vmatmul.mubr.msk.bf16.vlgmr.msra.gmra.mrb[124].mxu0 %vm2990_vm7, %v7836_v20  ;;  %v7848_v60 = vpack.c.bf16 %v13241_v34, %v13236_v53  ;;  %v14777_v20 = vmov 1983009808  }
 0xc3d   : > { %12473 = vmatpush3.bf16.msra.mxu0 %v8510_v1  ;;  %12474 = vmatprep.mubr.msk.bf16.mxu0 %vm2990_vm7, %v7839_v14  ;;  %v8796_v15 = vunpack.c.l.s4 %v14777_v20  ;;  %v14778_v14 = vmov 1934713408   ;;  %v19693_v1 = vld [vmem:[#allocation104_spill] sm:$0xff] }
 0xc3e   : > { %v8860_v52 = vunpack.c.l.s4 %v14778_v14 }
 0xc3f   : > { %v8797_v45 = vunpack.c.0.s8 %v8796_v15 }
 0xc40   : > { %v8861_v11 = vunpack.c.0.s8 %v8860_v52 }
 0xc41   : > { %v17657_v49 = vsub.s32 %v8797_v45, %v19693_v1 }
 0xc42   : > { %12469 = vmatmul.mubr.msk.bf16.vlgmr.msra.gmra.mrb[124].mxu1 %vm2990_vm7, %v7838_v26 }
 0xc43   : > { %12480 = vmatprep.mubr.msk.bf16.mxu1 %vm2990_vm7, %v7841_v47 }
 0xc44   : > { %12475 = vmatmul.mubr.msk.bf16.vlgmr.msra.gmra.mrb[128].mxu0 %vm2990_vm7, %v7840_v3 }
 0xc45   : > { %12486 = vmatprep.mubr.msk.bf16.mxu0 %vm2990_vm7, %v7843_v33  ;;  %v17660_v33 = vsub.s32 %v8861_v11, %v19693_v1 }
 0xc5a   : > { %v12404_v59 = vpop.f32.mrb[104].mxu0 }
 0xc5b   : > { %v7151_v38 = vadd.f32 %v12404_v59, %v17496_v32  ;;  %v7142_v39 = vpop.f32.mrb[105].mxu0 }
 0xc5c   : > { %v7143_v54 = vadd.f32 %v17496_v32, %v7142_v39  ;;  %v12405_v42 = vpop.f32.mrb[106].mxu0 }
 0xc5d   : > { %v7154_v8 = vadd.f32 %v12405_v42, %v17496_v32  ;;  %v7145_v13 = vpop.f32.mrb[107].mxu0  ;;  %v7171_v23 = vmax.f32 %v7151_v38, 0.0 }
 0xc5e   : > { %v7169_v21 = vmax.f32 %v7143_v54, 0.0  ;;  %v7146_v18 = vadd.f32 %v17496_v32, %v7145_v13 }
 0xc5f   : > { %v7172_v24 = vmax.f32 %v7154_v8, 0.0  ;;  %v7863_v56 = vpack.c.bf16 %v7171_v23, %v7171_v23 }
 0xc60   : > { %v7861_v25 = vpack.c.bf16 %v7169_v21, %v7169_v21  ;;  %v7170_v27 = vmax.f32 %v7146_v18, 0.0 }
 0xc61   : > { %v7864_v7 = vpack.c.bf16 %v7172_v24, %v7172_v24  ;;  %v8684_v57 = vsel %vm3188_vm6, %v7863_v56, 0 }
 0xc62   : > { %v7862_v58 = vpack.c.bf16 %v7170_v27, %v7170_v27  ;;  %12570 = vmatprep.subr.msk.bf16.mxu1 %vm3188_vm6, %v7861_v25  ;;  %v8568_v32 = vsel %vm3188_vm6, %v7861_v25, 0 }
 0xc63   : > { %12479 = vmatpush3.bf16.msra.mxu1 %v8568_v32  ;;  %v8742_v10 = vsel %vm3188_vm6, %v7864_v7, 0 }
 0xc64   : > { %12571 = vmatprep.subr.msk.bf16.mxu0 %vm3188_vm6, %v7862_v58  ;;  %12572 = vmatprep.subr.msk.bf16.mxu1 %vm3188_vm6, %v7863_v56  ;;  %v8626_v63 = vsel %vm3188_vm6, %v7862_v58, 0 }
 0xc65   : > { %12485 = vmatpush3.bf16.msra.mxu0 %v8626_v63 }
 0xc66   : > { %12481 = vmatmul.mubr.msk.bf16.vlgmr.msra.gmra.mrb[128].mxu1 %vm2990_vm7, %v7842_v22  ;;  %12573 = vmatprep.subr.msk.bf16.mxu0 %vm3188_vm6, %v7864_v7 }
 0xc67   : > { %12491 = vmatpush3.bf16.msra.mxu1 %v8684_v57  ;;  %12492 = vmatprep.mubr.msk.bf16.mxu1 %vm2990_vm7, %v7845_v28 }
 0xc68   : > { %12487 = vmatmul.mubr.msk.bf16.vlgmr.msra.gmra.mrb[132].mxu0 %vm2990_vm7, %v7844_v37 }
 0xc69   : > { %12497 = vmatpush3.bf16.msra.mxu0 %v8742_v10  ;;  %12498 = vmatprep.mubr.msk.bf16.mxu0 %vm2990_vm7, %v7847_v46 }
 0xc6e   : > { %12493 = vmatmul.mubr.msk.bf16.vlgmr.msra.gmra.mrb[132].mxu1 %vm2990_vm7, %v7846_v44 }
 0xc70   : > { %12499 = vmatmul.mubr.msk.bf16.vlgmr.msra.gmra.mrb[136].mxu0 %vm2990_vm7, %v7848_v60 }
 0xcc9   : > { %v12410_v31 = vpop.f32.mrb[104].mxu1 }
 0xcca   : > { %v7908_v19 = vpop.f32.mrb[105].mxu1 }
 0xccb   : > { %v12416_v17 = vpop.f32.mrb[108].mxu0  ;;  %v12411_v12 = vpop.f32.mrb[106].mxu1 }
 0xccc   : > { %v7966_v4 = vpop.f32.mrb[109].mxu0  ;;  %v17652_v43 = vpop.f32.mrb[107].mxu1 }
 0xccd   : > { %v12417_v35 = vpop.f32.mrb[110].mxu0 }
 0xcce   : > { %v17654_v0 = vpop.f32.mrb[111].mxu0 }
 0xcd1   : > { %v12422_v55 = vpop.f32.mrb[108].mxu1 }
 0xcd2   : > { %v9337_v26 = vcombine.low %v12410_v31, %v12422_v55  ;;  %v9338_v47 = vcombine.high %v12410_v31, %v12422_v55  ;;  %v8024_v3 = vpop.f32.mrb[109].mxu1 }
 0xcd3   : > { %v12428_v59 = vpop.f32.mrb[112].mxu0  ;;  %v8793_v38 = vcombine.low %v7908_v19, %v8024_v3  ;;  %v8794_v39 = vcombine.high %v7908_v19, %v8024_v3  ;;  %v12423_v54 = vpop.f32.mrb[110].mxu1 }
 0xcd4   : > { %v9345_v42 = vrot.slane %v9337_v26, %v17657_v49  ;;  %v9352_v8 = vrot.slane %v9338_v47, %v17657_v49  ;;  %v9353_v13 = vcombine.low %v12416_v17, %v12428_v59  ;;  %v9354_v23 = vcombine.high %v12416_v17, %v12428_v59  ;;  %v8082_v21 = vpop.f32.mrb[113].mxu0  ;;  %v8027_v18 = vpop.f32.mrb[111].mxu1 }
 0xcd5   : > { %v8801_v41 = vrot.slane %v8793_v38, %v17657_v49  ;;  %v8808_v16 = vrot.slane %v8794_v39, %v17657_v49  ;;  %v8809_v25 = vcombine.low %v7966_v4, %v8082_v21  ;;  %v8810_v24 = vcombine.high %v7966_v4, %v8082_v21  ;;  %v12429_v27 = vpop.f32.mrb[114].mxu0 }
 0xcd6   : > { %v9361_v48 = vrot.slane %v9353_v13, %v17657_v49  ;;  %v9368_v29 = vrot.slane %v9354_v23, %v17657_v49  ;;  %v9609_v36 = vcombine.low %v12411_v12, %v12423_v54  ;;  %v9610_v6 = vcombine.high %v12411_v12, %v12423_v54  ;;  %v8085_v56 = vpop.f32.mrb[115].mxu0 }
 0xcd7   : > { %v8817_v58 = vrot.slane %v8809_v25, %v17657_v49  ;;  %v8824_v32 = vrot.slane %v8810_v24, %v17657_v49  ;;  %v9625_v51 = vcombine.low %v12417_v35, %v12429_v27  ;;  %v9626_v62 = vcombine.high %v12417_v35, %v12429_v27 }
 0xcd8   : > { %v9401_v22 = vcombine.low %v9345_v42, %v9361_v48  ;;  %v9402_v7 = vcombine.high %v9345_v42, %v9361_v48  ;;  %v9417_v63 = vcombine.low %v9352_v8, %v9368_v29  ;;  %v9418_v28 = vcombine.high %v9352_v8, %v9368_v29 }
 0xcd9   : > { %v8857_v37 = vcombine.low %v8801_v41, %v8817_v58  ;;  %v8858_v57 = vcombine.high %v8801_v41, %v8817_v58  ;;  %v8873_v46 = vcombine.low %v8808_v16, %v8824_v32  ;;  %v8874_v2 = vcombine.high %v8808_v16, %v8824_v32  ;;  %v13249_v16 = vpop.permute.xlu1 %13248 }
 0xcda   : > { %v17671_v40 = vrot.slane %v9401_v22, %v17660_v33  ;;  %v17674_v10 = vrot.slane %v9402_v7, %v17660_v33  ;;  %v17677_v53 = vrot.slane %v9417_v63, %v17660_v33  ;;  %v17680_v34 = vrot.slane %v9418_v28, %v17660_v33  ;;  %v19709_v22 = vld [vmem:[#allocation148_spill] sm:$0xff] }
 0xcdb   : > { %v17683_v44 = vrot.slane %v8857_v37, %v17660_v33  ;;  %v17686_v60 = vrot.slane %v8858_v57, %v17660_v33  ;;  %v17689_v20 = vrot.slane %v8873_v46, %v17660_v33  ;;  %v17692_v15 = vrot.slane %v8874_v2, %v17660_v33 }
 0xcdc   : > { %19694 = vst [vmem:[#allocation112_spill] sm:$0xff] %v17671_v40  ;;  %19695 = vst [vmem:[#allocation126_spill] sm:$0xff] %v17674_v10  ;;  %v9617_v31 = vrot.slane %v9609_v36, %v17657_v49  ;;  %v9624_v19 = vrot.slane %v9610_v6, %v17657_v49  ;;  %v9633_v14 = vrot.slane %v9625_v51, %v17657_v49  ;;  %v13251_v27 = vunpack.i.h.bf16 %v13249_v16  ;;  %v19708_v51 = vld [vmem:[#allocation150_spill] sm:$0xff] }
 0xcdd   : > { %19696 = vst [vmem:[#allocation108_spill] sm:$0xff] %v17677_v53  ;;  %19697 = vst [vmem:[#allocation124_spill] sm:$0xff] %v17680_v34  ;;  %v9640_v52 = vrot.slane %v9626_v62, %v17657_v49  ;;  %v9065_v17 = vcombine.low %v17652_v43, %v8027_v18  ;;  %v9066_v12 = vcombine.high %v17652_v43, %v8027_v18  ;;  %v13250_v48 = vunpack.i.l.bf16 %v13249_v16 }
 0xcde   : > { %19698 = vst [vmem:[#allocation111_spill] sm:$0xff] %v17683_v44  ;;  %19699 = vst [vmem:[#allocation109_spill] sm:$0xff] %v17686_v60  ;;  %v9081_v45 = vcombine.low %v17654_v0, %v8085_v56  ;;  %v9082_v4 = vcombine.high %v17654_v0, %v8085_v56  ;;  %v9673_v35 = vcombine.low %v9617_v31, %v9633_v14 }
 0xcdf   : > { %19700 = vst [vmem:[#allocation131_spill] sm:$0xff] %v17689_v20  ;;  %19701 = vst [vmem:[#allocation115_spill] sm:$0xff] %v17692_v15  ;;  %v9674_v11 = vcombine.high %v9617_v31, %v9633_v14  ;;  %v9689_v1 = vcombine.low %v9624_v19, %v9640_v52  ;;  %v9690_v55 = vcombine.high %v9624_v19, %v9640_v52 }
 0xce0   : > { %v9073_v26 = vrot.slane %v9065_v17, %v17657_v49  ;;  %v9080_v47 = vrot.slane %v9066_v12, %v17657_v49  ;;  %v9089_v3 = vrot.slane %v9081_v45, %v17657_v49  ;;  %v9096_v59 = vrot.slane %v9082_v4, %v17657_v49 }
 0xce1   : > { %v17707_v38 = vrot.slane %v9673_v35, %v17660_v33  ;;  %v17710_v43 = vrot.slane %v9674_v11, %v17660_v33  ;;  %v17713_v0 = vrot.slane %v9689_v1, %v17660_v33  ;;  %v17716_v39 = vrot.slane %v9690_v55, %v17660_v33 }
 0xce2   : > { %v9129_v54 = vcombine.low %v9073_v26, %v9089_v3  ;;  %v9130_v42 = vcombine.high %v9073_v26, %v9089_v3  ;;  %v9145_v8 = vcombine.low %v9080_v47, %v9096_v59  ;;  %v9146_v13 = vcombine.high %v9080_v47, %v9096_v59 }
 0xce3   : > { %19702 = vst [vmem:[#allocation128_spill] sm:$0xff] %v17707_v38  ;;  %19703 = vst [vmem:[#allocation120_spill] sm:$0xff] %v17713_v0  ;;  %v4865_v62 = vmul.f32 %v13251_v27, %v19708_v51  ;;  %v4864_v7 = vmul.f32 %v13250_v48, %v19709_v22 }
 0xce4   : > { %v17719_v23 = vrot.slane %v9129_v54, %v17660_v33  ;;  %v17722_v21 = vrot.slane %v9130_v42, %v17660_v33  ;;  %v17725_v18 = vrot.slane %v9145_v8, %v17660_v33  ;;  %v17728_v41 = vrot.slane %v9146_v13, %v17660_v33 }
 0xce5   : > { %v17737_v46 = vsel %vm4872_vm2, %v4865_v62, 0.0  ;;  %v17740_v2 = vsel %vm4872_vm2, %v4864_v7, 0.0 }
 0xce6   : > { %19704 = vst [vmem:[#allocation117_spill] sm:$0xff] %v17719_v23  ;;  %19705 = vst [vmem:[#allocation119_spill] sm:$0xff] %v17722_v21  ;;  %v19749_v21 = vld [vmem:[#allocation145_spill] sm:$0xff] }
 0xce7   : > { %19706 = vst [vmem:[#allocation123_spill] sm:$0xff] %v17725_v18  ;;  %19707 = vst [vmem:[#allocation114_spill] sm:$0xff] %v17728_v41 }
 0xcf3   : > { %v12434_v25 = vpop.f32.mrb[112].mxu1 }
 0xcf4   : > { %v8140_v24 = vpop.f32.mrb[113].mxu1 }
 0xcf5   : > { %v12440_v29 = vpop.f32.mrb[116].mxu0  ;;  %v12435_v36 = vpop.f32.mrb[114].mxu1 }
 0xcf6   : > { %v8198_v6 = vpop.f32.mrb[117].mxu0  ;;  %v17730_v56 = vpop.f32.mrb[115].mxu1 }
 0xcf7   : > { %v12441_v58 = vpop.f32.mrb[118].mxu0 }
 0xcf8   : > { %v17732_v32 = vpop.f32.mrb[119].mxu0 }
 0xcfb   : > { %v12446_v63 = vpop.f32.mrb[116].mxu1 }
 0xcfc   : > { %v9369_v28 = vcombine.low %v12434_v25, %v12446_v63  ;;  %v9370_v37 = vcombine.high %v12434_v25, %v12446_v63  ;;  %v8256_v57 = vpop.f32.mrb[117].mxu1 }
 0xcfd   : > { %v12452_v31 = vpop.f32.mrb[120].mxu0  ;;  %v8825_v19 = vcombine.low %v8140_v24, %v8256_v57  ;;  %v8826_v14 = vcombine.high %v8140_v24, %v8256_v57  ;;  %v12447_v52 = vpop.f32.mrb[118].mxu1 }
 0xcfe   : > { %v9377_v17 = vrot.slane %v9369_v28, %v17657_v49  ;;  %v9384_v12 = vrot.slane %v9370_v37, %v17657_v49  ;;  %v9385_v45 = vcombine.low %v12440_v29, %v12452_v31  ;;  %v9386_v4 = vcombine.high %v12440_v29, %v12452_v31  ;;  %v8314_v35 = vpop.f32.mrb[121].mxu0  ;;  %v8259_v11 = vpop.f32.mrb[119].mxu1 }
 0xcff   : > { %v8833_v1 = vrot.slane %v8825_v19, %v17657_v49  ;;  %v8840_v55 = vrot.slane %v8826_v14, %v17657_v49  ;;  %v8841_v26 = vcombine.low %v8198_v6, %v8314_v35  ;;  %v8842_v47 = vcombine.high %v8198_v6, %v8314_v35  ;;  %v12453_v3 = vpop.f32.mrb[122].mxu0 }
 0xd00   : > { %v9393_v59 = vrot.slane %v9385_v45, %v17657_v49  ;;  %v9400_v54 = vrot.slane %v9386_v4, %v17657_v49  ;;  %v9641_v42 = vcombine.low %v12435_v36, %v12447_v52  ;;  %v9642_v8 = vcombine.high %v12435_v36, %v12447_v52  ;;  %v8317_v13 = vpop.f32.mrb[123].mxu0  ;;  %v13259_v52 = vpop.permute.xlu1 %13258  ;;  %v10177_v4 = vld [vmem:[#allocation31 + $0x1a8] sm:$0xff] }
 0xd01   : > { %v8849_v16 = vrot.slane %v8841_v26, %v17657_v49  ;;  %v8856_v25 = vrot.slane %v8842_v47, %v17657_v49  ;;  %v9657_v24 = vcombine.low %v12441_v58, %v12453_v3  ;;  %v9658_v27 = vcombine.high %v12441_v58, %v12453_v3 }
 0xd02   : > { %v9433_v48 = vcombine.low %v9377_v17, %v9393_v59  ;;  %v9434_v29 = vcombine.high %v9377_v17, %v9393_v59  ;;  %v9449_v51 = vcombine.low %v9384_v12, %v9400_v54  ;;  %v9450_v62 = vcombine.high %v9384_v12, %v9400_v54 }
 0xd03   : > { %v8889_v22 = vcombine.low %v8833_v1, %v8849_v16  ;;  %v8890_v6 = vcombine.high %v8833_v1, %v8849_v16  ;;  %v8905_v7 = vcombine.low %v8840_v55, %v8856_v25  ;;  %v8906_v63 = vcombine.high %v8840_v55, %v8856_v25 }
 0xd04   : > { %v17751_v28 = vrot.slane %v9433_v48, %v17660_v33  ;;  %v17754_v36 = vrot.slane %v9434_v29, %v17660_v33  ;;  %v17757_v37 = vrot.slane %v9449_v51, %v17660_v33  ;;  %v17760_v57 = vrot.slane %v9450_v62, %v17660_v33 }
 0xd05   : > { %v17763_v58 = vrot.slane %v8889_v22, %v17660_v33  ;;  %v17766_v31 = vrot.slane %v8890_v6, %v17660_v33  ;;  %v17769_v19 = vrot.slane %v8905_v7, %v17660_v33  ;;  %v17772_v14 = vrot.slane %v8906_v63, %v17660_v33  ;;  %v10157_v7 = vld [vmem:[#allocation31 + $0x108] sm:$0xff]  ;;  %v19724_v63 = vld [vmem:[#allocation149_spill] sm:$0xff] }
 0xd06   : > { %19710 = vst [vmem:[#allocation116_spill] sm:$0xff] %v17751_v28  ;;  %19711 = vst [vmem:[#allocation121_spill] sm:$0xff] %v17754_v36  ;;  %v9649_v12 = vrot.slane %v9641_v42, %v17657_v49  ;;  %v9656_v45 = vrot.slane %v9642_v8, %v17657_v49  ;;  %v9665_v1 = vrot.slane %v9657_v24, %v17657_v49  ;;  %v13261_v17 = vunpack.i.h.bf16 %v13259_v52 }
 0xd07   : > { %19712 = vst [vmem:[#allocation118_spill] sm:$0xff] %v17757_v37  ;;  %19713 = vst [vmem:[#allocation125_spill] sm:$0xff] %v17760_v57  ;;  %v9672_v55 = vrot.slane %v9658_v27, %v17657_v49  ;;  %v9097_v26 = vcombine.low %v17730_v56, %v8259_v11  ;;  %v9098_v47 = vcombine.high %v17730_v56, %v8259_v11  ;;  %v4930_v35 = vrot.slane %v17740_v2, 4 }
 0xd08   : > { %19714 = vst [vmem:[#allocation134_spill] sm:$0xff] %v17763_v58  ;;  %19715 = vst [vmem:[#allocation127_spill] sm:$0xff] %v17766_v31  ;;  %v9113_v3 = vcombine.low %v17732_v32, %v8317_v13  ;;  %v9114_v59 = vcombine.high %v17732_v32, %v8317_v13  ;;  %v9705_v54 = vcombine.low %v9649_v12, %v9665_v1  ;;  %v13260_v6 = vunpack.i.l.bf16 %v13259_v52 }
 0xd09   : > { %19716 = vst [vmem:[#allocation130_spill] sm:$0xff] %v17769_v19  ;;  %19717 = vst [vmem:[#allocation133_spill] sm:$0xff] %v17772_v14  ;;  %v9706_v42 = vcombine.high %v9649_v12, %v9665_v1  ;;  %v9721_v8 = vcombine.low %v9656_v45, %v9672_v55  ;;  %v9722_v16 = vcombine.high %v9656_v45, %v9672_v55 }
 0xd0a   : > { %v9105_v25 = vrot.slane %v9097_v26, %v17657_v49  ;;  %v9112_v48 = vrot.slane %v9098_v47, %v17657_v49  ;;  %v9121_v24 = vrot.slane %v9113_v3, %v17657_v49  ;;  %v9128_v27 = vrot.slane %v9114_v59, %v17657_v49  ;;  %v10176_v59 = vld [vmem:[#allocation31 + $0x1a0] sm:$0xff] }
 0xd0b   : > { %v17795_v29 = vrot.slane %v9705_v54, %v17660_v33  ;;  %v17798_v56 = vrot.slane %v9706_v42, %v17660_v33  ;;  %v17801_v32 = vrot.slane %v9721_v8, %v17660_v33  ;;  %v17804_v11 = vrot.slane %v9722_v16, %v17660_v33  ;;  %v10174_v42 = vld [vmem:[#allocation31 + $0x190] sm:$0xff]  ;;  %v10175_v8 = vld [vmem:[#allocation31 + $0x198] sm:$0xff] }
 0xd0c   : > { %v9161_v13 = vcombine.low %v9105_v25, %v9121_v24  ;;  %v9162_v51 = vcombine.high %v9105_v25, %v9121_v24  ;;  %v9177_v62 = vcombine.low %v9112_v48, %v9128_v27  ;;  %v9178_v22 = vcombine.high %v9112_v48, %v9128_v27  ;;  %v10158_v24 = vld [vmem:[#allocation31 + $0x110] sm:$0xff]  ;;  %v10159_v16 = vld [vmem:[#allocation31 + $0x118] sm:$0xff] }
 0xd0d   : > { %19718 = vst [vmem:[#allocation113_spill] sm:$0xff] %v17795_v29  ;;  %19719 = vst [vmem:[#allocation132_spill] sm:$0xff] %v17801_v32  ;;  %v10285_v25 = vpack.c.bf16 %v10175_v8, %v10174_v42  ;;  %v4937_v3 = vrot.slane %v17737_v46, 4  ;;  %v12458_v47 = vpop.f32.mrb[120].mxu1  ;;  %v10277_v48 = vpack.c.bf16 %v10159_v16, %v10158_v24  ;;  %v4867_v12 = vmul.f32 %v13261_v17, %v19724_v63  ;;  %v10160_v42 = vld [vmem:[#allocation31 + $0x120] sm:$0xff]  ;;  %v10161_v8 = vld [vmem:[#allocation31 + $0x128] sm:$0xff] }
 0xd0e   : > { %v17815_v45 = vrot.slane %v9161_v13, %v17660_v33  ;;  %v17818_v1 = vrot.slane %v9162_v51, %v17660_v33  ;;  %v17821_v55 = vrot.slane %v9177_v62, %v17660_v33  ;;  %v17824_v26 = vrot.slane %v9178_v22, %v17660_v33  ;;  %v10172_v51 = vld [vmem:[#allocation31 + $0x180] sm:$0xff]  ;;  %v10173_v62 = vld [vmem:[#allocation31 + $0x188] sm:$0xff]  ;;  %v17877_v13 = vpop.permute.xlu1 %13268 }
 0xd0f   : > { %v10156_v22 = vld [vmem:[#allocation31 + $0x100] sm:$0xff]  ;;  %v10284_v27 = vpack.c.bf16 %v10173_v62, %v10172_v51  ;;  %v8372_v51 = vpop.f32.mrb[121].mxu1  ;;  %v12464_v62 = vpop.f32.mrb[124].mxu0  ;;  %v17882_v5 = vadd.f32 %v4937_v3, %v17737_v46  ;;  %v17887_v17 = vadd.f32 %v4930_v35, %v17740_v2  ;;  %v13271_v24 = vunpack.i.h.bf16 %v17877_v13  ;;  %v10162_v3 = vld [vmem:[#allocation31 + $0x130] sm:$0xff]  ;;  %v10181_v2 = vld [vmem:[#allocation31 + $0x1c8] sm:$0xff] }
 0xd10   : > { %19720 = vst [vmem:[#allocation122_spill] sm:$0xff] %v17815_v45  ;;  %19721 = vst [vmem:[#allocation156_spill] sm:$0xff] %v17818_v1  ;;  %v10276_v54 = vpack.c.bf16 %v10157_v7, %v10156_v22  ;;  %v10286_v7 = vpack.c.bf16 %v10177_v4, %v10176_v59  ;;  %v17879_v22 = vpop.f32.mrb[122].mxu1  ;;  %v8430_v52 = vpop.f32.mrb[125].mxu0  ;;  %v19725_v63 = vld [vmem:[#allocation142_spill] sm:$0xff]  ;;  %v10278_v4 = vpack.c.bf16 %v10161_v8, %v10160_v42  ;;  %v17893_v59 = vsel %vm4872_vm2, %v4867_v12, 0.0 }
 0xd11   : > { %19722 = vst [vmem:[#allocation141_spill] sm:$0xff] %v17821_v55  ;;  %19723 = vst [vmem:[#allocation136_spill] sm:$0xff] %v17824_v26  ;;  %12030 = vmatprep.subr.bf16.mxu0 %v10284_v27  ;;  %v10179_v27 = vld [vmem:[#allocation31 + $0x1b8] sm:$0xff]  ;;  %v4859_v16 = vmul.f32 %v13260_v6, %v19725_v63  ;;  %v17900_v63 = vpop.permute.xlu0 %13243  ;;  %v10165_v42 = vld [vmem:[#allocation31 + $0x148] sm:$0xff]  ;;  %v10288_v34 = vpack.c.bf16 %v10181_v2, %v10180_v61 }
 0xd12   : > { %12031 = vmatpush3.bf16.msra.mxu0 %v10276_v54  ;;  %v17884_v54 = vpop.f32.mrb[123].mxu1  ;;  %v10287_v46 = vpack.c.bf16 %v10179_v27, %v10178_v50  ;;  %v19726_v27 = vld [vmem:[#allocation154_spill] sm:$0xff] }
 0xd13   : > { %12032 = vmatprep.subr.bf16.mxu0 %v10285_v25  ;;  %v17890_v25 = vpop.f32.mrb[126].mxu0  ;;  %v17905_v36 = vsel %vm4872_vm2, %v4859_v16, 0.0  ;;  %v17908_v10 = vmul.f32 %v13271_v24, %v19726_v27 }
 0xd14   : > { %v17896_v9 = vpop.f32.mrb[127].mxu0 }
 0xd15   : > { %v12470_v50 = vpop.f32.mrb[124].mxu1 }
 0xd16   : > { %12033 = vmatpush3.bf16.msra.mxu0 %v10277_v48  ;;  %v10164_v48 = vld [vmem:[#allocation31 + $0x140] sm:$0xff]  ;;  %v9473_v35 = vcombine.low %v12458_v47, %v12470_v50  ;;  %v9474_v57 = vcombine.high %v12458_v47, %v12470_v50  ;;  %v8488_v6 = vpop.f32.mrb[125].mxu1 }
 0xd17   : > { %12034 = vmatprep.subr.bf16.mxu0 %v10286_v7  ;;  %v10279_v7 = vpack.c.bf16 %v10163_v30, %v10162_v3  ;;  %v12476_v40 = vpop.f32.mrb[128].mxu0  ;;  %v8929_v12 = vcombine.low %v8372_v51, %v8488_v6  ;;  %v8930_v37 = vcombine.high %v8372_v51, %v8488_v6  ;;  %v12471_v8 = vpop.f32.mrb[126].mxu1  ;;  %v10280_v53 = vpack.c.bf16 %v10165_v42, %v10164_v48 }
 0xd18   : > { %v9481_v16 = vrot.slane %v9473_v35, %v17657_v49  ;;  %v9489_v30 = vcombine.low %v12464_v62, %v12476_v40  ;;  %v9490_v3 = vcombine.high %v12464_v62, %v12476_v40  ;;  %v8546_v24 = vpop.f32.mrb[129].mxu0  ;;  %v8491_v27 = vpop.f32.mrb[127].mxu1  ;;  %v9745_v35 = vcombine.low %v17879_v22, %v12471_v8 }
 0xd19   : > { %v8937_v47 = vrot.slane %v8929_v12, %v17657_v49  ;;  %v8945_v61 = vcombine.low %v8430_v52, %v8546_v24  ;;  %v8946_v2 = vcombine.high %v8430_v52, %v8546_v24  ;;  %v12477_v50 = vpop.f32.mrb[130].mxu0 }
 0xd1a   : > { %12035 = vmatpush3.bf16.msra.mxu0 %v10278_v4  ;;  %v9488_v4 = vrot.slane %v9474_v57, %v17657_v49  ;;  %v9497_v51 = vrot.slane %v9489_v30, %v17657_v49  ;;  %v9504_v6 = vrot.slane %v9490_v3, %v17657_v49  ;;  %v9746_v57 = vcombine.high %v17879_v22, %v12471_v8  ;;  %v8549_v48 = vpop.f32.mrb[131].mxu0 }
 0xd1b   : > { %12036 = vmatprep.subr.bf16.mxu0 %v10287_v46  ;;  %v8944_v46 = vrot.slane %v8930_v37, %v17657_v49  ;;  %v8953_v40 = vrot.slane %v8945_v61, %v17657_v49  ;;  %v8960_v62 = vrot.slane %v8946_v2, %v17657_v49  ;;  %v9761_v37 = vcombine.low %v17890_v25, %v12477_v50 }
 0xd1c   : > { %v9762_v52 = vcombine.high %v17890_v25, %v12477_v50  ;;  %v9537_v42 = vcombine.low %v9481_v16, %v9497_v51  ;;  %v9538_v12 = vcombine.high %v9481_v16, %v9497_v51  ;;  %v9554_v30 = vcombine.high %v9488_v4, %v9504_v6 }
 0xd1d   : > { %v8993_v24 = vcombine.low %v8937_v47, %v8953_v40  ;;  %v8994_v3 = vcombine.high %v8937_v47, %v8953_v40  ;;  %v9009_v28 = vcombine.low %v8944_v46, %v8960_v62  ;;  %v9010_v31 = vcombine.high %v8944_v46, %v8960_v62 }
 0xd1e   : > { %12037 = vmatpush3.bf16.msra.mxu0 %v10279_v7  ;;  %v9553_v7 = vcombine.low %v9488_v4, %v9504_v6  ;;  %v17924_v22 = vrot.slane %v9537_v42, %v17660_v33  ;;  %v17933_v25 = vrot.slane %v9554_v30, %v17660_v33  ;;  %v9753_v46 = vrot.slane %v9745_v35, %v17657_v49 }
 0xd1f   : > { %12038 = vmatprep.subr.bf16.mxu0 %v10288_v34  ;;  %v17927_v34 = vrot.slane %v9538_v12, %v17660_v33  ;;  %v17936_v16 = vrot.slane %v8993_v24, %v17660_v33  ;;  %v17939_v4 = vrot.slane %v8994_v3, %v17660_v33  ;;  %v17945_v47 = vrot.slane %v9010_v31, %v17660_v33 }
 0xd20   : > { %19727 = vst [vmem:[#allocation155_spill] sm:$0xff] %v17924_v22  ;;  %v17930_v8 = vrot.slane %v9553_v7, %v17660_v33  ;;  %19730 = vst [vmem:[#allocation104_spill] sm:$0xff] %v17933_v25  ;;  %v9760_v61 = vrot.slane %v9746_v57, %v17657_v49  ;;  %v9769_v2 = vrot.slane %v9761_v37, %v17657_v49  ;;  %v13254_v7 = vpop.permute.xlu0 %13253  ;;  %v19747_v25 = vld [vmem:[#allocation138_spill] sm:$0xff] }
 0xd21   : > { %19728 = vst [vmem:[#allocation137_spill] sm:$0xff] %v17927_v34  ;;  %19731 = vst [vmem:[#allocation150_spill] sm:$0xff] %v17936_v16  ;;  %v9776_v50 = vrot.slane %v9762_v52, %v17657_v49  ;;  %v9201_v51 = vcombine.low %v17884_v54, %v8491_v27  ;;  %v9202_v6 = vcombine.high %v17884_v54, %v8491_v27 }
 0xd22   : > { %12039 = vmatpush3.bf16.msra.mxu0 %v10280_v53  ;;  %19729 = vst [vmem:[#allocation135_spill] sm:$0xff] %v17930_v8  ;;  %19732 = vst [vmem:[#allocation148_spill] sm:$0xff] %v17939_v4  ;;  %v17942_v53 = vrot.slane %v9009_v28, %v17660_v33  ;;  %v9217_v40 = vcombine.low %v17896_v9, %v8549_v48  ;;  %v9218_v28 = vcombine.high %v17896_v9, %v8549_v48 }
 0xd23   : > { %v9809_v62 = vcombine.low %v9753_v46, %v9769_v2  ;;  %v9810_v42 = vcombine.high %v9753_v46, %v9769_v2  ;;  %v9825_v31 = vcombine.low %v9760_v61, %v9776_v50  ;;  %v9826_v12 = vcombine.high %v9760_v61, %v9776_v50  ;;  %v19736_v61 = vld [vmem:[#allocation139_spill] sm:$0xff] }
 0xd24   : > { %19733 = vst [vmem:[#allocation149_spill] sm:$0xff] %v17942_v53  ;;  %v9209_v35 = vrot.slane %v9201_v51, %v17657_v49  ;;  %v9216_v57 = vrot.slane %v9202_v6, %v17657_v49  ;;  %v9225_v37 = vrot.slane %v9217_v40, %v17657_v49  ;;  %v9232_v52 = vrot.slane %v9218_v28, %v17657_v49 }
 0xd25   : > { %v17960_v30 = vrot.slane %v9809_v62, %v17660_v33  ;;  %v17963_v54 = vrot.slane %v9810_v42, %v17660_v33  ;;  %v17966_v9 = vrot.slane %v9825_v31, %v17660_v33  ;;  %v17969_v27 = vrot.slane %v9826_v12, %v17660_v33 }
 0xd26   : > { %v9265_v48 = vcombine.low %v9209_v35, %v9225_v37  ;;  %v9266_v24 = vcombine.high %v9209_v35, %v9225_v37  ;;  %v9281_v3 = vcombine.low %v9216_v57, %v9232_v52  ;;  %v9282_v46 = vcombine.high %v9216_v57, %v9232_v52  ;;  %v19742_v57 = vld [vmem:[#allocation146_spill] sm:$0xff] }
 0xd27   : > { %19734 = vst [vmem:[#allocation142_spill] sm:$0xff] %v17960_v30  ;;  %19735 = vst [vmem:[#allocation154_spill] sm:$0xff] %v17966_v9  ;;  %v19737_v2 = vunpack.i.h.bf16 %v17900_v63  ;;  %v13245_v51 = vunpack.i.l.bf16 %v17900_v63  ;;  %v13256_v6 = vunpack.i.h.bf16 %v13254_v7  ;;  %v13255_v40 = vunpack.i.l.bf16 %v13254_v7 }
 0xd28   : > { %v17976_v28 = vrot.slane %v9265_v48, %v17660_v33  ;;  %v17979_v62 = vrot.slane %v9266_v24, %v17660_v33  ;;  %v17982_v42 = vrot.slane %v9281_v3, %v17660_v33  ;;  %v17985_v31 = vrot.slane %v9282_v46, %v17660_v33  ;;  %v13264_v48 = vpop.permute.xlu0 %13263 }
 0xd29   : > { %v4857_v50 = vmul.f32 %v19737_v2, %v19736_v61  ;;  %v19740_v12 = vrot.slane %v17882_v5, 2  ;;  %v19741_v63 = vrot.slane %v17887_v17, 2  ;;  %v19743_v37 = vunpack.i.l.bf16 %v17877_v13  ;;  %v13279_v2 = vpop.permute.xlu1 %13278 }
 0xd2a   : > { %19738 = vst [vmem:[#allocation139_spill] sm:$0xff] %v17976_v28  ;;  %19739 = vst [vmem:[#allocation173_spill] sm:$0xff] %v17982_v42  ;;  %v19744_v24 = vrot.slane %v17893_v59, 4  ;;  %v4895_v46 = vrot.slane %v17905_v36, 4  ;;  %v4964_v61 = vsel %vm4872_vm2, %v17908_v10, 0.0  ;;  %v4858_v13 = vmul.f32 %v13255_v40, %v19747_v25 }
 0xd2b   : > { %v4940_v35 = vadd.f32 %v19740_v12, %v17882_v5  ;;  %v4933_v7 = vadd.f32 %v19741_v63, %v17887_v17  ;;  %v4861_v52 = vmul.f32 %v19743_v37, %v19742_v57  ;;  %v4880_v5 = vsel %vm4872_vm2, %v4857_v50, 0.0  ;;  %v19745_v12 = vld [vmem:[#allocation140_spill] sm:$0xff]  ;;  %v19746_v17 = vld [vmem:[#allocation147_spill] sm:$0xff] }
 0xd2c   : > { %v4952_v3 = vadd.f32 %v19744_v24, %v17893_v59  ;;  %v4856_v34 = vmul.f32 %v13245_v51, %v19745_v12  ;;  %v4866_v63 = vmul.f32 %v13256_v6, %v19746_v17  ;;  %v13266_v57 = vunpack.i.h.bf16 %v13264_v48  ;;  %v13274_v40 = vpop.permute.xlu0 %13273  ;;  %v19748_v12 = vld [vmem:[#allocation153_spill] sm:$0xff] }
 0xd2d   : > { %v13265_v37 = vunpack.i.l.bf16 %v13264_v48  ;;  %v4941_v60 = vrot.slane %v4940_v35, 1  ;;  %v4934_v4 = vrot.slane %v4933_v7, 1  ;;  %v4908_v59 = vsel %vm4872_vm2, %v4861_v52, 0.0 }
 0xd2e   : > { %v18008_v24 = vadd.f32 %v4895_v46, %v17905_v36  ;;  %v4965_v14 = vrot.slane %v4964_v61, 4  ;;  %v13281_v10 = vunpack.i.h.bf16 %v13279_v2  ;;  %v4881_v15 = vrot.slane %v4880_v5, 4 }
 0xd2f   : > { %v4953_v50 = vrot.slane %v4952_v3, 2  ;;  %v4873_v51 = vsel %vm4872_vm2, %v4856_v34, 0.0  ;;  %v4943_v6 = vsel %vm4872_vm2, %v4866_v63, 0.0  ;;  %v4887_v25 = vsel %vm4872_vm2, %v4858_v13, 0.0 }
 0xd30   : > { %v4868_v17 = vmul.f32 %v13266_v57, %v19748_v12  ;;  %v4860_v52 = vmul.f32 %v13265_v37, %v19749_v21  ;;  %v18015_v46 = vadd.f32 %v4941_v60, %v4940_v35  ;;  %v18017_v41 = vadd.f32 %v4934_v4, %v4933_v7  ;;  %v19755_v60 = vld [vmem:[#allocation152_spill] sm:$0xff] }
 0xd31   : > { %v4909_v58 = vrot.slane %v4908_v59, 4  ;;  %v13280_v44 = vunpack.i.l.bf16 %v13279_v2  ;;  %v18021_v63 = vadd.f32 %v4881_v15, %v4880_v5  ;;  %v4874_v13 = vrot.slane %v4873_v51, 4 }
 0xd32   : > { %19750 = vst [vmem:[#allocation146_spill] sm:$0xff] %v18015_v46  ;;  %19751 = vst [vmem:[#allocation140_spill] sm:$0xff] %v18017_v41  ;;  %v4944_v23 = vrot.slane %v4943_v6, 4  ;;  %v4888_v55 = vrot.slane %v4887_v25, 4  ;;  %v18023_v57 = vadd.f32 %v4953_v50, %v4952_v3  ;;  %v18026_v37 = vadd.f32 %v4965_v14, %v4964_v61 }
 0xd33   : > { %19752 = vst [vmem:[#allocation147_spill] sm:$0xff] %v18021_v63  ;;  %v18029_v4 = vmul.f32 %v13281_v10, %v19755_v60  ;;  %v18034_v7 = vsel %vm4872_vm2, %v4868_v17, 0.0  ;;  %v18037_v15 = vsel %vm4872_vm2, %v4860_v52, 0.0  ;;  %v13276_v2 = vunpack.i.h.bf16 %v13274_v40  ;;  %v19757_v10 = vld [vmem:[#allocation144_spill] sm:$0xff] }
 0xd34   : > { %19753 = vst [vmem:[#allocation138_spill] sm:$0xff] %v18023_v57  ;;  %19754 = vst [vmem:[#allocation153_spill] sm:$0xff] %v18026_v37  ;;  %v13275_v5 = vunpack.i.l.bf16 %v13274_v40  ;;  %v18043_v61 = vadd.f32 %v4909_v58, %v4908_v59  ;;  %v18046_v50 = vmul.f32 %v13280_v44, %v19757_v10  ;;  %v18049_v17 = vadd.f32 %v4874_v13, %v4873_v51  ;;  %v19759_v59 = vld [vmem:[#allocation151_spill] sm:$0xff] }
 0xd35   : > { %v18051_v60 = vadd.f32 %v4944_v23, %v4943_v6  ;;  %v18053_v52 = vadd.f32 %v4888_v55, %v4887_v25  ;;  %v18058_v41 = vmul.f32 %v13276_v2, %v19759_v59  ;;  %v19760_v44 = vld [vmem:[#allocation143_spill] sm:$0xff] }
 0xd36   : > { %19756 = vst [vmem:[#allocation145_spill] sm:$0xff] %v18043_v61  ;;  %19758 = vst [vmem:[#allocation152_spill] sm:$0xff] %v18046_v50  ;;  %v18061_v10 = vmul.f32 %v13275_v5, %v19760_v44 }
 0xd39   : > { %v12482_v1 = vpop.f32.mrb[128].mxu1 }
 0xd3a   : > { %v8604_v48 = vpop.f32.mrb[129].mxu1 }
 0xd3b   : > { %v12483_v26 = vpop.f32.mrb[130].mxu1  ;;  %v12488_v36 = vpop.f32.mrb[132].mxu0 }
 0xd3c   : > { %v8607_v45 = vpop.f32.mrb[131].mxu1  ;;  %v18019_v34 = vpop.f32.mrb[133].mxu0 }
 0xd3d   : > { %v12489_v18 = vpop.f32.mrb[134].mxu0 }
 0xd3e   : > { %v18031_v35 = vpop.f32.mrb[135].mxu0 }
 0xd41   : > { %v12494_v40 = vpop.f32.mrb[132].mxu1 }
 0xd42   : > { %v9505_v46 = vcombine.low %v12482_v1, %v12494_v40  ;;  %v9506_v14 = vcombine.high %v12482_v1, %v12494_v40  ;;  %v8720_v58 = vpop.f32.mrb[133].mxu1 }
 0xd43   : > { %v8961_v51 = vcombine.low %v8604_v48, %v8720_v58  ;;  %v8962_v13 = vcombine.high %v8604_v48, %v8720_v58  ;;  %v12495_v23 = vpop.f32.mrb[134].mxu1  ;;  %v12500_v6 = vpop.f32.mrb[136].mxu0 }
 0xd44   : > { %v9513_v55 = vrot.slane %v9505_v46, %v17657_v49  ;;  %v9520_v25 = vrot.slane %v9506_v14, %v17657_v49  ;;  %v9777_v12 = vcombine.low %v12483_v26, %v12495_v23  ;;  %v9778_v21 = vcombine.high %v12483_v26, %v12495_v23  ;;  %v8723_v3 = vpop.f32.mrb[135].mxu1  ;;  %v8778_v61 = vpop.f32.mrb[137].mxu0 }
 0xd45   : > { %v8969_v1 = vrot.slane %v8961_v51, %v17657_v49  ;;  %v8976_v2 = vrot.slane %v8962_v13, %v17657_v49  ;;  %v9521_v40 = vcombine.low %v12488_v36, %v12500_v6  ;;  %v9522_v59 = vcombine.high %v12488_v36, %v12500_v6  ;;  %v12501_v5 = vpop.f32.mrb[138].mxu0 }
 0xd46   : > { %v9785_v44 = vrot.slane %v9777_v12, %v17657_v49  ;;  %v9792_v48 = vrot.slane %v9778_v21, %v17657_v49  ;;  %v9233_v58 = vcombine.low %v8607_v45, %v8723_v3  ;;  %v9234_v57 = vcombine.high %v8607_v45, %v8723_v3  ;;  %v8781_v46 = vpop.f32.mrb[139].mxu0 }
 0xd47   : > { %v9529_v14 = vrot.slane %v9521_v40, %v17657_v49  ;;  %v9536_v26 = vrot.slane %v9522_v59, %v17657_v49  ;;  %v8977_v23 = vcombine.low %v18019_v34, %v8778_v61  ;;  %v8978_v51 = vcombine.high %v18019_v34, %v8778_v61 }
 0xd48   : > { %v9241_v13 = vrot.slane %v9233_v58, %v17657_v49  ;;  %v9248_v36 = vrot.slane %v9234_v57, %v17657_v49  ;;  %v9793_v6 = vcombine.low %v12489_v18, %v12501_v5  ;;  %v9794_v37 = vcombine.high %v12489_v18, %v12501_v5 }
 0xd49   : > { %v9569_v12 = vcombine.low %v9513_v55, %v9529_v14  ;;  %v9570_v50 = vcombine.high %v9513_v55, %v9529_v14  ;;  %v9585_v21 = vcombine.low %v9520_v25, %v9536_v26  ;;  %v9586_v63 = vcombine.high %v9520_v25, %v9536_v26 }
 0xd4a   : > { %v8985_v45 = vrot.slane %v8977_v23, %v17657_v49  ;;  %v8992_v3 = vrot.slane %v8978_v51, %v17657_v49  ;;  %v9801_v40 = vrot.slane %v9793_v6, %v17657_v49  ;;  %v9808_v59 = vrot.slane %v9794_v37, %v17657_v49 }
 0xd4b   : > { %v18080_v34 = vrot.slane %v9569_v12, %v17660_v33  ;;  %v18083_v61 = vrot.slane %v9570_v50, %v17660_v33  ;;  %v18086_v18 = vrot.slane %v9585_v21, %v17660_v33  ;;  %v18089_v57 = vrot.slane %v9586_v63, %v17660_v33 }
 0xd4c   : > { %v9025_v55 = vcombine.low %v8969_v1, %v8985_v45  ;;  %v9026_v25 = vcombine.high %v8969_v1, %v8985_v45  ;;  %v9041_v5 = vcombine.low %v8976_v2, %v8992_v3  ;;  %v9042_v58 = vcombine.high %v8976_v2, %v8992_v3 }
 0xd4d   : > { %19761 = vst [vmem:[#allocation144_spill] sm:$0xff] %v18080_v34  ;;  %19762 = vst [vmem:[#allocation151_spill] sm:$0xff] %v18086_v18  ;;  %v9841_v26 = vcombine.low %v9785_v44, %v9801_v40  ;;  %v9842_v23 = vcombine.high %v9785_v44, %v9801_v40  ;;  %v9857_v12 = vcombine.low %v9792_v48, %v9808_v59 }
 0xd4e   : > { %v18096_v50 = vrot.slane %v9025_v55, %v17660_v33  ;;  %v18099_v51 = vrot.slane %v9026_v25, %v17660_v33  ;;  %v18102_v63 = vrot.slane %v9041_v5, %v17660_v33  ;;  %v18105_v1 = vrot.slane %v9042_v58, %v17660_v33 }
 0xd4f   : > { %v18108_v2 = vrot.slane %v9841_v26, %v17660_v33  ;;  %v9856_v6 = vrot.slane %v9842_v23, %v17660_v33  ;;  %v9858_v21 = vcombine.high %v9792_v48, %v9808_v59  ;;  %v9249_v3 = vcombine.low %v18031_v35, %v8781_v46 }
 0xd50   : > { %19763 = vst [vmem:[#allocation143_spill] sm:$0xff] %v18096_v50  ;;  %19764 = vst [vmem:[#allocation174_spill] sm:$0xff] %v18102_v63  ;;  %v9250_v40 = vcombine.high %v18031_v35, %v8781_v46  ;;  %v18118_v55 = vrot.slane %v9857_v12, %v17660_v33  ;;  %v9062_v26 = vcombine.high %v17942_v53, %v18102_v63  ;;  %v19781_v53 = vld [vmem:[#allocation111_spill] sm:$0xff] }
 0xd51   : > { %19765 = vst [vmem:[#allocation175_spill] sm:$0xff] %v18108_v2  ;;  %v9872_v25 = vrot.slane %v9858_v21, %v17660_v33  ;;  %v9874_v48 = vcombine.high %v17960_v30, %v18108_v2  ;;  %v9257_v59 = vrot.slane %v9249_v3, %v17657_v49  ;;  %v9875_v35 = vcombine.low %v17963_v54, %v9856_v6  ;;  %v19787_v30 = vld [vmem:[#allocation119_spill] sm:$0xff] }
 0xd52   : > { %19766 = vst [vmem:[#allocation176_spill] sm:$0xff] %v18118_v55  ;;  %v9264_v58 = vrot.slane %v9250_v40, %v17657_v49  ;;  %v9878_v23 = vcombine.high %v17966_v9, %v18118_v55  ;;  %v19767_v12 = vcombine.high %v17707_v38, %v17795_v29  ;;  %v19768_v44 = vcombine.high %v17713_v0, %v17801_v32  ;;  %v19782_v29 = vld [vmem:[#allocation134_spill] sm:$0xff]  ;;  %v19807_v9 = vld [vmem:[#allocation112_spill] sm:$0xff] }
 0xd53   : > { %v9879_v3 = vcombine.low %v17969_v27, %v9872_v25  ;;  %v9297_v14 = vcombine.low %v9241_v13, %v9257_v59  ;;  %v9298_v49 = vcombine.high %v9241_v13, %v9257_v59  ;;  %v19769_v5 = vcombine.low %v17716_v39, %v17804_v11 }
 0xd54   : > { %v18137_v21 = vpack.i.bf16 %v9874_v48, %v19767_v12  ;;  %v9313_v40 = vcombine.low %v9248_v36, %v9264_v58  ;;  %v9314_v37 = vcombine.high %v9248_v36, %v9264_v58  ;;  %v18143_v45 = vpack.i.bf16 %v9878_v23, %v19768_v44 }
 0xd55   : > { %v18148_v46 = vpack.i.bf16 %v9879_v3, %v19769_v5  ;;  %v19770_v48 = vcombine.high %v17689_v20, %v17769_v19  ;;  %v19771_v13 = vcombine.low %v17710_v43, %v17798_v56  ;;  %v18161_v36 = vrot.slane %v9297_v14, %v17660_v33 }
 0xd56   : > { %v9312_v44 = vrot.slane %v9298_v49, %v17660_v33  ;;  %v18165_v58 = vrot.slane %v9313_v40, %v17660_v33  ;;  %v9328_v5 = vrot.slane %v9314_v37, %v17660_v33  ;;  %v9880_v23 = vcombine.high %v17969_v27, %v9872_v25  ;;  %v19778_v49 = vld [vmem:[#allocation122_spill] sm:$0xff] }
 0xd57   : > { %v18153_v12 = vpack.i.bf16 %v9062_v26, %v19770_v48  ;;  %v18158_v59 = vpack.i.bf16 %v9875_v35, %v19771_v13  ;;  %19772 = vst [vmem:[#allocation177_spill] sm:$0xff] %v18161_v36  ;;  %v9058_v26 = vcombine.high %v17936_v16, %v18096_v50  ;;  %v9063_v3 = vcombine.low %v17945_v47, %v18105_v1  ;;  %v19775_v48 = vld [vmem:[#allocation141_spill] sm:$0xff] }
 0xd58   : > { %19773 = vst [vmem:[#allocation178_spill] sm:$0xff] %v18165_v58  ;;  %v9876_v35 = vcombine.high %v17963_v54, %v9856_v6  ;;  %v9334_v40 = vcombine.high %v17982_v42, %v18165_v58  ;;  %v9330_v33 = vcombine.high %v17976_v28, %v18161_v36  ;;  %v9335_v27 = vcombine.low %v17985_v31, %v9328_v5  ;;  %v19774_v6 = vld [vmem:[#allocation123_spill] sm:$0xff]  ;;  %v19777_v50 = vld [vmem:[#allocation117_spill] sm:$0xff] }
 0xd59   : > { %v9331_v37 = vcombine.low %v17979_v62, %v9312_v44  ;;  %v9336_v25 = vcombine.high %v17985_v31, %v9328_v5  ;;  %v9332_v54 = vcombine.high %v17979_v62, %v9312_v44  ;;  %v19776_v13 = vcombine.high %v19774_v6, %v19775_v48  ;;  %v19784_v31 = vld [vmem:[#allocation114_spill] sm:$0xff]  ;;  %v19785_v62 = vld [vmem:[#allocation136_spill] sm:$0xff]  ;;  %v10125_v28 = vld [vmem:[#allocation31 + $0x8] sm:$0xff] }
 0xd5a   : > { %v19779_v16 = vcombine.high %v19777_v50, %v19778_v49  ;;  %v19780_v20 = vcombine.high %v17716_v39, %v17804_v11  ;;  %v19783_v38 = vcombine.high %v19781_v53, %v19782_v29  ;;  %v19786_v44 = vcombine.low %v19784_v31, %v19785_v62  ;;  %v19792_v11 = vld [vmem:[#allocation115_spill] sm:$0xff]  ;;  %v19804_v29 = vld [vmem:[#allocation108_spill] sm:$0xff]  ;;  %v19805_v53 = vld [vmem:[#allocation118_spill] sm:$0xff] }
 0xd5b   : > { %v13282_v14 = vpack.i.bf16 %v9334_v40, %v19776_v13  ;;  %v19788_v40 = vld [vmem:[#allocation156_spill] sm:$0xff]  ;;  %v19806_v0 = vcombine.high %v19804_v29, %v19805_v53  ;;  %v10169_v53 = vld [vmem:[#allocation31 + $0x168] sm:$0xff]  ;;  %v10127_v58 = vld [vmem:[#allocation31 + $0x18] sm:$0xff] }
 0xd5c   : > { %v13287_v19 = vpack.i.bf16 %v9330_v33, %v19779_v16  ;;  %v18195_v63 = vpack.i.bf16 %v9880_v23, %v19780_v20  ;;  %v18200_v2 = vpack.i.bf16 %v9058_v26, %v19783_v38  ;;  %v13292_v5 = vpack.i.bf16 %v9335_v27, %v19786_v44  ;;  %v19793_v23 = vld [vmem:[#allocation133_spill] sm:$0xff]  ;;  %v10141_v44 = vld [vmem:[#allocation31 + $0x88] sm:$0xff]  ;;  %v10142_v49 = vld [vmem:[#allocation31 + $0x90] sm:$0xff] }
 0xd5d   : > { %v19789_v13 = vcombine.low %v19787_v30, %v19788_v40  ;;  %v19790_v16 = vcombine.high %v19784_v31, %v19785_v62  ;;  %v19791_v20 = vcombine.high %v19787_v30, %v19788_v40  ;;  %v18220_v38 = vsel %vm4872_vm2, %v18058_v41, 0.0  ;;  %13283 = vrot.lane.b32.xlu0 %v13282_v14, %s14779_s9  ;;  %v10182_v41 = vld [vmem:[#allocation31 + $0x1d0] sm:$0xff]  ;;  %v10183_v31 = vld [vmem:[#allocation31 + $0x1d8] sm:$0xff]  ;;  %v10149_v42 = vld [vmem:[#allocation31 + $0xc8] sm:$0xff] }
 0xd5e   : > { %13288 = vrot.lane.b32.xlu1 %v13287_v19, %s14779_s9  ;;  %v19794_v26 = vcombine.low %v19792_v11, %v19793_v23  ;;  %v10166_v62 = vld [vmem:[#allocation31 + $0x150] sm:$0xff]  ;;  %v9064_v14 = vcombine.high %v17945_v47, %v18105_v1  ;;  %v19797_v40 = vld [vmem:[#allocation109_spill] sm:$0xff]  ;;  %v19827_v48 = vld [vmem:[#allocation146_spill] sm:$0xff] }
 0xd5f   : > { %v13297_v32 = vpack.i.bf16 %v9331_v37, %v19789_v13  ;;  %v18211_v33 = vpack.i.bf16 %v9336_v25, %v19790_v16  ;;  %v18216_v39 = vpack.i.bf16 %v9332_v54, %v19791_v20  ;;  %v19795_v37 = vcombine.high %v17710_v43, %v17798_v56  ;;  %v19796_v25 = vld [vmem:[#allocation148_spill] sm:$0xff]  ;;  %v10167_v56 = vld [vmem:[#allocation31 + $0x158] sm:$0xff]  ;;  %v19798_v13 = vld [vmem:[#allocation127_spill] sm:$0xff] }
 0xd60   : > { %v18227_v27 = vpack.i.bf16 %v9063_v3, %v19794_v26  ;;  %v9059_v54 = vcombine.low %v19796_v25, %v18099_v51  ;;  %v9060_v19 = vcombine.high %v19796_v25, %v18099_v51  ;;  %v9606_v3 = vcombine.high %v17930_v8, %v18086_v18  ;;  %v19800_v26 = vld [vmem:[#allocation104_spill] sm:$0xff]  ;;  %v19801_v1 = vld [vmem:[#allocation137_spill] sm:$0xff]  ;;  %v10184_v25 = vld [vmem:[#allocation31 + $0x1e0] sm:$0xff] }
 0xd61   : > { %v18232_v30 = vpack.i.bf16 %v9876_v35, %v19795_v37  ;;  %v9602_v43 = vcombine.high %v17924_v22, %v18080_v34  ;;  %v10140_v35 = vld [vmem:[#allocation31 + $0x80] sm:$0xff]  ;;  %v19799_v16 = vcombine.low %v19797_v40, %v19798_v13  ;;  %v9607_v47 = vcombine.low %v19800_v26, %v18089_v57  ;;  %v10185_v18 = vld [vmem:[#allocation31 + $0x1e8] sm:$0xff]  ;;  %13293 = vrot.lane.b32.xlu0 %v13292_v5, %s14780_s18 }
 0xd62   : > { %v9603_v51 = vcombine.low %v19801_v1, %v18083_v61  ;;  %v9608_v37 = vcombine.high %v19800_v26, %v18089_v57  ;;  %v10124_v34 = vld [vmem:[#allocation31] sm:$0xff]  ;;  %v19802_v22 = vcombine.high %v19792_v11, %v19793_v23  ;;  %v18268_v55 = vpack.i.bf16 %v9606_v3, %v19806_v0  ;;  %v19808_v57 = vld [vmem:[#allocation116_spill] sm:$0xff]  ;;  %v10143_v11 = vld [vmem:[#allocation31 + $0x98] sm:$0xff]  ;;  %13298 = vrot.lane.b32.xlu1 %v13297_v32, %s14780_s18 }
 0xd63   : > { %v18247_v20 = vpack.i.bf16 %v9059_v54, %v19799_v16  ;;  %v19803_v54 = vcombine.high %v19797_v40, %v19798_v13  ;;  %v19809_v26 = vcombine.high %v19807_v9, %v19808_v57  ;;  %v19810_v23 = vld [vmem:[#allocation124_spill] sm:$0xff]  ;;  %v19813_v3 = vld [vmem:[#allocation126_spill] sm:$0xff]  ;;  %v19814_v40 = vld [vmem:[#allocation121_spill] sm:$0xff]  ;;  %v10289_v5 = vpack.c.bf16 %v10183_v31, %v10182_v41 }
 0xd64   : > { %v18258_v8 = vpack.i.bf16 %v9064_v14, %v19802_v22  ;;  %v4915_v22 = vsel %vm4872_vm2, %v18061_v10, 0.0  ;;  %v19811_v14 = vld [vmem:[#allocation125_spill] sm:$0xff]  ;;  %v9604_v10 = vcombine.high %v19801_v1, %v18083_v61  ;;  %v10281_v32 = vpack.c.bf16 %v10167_v56, %v10166_v62  ;;  %v10168_v9 = vld [vmem:[#allocation31 + $0x160] sm:$0xff] }
 0xd65   : > { %v18263_v16 = vpack.i.bf16 %v9060_v19, %v19803_v54  ;;  %v18273_v36 = vpack.i.bf16 %v9602_v43, %v19809_v26  ;;  %v19812_v0 = vcombine.low %v19810_v23, %v19811_v14  ;;  %v19815_v43 = vcombine.low %v19813_v3, %v19814_v40  ;;  %12040 = vmatprep.subr.bf16.mxu0 %v10289_v5 }
 0xd66   : > { %v19816_v54 = vcombine.high %v19810_v23, %v19811_v14  ;;  %v10268_v57 = vpack.c.bf16 %v10141_v44, %v10140_v35  ;;  %v10260_v29 = vpack.c.bf16 %v10125_v28, %v10124_v34  ;;  %v10269_v50 = vpack.c.bf16 %v10143_v11, %v10142_v49  ;;  %v10187_v28 = vld [vmem:[#allocation31 + $0x1f8] sm:$0xff]  ;;  %v10144_v34 = vld [vmem:[#allocation31 + $0xa0] sm:$0xff]  ;;  %13303 = vrot.lane.b32.xlu0 %v18211_v33, %s14775_s25 }
 0xd67   : > { %v18282_v19 = vpack.i.bf16 %v9607_v47, %v19812_v0  ;;  %v18287_v13 = vpack.i.bf16 %v9603_v51, %v19815_v43  ;;  %v4876_v47 = vrot.slane %v18049_v17, 2  ;;  %v10290_v0 = vpack.c.bf16 %v10185_v18, %v10184_v25  ;;  %v10186_v51 = vld [vmem:[#allocation31 + $0x1f0] sm:$0xff]  ;;  %v10145_v18 = vld [vmem:[#allocation31 + $0xa8] sm:$0xff]  ;;  %13308 = vrot.lane.b32.xlu1 %v18216_v39, %s14775_s25  ;;  %12041 = vmatpush3.bf16.msra.mxu0 %v10281_v32 }
 0xd68   : > { %v18292_v26 = vpack.i.bf16 %v9608_v37, %v19816_v54  ;;  %v10126_v43 = vld [vmem:[#allocation31 + $0x10] sm:$0xff]  ;;  %v4946_v23 = vrot.slane %v18051_v60, 2  ;;  %v4890_v37 = vrot.slane %v18053_v52, 2  ;;  %v19817_v61 = vrot.slane %v18034_v7, 4  ;;  %12008 = vmatprep.subr.bf16.mxu1 %v10268_v57  ;;  %v19821_v57 = vld [vmem:[#allocation147_spill] sm:$0xff] }
 0xd69   : > { %v19818_v31 = vcombine.high %v19813_v3, %v19814_v40  ;;  %v19819_v49 = vrot.slane %v18008_v24, 2  ;;  %v19820_v35 = vrot.slane %v18037_v15, 4  ;;  %v4916_v1 = vrot.slane %v4915_v22, 4  ;;  %12009 = vmatpush3.bf16.msra.mxu1 %v10260_v29  ;;  %v10170_v3 = vld [vmem:[#allocation31 + $0x170] sm:$0xff]  ;;  %v10171_v40 = vld [vmem:[#allocation31 + $0x178] sm:$0xff]  ;;  %12042 = vmatprep.subr.bf16.mxu0 %v10290_v0 }
 0xd6a   : > { %v4959_v41 = vadd.f32 %v19817_v61, %v18034_v7  ;;  %v4972_v7 = vrot.slane %v18220_v38, 4  ;;  %v4978_v25 = vsel %vm4872_vm2, %v18029_v4, 0.0  ;;  %v10282_v14 = vpack.c.bf16 %v10169_v53, %v10168_v9  ;;  %v19823_v54 = vld [vmem:[#allocation152_spill] sm:$0xff]  ;;  %12010 = vmatprep.subr.bf16.mxu1 %v10269_v50  ;;  %v10236_v4 = vld [vmem:[#allocation31 + $0x380] sm:$0xff]  ;;  %13313 = vrot.lane.b32.xlu0 %v18143_v45, %s14779_s9 }
 0xd6b   : > { %v18305_v62 = vpack.i.bf16 %v9604_v10, %v19818_v31  ;;  %v18310_v56 = vadd.f32 %v19819_v49, %v18008_v24  ;;  %v4903_v44 = vadd.f32 %v19820_v35, %v18037_v15  ;;  %v19822_v24 = vrot.slane %v19821_v57, 2  ;;  %v10128_v61 = vld [vmem:[#allocation31 + $0x20] sm:$0xff]  ;;  %v10129_v31 = vld [vmem:[#allocation31 + $0x28] sm:$0xff]  ;;  %v19824_v49 = vld [vmem:[#allocation153_spill] sm:$0xff]  ;;  %13318 = vrot.lane.b32.xlu1 %v18137_v21, %s14779_s9 }
 0xd6c   : > { %v10261_v15 = vpack.c.bf16 %v10127_v58, %v10126_v43  ;;  %v4922_v10 = vsel %vm4872_vm2, %v19823_v54, 0.0  ;;  %v4877_v33 = vadd.f32 %v4876_v47, %v18049_v17  ;;  %v10291_v39 = vpack.c.bf16 %v10187_v28, %v10186_v51  ;;  %v10237_v58 = vld [vmem:[#allocation31 + $0x388] sm:$0xff]  ;;  %v10146_v32 = vld [vmem:[#allocation31 + $0xb0] sm:$0xff]  ;;  %v10147_v43 = vld [vmem:[#allocation31 + $0xb8] sm:$0xff]  ;;  %12043 = vmatpush3.bf16.msra.mxu0 %v10282_v14 }
 0xd6d   : > { %v4884_v11 = vadd.f32 %v19822_v24, %v19821_v57  ;;  %v10270_v5 = vpack.c.bf16 %v10145_v18, %v10144_v34  ;;  %v4967_v35 = vrot.slane %v19824_v49, 2  ;;  %v4947_v29 = vadd.f32 %v4946_v23, %v18051_v60  ;;  %v19825_v57 = vld [vmem:[#allocation138_spill] sm:$0xff]  ;;  %v19826_v18 = vld [vmem:[#allocation145_spill] sm:$0xff] }
 0xd6e   : > { %v4891_v53 = vadd.f32 %v4890_v37, %v18053_v52  ;;  %v4960_v9 = vrot.slane %v4959_v41, 2  ;;  %v4955_v24 = vrot.slane %v19825_v57, 1  ;;  %v4904_v17 = vrot.slane %v4903_v44, 2  ;;  %12011 = vmatpush3.bf16.msra.mxu1 %v10261_v15  ;;  %12044 = vmatprep.subr.bf16.mxu0 %v10291_v39  ;;  %v10148_v21 = vld [vmem:[#allocation31 + $0xc0] sm:$0xff] }
 0xd6f   : > { %v4973_v50 = vadd.f32 %v4972_v7, %v18220_v38  ;;  %v4917_v47 = vadd.f32 %v4916_v1, %v4915_v22  ;;  %v4979_v0 = vrot.slane %v4978_v25, 4  ;;  %v4923_v60 = vrot.slane %v4922_v10, 4  ;;  %12012 = vmatprep.subr.bf16.mxu1 %v10270_v5  ;;  %v10130_v38 = vld [vmem:[#allocation31 + $0x30] sm:$0xff]  ;;  %v10131_v22 = vld [vmem:[#allocation31 + $0x38] sm:$0xff]  ;;  %13323 = vrot.lane.b32.xlu0 %v18148_v46, %s14780_s18 }
 0xd70   : > { %v10283_v52 = vpack.c.bf16 %v10171_v40, %v10170_v3  ;;  %v10262_v51 = vpack.c.bf16 %v10129_v31, %v10128_v61  ;;  %v4885_v23 = vrot.slane %v4884_v11, 1  ;;  %v4878_v37 = vrot.slane %v4877_v33, 1  ;;  %13328 = vrot.lane.b32.xlu1 %v18153_v12, %s14779_s9  ;;  %v19829_v5 = vld [vmem:[#allocation140_spill] sm:$0xff] }
 0xd71   : > { %v10316_v28 = vpack.c.bf16 %v10237_v58, %v10236_v4  ;;  %v10271_v34 = vpack.c.bf16 %v10147_v43, %v10146_v32  ;;  %v4911_v7 = vrot.slane %v19826_v18, 2  ;;  %v4948_v45 = vrot.slane %v4947_v29, 1  ;;  %v10132_v32 = vld [vmem:[#allocation31 + $0x40] sm:$0xff]  ;;  %v10133_v43 = vld [vmem:[#allocation31 + $0x48] sm:$0xff] }
 0xd72   : > { %v4892_v1 = vrot.slane %v4891_v53, 1  ;;  %v4961_v54 = vadd.f32 %v4960_v9, %v4959_v41  ;;  %v19828_v14 = vpack.c.bf16 %v19827_v48, %v19827_v48  ;;  %v4905_v3 = vadd.f32 %v4904_v17, %v4903_v44  ;;  %12045 = vmatpush3.bf16.msra.mxu0 %v10283_v52  ;;  %12013 = vmatpush3.bf16.msra.mxu1 %v10262_v51 }
 0xd73   : > { %v4974_v40 = vrot.slane %v4973_v50, 2  ;;  %v4918_v39 = vrot.slane %v4917_v47, 2  ;;  %v19830_v4 = vpack.c.bf16 %v19829_v5, %v19829_v5  ;;  %v4980_v61 = vadd.f32 %v4979_v0, %v4978_v25  ;;  %12074 = vmatprep.subr.bf16.mxu0 %v10316_v28  ;;  %12014 = vmatprep.subr.bf16.mxu1 %v10271_v34  ;;  %v10151_v25 = vld [vmem:[#allocation31 + $0xd8] sm:$0xff] }
 0xd74   : > { %v18341_v15 = vunpack.c.l.b16 %v19828_v14  ;;  %v4924_v31 = vadd.f32 %v4923_v60, %v4922_v10  ;;  %v10263_v48 = vpack.c.bf16 %v10131_v22, %v10130_v38  ;;  %v4899_v44 = vrot.slane %v18310_v56, 1  ;;  %13333 = vrot.lane.b32.xlu0 %v18158_v59, %s14780_s18  ;;  %13338 = vrot.lane.b32.xlu1 %v18195_v63, %s14775_s25  ;;  %v10153_v63 = vld [vmem:[#allocation31 + $0xe8] sm:$0xff] }
 0xd75   : > { %v18350_v41 = vunpack.c.l.b16 %v19830_v4  ;;  %v4886_v9 = vadd.f32 %v4885_v23, %v4884_v11  ;;  %v4879_v58 = vadd.f32 %v4878_v37, %v4877_v33  ;;  %v10272_v46 = vpack.c.bf16 %v10149_v42, %v10148_v21  ;;  %v10150_v4 = vld [vmem:[#allocation31 + $0xd0] sm:$0xff]  ;;  %v10152_v37 = vld [vmem:[#allocation31 + $0xe0] sm:$0xff] }
 0xd76   : > { %v4968_v12 = vadd.f32 %v4967_v35, %v19824_v49  ;;  %v4949_v17 = vadd.f32 %v4948_v45, %v4947_v29  ;;  %v4893_v14 = vadd.f32 %v4892_v1, %v4891_v53  ;;  %v4962_v5 = vrot.slane %v4961_v54, 1  ;;  %12015 = vmatpush3.bf16.msra.mxu1 %v10263_v48 }
 0xd77   : > { %v4956_v10 = vadd.f32 %v4955_v24, %v19825_v57  ;;  %v4906_v0 = vrot.slane %v4905_v3, 1  ;;  %v4975_v60 = vadd.f32 %v4974_v40, %v4973_v50  ;;  %v4919_v52 = vadd.f32 %v4918_v39, %v4917_v47  ;;  %12016 = vmatprep.subr.bf16.mxu1 %v10272_v46  ;;  %v10134_v24 = vld [vmem:[#allocation31 + $0x50] sm:$0xff]  ;;  %v10135_v50 = vld [vmem:[#allocation31 + $0x58] sm:$0xff]  ;;  %v10136_v39 = vld [vmem:[#allocation31 + $0x60] sm:$0xff] }
 0xd78   : > { %v4912_v42 = vadd.f32 %v4911_v7, %v19826_v18  ;;  %v4981_v11 = vrot.slane %v4980_v61, 2  ;;  %v4925_v33 = vrot.slane %v4924_v31, 2  ;;  %v10264_v49 = vpack.c.bf16 %v10133_v43, %v10132_v32  ;;  %13343 = vrot.lane.b32.xlu0 %v18200_v2, %s14779_s9  ;;  %13348 = vrot.lane.b32.xlu1 %v18227_v27, %s14780_s18  ;;  %v10154_v2 = vld [vmem:[#allocation31 + $0xf0] sm:$0xff]  ;;  %v10155_v46 = vld [vmem:[#allocation31 + $0xf8] sm:$0xff] }
 0xd79   : > { %v4900_v35 = vadd.f32 %v4899_v44, %v18310_v56  ;;  %v10500_v29 = vpack.c.bf16 %v4886_v9, %v4886_v9  ;;  %v10499_v53 = vpack.c.bf16 %v4879_v58, %v4879_v58  ;;  %v10273_v57 = vpack.c.bf16 %v10151_v25, %v10150_v4 }
 0xd7a   : > { %v4969_v47 = vrot.slane %v4968_v12, 1  ;;  %v10509_v51 = vpack.c.bf16 %v4949_v17, %v4949_v17  ;;  %v10501_v59 = vpack.c.bf16 %v4893_v14, %v4893_v14  ;;  %v4963_v23 = vadd.f32 %v4962_v5, %v4961_v54  ;;  %12017 = vmatpush3.bf16.msra.mxu1 %v10264_v49 }
 0xd7b   : > { %v10510_v28 = vpack.c.bf16 %v4956_v10, %v4956_v10  ;;  %v4907_v34 = vadd.f32 %v4906_v0, %v4905_v3  ;;  %v4976_v38 = vrot.slane %v4975_v60, 1  ;;  %v4920_v22 = vrot.slane %v4919_v52, 1  ;;  %12018 = vmatprep.subr.bf16.mxu1 %v10273_v57  ;;  %v10137_v3 = vld [vmem:[#allocation31 + $0x68] sm:$0xff]  ;;  %v10138_v10 = vld [vmem:[#allocation31 + $0x70] sm:$0xff]  ;;  %v10139_v0 = vld [vmem:[#allocation31 + $0x78] sm:$0xff] }
 0xd7c   : > { %v4913_v56 = vrot.slane %v4912_v42, 1  ;;  %v4982_v18 = vadd.f32 %v4981_v11, %v4980_v61  ;;  %v4926_v7 = vadd.f32 %v4925_v33, %v4924_v31  ;;  %v10265_v45 = vpack.c.bf16 %v10135_v50, %v10134_v24  ;;  %13353 = vrot.lane.b32.xlu0 %v18232_v30, %s14775_s25  ;;  %13358 = vrot.lane.b32.xlu1 %v18247_v20, %s14780_s18  ;;  %v10205_v11 = vld [vmem:[#allocation31 + $0x288] sm:$0xff] }
 0xd7d   : > { %v10502_v1 = vpack.c.bf16 %v4900_v35, %v4900_v35  ;;  %v10533_v21 = vunpack.c.l.b16 %v10500_v29  ;;  %v10532_v54 = vunpack.c.l.b16 %v10499_v53  ;;  %v10274_v40 = vpack.c.bf16 %v10153_v63, %v10152_v37 }
 0xd7e   : > { %v4970_v48 = vadd.f32 %v4969_v47, %v4968_v12  ;;  %v10542_v44 = vunpack.c.l.b16 %v10509_v51  ;;  %v10534_v9 = vunpack.c.l.b16 %v10501_v59  ;;  %v10511_v58 = vpack.c.bf16 %v4963_v23, %v4963_v23  ;;  %12019 = vmatpush3.bf16.msra.mxu1 %v10265_v45 }
 0xd7f   : > { %v10503_v32 = vpack.c.bf16 %v4907_v34, %v4907_v34  ;;  %v4977_v27 = vadd.f32 %v4976_v38, %v4975_v60  ;;  %v4921_v43 = vadd.f32 %v4920_v22, %v4919_v52  ;;  %v4914_v61 = vadd.f32 %v4913_v56, %v4912_v42  ;;  %12020 = vmatprep.subr.bf16.mxu1 %v10274_v40  ;;  %v10204_v42 = vld [vmem:[#allocation31 + $0x280] sm:$0xff] }
 0xd80   : > { %v4983_v31 = vrot.slane %v4982_v18, 1  ;;  %v4927_v17 = vrot.slane %v4926_v7, 1  ;;  %v10266_v14 = vpack.c.bf16 %v10137_v3, %v10136_v39  ;;  %v10555_v12 = vsel %vm6087_vm3, %v18341_v15, %v18350_v41  ;;  %13363 = vrot.lane.b32.xlu0 %v18258_v8, %s14775_s25  ;;  %13368 = vrot.lane.b32.xlu1 %v18263_v16, %s14775_s25 }
 0xd81   : > { %v10543_v5 = vunpack.c.l.b16 %v10510_v28  ;;  %v10548_v4 = vsel %vm6087_vm3, %v10533_v21, %v10532_v54  ;;  %v10275_v25 = vpack.c.bf16 %v10155_v46, %v10154_v2  ;;  %v10535_v30 = vunpack.c.l.b16 %v10502_v1  ;;  %v19833_v46 = vld [vmem:[#allocation173_spill] sm:$0xff] }
 0xd82   : > { %v10512_v60 = vpack.c.bf16 %v4970_v48, %v4970_v48  ;;  %v10556_v20 = vsel %vm6089_vm10, %v10542_v44, %v10555_v12  ;;  %v10549_v52 = vsel %vm6089_vm10, %v10534_v9, %v10548_v4  ;;  %v10544_v33 = vunpack.c.l.b16 %v10511_v58  ;;  %12021 = vmatpush3.bf16.msra.mxu1 %v10266_v14  ;;  %v19839_v12 = vld [vmem:[#allocation139_spill] sm:$0xff] }
 0xd83   : > { %v10536_v49 = vunpack.c.l.b16 %v10503_v32  ;;  %v10513_v35 = vpack.c.bf16 %v4977_v27, %v4977_v27  ;;  %v10505_v29 = vpack.c.bf16 %v4921_v43, %v4921_v43  ;;  %v10504_v15 = vpack.c.bf16 %v4914_v61, %v4914_v61  ;;  %12022 = vmatprep.subr.bf16.mxu1 %v10275_v25  ;;  %v19834_v32 = vld [vmem:[#allocation178_spill] sm:$0xff]  ;;  %v19836_v61 = vld [vmem:[#allocation117_spill] sm:$0xff] }
 0xd84   : > { %v4984_v41 = vadd.f32 %v4983_v31, %v4982_v18  ;;  %v4928_v53 = vadd.f32 %v4927_v17, %v4926_v7  ;;  %v10267_v57 = vpack.c.bf16 %v10139_v0, %v10138_v10  ;;  %v10300_v24 = vpack.c.bf16 %v10205_v11, %v10204_v42  ;;  %13373 = vrot.lane.b32.xlu0 %v18268_v55, %s14779_s9  ;;  %v19837_v31 = vld [vmem:[#allocation122_spill] sm:$0xff]  ;;  %v10221_v42 = vld [vmem:[#allocation31 + $0x308] sm:$0xff] }
 0xd85   : > { %v10550_v50 = vsel %vm6091_vm11, %v10535_v30, %v10549_v52  ;;  %v10557_v47 = vsel %vm6091_vm11, %v10543_v5, %v10556_v20  ;;  %v10546_v51 = vunpack.c.l.b16 %v10513_v35  ;;  %v10538_v59 = vunpack.c.l.b16 %v10505_v29  ;;  %13378 = vrot.lane.b32.xlu1 %v18273_v36, %s14779_s9  ;;  %v19840_v5 = vld [vmem:[#allocation177_spill] sm:$0xff]  ;;  %v10220_v52 = vld [vmem:[#allocation31 + $0x300] sm:$0xff]  ;;  %v10238_v29 = vld [vmem:[#allocation31 + $0x390] sm:$0xff] }
 0xd86   : > { %v10551_v8 = vsel %vm6093_vm12, %v10536_v49, %v10550_v50  ;;  %v10558_v16 = vsel %vm6093_vm12, %v10544_v33, %v10557_v47  ;;  %v10545_v23 = vunpack.c.l.b16 %v10512_v60  ;;  %v10537_v37 = vunpack.c.l.b16 %v10504_v15  ;;  %12023 = vmatpush3.bf16.msra.mxu1 %v10267_v57  ;;  %v10239_v15 = vld [vmem:[#allocation31 + $0x398] sm:$0xff] }
 0xd87   : > { %v10514_v63 = vpack.c.bf16 %v4984_v41, %v4984_v41  ;;  %v10506_v28 = vpack.c.bf16 %v4928_v53, %v4928_v53  ;;  %12052 = vmatprep.subr.bf16.mxu1 %v10300_v24  ;;  %vm10076_vm2 = vcmask 523264   ;;  %v19835_v27 = vcombine.low %v19833_v46, %v19834_v32 }
 0xd88   : > { %v10552_v34 = vsel %vm6095_vm13, %v10537_v37, %v10551_v8  ;;  %v10559_v38 = vsel %vm6095_vm13, %v10545_v23, %v10558_v16  ;;  %13383 = vrot.lane.b32.xlu0 %v18282_v19, %s14780_s18  ;;  %v19838_v17 = vcombine.low %v19836_v61, %v19837_v31  ;;  %v19841_v4 = vcombine.low %v19839_v12, %v19840_v5  ;;  %v10222_v23 = vld [vmem:[#allocation31 + $0x310] sm:$0xff]  ;;  %v10223_v37 = vld [vmem:[#allocation31 + $0x318] sm:$0xff] }
 0xd89   : > { %13388 = vrot.lane.b32.xlu1 %v18287_v13, %s14780_s18  ;;  %v10553_v55 = vsel %vm6097_vm14, %v10538_v59, %v10552_v34  ;;  %v10560_v36 = vsel %vm6097_vm14, %v10546_v51, %v10559_v38  ;;  %v10539_v22 = vunpack.c.l.b16 %v10506_v28  ;;  %v10547_v56 = vunpack.c.l.b16 %v10514_v63  ;;  %v10240_v63 = vld [vmem:[#allocation31 + $0x3a0] sm:$0xff]  ;;  %v10241_v28 = vld [vmem:[#allocation31 + $0x3a8] sm:$0xff] }
 0xd8a   : > { %v10308_v8 = vpack.c.bf16 %v10221_v42, %v10220_v52  ;;  %v10317_v16 = vpack.c.bf16 %v10239_v15, %v10238_v29  ;;  %v10247_v42 = vld [vmem:[#allocation31 + $0x3d8] sm:$0xff] }
 0xd8b   : > { %v10554_v18 = vsel %vm6099_vm15, %v10539_v22, %v10553_v55  ;;  %v10561_v7 = vsel %vm6099_vm15, %v10547_v56, %v10560_v36  ;;  %v10309_v55 = vpack.c.bf16 %v10223_v37, %v10222_v23  ;;  %v10224_v36 = vld [vmem:[#allocation31 + $0x320] sm:$0xff] }
 0xd8c   : > { %13393 = vrot.lane.b32.xlu0 %v18292_v26, %s14775_s25  ;;  %v10562_v19 = vpack.c.b16 %v10561_v7, %v10554_v18  ;;  %v19831_v26 = vld [vmem:[#allocation141_spill] sm:$0xff]  ;;  %v10318_v18 = vpack.c.bf16 %v10241_v28, %v10240_v63  ;;  %v10225_v7 = vld [vmem:[#allocation31 + $0x328] sm:$0xff] }
 0xd8d   : > { %13398 = vrot.lane.b32.xlu1 %v18305_v62, %s14775_s25  ;;  %v19832_v62 = vcombine.low %v19774_v6, %v19831_v26  ;;  %v19846_v26 = vld [vmem:[#allocation132_spill] sm:$0xff] }
 0xd90   : > { %10563 = vrot.lane.b32.xlu0 %v10562_v19, %s14781_s10  ;;  %v10242_v19 = vld [vmem:[#allocation31 + $0x3b0] sm:$0xff] }
 0xdcf   : > { %v13284_v13 = vpop.permute.xlu0 %13283 }
 0xdd0   : > { %v13289_v45 = vpop.permute.xlu1 %13288  ;;  %v13286_v1 = vunpack.i.h.bf16 %v13284_v13  ;;  %v13285_v21 = vunpack.i.l.bf16 %v13284_v13  ;;  %v10243_v13 = vld [vmem:[#allocation31 + $0x3b8] sm:$0xff] }
 0xdd1   : > { %v13291_v54 = vunpack.i.h.bf16 %v13289_v45  ;;  %v13290_v40 = vunpack.i.l.bf16 %v13289_v45 }
 0xdd2   : > { %v10094_v2 = vsel %vm10073_vm8, %v19832_v62, %v13285_v21  ;;  %v10095_v43 = vsel %vm10073_vm8, %v19835_v27, %v13286_v1  ;;  %v10226_v27 = vld [vmem:[#allocation31 + $0x330] sm:$0xff] }
 0xdd3   : > { %v13294_v39 = vpop.permute.xlu0 %13293  ;;  %v10088_v14 = vsel %vm10073_vm8, %v19838_v17, %v13290_v40  ;;  %v10089_v25 = vsel %vm10073_vm8, %v19841_v4, %v13291_v54  ;;  %v10310_v40 = vpack.c.bf16 %v10225_v7, %v10224_v36  ;;  %v10244_v17 = vld [vmem:[#allocation31 + $0x3c0] sm:$0xff] }
 0xdd4   : > { %v13299_v3 = vpop.permute.xlu1 %13298  ;;  %v13296_v48 = vunpack.i.h.bf16 %v13294_v39  ;;  %v13295_v44 = vunpack.i.l.bf16 %v13294_v39  ;;  %v10319_v39 = vpack.c.bf16 %v10243_v13, %v10242_v19  ;;  %v10248_v36 = vld [vmem:[#allocation31 + $0x3e0] sm:$0xff] }
 0xdd5   : > { %v13301_v9 = vunpack.i.h.bf16 %v13299_v3  ;;  %v13300_v58 = vunpack.i.l.bf16 %v13299_v3  ;;  %v19842_v3 = vld [vmem:[#allocation154_spill] sm:$0xff] }
 0xdd6   : > { %v10096_v11 = vsel %vm10076_vm2, %v10094_v2, %v13295_v44  ;;  %v10097_v33 = vsel %vm10076_vm2, %v10095_v43, %v13296_v48  ;;  %v19843_v48 = vld [vmem:[#allocation176_spill] sm:$0xff]  ;;  %v10227_v43 = vld [vmem:[#allocation31 + $0x338] sm:$0xff] }
 0xdd7   : > { %v10090_v49 = vsel %vm10076_vm2, %v10088_v14, %v13300_v58  ;;  %v10091_v35 = vsel %vm10076_vm2, %v10089_v25, %v13301_v9  ;;  %v19844_v44 = vcombine.low %v19842_v3, %v19843_v48  ;;  %v19845_v58 = vld [vmem:[#allocation120_spill] sm:$0xff]  ;;  %v10245_v14 = vld [vmem:[#allocation31 + $0x3c8] sm:$0xff]  ;;  %v10228_v25 = vld [vmem:[#allocation31 + $0x340] sm:$0xff]  ;;  %v10311_v52 = vpack.c.bf16 %v10227_v43, %v10226_v27 }
 0xdd8   : > { %v13304_v10 = vpop.permute.xlu0 %13303  ;;  %v19847_v62 = vcombine.low %v19845_v58, %v19846_v26  ;;  %v10320_v29 = vpack.c.bf16 %v10245_v14, %v10244_v17  ;;  %v19858_v58 = vld [vmem:[#allocation130_spill] sm:$0xff]  ;;  %v19863_v43 = vld [vmem:[#allocation111_spill] sm:$0xff] }
 0xdd9   : > { %v13309_v0 = vpop.permute.xlu1 %13308  ;;  %v13306_v6 = vunpack.i.h.bf16 %v13304_v10  ;;  %v13305_v30 = vunpack.i.l.bf16 %v13304_v10  ;;  %v10229_v10 = vld [vmem:[#allocation31 + $0x348] sm:$0xff] }
 0xdda   : > { %v13311_v60 = vunpack.i.h.bf16 %v13309_v0  ;;  %v13310_v20 = vunpack.i.l.bf16 %v13309_v0  ;;  %v10246_v0 = vld [vmem:[#allocation31 + $0x3d0] sm:$0xff]  ;;  %v10312_v15 = vpack.c.bf16 %v10229_v10, %v10228_v25  ;;  %v10189_v25 = vld [vmem:[#allocation31 + $0x208] sm:$0xff] }
 0xddb   : > { %v10098_v57 = vsel %vm10079_vm5, %v10096_v11, %v13305_v30  ;;  %v10099_v24 = vsel %vm10079_vm5, %v10097_v33, %v13306_v6  ;;  %v18443_v11 = vld [vmem:[#allocation31 + $0x350] sm:$0xff]  ;;  %v10231_v33 = vld [vmem:[#allocation31 + $0x358] sm:$0xff] }
 0xddc   : > { %v10092_v41 = vsel %vm10079_vm5, %v10090_v49, %v13310_v20  ;;  %v10093_v53 = vsel %vm10079_vm5, %v10091_v35, %v13311_v60  ;;  %v13314_v50 = vpop.permute.xlu0 %13313  ;;  %v10255_v51 = vpack.c.bf16 %v10099_v24, %v10098_v57 }
 0xddd   : > { %v18425_v47 = vpop.permute.xlu1 %13318  ;;  %v10254_v59 = vpack.c.bf16 %v10093_v53, %v10092_v41  ;;  %v13316_v22 = vunpack.i.h.bf16 %v13314_v50  ;;  %v13315_v56 = vunpack.i.l.bf16 %v13314_v50  ;;  %v19848_v41 = vld [vmem:[#allocation142_spill] sm:$0xff]  ;;  %v19849_v53 = vld [vmem:[#allocation175_spill] sm:$0xff] }
 0xdde   : > { %10404 = vmatprep.mubr.bf16.mxu0 %v10255_v51  ;;  %v13321_v12 = vunpack.i.h.bf16 %v18425_v47  ;;  %v13320_v6 = vunpack.i.l.bf16 %v18425_v47  ;;  %v19850_v57 = vcombine.low %v19848_v41, %v19849_v53  ;;  %v10321_v47 = vpack.c.bf16 %v10247_v42, %v10246_v0 }
 0xddf   : > { %10405 = vmatmul.mubr.bf16.vlgmr.msra.gmra.mrb[140].mxu0 %v10254_v59  ;;  %v10119_v9 = vsel %vm10073_vm8, %v19844_v44, %v13316_v22  ;;  %v10118_v2 = vsel %vm10073_vm8, %v19847_v62, %v13315_v56  ;;  %v10313_v51 = vpack.c.bf16 %v10231_v33, %v18443_v11  ;;  %v19851_v59 = vld [vmem:[#allocation128_spill] sm:$0xff]  ;;  %v10249_v22 = vld [vmem:[#allocation31 + $0x3e8] sm:$0xff] }
 0xde0   : > { %12075 = vmatpush3.bf16.msra.mxu0 %v10308_v8  ;;  %v10113_v24 = vsel %vm10073_vm8, %v19850_v57, %v13321_v12  ;;  %v19852_v8 = vld [vmem:[#allocation113_spill] sm:$0xff]  ;;  %v10322_v44 = vpack.c.bf16 %v10249_v22, %v10248_v36 }
 0xde1   : > { %v13324_v34 = vpop.permute.xlu0 %13323  ;;  %12076 = vmatprep.subr.bf16.mxu0 %v10317_v16  ;;  %v19853_v16 = vcombine.low %v19851_v59, %v19852_v8  ;;  %v10497_v22 = vld [vmem:[#allocation41] sm:$0x3f] }
 0xde2   : > { %v18427_v38 = vpop.permute.xlu1 %13328  ;;  %v13326_v45 = vunpack.i.h.bf16 %v13324_v34  ;;  %v13325_v1 = vunpack.i.l.bf16 %v13324_v34 }
 0xde3   : > { %v13331_v50 = vunpack.i.h.bf16 %v18427_v38  ;;  %v10112_v23 = vsel %vm10073_vm8, %v19853_v16, %v13320_v6  ;;  %v13330_v37 = vunpack.i.l.bf16 %v18427_v38  ;;  %v19855_v38 = vld [vmem:[#allocation174_spill] sm:$0xff] }
 0xde4   : > { %12077 = vmatpush3.bf16.msra.mxu0 %v10309_v55  ;;  %v10120_v61 = vsel %vm10076_vm2, %v10118_v2, %v13325_v1  ;;  %v10121_v31 = vsel %vm10076_vm2, %v10119_v9, %v13326_v45  ;;  %v19857_v9 = vld [vmem:[#allocation131_spill] sm:$0xff]  ;;  %v19860_v2 = vld [vmem:[#allocation150_spill] sm:$0xff] }
 0xde5   : > { %12078 = vmatprep.subr.bf16.mxu0 %v10318_v18  ;;  %v19859_v26 = vcombine.low %v19857_v9, %v19858_v58  ;;  %v10621_v9 = vpack.c.bf16 %v10497_v22, %v10497_v22 }
 0xde6   : > { %v13334_v21 = vpop.permute.xlu0 %13333  ;;  %v13339_v54 = vpop.permute.xlu1 %13338 }
 0xde7   : > { %v13341_v46 = vunpack.i.h.bf16 %v13339_v54  ;;  %v13340_v32 = vunpack.i.l.bf16 %v13339_v54  ;;  %v13336_v49 = vunpack.i.h.bf16 %v13334_v21  ;;  %v13335_v35 = vunpack.i.l.bf16 %v13334_v21  ;;  %v19854_v54 = vld [vmem:[#allocation149_spill] sm:$0xff] }
 0xde8   : > { %12079 = vmatpush3.bf16.msra.mxu0 %v10310_v40  ;;  %v19856_v40 = vcombine.low %v19854_v54, %v19855_v38  ;;  %v10082_v62 = vsel %vm10073_vm8, %v19859_v26, %v13330_v37 }
 0xde9   : > { %v10122_v5 = vsel %vm10079_vm5, %v10120_v61, %v13340_v32  ;;  %v10123_v4 = vsel %vm10079_vm5, %v10121_v31, %v13341_v46  ;;  %12080 = vmatprep.subr.bf16.mxu0 %v10319_v39  ;;  %v10114_v56 = vsel %vm10076_vm2, %v10112_v23, %v13335_v35  ;;  %v10115_v18 = vsel %vm10076_vm2, %v10113_v24, %v13336_v49  ;;  %v19861_v46 = vld [vmem:[#allocation143_spill] sm:$0xff]  ;;  %v19864_v61 = vld [vmem:[#allocation134_spill] sm:$0xff]  ;;  %v10207_v35 = vld [vmem:[#allocation31 + $0x298] sm:$0xff] }
 0xdea   : > { %v13344_v30 = vpop.permute.xlu0 %13343  ;;  %v13349_v60 = vpop.permute.xlu1 %13348  ;;  %v10259_v20 = vpack.c.bf16 %v10123_v4, %v10122_v5  ;;  %v10083_v39 = vsel %vm10073_vm8, %v19856_v40, %v13331_v50  ;;  %v19862_v32 = vcombine.low %v19860_v2, %v19861_v46  ;;  %v19865_v31 = vcombine.low %v19863_v43, %v19864_v61  ;;  %v10188_v4 = vld [vmem:[#allocation31 + $0x200] sm:$0xff]  ;;  %v10190_v50 = vld [vmem:[#allocation31 + $0x210] sm:$0xff]  ;;  %v10193_v40 = vld [vmem:[#allocation31 + $0x228] sm:$0xff] }
 0xdeb   : > { %v13346_v63 = vunpack.i.h.bf16 %v13344_v30  ;;  %v13345_v28 = vunpack.i.l.bf16 %v13344_v30  ;;  %v13351_v13 = vunpack.i.h.bf16 %v13349_v60  ;;  %v13350_v45 = vunpack.i.l.bf16 %v13349_v60  ;;  %v10232_v60 = vld [vmem:[#allocation31 + $0x360] sm:$0xff] }
 0xdec   : > { %10486 = vmatprep.mubr.bf16.mxu0 %v10259_v20  ;;  %12081 = vmatpush3.bf16.msra.mxu0 %v10311_v52  ;;  %v10233_v20 = vld [vmem:[#allocation31 + $0x368] sm:$0xff]  ;;  %v10206_v52 = vld [vmem:[#allocation31 + $0x290] sm:$0xff]  ;;  %v10292_v23 = vpack.c.bf16 %v10189_v25, %v10188_v4 }
 0xded   : > { %12082 = vmatprep.subr.bf16.mxu0 %v10320_v29  ;;  %v10075_v27 = vsel %vm10073_vm8, %v19862_v32, %v13346_v63  ;;  %v10074_v17 = vsel %vm10073_vm8, %v19865_v31, %v13345_v28  ;;  %v10084_v33 = vsel %vm10076_vm2, %v10082_v62, %v13350_v45  ;;  %v10085_v49 = vsel %vm10076_vm2, %v10083_v39, %v13351_v13  ;;  %v10250_v29 = vld [vmem:[#allocation31 + $0x3f0] sm:$0xff]  ;;  %v10191_v63 = vld [vmem:[#allocation31 + $0x218] sm:$0xff]  ;;  %v10192_v13 = vld [vmem:[#allocation31 + $0x220] sm:$0xff] }
 0xdee   : > { %v13354_v34 = vpop.permute.xlu0 %13353  ;;  %v13359_v55 = vpop.permute.xlu1 %13358  ;;  %v10314_v37 = vpack.c.bf16 %v10233_v20, %v10232_v60  ;;  %v10234_v28 = vld [vmem:[#allocation31 + $0x370] sm:$0xff]  ;;  %v19866_v32 = vld [vmem:[#allocation135_spill] sm:$0xff]  ;;  %v10294_v31 = vpack.c.bf16 %v10193_v40, %v10192_v13 }
 0xdef   : > { %v13356_v7 = vunpack.i.h.bf16 %v13354_v34  ;;  %v13355_v19 = vunpack.i.l.bf16 %v13354_v34  ;;  %v13361_v1 = vunpack.i.h.bf16 %v13359_v55  ;;  %v13360_v21 = vunpack.i.l.bf16 %v13359_v55  ;;  %v10235_v34 = vld [vmem:[#allocation31 + $0x378] sm:$0xff]  ;;  %v10210_v39 = vld [vmem:[#allocation31 + $0x2b0] sm:$0xff] }
 0xdf0   : > { %12083 = vmatpush3.bf16.msra.mxu0 %v10312_v15  ;;  %v10251_v15 = vld [vmem:[#allocation31 + $0x3f8] sm:$0xff]  ;;  %v10301_v55 = vpack.c.bf16 %v10207_v35, %v10206_v52  ;;  %v19875_v60 = vld [vmem:[#allocation112_spill] sm:$0xff] }
 0xdf1   : > { %v18463_v3 = vsel %vm10079_vm5, %v10114_v56, %v13355_v19  ;;  %v18466_v48 = vsel %vm10079_vm5, %v10115_v18, %v13356_v7  ;;  %12084 = vmatprep.subr.bf16.mxu0 %v10321_v47  ;;  %v10078_v42 = vsel %vm10076_vm2, %v10075_v27, %v13361_v1  ;;  %v10077_v11 = vsel %vm10076_vm2, %v10074_v17, %v13360_v21  ;;  %v10208_v56 = vld [vmem:[#allocation31 + $0x2a0] sm:$0xff]  ;;  %v10209_v18 = vld [vmem:[#allocation31 + $0x2a8] sm:$0xff]  ;;  %v19876_v20 = vld [vmem:[#allocation116_spill] sm:$0xff] }
 0xdf2   : > { %v10258_v14 = vpack.c.bf16 %v18466_v48, %v18463_v3  ;;  %v13364_v12 = vpop.permute.xlu0 %13363  ;;  %v13369_v5 = vpop.permute.xlu1 %13368  ;;  %v10323_v36 = vpack.c.bf16 %v10251_v15, %v10250_v29  ;;  %v10293_v19 = vpack.c.bf16 %v10191_v63, %v10190_v50  ;;  %v10302_v58 = vpack.c.bf16 %v10209_v18, %v10208_v56  ;;  %v19867_v27 = vld [vmem:[#allocation151_spill] sm:$0xff]  ;;  %v10196_v18 = vld [vmem:[#allocation31 + $0x240] sm:$0xff]  ;;  %v10214_v3 = vld [vmem:[#allocation31 + $0x2d0] sm:$0xff] }
 0xdf3   : > { %v13366_v10 = vunpack.i.h.bf16 %v13364_v12  ;;  %v13365_v0 = vunpack.i.l.bf16 %v13364_v12  ;;  %v13371_v6 = vunpack.i.h.bf16 %v13369_v5  ;;  %v13370_v30 = vunpack.i.l.bf16 %v13369_v5  ;;  %v19869_v12 = vld [vmem:[#allocation108_spill] sm:$0xff]  ;;  %v19870_v5 = vld [vmem:[#allocation118_spill] sm:$0xff]  ;;  %v10215_v48 = vld [vmem:[#allocation31 + $0x2d8] sm:$0xff] }
 0xdf4   : > { %12085 = vmatpush3.bf16.msra.mxu0 %v10313_v51  ;;  %v10315_v51 = vpack.c.bf16 %v10235_v34, %v10234_v28  ;;  %v19868_v43 = vcombine.low %v19866_v32, %v19867_v27  ;;  %v19871_v4 = vcombine.low %v19869_v12, %v19870_v5  ;;  %v19877_v52 = vcombine.low %v19875_v60, %v19876_v20  ;;  %v13455_v13 = vld [vmem:[%s15540_s8 + $0x10] sm:$0xff]   ;;  %v11819_v60 = vld [vmem:[#allocation32] ss:$0 sm:$0xff] }
 0xdf5   : > { %v10080_v41 = vsel %vm10079_vm5, %v10077_v11, %v13370_v30  ;;  %v10081_v53 = vsel %vm10079_vm5, %v10078_v42, %v13371_v6  ;;  %v10086_v57 = vsel %vm10079_vm5, %v10084_v33, %v13365_v0  ;;  %v10087_v24 = vsel %vm10079_vm5, %v10085_v49, %v13366_v10  ;;  %12086 = vmatprep.subr.bf16.mxu0 %v10322_v44  ;;  %v10211_v44 = vld [vmem:[#allocation31 + $0x2b8] sm:$0xff]  ;;  %v19872_v10 = vld [vmem:[#allocation155_spill] sm:$0xff]  ;;  %v19873_v0 = vld [vmem:[#allocation144_spill] sm:$0xff] }
 0xdf6   : > { %v13374_v47 = vpop.permute.xlu0 %13373  ;;  %v10253_v8 = vpack.c.bf16 %v10087_v24, %v10086_v57  ;;  %v10252_v16 = vpack.c.bf16 %v10081_v53, %v10080_v41  ;;  %v10303_v17 = vpack.c.bf16 %v10211_v44, %v10210_v39  ;;  %v19874_v6 = vcombine.low %v19872_v10, %v19873_v0  ;;  %v10194_v53 = vld [vmem:[#allocation31 + $0x230] sm:$0xff]  ;;  %v10195_v57 = vld [vmem:[#allocation31 + $0x238] sm:$0xff]  ;;  %v13453_v24 = vld [vmem:[%s15540_s8] sm:$0xff]  }
 0xdf7   : > { %v13379_v59 = vpop.permute.xlu1 %13378  ;;  %v13376_v7 = vunpack.i.h.bf16 %v13374_v47  ;;  %v13375_v45 = vunpack.i.l.bf16 %v13374_v47  ;;  %v10655_v49 = vsel %vm2072_vm0, %v10621_v9, 0  ;;  %v10200_v44 = vld [vmem:[#allocation31 + $0x260] sm:$0xff]  ;;  %v10202_v32 = vld [vmem:[#allocation31 + $0x270] sm:$0xff]  ;;  %v10203_v27 = vld [vmem:[#allocation31 + $0x278] sm:$0xff] }
 0xdf8   : > { %10363 = vmatprep.mubr.bf16.mxu1 %v10253_v8  ;;  %v13381_v1 = vunpack.i.h.bf16 %v13379_v59  ;;  %v13380_v21 = vunpack.i.l.bf16 %v13379_v59  ;;  %12087 = vmatpush3.bf16.msra.mxu0 %v10314_v37 }
 0xdf9   : > { %10364 = vmatmul.mubr.bf16.vlgmr.msra.gmra.mrb[136].mxu1 %v10252_v16  ;;  %12088 = vmatprep.subr.bf16.mxu0 %v10323_v36  ;;  %v10107_v61 = vsel %vm10073_vm8, %v19868_v43, %v13376_v7  ;;  %v10106_v25 = vsel %vm10073_vm8, %v19871_v4, %v13375_v45  ;;  %v10212_v16 = vld [vmem:[#allocation31 + $0x2c0] sm:$0xff]  ;;  %v10295_v36 = vpack.c.bf16 %v10195_v57, %v10194_v53  ;;  %v10197_v7 = vld [vmem:[#allocation31 + $0x248] sm:$0xff]  ;;  %v10498_v43 = vld [vmem:[#allocation40] sm:$0x3f] }
 0xdfa   : > { %12053 = vmatpush3.bf16.msra.mxu1 %v10292_v23  ;;  %v13384_v54 = vpop.permute.xlu0 %13383  ;;  %v10101_v30 = vsel %vm10073_vm8, %v19874_v6, %v13381_v1  ;;  %v10100_v42 = vsel %vm10073_vm8, %v19877_v52, %v13380_v21  ;;  %v10213_v23 = vld [vmem:[#allocation31 + $0x2c8] sm:$0xff]  ;;  %v10305_v45 = vpack.c.bf16 %v10215_v48, %v10214_v3  ;;  %v10198_v1 = vld [vmem:[#allocation31 + $0x250] sm:$0xff]  ;;  %v10199_v21 = vld [vmem:[#allocation31 + $0x258] sm:$0xff] }
 0xdfb   : > { %v13389_v38 = vpop.permute.xlu1 %13388  ;;  %12054 = vmatprep.subr.bf16.mxu1 %v10301_v55  ;;  %v13386_v26 = vunpack.i.h.bf16 %v13384_v54  ;;  %v13385_v62 = vunpack.i.l.bf16 %v13384_v54  ;;  %v10304_v56 = vpack.c.bf16 %v10213_v23, %v10212_v16  ;;  %v10216_v54 = vld [vmem:[#allocation31 + $0x2e0] sm:$0xff]  ;;  %v10297_v40 = vpack.c.bf16 %v10199_v21, %v10198_v1 }
 0xdfc   : > { %v13391_v2 = vunpack.i.h.bf16 %v13389_v38  ;;  %v13390_v46 = vunpack.i.l.bf16 %v13389_v38  ;;  %12089 = vmatpush3.bf16.msra.mxu0 %v10315_v51  ;;  %v10296_v51 = vpack.c.bf16 %v10197_v7, %v10196_v18  ;;  %v10217_v38 = vld [vmem:[#allocation31 + $0x2e8] sm:$0xff] }
 0xdfd   : > { %12574 = vmatprep.subr.msk.bf16.mxu0 %vm2072_vm0, %v10621_v9  ;;  %v10108_v50 = vsel %vm10076_vm2, %v10106_v25, %v13385_v62  ;;  %v10109_v47 = vsel %vm10076_vm2, %v10107_v61, %v13386_v26  ;;  %v10306_v39 = vpack.c.bf16 %v10217_v38, %v10216_v54  ;;  %v10201_v9 = vld [vmem:[#allocation31 + $0x268] sm:$0xff]  ;;  %v10219_v26 = vld [vmem:[#allocation31 + $0x2f8] sm:$0xff]  ;;  %v10299_v61 = vpack.c.bf16 %v10203_v27, %v10202_v32 }
 0xdfe   : > { %12055 = vmatpush3.bf16.msra.mxu1 %v10293_v19  ;;  %v13394_v11 = vpop.permute.xlu0 %13393  ;;  %v10102_v59 = vsel %vm10076_vm2, %v10100_v42, %v13390_v46  ;;  %v10103_v8 = vsel %vm10076_vm2, %v10101_v30, %v13391_v2  ;;  %v13454_v19 = vld [vmem:[%s15540_s8 + $0x8] sm:$0xff]   ;;  %v13456_v62 = vld [vmem:[%s15540_s8 + $0x18] sm:$0xff]   ;;  %v10298_v2 = vpack.c.bf16 %v10201_v9, %v10200_v44  ;;  %s14527_s8 = sshll.u32 %s14783_s3, 4  ;;  %s14528_s8 = int_to_ptr.vmem [resolvable:$false] %s14527_s8 }
 0xdff   : > { %v13399_v33 = vpop.permute.xlu1 %13398  ;;  %v13396_v35 = vunpack.i.h.bf16 %v13394_v11  ;;  %v13395_v29 = vunpack.i.l.bf16 %v13394_v11  ;;  %12056 = vmatprep.subr.bf16.mxu1 %v10302_v58  ;;  %10487 = vmatmul.mubr.bf16.vlgmr.msra.gmra.mrb[144].mxu0 %v10258_v14  ;;  %v19878_v14 = vmov 0.0   ;;  %v10218_v58 = vld [vmem:[#allocation31 + $0x2f0] sm:$0xff]  ;;  %s14529_s2 = scalar_lea.vmem %s14528_s8, 512  ;;  %p14530_p7 = scmp.lt.s32.totalorder %s19175_s13, %s14528_s8 }
 0xe00   : > { %v13401_v15 = vunpack.i.h.bf16 %v13399_v33  ;;  %v13400_v41 = vunpack.i.l.bf16 %v13399_v33  ;;  %12509 = vmatpush3.bf16.msra.mxu0 %v10655_v49  ;;  %12510 = vmatprep.mubr.msk.bf16.mxu0 %vm2047_vm1, %v13453_v24  ;;  %v10307_v46 = vpack.c.bf16 %v10219_v26, %v10218_v58  ;;  %p14531_p1 = scmp.lt.s32.totalorder %s14529_s2, %s14523_s14 }
 0xe01   : > { %v10110_v28 = vsel %vm10079_vm5, %v10108_v50, %v13395_v29  ;;  %v10111_v34 = vsel %vm10079_vm5, %v10109_v47, %v13396_v35  ;;  %12530 = vmatprep.subr.bf16.mxu0 %v19878_v14 }
 0xe02   : > { %v10104_v37 = vsel %vm10079_vm5, %v10102_v59, %v13400_v41  ;;  %v10105_v63 = vsel %vm10079_vm5, %v10103_v8, %v13401_v15  ;;  %12057 = vmatpush3.bf16.msra.mxu1 %v10294_v31  ;;  %v10257_v55 = vpack.c.bf16 %v10111_v34, %v10110_v28  ;;  %v10515_v31 = vpack.c.bf16 %v10498_v43, %v10498_v43  ;;  %v10564_v12 = vpop.permute.xlu0 %10563  ;;  %p14532_p0 = por %p14531_p1, %p14530_p7 }
 0xe03   : > { %v10256_v22 = vpack.c.bf16 %v10105_v63, %v10104_v37  ;;  %12058 = vmatprep.subr.bf16.mxu1 %v10303_v17 }
 0xe04   : > { %10445 = vmatprep.mubr.bf16.mxu1 %v10257_v55  ;;  %v10569_v17 = vsel %vm2072_vm0, %v10515_v31, 0  ;;  %p14533_p5 = pnand %p14532_p0, %p14526_p6 }
 0xe06   : > { %12059 = vmatpush3.bf16.msra.mxu1 %v10295_v36 }
 0xe07   : > { %12060 = vmatprep.subr.bf16.mxu1 %v10304_v56  ;;  %12511 = vmatmul.mubr.msk.bf16.vlgmr.msra.gmra.mrb[148].mxu0 %vm2047_vm1, %v13454_v19 }
 0xe08   : > { %12514 = vmatprep.mubr.msk.bf16.mxu0 %vm2047_vm1, %v13455_v13 }
 0xe0a   : > { %12061 = vmatpush3.bf16.msra.mxu1 %v10296_v51 }
 0xe0b   : > { %12062 = vmatprep.subr.bf16.mxu1 %v10305_v45 }
 0xe0e   : > { %12063 = vmatpush3.bf16.msra.mxu1 %v10297_v40 }
 0xe0f   : > { %12064 = vmatprep.subr.bf16.mxu1 %v10306_v39  ;;  %12515 = vmatmul.mubr.msk.bf16.gmra.mrb[152].mxu0 %vm2047_vm1, %v13456_v62 }
 0xe10   : > { %12538 = vmatprep.mubr.msk.bf16.mxu0 %vm14773_vm4, %v19878_v14 }
 0xe12   : > { %12065 = vmatpush3.bf16.msra.mxu1 %v10298_v2 }
 0xe13   : > { %12066 = vmatprep.subr.bf16.mxu1 %v10307_v46 }
 0xe16   : > { %12067 = vmatpush3.bf16.msra.mxu1 %v10299_v61 }
 0xe17   : > { %12502 = vmatprep.subr.bf16.mxu1 %v19878_v14 }
 0xe19   : > { %10446 = vmatmul.mubr.bf16.vlgmr.msra.gmra.mrb[140].mxu1 %v10256_v22 }
 0xe1a   : > { %12503 = vmatpush3.bf16.msra.mxu1 %v10569_v17  ;;  %12504 = vmatprep.mubr.msk.bf16.mxu1 %vm14773_vm4, %v19878_v14 }
 0xe1b   : > { %12518 = vmatprep.subr.bf16.mxu1 %v19878_v14 }
 0xe21   : > { %12505 = vmatmul.mubr.msk.bf16.vlgmr.msra.gmra.mrb[144].mxu1 %vm2047_vm1, %v10564_v12 }
 0xe22   : > { %12526 = vmatprep.mubr.msk.bf16.mxu1 %vm14773_vm4, %v19878_v14 }
 0xeb2   : > { %v12046_v5 = vpop.f32.mrb[140].mxu0 }
 0xeb3   : > { %v12047_v4 = vpop.f32.mrb[141].mxu0 }
 0xeb4   : > { %v12048_v25 = vadd.f32 %v12047_v4, %v12046_v5  ;;  %v12049_v10 = vpop.f32.mrb[142].mxu0 }
 0xeb5   : > { %v12050_v0 = vpop.f32.mrb[143].mxu0 }
 0xeb6   : > { %v12051_v6 = vadd.f32 %v12050_v0, %v12049_v10 }
 0xecc   : > { %v12024_v30 = vpop.f32.mrb[136].mxu1 }
 0xecd   : > { %v12025_v20 = vpop.f32.mrb[137].mxu1 }
 0xece   : > { %v12026_v52 = vadd.f32 %v12025_v20, %v12024_v30  ;;  %v12027_v42 = vpop.f32.mrb[138].mxu1 }
 0xecf   : > { %v12028_v11 = vpop.f32.mrb[139].mxu1 }
 0xed0   : > { %v10366_v33 = vadd.f32 %v12026_v52, %v11819_v60  ;;  %v12029_v49 = vadd.f32 %v12028_v11, %v12027_v42  ;;  %v19882_v42 = vld [vmem:[#allocation160_spill] sm:$0xff] }
 0xed1   : > { %v5008_v11 = vsel %vm4663_vm9, %v19882_v42, -inf  ;;  %v19886_v42 = vmov 1  }
 0xed2   : > { %v10369_v35 = vadd.f32 %v12029_v49, %v11819_v60  ;;  %v10407_v29 = vadd.f32 %v12048_v25, %v10366_v33  ;;  %v12090_v15 = vpop.f32.mrb[144].mxu0  ;;  %v19881_v60 = vld [vmem:[#allocation168_spill] sm:$0xff] }
 0xed3   : > { %v12091_v53 = vpop.f32.mrb[145].mxu0  ;;  %v5064_v20 = vsel %vm4663_vm9, %v19881_v60, -inf }
 0xed4   : > { %v10410_v41 = vadd.f32 %v12051_v6, %v10369_v35  ;;  %v12092_v57 = vadd.f32 %v12091_v53, %v12090_v15  ;;  %v12093_v24 = vpop.f32.mrb[146].mxu0  ;;  %v5065_v52 = vrot.slane %v5064_v20, 4  ;;  %v5009_v53 = vrot.slane %v5008_v11, 4 }
 0xed5   : > { %v12094_v50 = vpop.f32.mrb[147].mxu0 }
 0xed6   : > { %v12095_v47 = vadd.f32 %v12094_v50, %v12093_v24  ;;  %v5066_v35 = vmax.f32 %v5064_v20, %v5065_v52  ;;  %v13659_v50 = vld [vmem:[%s15518_s6 + $0x10] sm:$0xff] }
 0xeda   : > { %v12512_v59 = vpop.f32.mrb[148].mxu0 }
 0xedb   : > { %v10691_v8 = vpop.f32.mrb[149].mxu0 }
 0xedc   : > { %v12513_v16 = vpop.f32.mrb[150].mxu0 }
 0xedd   : > { %v10723_v23 = vpack.c.bf16 %v12513_v16, %v12512_v59  ;;  %v10694_v37 = vpop.f32.mrb[151].mxu0  ;;  %v5010_v16 = vmax.f32 %v5008_v11, %v5009_v53  ;;  %v13664_v11 = vld [vmem:[%s15518_s6 + $0x20] sm:$0xff]  ;;  %v19887_v53 = vld [vmem:[#allocation157_spill] sm:$0xff] }
 0xede   : > { %v10722_v63 = vpack.c.bf16 %v10694_v37, %v10691_v8  ;;  %v5067_v8 = vrot.slane %v5066_v35, 2  ;;  %v13660_v37 = vld [vmem:[%s15518_s6 + $0x8] sm:$0xff] }
 0xedf   : > { %10817 = vrot.lane.b32.xlu1 %v10723_v23, %s14782_s30  ;;  %v10733_v7 = vsel %vm2990_vm7, %v10723_v23, 0 }
 0xee0   : > { %v10730_v28 = vsel %vm2990_vm7, %v10722_v63, 0  ;;  %10815 = vrot.lane.b32.xlu0 %v10722_v63, %s14782_s30  ;;  %v5421_v63 = vsel %vm4663_vm9, %v13660_v37, -inf }
 0xee1   : > { %12519 = vmatpush3.bf16.xpose.msra.mxu1 %v10730_v28 }
 0xee2   : > { %12520 = vmatprep.subr.bf16.mxu1 %v19878_v14  ;;  %v12516_v34 = vpop.f32.mrb[152].mxu0 }
 0xee3   : > { %v10707_v55 = vpop.f32.mrb[153].mxu0 }
 0xee4   : > { %v12517_v36 = vpop.f32.mrb[154].mxu0 }
 0xee5   : > { %v10725_v22 = vpack.c.bf16 %v12517_v36, %v12516_v34  ;;  %v10710_v56 = vpop.f32.mrb[155].mxu0  ;;  %v5068_v34 = vmax.f32 %v5066_v35, %v5067_v8  ;;  %v19884_v36 = vld [vmem:[#allocation158_spill] sm:$0xff] }
 0xee6   : > { %v10724_v18 = vpack.c.bf16 %v10710_v56, %v10707_v55  ;;  %v5422_v55 = vrot.slane %v5421_v63, 4  ;;  %v5011_v56 = vrot.slane %v5010_v16, 2 }
 0xee7   : > { %v10739_v62 = vsel %vm2990_vm7, %v10725_v22, 0 }
 0xee8   : > { %v10736_v38 = vsel %vm2990_vm7, %v10724_v18, 0 }
 0xee9   : > { %12521 = vmatpush3.bf16.xpose.msra.mxu1 %v10733_v7  ;;  %v13661_v7 = vld [vmem:[%s15518_s6 + $0x48] sm:$0xff] }
 0xeea   : > { %12522 = vmatprep.subr.bf16.mxu1 %v19878_v14 }
 0xeec   : > { %v12068_v3 = vpop.f32.mrb[140].mxu1 }
 0xeed   : > { %v12069_v48 = vpop.f32.mrb[141].mxu1 }
 0xeee   : > { %v12070_v19 = vadd.f32 %v12069_v48, %v12068_v3  ;;  %v12071_v51 = vpop.f32.mrb[142].mxu1  ;;  %v5477_v3 = vsel %vm4663_vm9, %v13661_v7, -inf  ;;  %v13662_v48 = vld [vmem:[%s15518_s6] sm:$0xff]  ;;  %v19889_v7 = vmov 0  }
 0xeef   : > { %v12072_v13 = vpop.f32.mrb[143].mxu1 }
 0xef0   : > { %v10448_v45 = vadd.f32 %v12070_v19, %v10407_v29  ;;  %v12073_v1 = vadd.f32 %v12072_v13, %v12071_v51  ;;  %v19883_v29 = vld [vmem:[#allocation165_spill] sm:$0xff]  ;;  %v5414_v19 = vsel %vm4663_vm9, %v13662_v48, -inf }
 0xef1   : > { %12523 = vmatpush3.bf16.xpose.msra.mxu1 %v10736_v38  ;;  %v5071_v15 = vsel %vm4663_vm9, %v19883_v29, -inf  ;;  %v5012_v38 = vmax.f32 %v5010_v16, %v5011_v56  ;;  %v13665_v56 = vld [vmem:[%s15518_s6 + $0x68] sm:$0xff] }
 0xef2   : > { %v18544_v21 = vadd.f32 %v12092_v57, %v10448_v45  ;;  %v10451_v54 = vadd.f32 %v12073_v1, %v10410_v41  ;;  %12524 = vmatprep.subr.bf16.mxu1 %v19878_v14  ;;  %v5072_v59 = vrot.slane %v5071_v15, 4  ;;  %v5069_v45 = vrot.slane %v5068_v34, 1 }
 0xef3   : > { %v5423_v1 = vmax.f32 %v5421_v63, %v5422_v55 }
 0xef4   : > { %19879 = vst [vmem:[#allocation123_spill] sm:$0xff] %v18544_v21  ;;  %v18547_v40 = vadd.f32 %v12095_v47, %v10451_v54  ;;  %v10605_v39 = vpop.f32.mrb[144].mxu1  ;;  %v5428_v47 = vsel %vm4663_vm9, %v13659_v50, -inf  ;;  %v5073_v28 = vmax.f32 %v5071_v15, %v5072_v59  ;;  %v5478_v54 = vrot.slane %v5477_v3, 4 }
 0xef5   : > { %v12506_v44 = vpop.f32.mrb[145].mxu1  ;;  %v5429_v23 = vrot.slane %v5428_v47, 4 }
 0xef6   : > { %19880 = vst [vmem:[#allocation114_spill] sm:$0xff] %v18547_v40  ;;  %v10608_v9 = vpop.f32.mrb[146].mxu1  ;;  %v5074_v51 = vrot.slane %v5073_v28, 2  ;;  %v5415_v44 = vrot.slane %v5414_v19, 4 }
 0xef7   : > { %v10612_v58 = vpack.c.bf16 %v10608_v9, %v10605_v39  ;;  %v12507_v26 = vpop.f32.mrb[147].mxu1  ;;  %v13663_v9 = vld [vmem:[%s15518_s6 + $0x58] sm:$0xff] }
 0xef8   : > { %v5075_v26 = vmax.f32 %v5073_v28, %v5074_v51  ;;  %v19888_v28 = vld [vmem:[#allocation163_spill] sm:$0xff] }
 0xef9   : > { %12525 = vmatpush3.bf16.xpose.msra.mxu1 %v10739_v62 }
 0xf00   : > { %12527 = vmatmul.mubr.msk.bf16.vlgmr.msra.gmra.mrb[148].mxu1 %vm2990_vm7, %v10612_v58  ;;  %v5491_v58 = vsel %vm4663_vm9, %v13663_v9, -inf }
 0xf51   : > { %v10818_v46 = vpop.permute.xlu1 %10817 }
 0xf52   : > { %v10816_v2 = vpop.permute.xlu0 %10815 }
 0xf53   : > { %12531 = vmatpush3.bf16.msra.mxu0 %v10816_v2  ;;  %v18589_v2 = vmax.f32 %v5068_v34, %v5069_v45  ;;  %v5036_v34 = vsel %vm4663_vm9, %v19888_v28, -inf  ;;  %v19892_v28 = vld [vmem:[#allocation166_spill] sm:$0xff] }
 0xf54   : > { %12532 = vmatprep.subr.bf16.mxu0 %v19878_v14 }
 0xf57   : > { %12533 = vmatpush3.bf16.msra.mxu0 %v10818_v46  ;;  %v5424_v46 = vrot.slane %v5423_v1, 2 }
 0xf58   : > { %12534 = vmatprep.subr.bf16.mxu0 %v19878_v14 }
 0xfd3   : > { %v10775_v32 = vpop.f32.mrb[148].mxu1 }
 0xfd4   : > { %v12528_v27 = vpop.f32.mrb[149].mxu1  ;;  %v10782_v43 = vsel %vm10076_vm2, %v10775_v32, -inf }
 0xfd5   : > { %10783 = vmax.xlane.f32.xlu1 %v10782_v43  ;;  %v10778_v61 = vpop.f32.mrb[150].mxu1  ;;  %v5013_v27 = vrot.slane %v5012_v38, 1 }
 0xfd6   : > { %v12529_v31 = vpop.f32.mrb[151].mxu1  ;;  %v10785_v17 = vsel %vm10076_vm2, %v10778_v61, -inf }
 0xfd7   : > { %10786 = vmax.xlane.f32.xlu0 %v10785_v17  ;;  %v5492_v31 = vrot.slane %v5491_v58, 4  ;;  %v5076_v17 = vrot.slane %v5075_v26, 1 }
 0xfd9   : > { %v5493_v52 = vmax.f32 %v5491_v58, %v5492_v31 }
 0xfe6   : > { %10819 = vrot.lane.b32.xlu1 %v10724_v18, %s14782_s30  ;;  %v5430_v18 = vmax.f32 %v5428_v47, %v5429_v23  ;;  %v5494_v47 = vrot.slane %v5493_v52, 2 }
 0xfe8   : > { %v5431_v39 = vrot.slane %v5430_v18, 2 }
 0xfea   : > { %v5432_v43 = vmax.f32 %v5430_v18, %v5431_v39  ;;  %v5505_v18 = vsel %vm4663_vm9, %v13665_v56, -inf }
 0xfec   : > { %v5433_v60 = vrot.slane %v5432_v43, 1 }
 0xfed   : > { %10821 = vrot.lane.b32.xlu0 %v10725_v22, %s14782_s30  ;;  %v5022_v22 = vsel %vm4663_vm9, %v19884_v36, -inf  ;;  %v5495_v36 = vmax.f32 %v5493_v52, %v5494_v47  ;;  %v19890_v52 = vld [vmem:[#allocation159_spill] sm:$0xff]  ;;  %v13667_v47 = vld [vmem:[%s15518_s6 + $0x18] sm:$0xff] }
 0xfee   : > { %v5023_v13 = vrot.slane %v5022_v22, 4 }
 0xff0   : > { %v5024_v62 = vmax.f32 %v5022_v22, %v5023_v13 }
0x1062   : > { %v18558_v12 = vpop.xlane.xlu1 %10783 }
0x1063   : > { %v10794_v5 = vsub.f32 %v10775_v32, %v18558_v12  ;;  %v5479_v32 = vmax.f32 %v5477_v3, %v5478_v54 }
0x1064   : > { %v18561_v4 = vpop.xlane.xlu0 %10786 }
0x1065   : > { %v10796_v25 = vmul.f32 1.442695, %v10794_v5  ;;  %v10795_v10 = vsub.f32 %v10778_v61, %v18561_v4  ;;  %v5416_v61 = vmax.f32 %v5414_v19, %v5415_v44  ;;  %v5025_v5 = vrot.slane %v5024_v62, 2 }
0x1066   : > { %v10820_v0 = vpop.permute.xlu1 %10819  ;;  %v5037_v19 = vrot.slane %v5036_v34, 4 }
0x1067   : > { %v10798_v6 = vmul.f32 1.442695, %v10795_v10  ;;  %12535 = vmatpush3.bf16.msra.mxu0 %v10820_v0  ;;  %13585 = vpow2.f32 %v10796_v25  ;;  %v5425_v25 = vmax.f32 %v5423_v1, %v5424_v46  ;;  %v5480_v10 = vrot.slane %v5479_v32, 2  ;;  %v19885_v0 = vld [vmem:[#allocation164_spill] sm:$0xff] }
0x1068   : > { %12536 = vmatprep.subr.bf16.mxu0 %v19878_v14  ;;  %v10822_v30 = vpop.permute.xlu0 %10821  ;;  %v5417_v20 = vrot.slane %v5416_v61, 2  ;;  %v5026_v35 = vmax.f32 %v5024_v62, %v5025_v5  ;;  %v5496_v1 = vrot.slane %v5495_v36, 1  ;;  %v5038_v44 = vmax.f32 %v5036_v34, %v5037_v19  ;;  %v13666_v46 = vld [vmem:[%s15518_s6 + $0x50] sm:$0xff] }
0x1069   : > { %13587 = vpow2.f32 %v10798_v6  ;;  %v5029_v6 = vsel %vm4663_vm9, %v19885_v0, -inf  ;;  %v5426_v15 = vrot.slane %v5425_v25, 1  ;;  %v5057_v34 = vsel %vm4663_vm9, %v19892_v28, -inf }
0x106a   : > { %v5030_v29 = vrot.slane %v5029_v6, 4  ;;  %v5418_v50 = vmax.f32 %v5416_v61, %v5417_v20  ;;  %v5027_v8 = vrot.slane %v5026_v35, 1  ;;  %v18626_v58 = vmax.f32 %v5495_v36, %v5496_v1  ;;  %v13668_v36 = vld [vmem:[%s15518_s6 + $0x28] sm:$0xff] }
0x106b   : > { %12537 = vmatpush3.bf16.msra.mxu0 %v10822_v30  ;;  %v18594_v30 = vmax.f32 %v5012_v38, %v5013_v27  ;;  %v18608_v23 = vmax.f32 %v5425_v25, %v5426_v15  ;;  %v5506_v38 = vrot.slane %v5505_v18, 4  ;;  %v5058_v19 = vrot.slane %v5057_v34, 4 }
0x106c   : > { %12542 = vmatprep.subr.bf16.mxu0 %v19878_v14  ;;  %v5031_v16 = vmax.f32 %v5029_v6, %v5030_v29  ;;  %v5419_v55 = vrot.slane %v5418_v50, 1  ;;  %v18616_v3 = vmax.f32 %v5026_v35, %v5027_v8 }
0x106d   : > { %v5507_v62 = vmax.f32 %v5505_v18, %v5506_v38 }
0x106e   : > { %v5032_v48 = vrot.slane %v5031_v16, 2  ;;  %v18622_v45 = vmax.f32 %v5418_v50, %v5419_v55 }
0x106f   : > { %v5508_v5 = vrot.slane %v5507_v62, 2 }
0x1070   : > { %v5033_v39 = vmax.f32 %v5031_v16, %v5032_v48 }
0x1071   : > { %v13586_v33 = vpop.eup %13585  ;;  %v5509_v20 = vmax.f32 %v5507_v62, %v5508_v5 }
0x1072   : > { %v10802_v49 = vsel %vm10076_vm2, %v13586_v33, 0.0  ;;  %v5034_v27 = vrot.slane %v5033_v39, 1 }
0x1073   : > { %v13588_v41 = vpop.eup %13587  ;;  %10803 = vadd.xlane.f32.xlu1 %v10802_v49  ;;  %v18600_v49 = vmax.f32 %v5075_v26, %v5076_v17 }
0x1074   : > { %v10810_v57 = vpack.c.bf16 %v13588_v41, %v13586_v33  ;;  %v10805_v24 = vsel %vm10076_vm2, %v13588_v41, 0.0  ;;  %v5442_v33 = vsel %vm4663_vm9, %v13664_v11, -inf  ;;  %v5481_v41 = vmax.f32 %v5479_v32, %v5480_v10 }
0x1075   : > { %10806 = vadd.xlane.f32.xlu0 %v10805_v24  ;;  %v18605_v24 = vmax.f32 %v5432_v43, %v5433_v60  ;;  %v5443_v59 = vrot.slane %v5442_v33, 4  ;;  %v5484_v32 = vsel %vm4663_vm9, %v13666_v46, -inf  ;;  %v5039_v43 = vrot.slane %v5038_v44, 2 }
0x1076   : > { %12539 = vmatmul.mubr.msk.bf16.vlgmr.msra.gmra.mrb[156].mxu0 %vm10076_vm2, %v10810_v57  ;;  %v5015_v57 = vsel %vm4663_vm9, %v19887_v53, -inf  ;;  %v5482_v37 = vrot.slane %v5481_v41, 1  ;;  %v5485_v31 = vrot.slane %v5484_v32, 4  ;;  %v18633_v25 = vmax.f32 %v5033_v39, %v5034_v27  ;;  %v19891_v53 = vld [vmem:[#allocation167_spill] sm:$0xff] }
0x1077   : > { %12544 = vmatprep.mubr.msk.bf16.mxu0 %vm14773_vm4, %v19878_v14  ;;  %v5016_v63 = vrot.slane %v5015_v57, 4  ;;  %v5444_v22 = vmax.f32 %v5442_v33, %v5443_v59  ;;  %v5040_v10 = vmax.f32 %v5038_v44, %v5039_v43  ;;  %v5001_v11 = vsel %vm4663_vm9, %v19890_v52, -inf }
0x1078   : > { %v18619_v51 = vmax.f32 %v5481_v41, %v5482_v37  ;;  %v5486_v6 = vmax.f32 %v5484_v32, %v5485_v31  ;;  %v5002_v15 = vrot.slane %v5001_v11, 4  ;;  %v5510_v41 = vrot.slane %v5509_v20, 1  ;;  %v13669_v32 = vld [vmem:[%s15518_s6 + $0x70] sm:$0xff] }
0x1079   : > { %v5017_v13 = vmax.f32 %v5015_v57, %v5016_v63  ;;  %v5445_v54 = vrot.slane %v5444_v22, 2  ;;  %v5041_v33 = vrot.slane %v5040_v10, 1  ;;  %v5078_v57 = vsel %vm4663_vm9, %v19891_v53, -inf }
0x107a   : > { %v5487_v29 = vrot.slane %v5486_v6, 2  ;;  %v5435_v59 = vsel %vm4663_vm9, %v13667_v47, -inf  ;;  %v5003_v16 = vmax.f32 %v5001_v11, %v5002_v15  ;;  %v5079_v37 = vrot.slane %v5078_v57, 4 }
0x107b   : > { %v5018_v9 = vrot.slane %v5017_v13, 2  ;;  %v5446_v26 = vmax.f32 %v5444_v22, %v5445_v54  ;;  %v18648_v50 = vmax.f32 %v5040_v10, %v5041_v33  ;;  %v18653_v63 = vmax.f32 %v5509_v20, %v5510_v41  ;;  %v19894_v33 = vld [vmem:[#allocation170_spill] sm:$0xff] }
0x107c   : > { %v5488_v8 = vmax.f32 %v5486_v6, %v5487_v29  ;;  %v5436_v55 = vrot.slane %v5435_v59, 4  ;;  %v5449_v22 = vsel %vm4663_vm9, %v13668_v36, -inf  ;;  %v5004_v18 = vrot.slane %v5003_v16, 2 }
0x107d   : > { %v5019_v61 = vmax.f32 %v5017_v13, %v5018_v9  ;;  %v5447_v17 = vrot.slane %v5446_v26, 1  ;;  %v5080_v48 = vmax.f32 %v5078_v57, %v5079_v37  ;;  %v5450_v1 = vrot.slane %v5449_v22, 4  ;;  %v19893_v9 = vld [vmem:[#allocation169_spill] sm:$0xff] }
0x107e   : > { %v5489_v56 = vrot.slane %v5488_v8, 1  ;;  %v5437_v13 = vmax.f32 %v5435_v59, %v5436_v55  ;;  %v5005_v38 = vmax.f32 %v5003_v16, %v5004_v18  ;;  %v5059_v44 = vmax.f32 %v5057_v34, %v5058_v19  ;;  %v13670_v57 = vld [vmem:[%s15518_s6 + $0x78] sm:$0xff] }
0x107f   : > { %v5020_v0 = vrot.slane %v5019_v61, 1  ;;  %v18637_v60 = vmax.f32 %v5446_v26, %v5447_v17  ;;  %v5081_v39 = vrot.slane %v5080_v48, 2  ;;  %v5099_v26 = vsel %vm4663_vm9, %v19893_v9, -inf }
0x1080   : > { %v18664_v54 = vmax.f32 %v5488_v8, %v5489_v56  ;;  %v5438_v62 = vrot.slane %v5437_v13, 2  ;;  %v5451_v46 = vmax.f32 %v5449_v22, %v5450_v1  ;;  %v5512_v27 = vsel %vm4663_vm9, %v13669_v32, -inf  ;;  %v13671_v1 = vld [vmem:[%s15518_s6 + $0x40] sm:$0xff] }
0x1081   : > { %v18641_v35 = vmax.f32 %v5019_v61, %v5020_v0  ;;  %v5006_v43 = vrot.slane %v5005_v38, 1  ;;  %v5082_v61 = vmax.f32 %v5080_v48, %v5081_v39  ;;  %v5060_v31 = vrot.slane %v5059_v44, 2 }
0x1082   : > { %v5100_v17 = vrot.slane %v5099_v26, 4  ;;  %v5439_v5 = vmax.f32 %v5437_v13, %v5438_v62  ;;  %v5452_v10 = vrot.slane %v5451_v46, 2  ;;  %v5513_v0 = vrot.slane %v5512_v27, 4 }
0x1083   : > { %v18675_v6 = vmax.f32 %v5005_v38, %v5006_v43  ;;  %v5083_v20 = vrot.slane %v5082_v61, 1  ;;  %v5061_v52 = vmax.f32 %v5059_v44, %v5060_v31  ;;  %v5106_v29 = vsel %vm4663_vm9, %v19894_v33, -inf }
0x1084   : > { %5161 = vperm.xlu1 %13402, %v18589_v2   ;;  %v5101_v11 = vmax.f32 %v5099_v26, %v5100_v17  ;;  %v5440_v15 = vrot.slane %v5439_v5, 1  ;;  %v5453_v41 = vmax.f32 %v5451_v46, %v5452_v10  ;;  %v5514_v53 = vmax.f32 %v5512_v27, %v5513_v0 }
0x1085   : > { %v5519_v47 = vsel %vm4663_vm9, %v13670_v57, -inf  ;;  %v18683_v59 = vmax.f32 %v5082_v61, %v5083_v20  ;;  %v5062_v8 = vrot.slane %v5061_v52, 1  ;;  %v5107_v37 = vrot.slane %v5106_v29, 4 }
0x1086   : > { %v5102_v16 = vrot.slane %v5101_v11, 2  ;;  %v18688_v28 = vmax.f32 %v5439_v5, %v5440_v15  ;;  %v5454_v34 = vrot.slane %v5453_v41, 1  ;;  %v5515_v55 = vrot.slane %v5514_v53, 2 }
0x1087   : > { %v5520_v36 = vrot.slane %v5519_v47, 4  ;;  %v18690_v22 = vmax.f32 %v5061_v52, %v5062_v8  ;;  %v5108_v18 = vmax.f32 %v5106_v29, %v5107_v37  ;;  %v5470_v38 = vsel %vm4663_vm9, %v13671_v1, -inf  ;;  %v10877_v52 = vld [vmem:[#allocation43] sm:$0xff] }
0x1088   : > { %13403 = vset.pattern.permute.xlu1 %v19886_v42  ;;  %v5103_v56 = vmax.f32 %v5101_v11, %v5102_v16  ;;  %v18694_v48 = vmax.f32 %v5453_v41, %v5454_v34  ;;  %v5516_v19 = vmax.f32 %v5514_v53, %v5515_v55  ;;  %v5471_v9 = vrot.slane %v5470_v38, 4  ;;  %v13672_v8 = vld [vmem:[%s15518_s6 + $0x60] sm:$0xff] }
0x1089   : > { %5219 = vperm.xlu1 %13403, %v18594_v30   ;;  %v5521_v13 = vmax.f32 %v5519_v47, %v5520_v36  ;;  %v5109_v44 = vrot.slane %v5108_v18, 2  ;;  %v19895_v11 = vmov 2   ;;  %v10879_v33 = vpack.c.bf16 %v10877_v52, %v10877_v52  ;;  %v19897_v36 = vld [vmem:[#allocation171_spill] sm:$0xff] }
0x108a   : > { %v5104_v39 = vrot.slane %v5103_v56, 1  ;;  %v5517_v26 = vrot.slane %v5516_v19, 1  ;;  %v5472_v27 = vmax.f32 %v5470_v38, %v5471_v9 }
0x108b   : > { %5255 = vperm.xlu0 %13408, %v18600_v49   ;;  %v5522_v62 = vrot.slane %v5521_v13, 2  ;;  %v5110_v32 = vmax.f32 %v5108_v18, %v5109_v44  ;;  %v10891_v15 = vsel %vm3188_vm6, %v10879_v33, 0 }
0x108c   : > { %v18701_v46 = vmax.f32 %v5103_v56, %v5104_v39  ;;  %v18704_v43 = vmax.f32 %v5516_v19, %v5517_v26  ;;  %v5473_v17 = vrot.slane %v5472_v27, 2  ;;  %12543 = vmatpush3.bf16.msra.mxu0 %v10891_v15  ;;  %v5092_v56 = vsel %vm4663_vm9, %v19897_v36, -inf }
0x108d   : > { %5251 = vperm.xlu1 %13403, %v18589_v2   ;;  %v5523_v61 = vmax.f32 %v5521_v13, %v5522_v62  ;;  %v5111_v31 = vrot.slane %v5110_v32, 1  ;;  %12548 = vmatprep.subr.bf16.mxu0 %v19878_v14  ;;  %v10788_v15 = vsub.f32 -inf, %v18558_v12 }
0x108e   : > { %v5474_v0 = vmax.f32 %v5472_v27, %v5473_v17 }
0x108f   : > { %5636 = vperm.xlu0 %13408, %v18605_v24   ;;  %v5524_v5 = vrot.slane %v5523_v61, 1  ;;  %v18709_v10 = vmax.f32 %v5110_v32, %v5111_v31 }
0x1090   : > { %v5475_v29 = vrot.slane %v5474_v0, 1 }
0x1091   : > { %13404 = vset.pattern.permute.xlu1 %v19889_v7  ;;  %v18712_v20 = vmax.f32 %v5523_v61, %v5524_v5 }
0x1092   : > { %5534 = vperm.xlu1 %13404, %v18608_v23   ;;  %v5476_v41 = vmax.f32 %v5474_v0, %v5475_v29 }
0x1093   : > { %5227 = vperm.xlu0 %13408, %v18616_v3  }
0x1096   : > { %5574 = vperm.xlu1 %13404, %v18619_v51  }
0x1097   : > { %5628 = vperm.xlu0 %13408, %v18622_v45  }
0x109a   : > { %13405 = vset.pattern.permute.xlu1 %v19886_v42 }
0x109b   : > { %5632 = vperm.xlu1 %13405, %v18608_v23   ;;  %5672 = vperm.xlu0 %13408, %v18626_v58  }
0x109f   : > { %5664 = vperm.xlu1 %13405, %v18619_v51   ;;  %5231 = vperm.xlu0 %13408, %v18633_v25  }
0x10a3   : > { %13406 = vset.pattern.permute.xlu1 %v19889_v7  ;;  %5644 = vperm.xlu0 %13408, %v18637_v60  }
0x10a4   : > { %5126 = vperm.xlu1 %13406, %v18641_v35  }
0x10a7   : > { %5235 = vperm.xlu0 %13408, %v18648_v50  }
0x10a8   : > { %13407 = vset.pattern.permute.xlu1 %v19886_v42 }
0x10a9   : > { %5223 = vperm.xlu1 %13407, %v18641_v35  }
0x10ab   : > { %5680 = vperm.xlu0 %13408, %v18653_v63  }
0x10ad   : > { %13409 = vset.pattern.permute.xlu1 %v19889_v7 }
0x10ae   : > { %5539 = vperm.xlu1 %13409, %v18605_v24  }
0x10af   : > { %13428 = vset.pattern.permute.xlu0 %v19889_v7 }
0x10b0   : > { %5121 = vperm.xlu0 %13428, %v18594_v30  }
0x10b2   : > { %5579 = vperm.xlu1 %13409, %v18664_v54  }
0x10b4   : > { %5166 = vperm.xlu0 %13428, %v18600_v49  }
0x10b6   : > { %13410 = vset.pattern.permute.xlu1 %v19886_v42 }
0x10b7   : > { %5668 = vperm.xlu1 %13410, %v18664_v54  }
0x10b8   : > { %5116 = vperm.xlu0 %13428, %v18675_v6  }
0x10bb   : > { %13411 = vset.pattern.permute.xlu1 %v19889_v7 }
0x10bc   : > { %5131 = vperm.xlu1 %13411, %v18616_v3   ;;  %5171 = vperm.xlu0 %13428, %v18683_v59  }
0x10c0   : > { %5156 = vperm.xlu1 %13411, %v18690_v22   ;;  %5544 = vperm.xlu0 %13428, %v18688_v28  }
0x10c4   : > { %13412 = vset.pattern.permute.xlu1 %v19886_v42  ;;  %5554 = vperm.xlu0 %13428, %v18694_v48  }
0x10c5   : > { %5215 = vperm.xlu1 %13412, %v18675_v6  }
0x10c8   : > { %5186 = vperm.xlu0 %13428, %v18701_v46  }
0x10c9   : > { %5247 = vperm.xlu1 %13412, %v18690_v22  }
0x10cc   : > { %5599 = vperm.xlu0 %13428, %v18704_v43  }
0x10cd   : > { %5259 = vperm.xlu1 %13412, %v18683_v59  }
0x10d0   : > { %5191 = vperm.xlu0 %13428, %v18709_v10  }
0x10d1   : > { %13413 = vset.pattern.permute.xlu1 %v19895_v11 }
0x10d2   : > { %5351 = vperm.xlu1 %13413, %v18589_v2   ;;  %v19896_v2 = vld [vmem:[#allocation172_spill] sm:$0xff] }
0x10d3   : > { %v5085_v53 = vsel %vm4663_vm9, %v19896_v2, -inf }
0x10d4   : > { %5604 = vperm.xlu0 %13428, %v18712_v20   ;;  %v5086_v57 = vrot.slane %v5085_v53, 4 }
0x10d6   : > { %13414 = vset.pattern.permute.xlu1 %v19889_v7  ;;  %v5087_v47 = vmax.f32 %v5085_v53, %v5086_v57  ;;  %v10790_v57 = vmul.f32 1.442695, %v10788_v15 }
0x10d7   : > { %5529 = vperm.xlu1 %13414, %v18622_v45  }
0x10d8   : > { %13440 = vset.pattern.permute.xlu0 %v19895_v11  ;;  %13589 = vpow2.f32 %v10790_v57 }
0x10d9   : > { %5319 = vperm.xlu0 %13440, %v18594_v30   ;;  %v5088_v30 = vrot.slane %v5087_v47, 2 }
0x10db   : > { %5569 = vperm.xlu1 %13414, %v5476_v41  }
0x10dd   : > { %5764 = vperm.xlu0 %13440, %v18619_v51   ;;  %v5089_v51 = vmax.f32 %v5087_v47, %v5088_v30 }
0x10df   : > { %5584 = vperm.xlu1 %13414, %v18626_v58   ;;  %v5090_v16 = vrot.slane %v5089_v51, 1 }
0x10e1   : > { %5355 = vperm.xlu0 %13440, %v18600_v49   ;;  %v5498_v49 = vsel %vm4663_vm9, %v13672_v8, -inf }
0x10e2   : > { %v5499_v37 = vrot.slane %v5498_v49, 4 }
0x10e3   : > { %13415 = vset.pattern.permute.xlu1 %v19886_v42 }
0x10e4   : > { %5640 = vperm.xlu1 %13415, %v18688_v28  }
0x10e5   : > { %5768 = vperm.xlu0 %13440, %v18664_v54   ;;  %v18739_v54 = vmax.f32 %v5089_v51, %v5090_v16  ;;  %v19901_v16 = vld [vmem:[#allocation106_spill] sm:$0xff] }
0x10e8   : > { %5660 = vperm.xlu1 %13415, %v5476_v41  }
0x10e9   : > { %5327 = vperm.xlu0 %13440, %v18616_v3   ;;  %v5500_v3 = vmax.f32 %v5498_v49, %v5499_v37 }
0x10ec   : > { %13416 = vset.pattern.permute.xlu1 %v19895_v11 }
0x10ed   : > { %5732 = vperm.xlu1 %13416, %v18608_v23   ;;  %5760 = vperm.xlu0 %13440, %v5476_v41   ;;  %v5501_v23 = vrot.slane %v5500_v3, 2  ;;  %v10789_v41 = vsub.f32 -inf, %v18561_v4  ;;  %v19899_v4 = vld [vmem:[#allocation161_spill] sm:$0xff] }
0x10ee   : > { %v5043_v8 = vsel %vm4663_vm9, %v19899_v4, -inf }
0x10ef   : > { %v5502_v34 = vmax.f32 %v5500_v3, %v5501_v23  ;;  %v10792_v47 = vmul.f32 1.442695, %v10789_v41 }
0x10f1   : > { %13417 = vset.pattern.permute.xlu1 %v19889_v7  ;;  %5331 = vperm.xlu0 %13440, %v18633_v25   ;;  %v5503_v55 = vrot.slane %v5502_v34, 1  ;;  %13591 = vpow2.f32 %v10792_v47 }
0x10f2   : > { %5136 = vperm.xlu1 %13417, %v18633_v25  }
0x10f3   : > { %v18759_v19 = vmax.f32 %v5502_v34, %v5503_v55  ;;  %v5044_v34 = vrot.slane %v5043_v8, 4 }
0x10f5   : > { %5744 = vperm.xlu0 %13440, %v18637_v60  }
0x10f6   : > { %5176 = vperm.xlu1 %13417, %v18739_v54  }
0x10f9   : > { %5335 = vperm.xlu0 %13440, %v18648_v50  }
0x10fa   : > { %13418 = vset.pattern.permute.xlu1 %v19886_v42 }
0x10fb   : > { %5263 = vperm.xlu1 %13418, %v18739_v54  }
0x10fd   : > { %5748 = vperm.xlu0 %13440, %v18694_v48  }
0x10ff   : > { %13419 = vset.pattern.permute.xlu1 %v19895_v11 }
0x1100   : > { %5323 = vperm.xlu1 %13419, %v18641_v35   ;;  %v18749_v25 = vpop.xlane.xlu1 %10803  ;;  %v5093_v35 = vrot.slane %v5092_v56, 4 }
0x1101   : > { %5371 = vperm.xlu0 %13440, %v18701_v46  }
0x1102   : > { %v18761_v13 = vpop.xlane.xlu0 %10806  ;;  %v5094_v39 = vmax.f32 %v5092_v56, %v5093_v35  ;;  %v5045_v35 = vmax.f32 %v5043_v8, %v5044_v34 }
0x1104   : > { %13420 = vset.pattern.permute.xlu1 %v19889_v7  ;;  %v18755_v18 = vpop.permute.xlu1 %5161  ;;  %v5095_v9 = vrot.slane %v5094_v39, 2  ;;  %v5046_v15 = vrot.slane %v5045_v35, 2 }
0x1105   : > { %5549 = vperm.xlu1 %13420, %v18637_v60   ;;  %5784 = vperm.xlu0 %13440, %v18704_v43  }
0x1106   : > { %v5096_v32 = vmax.f32 %v5094_v39, %v5095_v9  ;;  %v13590_v39 = vpop.eup %13589  ;;  %v5047_v8 = vmax.f32 %v5045_v35, %v5046_v15 }
0x1107   : > { %v13592_v9 = vpop.eup %13591 }
0x1108   : > { %v18763_v1 = vpop.permute.xlu1 %5219  ;;  %v5097_v31 = vrot.slane %v5096_v32, 1  ;;  %v10801_v41 = vmul.f32 0.0, %v13592_v9 }
0x1109   : > { %5589 = vperm.xlu1 %13420, %v18759_v19   ;;  %5375 = vperm.xlu0 %13440, %v18709_v10  }
0x110a   : > { %v5256_v38 = vpop.permute.xlu0 %5255  ;;  %v18790_v0 = vmax.f32 %v5096_v32, %v5097_v31  ;;  %v10809_v47 = vadd.f32 %v18761_v13, %v10801_v41 }
0x110c   : > { %v18767_v44 = vpop.permute.xlu1 %5251 }
0x110d   : > { %13421 = vset.pattern.permute.xlu1 %v19886_v42  ;;  %5788 = vperm.xlu0 %13440, %v18712_v20  }
0x110e   : > { %5676 = vperm.xlu1 %13421, %v18759_v19   ;;  %v18772_v60 = vpop.permute.xlu0 %5636 }
0x1111   : > { %v18774_v26 = vpop.permute.xlu1 %5534 }
0x1112   : > { %13422 = vset.pattern.permute.xlu1 %v19895_v11  ;;  %v18777_v62 = vpop.permute.xlu0 %5227 }
0x1113   : > { %19898 = vst [vmem:[#allocation136_spill] sm:$0xff] %v18777_v62  ;;  %5736 = vperm.xlu1 %13422, %v18605_v24  }
0x1115   : > { %v18780_v27 = vpop.permute.xlu1 %5574 }
0x1116   : > { %v18782_v61 = vpop.permute.xlu0 %5628 }
0x1117   : > { %13423 = vset.pattern.permute.xlu1 %v19889_v7 }
0x1118   : > { %5141 = vperm.xlu1 %13423, %v18648_v50  }
0x111a   : > { %v18786_v17 = vpop.permute.xlu1 %5632  ;;  %v18788_v5 = vpop.permute.xlu0 %5672 }
0x111c   : > { %5181 = vperm.xlu1 %13423, %v18790_v0  }
0x111e   : > { %v18793_v52 = vpop.permute.xlu1 %5664  ;;  %v18795_v24 = vpop.permute.xlu0 %5231 }
0x1120   : > { %13424 = vset.pattern.permute.xlu1 %v19886_v42 }
0x1121   : > { %5267 = vperm.xlu1 %13424, %v18790_v0  }
0x1122   : > { %v18799_v33 = vpop.permute.xlu0 %5644 }
0x1123   : > { %v18801_v29 = vpop.permute.xlu1 %5126 }
0x1125   : > { %13425 = vset.pattern.permute.xlu1 %v19895_v11 }
0x1126   : > { %5315 = vperm.xlu1 %13425, %v18675_v6   ;;  %v18805_v50 = vpop.permute.xlu0 %5235  ;;  %v18817_v6 = vld [vmem:[#allocation34] sm:$0x7] }
0x1127   : > { %v18831_v37 = vrot.slane %v18817_v6, %v19901_v16 }
0x1128   : > { %v18809_v2 = vpop.permute.xlu1 %5223 }
0x1129   : > { %v5292_v3 = vmul.f32 %v18831_v37, %v5256_v38  ;;  %v10800_v38 = vmul.f32 0.0, %v13590_v39 }
0x112a   : > { %5347 = vperm.xlu1 %13425, %v18690_v22   ;;  %v18812_v53 = vpop.permute.xlu0 %5680  ;;  %v19900_v22 = vld [vmem:[#allocation105_spill] sm:$0xff] }
0x112b   : > { %v18827_v49 = vrot.slane %v18817_v6, %v19900_v22  ;;  %v10808_v57 = vadd.f32 %v18749_v25, %v10800_v38 }
0x112d   : > { %v18814_v30 = vpop.permute.xlu1 %5539  ;;  %13593 = vrcp.f32 %v10808_v57 }
0x112e   : > { %5359 = vperm.xlu1 %13425, %v18683_v59   ;;  %13595 = vrcp.f32 %v10809_v47 }
0x112f   : > { %v18819_v51 = vpop.permute.xlu0 %5121 }
0x1131   : > { %v18821_v12 = vpop.permute.xlu1 %5579 }
0x1132   : > { %13426 = vset.pattern.permute.xlu1 %v19889_v7 }
0x1133   : > { %5594 = vperm.xlu1 %13426, %v18653_v63   ;;  %v5167_v59 = vpop.permute.xlu0 %5166 }
0x1134   : > { %v5208_v23 = vmul.f32 %v18827_v49, %v5167_v59  ;;  %v13673_v59 = vld [vmem:[%s15518_s6 + $0x30] sm:$0xff] }
0x1136   : > { %v18837_v55 = vadd.f32 %v5292_v3, %v5208_v23  ;;  %v18839_v36 = vpop.permute.xlu1 %5668  ;;  %v5456_v3 = vsel %vm4663_vm9, %v13673_v59, -inf }
0x1137   : > { %13427 = vset.pattern.permute.xlu1 %v19886_v42  ;;  %v5117_v56 = vpop.permute.xlu0 %5116  ;;  %v5457_v39 = vrot.slane %v5456_v3, 4 }
0x1138   : > { %5648 = vperm.xlu1 %13427, %v18694_v48   ;;  %v5198_v25 = vmul.f32 %v18827_v49, %v5117_v56 }
0x1139   : > { %v5458_v47 = vmax.f32 %v5456_v3, %v5457_v39 }
0x113b   : > { %v18843_v32 = vpop.permute.xlu1 %5131  ;;  %v5172_v31 = vpop.permute.xlu0 %5171 }
0x113c   : > { %19902 = vst [vmem:[#allocation119_spill] sm:$0xff] %v18843_v32  ;;  %13429 = vset.pattern.permute.xlu1 %v19895_v11  ;;  %v5209_v62 = vmul.f32 %v18827_v49, %v5172_v31 }
0x113d   : > { %5728 = vperm.xlu1 %13429, %v18622_v45   ;;  %v5048_v45 = vrot.slane %v5047_v8, 1 }
0x113f   : > { %v18849_v4 = vpop.permute.xlu1 %5156  ;;  %v18851_v48 = vpop.permute.xlu0 %5544  ;;  %v18867_v15 = vmax.f32 %v5047_v8, %v5048_v45  ;;  %v5459_v45 = vrot.slane %v5458_v47, 2 }
0x1141   : > { %5740 = vperm.xlu1 %13429, %v18688_v28  }
0x1143   : > { %v18856_v23 = vpop.permute.xlu0 %5554 }
0x1144   : > { %19903 = vst [vmem:[#allocation156_spill] sm:$0xff] %v18856_v23  ;;  %v5216_v34 = vpop.permute.xlu1 %5215 }
0x1145   : > { %v5282_v13 = vmul.f32 %v18831_v37, %v5216_v34  ;;  %5772 = vperm.xlu1 %13429, %v18626_v58   ;;  %v13594_v58 = vpop.eup %13593 }
0x1147   : > { %v18861_v9 = vadd.f32 %v5282_v13, %v5198_v25  ;;  %v18863_v35 = vpop.permute.xlu0 %5186 }
0x1148   : > { %19904 = vst [vmem:[#allocation115_spill] sm:$0xff] %v18863_v35  ;;  %v18865_v28 = vpop.permute.xlu1 %5247  ;;  %v13596_v35 = vpop.eup %13595 }
0x1149   : > { %13430 = vset.pattern.permute.xlu1 %v19889_v7  ;;  %v10864_v57 = vpop.f32.mrb[156].mxu0 }
0x114a   : > { %v10871_v59 = vadd.f32 %v10864_v57, %v10800_v38  ;;  %5146 = vperm.xlu1 %13430, %v18867_v15   ;;  %v12540_v56 = vpop.f32.mrb[157].mxu0  ;;  %v5526_v57 = vld [vmem:[#allocation35] sm:$0x7] }
0x114b   : > { %v10867_v34 = vpop.f32.mrb[158].mxu0  ;;  %v18871_v40 = vpop.permute.xlu0 %5599  ;;  %v18885_v31 = vrot.slane %v5526_v57, %v19901_v16 }
0x114c   : > { %19905 = vst [vmem:[#allocation133_spill] sm:$0xff] %v18871_v40  ;;  %v10872_v25 = vadd.f32 %v10867_v34, %v10801_v41  ;;  %v5260_v13 = vpop.permute.xlu1 %5259  ;;  %v12541_v21 = vpop.f32.mrb[159].mxu0  ;;  %v10875_v32 = vmul.f32 %v13594_v58, %v10871_v59  ;;  %v19908_v59 = vld [vmem:[#allocation162_spill] sm:$0xff] }
0x114d   : > { %v5293_v8 = vmul.f32 %v18831_v37, %v5260_v13  ;;  %v5460_v21 = vmax.f32 %v5458_v47, %v5459_v45  ;;  %v5706_v13 = vmul.f32 %v18885_v31, %v18788_v5 }
0x114e   : > { %v10876_v23 = vmul.f32 %v13596_v35, %v10872_v25  ;;  %13431 = vset.pattern.permute.xlu1 %v19886_v42 }
0x114f   : > { %v18876_v38 = vadd.f32 %v5293_v8, %v5209_v62  ;;  %5239 = vperm.xlu1 %13431, %v18867_v15   ;;  %v18879_v3 = vpop.permute.xlu0 %5191  ;;  %v18893_v62 = vrot.slane %v5526_v57, %v19900_v22 }
0x1150   : > { %19906 = vst [vmem:[#allocation148_spill] sm:$0xff] %v18879_v3  ;;  %v10878_v39 = vpack.c.bf16 %v10876_v23, %v10875_v32  ;;  %v5695_v32 = vmul.f32 %v18885_v31, %v18782_v61  ;;  %v5461_v23 = vrot.slane %v5460_v21, 1 }
0x1151   : > { %v18881_v41 = vpop.permute.xlu1 %5351  ;;  %v5614_v5 = vmul.f32 %v18893_v62, %v18851_v48 }
0x1152   : > { %12545 = vmatmul.mubr.msk.bf16.vlgmr.msra.gmra.mrb[160].mxu0 %vm2990_vm7, %v10878_v39  ;;  %v18904_v58 = vmax.f32 %v5460_v21, %v5461_v23  ;;  %v5705_v21 = vmul.f32 %v18885_v31, %v18839_v36 }
0x1153   : > { %5271 = vperm.xlu1 %13431, %v18701_v46   ;;  %v18888_v35 = vpop.permute.xlu0 %5604  ;;  %12552 = vmatprep.mubr.msk.bf16.mxu0 %vm14773_vm4, %v19878_v14  ;;  %v5050_v46 = vsel %vm4663_vm9, %v19908_v59, -inf  ;;  %v5621_v59 = vmul.f32 %v18893_v62, %v18821_v12 }
0x1154   : > { %19907 = vst [vmem:[#allocation109_spill] sm:$0xff] %v18888_v35  ;;  %v5051_v25 = vrot.slane %v5050_v46, 4 }
0x1156   : > { %v5530_v47 = vpop.permute.xlu1 %5529  ;;  %v5052_v45 = vmax.f32 %v5050_v46, %v5051_v25 }
0x1157   : > { %13432 = vset.pattern.permute.xlu1 %v19895_v11  ;;  %v5611_v16 = vmul.f32 %v18893_v62, %v5530_v47 }
0x1158   : > { %5363 = vperm.xlu1 %13432, %v18739_v54   ;;  %v5320_v56 = vpop.permute.xlu0 %5319 }
0x1159   : > { %v18902_v34 = vadd.f32 %v5695_v32, %v5611_v16  ;;  %v19909_v32 = vld [vmem:[#allocation107_spill] sm:$0xff]  ;;  %v5053_v16 = vrot.slane %v5052_v45, 2 }
0x115a   : > { %v5570_v22 = vpop.permute.xlu1 %5569  ;;  %v18917_v23 = vrot.slane %v18817_v6, %v19909_v32  ;;  %v18928_v36 = vrot.slane %v5526_v57, %v19909_v32  ;;  %v13674_v57 = vld [vmem:[%s15518_s6 + $0x38] sm:$0xff]  ;;  %s19921_s6 = sld [smem:[#allocation103_spill]] }
0x115b   : > { %v5054_v35 = vmax.f32 %v5052_v45, %v5053_v16  ;;  %v5463_v32 = vsel %vm4663_vm9, %v13674_v57, -inf }
0x115c   : > { %13433 = vset.pattern.permute.xlu1 %v19889_v7  ;;  %v18907_v61 = vpop.permute.xlu0 %5764 }
0x115d   : > { %5559 = vperm.xlu1 %13433, %v18904_v58  }
0x115e   : > { %v5585_v8 = vpop.permute.xlu1 %5584 }
0x115f   : > { %v5622_v54 = vmul.f32 %v18893_v62, %v5585_v8  ;;  %v5721_v8 = vadd.f32 %v5705_v21, %v5621_v59  ;;  %v5696_v21 = vmul.f32 %v18885_v31, %v18786_v17  ;;  %v19910_v59 = vld [vmem:[#allocation110_spill] sm:$0xff]  ;;  %v5383_v17 = vmul.f32 %v18917_v23, %v5320_v56 }
0x1160   : > { %v5356_v39 = vpop.permute.xlu0 %5355  ;;  %s11847_s7 = sshll.u32 %s19921_s6, 8 }
0x1161   : > { %v18919_v47 = vadd.f32 %v5706_v13, %v5622_v54  ;;  %13434 = vset.pattern.permute.xlu1 %v19886_v42  ;;  %v5392_v6 = vmul.f32 %v18917_v23, %v5356_v39  ;;  %v5619_v39 = vmul.f32 %v18893_v62, %v5570_v22  ;;  %v5283_v22 = vmul.f32 %v18831_v37, %v18763_v1  ;;  %s19172_s26 = scalar_lea.hbm %s19922_s4, %s11847_s7 }
0x1162   : > { %5652 = vperm.xlu1 %13434, %v18904_v58  }
0x1163   : > { %v5641_v46 = vpop.permute.xlu1 %5640  ;;  %v5408_v3 = vadd.f32 %v5392_v6, %v18837_v55  ;;  %v5055_v55 = vrot.slane %v5054_v35, 1  ;;  %v5464_v6 = vrot.slane %v5463_v32, 4 }
0x1164   : > { %v5698_v25 = vmul.f32 %v18885_v31, %v5641_v46  ;;  %v5769_v13 = vpop.permute.xlu0 %5768 }
0x1165   : > { %v5805_v54 = vmul.f32 %v18928_v36, %v5769_v13  ;;  %v5465_v1 = vmax.f32 %v5463_v32, %v5464_v6 }
0x1166   : > { %v18933_v48 = vadd.f32 %v5698_v25, %v5614_v5  ;;  %5684 = vperm.xlu1 %13434, %v18704_v43   ;;  %v5199_v5 = vmul.f32 %v18827_v49, %v18819_v51  ;;  %v6166_v43 = vrot.slane %v19910_v59, 2 }
0x1167   : > { %v5821_v12 = vadd.f32 %v5805_v54, %v5721_v8  ;;  %v5661_v40 = vpop.permute.xlu1 %5660  ;;  %v18958_v54 = vmax.f32 %v5054_v35, %v5055_v55 }
0x1168   : > { %v5703_v46 = vmul.f32 %v18885_v31, %v5661_v40  ;;  %v5612_v40 = vmul.f32 %v18893_v62, %v18774_v26  ;;  %v5299_v13 = vadd.f32 %v5283_v22, %v5199_v5  ;;  %v19911_v26 = vld [vmem:[#allocation129_spill] sm:$0xff] }
0x1169   : > { %v5837_v45 = vadd.f32 %v5821_v12, %v5408_v3  ;;  %v6158_v56 = vrot.slane %v19911_v26, 1 }
0x116a   : > { %v18946_v16 = vadd.f32 %v5703_v46, %v5619_v39  ;;  %13435 = vset.pattern.permute.xlu1 %v19895_v11  ;;  %v5712_v3 = vadd.f32 %v5696_v21, %v5612_v40  ;;  %v5399_v12 = vadd.f32 %v5383_v17, %v5299_v13  ;;  %v18965_v21 = vpop.permute.xlu0 %5327 }
0x116b   : > { %v18954_v25 = vadd.f32 %v6166_v43, %v5837_v45  ;;  %5776 = vperm.xlu1 %13435, %v18759_v19   ;;  %v5286_v19 = vmul.f32 %v18831_v37, %v18795_v24  ;;  %v5466_v43 = vrot.slane %v5465_v1, 2 }
0x116c   : > { %v5733_v51 = vpop.permute.xlu1 %5732 }
0x116d   : > { %v5796_v8 = vmul.f32 %v18928_v36, %v5733_v51  ;;  %v5467_v55 = vmax.f32 %v5465_v1, %v5466_v43 }
0x116e   : > { %v18972_v6 = vpop.permute.xlu0 %5760 }
0x116f   : > { %v5812_v57 = vadd.f32 %v5796_v8, %v5712_v3  ;;  %13436 = vset.pattern.permute.xlu1 %v19889_v7  ;;  %v5468_v17 = vrot.slane %v5467_v55, 1 }
0x1170   : > { %5151 = vperm.xlu1 %13436, %v18958_v54  }
0x1171   : > { %v5828_v39 = vadd.f32 %v5812_v57, %v5399_v12  ;;  %v5137_v46 = vpop.permute.xlu1 %5136  ;;  %v5469_v8 = vmax.f32 %v5467_v55, %v5468_v17 }
0x1172   : > { %v5202_v5 = vmul.f32 %v18827_v49, %v5137_v46  ;;  %v5332_v3 = vpop.permute.xlu0 %5331 }
0x1173   : > { %v18968_v35 = vadd.f32 %v6158_v56, %v5828_v39  ;;  %v5386_v39 = vmul.f32 %v18917_v23, %v5332_v3 }
0x1174   : > { %v5302_v45 = vadd.f32 %v5286_v19, %v5202_v5  ;;  %13437 = vset.pattern.permute.xlu1 %v19886_v42 }
0x1175   : > { %5243 = vperm.xlu1 %13437, %v18958_v54   ;;  %v5177_v32 = vpop.permute.xlu1 %5176 }
0x1176   : > { %v5210_v24 = vmul.f32 %v18827_v49, %v5177_v32  ;;  %v5745_v12 = vpop.permute.xlu0 %5744  ;;  %v5402_v19 = vadd.f32 %v5386_v39, %v5302_v45  ;;  %v5613_v45 = vmul.f32 %v18893_v62, %v18814_v30  ;;  %v6159_v30 = vrot.slane %v19911_v26, 2 }
0x1177   : > { %v5799_v1 = vmul.f32 %v18928_v36, %v5745_v12 }
0x1179   : > { %5275 = vperm.xlu1 %13437, %v18709_v10   ;;  %v5699_v10 = vmul.f32 %v18885_v31, %v18799_v33 }
0x117a   : > { %v5264_v22 = vpop.permute.xlu1 %5263 }
0x117b   : > { %v5294_v40 = vmul.f32 %v18831_v37, %v5264_v22 }
0x117d   : > { %v18977_v51 = vadd.f32 %v5294_v40, %v5210_v24  ;;  %13438 = vset.pattern.permute.xlu1 %v19895_v11  ;;  %v5697_v24 = vmul.f32 %v18885_v31, %v18772_v60 }
0x117e   : > { %5367 = vperm.xlu1 %13438, %v18790_v0  }
0x117f   : > { %v5324_v13 = vpop.permute.xlu1 %5323  ;;  %v5713_v60 = vadd.f32 %v5697_v24, %v5613_v45  ;;  %v5206_v24 = vmul.f32 %v18827_v49, %v18849_v4  ;;  %v5803_v45 = vmul.f32 %v18928_v36, %v18972_v6 }
0x1180   : > { %v5384_v17 = vmul.f32 %v18917_v23, %v5324_v13 }
0x1182   : > { %13439 = vset.pattern.permute.xlu1 %v19889_v7  ;;  %v6161_v7 = vrot.slane %v19911_v26, 4 }
0x1183   : > { %5564 = vperm.xlu1 %13439, %v5469_v8  }
0x1184   : > { %v5550_v57 = vpop.permute.xlu1 %5549 }
0x1185   : > { %v5615_v56 = vmul.f32 %v18893_v62, %v5550_v57 }
0x1187   : > { %v5715_v46 = vadd.f32 %v5699_v10, %v5615_v56  ;;  %13441 = vset.pattern.permute.xlu1 %v19886_v42  ;;  %v5284_v42 = vmul.f32 %v18831_v37, %v18809_v2 }
0x1188   : > { %5656 = vperm.xlu1 %13441, %v5469_v8   ;;  %v5590_v0 = vpop.permute.xlu1 %5589 }
0x1189   : > { %v5815_v5 = vadd.f32 %v5799_v1, %v5715_v46  ;;  %v5623_v55 = vmul.f32 %v18893_v62, %v5590_v0  ;;  %v5620_v0 = vmul.f32 %v18893_v62, %v18780_v27 }
0x118b   : > { %v5831_v43 = vadd.f32 %v5815_v5, %v5402_v19 }
0x118c   : > { %5688 = vperm.xlu1 %13441, %v18712_v20   ;;  %v5200_v20 = vmul.f32 %v18827_v49, %v18801_v29  ;;  %v5287_v29 = vmul.f32 %v18831_v37, %v18805_v50  ;;  %v5804_v50 = vmul.f32 %v18928_v36, %v18907_v61 }
0x118d   : > { %v18990_v33 = vadd.f32 %v6161_v7, %v5831_v43  ;;  %v5677_v32 = vpop.permute.xlu1 %5676 }
0x118e   : > { %v5707_v22 = vmul.f32 %v18885_v31, %v5677_v32  ;;  %v5300_v10 = vadd.f32 %v5284_v42, %v5200_v20  ;;  %v19044_v20 = vld [vmem:[#allocation38] ss:$0 sm:$0xff] }
0x118f   : > { %v6221_v4 = vadd.f32 %v19044_v20, %v18954_v25  ;;  %v5708_v25 = vmul.f32 %v18885_v31, %v18812_v53 }
0x1190   : > { %v19000_v40 = vadd.f32 %v5707_v22, %v5623_v55  ;;  %13442 = vset.pattern.permute.xlu1 %v19895_v11  ;;  %v5400_v2 = vadd.f32 %v5384_v17, %v5300_v10  ;;  %v6165_v22 = vrot.slane %v19910_v59, 1 }
0x1191   : > { %5780 = vperm.xlu1 %13442, %v18653_v63   ;;  %v5704_v63 = vmul.f32 %v18885_v31, %v18793_v52  ;;  %v5391_v52 = vmul.f32 %v18917_v23, %v18881_v41 }
0x1192   : > { %v5737_v3 = vpop.permute.xlu1 %5736 }
0x1193   : > { %v5797_v12 = vmul.f32 %v18928_v36, %v5737_v3  ;;  %v5720_v19 = vadd.f32 %v5704_v63, %v5620_v0 }
0x1195   : > { %v5813_v57 = vadd.f32 %v5797_v12, %v5713_v60  ;;  %5339 = vperm.xlu1 %13442, %v18867_v15   ;;  %v5291_v15 = vmul.f32 %v18831_v37, %v18767_v44  ;;  %v5820_v7 = vadd.f32 %v5804_v50, %v5720_v19  ;;  %v5819_v60 = vadd.f32 %v5803_v45, %v18946_v16  ;;  %v10986_v16 = vld [vmem:[#allocation46] sm:$0xff] }
0x1197   : > { %v5829_v1 = vadd.f32 %v5813_v57, %v5400_v2  ;;  %v5142_v11 = vpop.permute.xlu1 %5141 }
0x1198   : > { %v5203_v13 = vmul.f32 %v18827_v49, %v5142_v11  ;;  %v6237_v11 = vmax.f32 %v6221_v4, 0.0  ;;  %v5385_v4 = vmul.f32 %v18917_v23, %v18965_v21 }
0x1199   : > { %v19013_v56 = vadd.f32 %v6159_v30, %v5829_v1  ;;  %5752 = vperm.xlu1 %13442, %v18904_v58   ;;  %v5207_v58 = vmul.f32 %v18827_v49, %v18755_v18  ;;  %v5290_v18 = vmul.f32 %v18831_v37, %v18865_v28 }
0x119a   : > { %v19018_v39 = vadd.f32 %v5287_v29, %v5203_v13  ;;  %v5336_v29 = vpop.permute.xlu0 %5335 }
0x119b   : > { %v5182_v46 = vpop.permute.xlu1 %5181  ;;  %v5307_v5 = vadd.f32 %v5291_v15, %v5207_v58  ;;  %v5306_v3 = vadd.f32 %v5290_v18, %v5206_v24  ;;  %v10988_v15 = vld [vmem:[#allocation46 + $0x10] sm:$0xff]  ;;  %v10989_v58 = vld [vmem:[#allocation46 + $0x18] sm:$0xff] }
0x119c   : > { %v5211_v44 = vmul.f32 %v18827_v49, %v5182_v46  ;;  %v10987_v46 = vld [vmem:[#allocation46 + $0x8] sm:$0xff] }
0x119d   : > { %5343 = vperm.xlu1 %13442, %v18958_v54   ;;  %v5407_v27 = vadd.f32 %v5391_v52, %v5307_v5  ;;  %v10991_v50 = vpack.c.bf16 %v10987_v46, %v10986_v16  ;;  %v10970_v5 = vrot.slane %v6237_v11, 6 }
0x119f   : > { %v5836_v61 = vadd.f32 %v5820_v7, %v5407_v27  ;;  %12549 = vmatpush3.bf16.msra.mxu0 %v10991_v50  ;;  %v10992_v7 = vpack.c.bf16 %v10989_v58, %v10988_v15  ;;  %v5749_v27 = vpop.permute.xlu0 %5748 }
0x11a0   : > { %v5268_v43 = vpop.permute.xlu1 %5267  ;;  %12550 = vmatprep.subr.bf16.mxu0 %v19878_v14 }
0x11a1   : > { %v5295_v32 = vmul.f32 %v18831_v37, %v5268_v43  ;;  %5756 = vperm.xlu1 %13442, %v5469_v8   ;;  %v6197_v42 = vadd.f32 %v6165_v22, %v5836_v61  ;;  %v19912_v43 = vld [vmem:[#allocation156_spill] sm:$0xff]  ;;  %v5387_v22 = vmul.f32 %v18917_v23, %v5336_v29 }
0x11a3   : > { %v19033_v55 = vadd.f32 %v5295_v32, %v5211_v44  ;;  %v6220_v28 = vadd.f32 %v19044_v20, %v6197_v42  ;;  %v5616_v44 = vmul.f32 %v18893_v62, %v19912_v43  ;;  %12551 = vmatpush3.bf16.msra.mxu0 %v10992_v7  ;;  %v5403_v24 = vadd.f32 %v5387_v22, %v19018_v39 }
0x11a4   : > { %v6167_v43 = vrot.slane %v19910_v59, 3 }
0x11a5   : > { %v5316_v54 = vpop.permute.xlu1 %5315  ;;  %v6236_v30 = vmax.f32 %v6220_v28, 0.0 }
0x11a6   : > { %v5382_v41 = vmul.f32 %v18917_v23, %v5316_v54  ;;  %v5800_v54 = vmul.f32 %v18928_v36, %v5749_v27 }
0x11a7   : > { %v10968_v19 = vrot.slane %v6236_v30, 7 }
0x11a8   : > { %v5398_v8 = vadd.f32 %v5382_v41, %v18861_v9 }
0x11a9   : > { %v5348_v17 = vpop.permute.xlu1 %5347 }
0x11aa   : > { %v5390_v10 = vmul.f32 %v18917_v23, %v5348_v17  ;;  %v19913_v17 = vld [vmem:[#allocation119_spill] sm:$0xff] }
0x11ab   : > { %v5201_v14 = vmul.f32 %v18827_v49, %v19913_v17 }
0x11ac   : > { %v5406_v12 = vadd.f32 %v5390_v10, %v5306_v3  ;;  %v6162_v10 = vrot.slane %v19911_v26, 5 }
0x11ad   : > { %v5360_v2 = vpop.permute.xlu1 %5359 }
0x11ae   : > { %v5835_v57 = vadd.f32 %v5819_v60, %v5406_v12  ;;  %v5393_v6 = vmul.f32 %v18917_v23, %v5360_v2  ;;  %v19914_v60 = vld [vmem:[#allocation136_spill] sm:$0xff]  ;;  %v6212_v2 = vadd.f32 %v19044_v20, %v18968_v35 }
0x11af   : > { %v5285_v12 = vmul.f32 %v18831_v37, %v19914_v60 }
0x11b0   : > { %v6196_v9 = vadd.f32 %v19910_v59, %v5835_v57  ;;  %v19054_v1 = vadd.f32 %v5393_v6, %v18876_v38  ;;  %v6213_v57 = vadd.f32 %v19044_v20, %v19013_v56 }
0x11b2   : > { %v6219_v13 = vadd.f32 %v19044_v20, %v6196_v9  ;;  %v5595_v63 = vpop.permute.xlu1 %5594  ;;  %v5301_v9 = vadd.f32 %v5285_v12, %v5201_v14  ;;  %v6229_v46 = vmax.f32 %v6213_v57, 0.0 }
0x11b3   : > { %v5624_v0 = vmul.f32 %v18893_v62, %v5595_v63  ;;  %v6228_v63 = vmax.f32 %v6212_v2, 0.0 }
0x11b4   : > { %v6235_v52 = vmax.f32 %v6219_v13, 0.0  ;;  %v5401_v13 = vadd.f32 %v5385_v4, %v5301_v9  ;;  %v19915_v4 = vld [vmem:[#allocation115_spill] sm:$0xff] }
0x11b5   : > { %v19060_v38 = vadd.f32 %v5708_v25, %v5624_v0  ;;  %v10954_v50 = vrot.slane %v6228_v63, 7  ;;  %v5212_v2 = vmul.f32 %v18827_v49, %v19915_v4 }
0x11b6   : > { %v10969_v32 = vsel %vm6087_vm3, %v10968_v19, %v6235_v52 }
0x11b7   : > { %v19067_v53 = vsel %vm6089_vm10, %v10970_v5, %v10969_v32  ;;  %v5649_v61 = vpop.permute.xlu1 %5648 }
0x11b8   : > { %v5700_v18 = vmul.f32 %v18885_v31, %v5649_v61 }
0x11ba   : > { %v5716_v41 = vadd.f32 %v5700_v18, %v5616_v44 }
0x11bc   : > { %v5816_v42 = vadd.f32 %v5800_v54, %v5716_v41  ;;  %v5729_v45 = vpop.permute.xlu1 %5728 }
0x11bd   : > { %v5795_v3 = vmul.f32 %v18928_v36, %v5729_v45 }
0x11be   : > { %v5832_v28 = vadd.f32 %v5816_v42, %v5403_v24 }
0x11bf   : > { %v5811_v39 = vadd.f32 %v5795_v3, %v18902_v34  ;;  %v6160_v34 = vrot.slane %v19911_v26, 3 }
0x11c0   : > { %v6193_v6 = vadd.f32 %v6162_v10, %v5832_v28  ;;  %v5741_v30 = vpop.permute.xlu1 %5740 }
0x11c1   : > { %v5827_v11 = vadd.f32 %v5811_v39, %v5398_v8  ;;  %v5798_v29 = vmul.f32 %v18928_v36, %v5741_v30  ;;  %v6215_v8 = vadd.f32 %v19044_v20, %v18990_v33 }
0x11c2   : > { %v6216_v0 = vadd.f32 %v19044_v20, %v6193_v6 }
0x11c3   : > { %v6188_v16 = vadd.f32 %v19911_v26, %v5827_v11  ;;  %v5814_v21 = vadd.f32 %v5798_v29, %v18933_v48  ;;  %v10956_v48 = vrot.slane %v6229_v46, 6  ;;  %v6231_v27 = vmax.f32 %v6215_v8, 0.0  ;;  %v5372_v11 = vpop.permute.xlu0 %5371 }
0x11c4   : > { %v5773_v15 = vpop.permute.xlu1 %5772  ;;  %v6232_v61 = vmax.f32 %v6216_v0, 0.0 }
0x11c5   : > { %v6211_v35 = vadd.f32 %v19044_v20, %v6188_v16  ;;  %v5830_v25 = vadd.f32 %v5814_v21, %v5401_v13  ;;  %v5806_v56 = vmul.f32 %v18928_v36, %v5773_v15  ;;  %v19916_v16 = vld [vmem:[#allocation133_spill] sm:$0xff] }
0x11c6   : > { %v10962_v24 = vrot.slane %v6232_v61, 3  ;;  %v5625_v21 = vmul.f32 %v18893_v62, %v19916_v16 }
0x11c7   : > { %v6227_v58 = vmax.f32 %v6211_v35, 0.0  ;;  %v6191_v19 = vadd.f32 %v6160_v34, %v5830_v25  ;;  %v5822_v52 = vadd.f32 %v5806_v56, %v18919_v47  ;;  %v10960_v47 = vrot.slane %v6231_v27, 4  ;;  %v5785_v13 = vpop.permute.xlu0 %5784 }
0x11c8   : > { %v5809_v46 = vmul.f32 %v18928_v36, %v5785_v13  ;;  %v5396_v35 = vmul.f32 %v18917_v23, %v5372_v11  ;;  %v6171_v13 = vrot.slane %v19910_v59, 7 }
0x11c9   : > { %v10955_v5 = vsel %vm6087_vm3, %v10954_v50, %v6227_v58  ;;  %v6214_v7 = vadd.f32 %v19044_v20, %v6191_v19  ;;  %v5838_v44 = vadd.f32 %v5822_v52, %v19054_v1  ;;  %v5147_v32 = vpop.permute.xlu1 %5146  ;;  %v6170_v50 = vrot.slane %v19910_v59, 6 }
0x11ca   : > { %v10957_v33 = vsel %vm6089_vm10, %v10956_v48, %v10955_v5  ;;  %v5204_v14 = vmul.f32 %v18827_v49, %v5147_v32  ;;  %v6168_v5 = vrot.slane %v19910_v59, 4 }
0x11cb   : > { %v6230_v54 = vmax.f32 %v6214_v7, 0.0  ;;  %v6199_v18 = vadd.f32 %v6167_v43, %v5838_v44 }
0x11cd   : > { %v10958_v22 = vrot.slane %v6230_v54, 5  ;;  %v6222_v41 = vadd.f32 %v19044_v20, %v6199_v18 }
0x11ce   : > { %v5240_v42 = vpop.permute.xlu1 %5239 }
0x11cf   : > { %v10959_v45 = vsel %vm6091_vm11, %v10958_v22, %v10957_v33  ;;  %v6238_v17 = vmax.f32 %v6222_v41, 0.0  ;;  %v5288_v1 = vmul.f32 %v18831_v37, %v5240_v42 }
0x11d0   : > { %v10961_v3 = vsel %vm6093_vm12, %v10960_v47, %v10959_v45  ;;  %v5376_v47 = vpop.permute.xlu0 %5375 }
0x11d1   : > { %v10972_v10 = vrot.slane %v6238_v17, 5  ;;  %v19106_v28 = vadd.f32 %v5288_v1, %v5204_v14  ;;  %v19109_v60 = vsel %vm6095_vm13, %v10962_v24, %v10961_v3  ;;  %v19917_v24 = vld [vmem:[#allocation148_spill] sm:$0xff]  ;;  %v19918_v14 = vld [vmem:[#allocation109_spill] sm:$0xff] }
0x11d2   : > { %v5272_v12 = vpop.permute.xlu1 %5271  ;;  %v5213_v42 = vmul.f32 %v18827_v49, %v19917_v24  ;;  %v5626_v1 = vmul.f32 %v18893_v62, %v19918_v14 }
0x11d3   : > { %v10973_v39 = vsel %vm6091_vm11, %v10972_v10, %v19067_v53  ;;  %v5296_v57 = vmul.f32 %v18831_v37, %v5272_v12  ;;  %v5397_v12 = vmul.f32 %v18917_v23, %v5376_v47 }
0x11d4   : > { %v5789_v45 = vpop.permute.xlu0 %5788 }
0x11d5   : > { %v5312_v6 = vadd.f32 %v5296_v57, %v5212_v2  ;;  %v5810_v4 = vmul.f32 %v18928_v36, %v5789_v45 }
0x11d7   : > { %v5364_v30 = vpop.permute.xlu1 %5363  ;;  %v5412_v25 = vadd.f32 %v5396_v35, %v5312_v6 }
0x11d8   : > { %v5394_v53 = vmul.f32 %v18917_v23, %v5364_v30 }
0x11da   : > { %v5410_v19 = vadd.f32 %v5394_v53, %v18977_v51 }
0x11dc   : > { %v5560_v9 = vpop.permute.xlu1 %5559 }
0x11e1   : > { %v5653_v29 = vpop.permute.xlu1 %5652 }
0x11e2   : > { %v5701_v35 = vmul.f32 %v18885_v31, %v5653_v29 }
0x11e5   : > { %v5685_v63 = vpop.permute.xlu1 %5684 }
0x11e6   : > { %v5709_v15 = vmul.f32 %v18885_v31, %v5685_v63 }
0x11e8   : > { %v5725_v34 = vadd.f32 %v5709_v15, %v5625_v21 }
0x11ea   : > { %v5825_v56 = vadd.f32 %v5809_v46, %v5725_v34  ;;  %v5777_v8 = vpop.permute.xlu1 %5776  ;;  %v6169_v34 = vrot.slane %v19910_v59, 5 }
0x11eb   : > { %v5807_v0 = vmul.f32 %v18928_v36, %v5777_v8 }
0x11ec   : > { %v5841_v58 = vadd.f32 %v5825_v56, %v5412_v25  ;;  %v5617_v56 = vmul.f32 %v18893_v62, %v5560_v9 }
0x11ed   : > { %v5823_v52 = vadd.f32 %v5807_v0, %v19000_v40 }
0x11ee   : > { %v6202_v48 = vadd.f32 %v6170_v50, %v5841_v58 }
0x11ef   : > { %v5839_v7 = vadd.f32 %v5823_v52, %v5410_v19  ;;  %v5152_v43 = vpop.permute.xlu1 %5151 }
0x11f0   : > { %v6225_v25 = vadd.f32 %v19044_v20, %v6202_v48 }
0x11f1   : > { %v6200_v44 = vadd.f32 %v6168_v5, %v5839_v7 }
0x11f2   : > { %v6241_v52 = vmax.f32 %v6225_v25, 0.0 }
0x11f3   : > { %v6223_v32 = vadd.f32 %v19044_v20, %v6200_v44 }
0x11f4   : > { %v5244_v27 = vpop.permute.xlu1 %5243 }
0x11f5   : > { %v6239_v61 = vmax.f32 %v6223_v32, 0.0  ;;  %v5289_v48 = vmul.f32 %v18831_v37, %v5244_v27 }
0x11f7   : > { %v10974_v33 = vrot.slane %v6239_v61, 4  ;;  %v6163_v61 = vrot.slane %v19911_v26, 6 }
0x11f8   : > { %v5276_v54 = vpop.permute.xlu1 %5275 }
0x11f9   : > { %v10975_v18 = vsel %vm6093_vm12, %v10974_v33, %v10973_v39  ;;  %v5297_v40 = vmul.f32 %v18831_v37, %v5276_v54  ;;  %v10978_v54 = vrot.slane %v6241_v52, 2 }
0x11fb   : > { %v5313_v3 = vadd.f32 %v5297_v40, %v5213_v42 }
0x11fd   : > { %v5368_v22 = vpop.permute.xlu1 %5367  ;;  %v5413_v57 = vadd.f32 %v5397_v12, %v5313_v3 }
0x11fe   : > { %v5395_v39 = vmul.f32 %v18917_v23, %v5368_v22  ;;  %v5205_v22 = vmul.f32 %v18827_v49, %v5152_v43 }
0x1200   : > { %v5411_v16 = vadd.f32 %v5395_v39, %v19033_v55  ;;  %v5717_v55 = vadd.f32 %v5701_v35, %v5617_v56  ;;  %v5305_v45 = vadd.f32 %v5289_v48, %v5205_v22  ;;  %v11833_v56 = vld [vmem:[#allocation47] ss:$0 sm:$0xff] }
0x1202   : > { %v5565_v41 = vpop.permute.xlu1 %5564 }
0x1203   : > { %v5618_v47 = vmul.f32 %v18893_v62, %v5565_v41  ;;  %v11831_v41 = vld [vmem:[#allocation44] ss:$0 sm:$0xff] }
0x1207   : > { %v5657_v51 = vpop.permute.xlu1 %5656 }
0x1208   : > { %v5702_v44 = vmul.f32 %v18885_v31, %v5657_v51 }
0x120b   : > { %v5689_v17 = vpop.permute.xlu1 %5688 }
0x120c   : > { %v5710_v10 = vmul.f32 %v18885_v31, %v5689_v17  ;;  %v5718_v31 = vadd.f32 %v5702_v44, %v5618_v47 }
0x120e   : > { %v5726_v2 = vadd.f32 %v5710_v10, %v5626_v1 }
0x1210   : > { %v5826_v6 = vadd.f32 %v5810_v4, %v5726_v2  ;;  %v5781_v30 = vpop.permute.xlu1 %5780 }
0x1211   : > { %v5808_v11 = vmul.f32 %v18928_v36, %v5781_v30 }
0x1212   : > { %v5842_v63 = vadd.f32 %v5826_v6, %v5413_v57  ;;  %v19919_v57 = vld [vmem:[#allocation123_spill] sm:$0xff] }
0x1213   : > { %v5824_v21 = vadd.f32 %v5808_v11, %v19060_v38 }
0x1214   : > { %v6203_v46 = vadd.f32 %v6171_v13, %v5842_v63  ;;  %v5340_v15 = vpop.permute.xlu1 %5339 }
0x1215   : > { %v5840_v53 = vadd.f32 %v5824_v21, %v5411_v16  ;;  %v5388_v50 = vmul.f32 %v18917_v23, %v5340_v15  ;;  %v19920_v16 = vld [vmem:[#allocation114_spill] sm:$0xff] }
0x1216   : > { %v6226_v8 = vadd.f32 %v19044_v20, %v6203_v46  ;;  %v10496_v21 = vmax.f32 %v19920_v16, 0.0 }
0x1217   : > { %v6201_v0 = vadd.f32 %v6169_v34, %v5840_v53  ;;  %v5404_v59 = vadd.f32 %v5388_v50, %v19106_v28 }
0x1218   : > { %v5753_v58 = vpop.permute.xlu1 %5752  ;;  %v6242_v7 = vmax.f32 %v6226_v8, 0.0 }
0x1219   : > { %v6224_v38 = vadd.f32 %v19044_v20, %v6201_v0  ;;  %v5801_v19 = vmul.f32 %v18928_v36, %v5753_v58 }
0x121a   : > { %v10980_v42 = vrot.slane %v6242_v7, 1 }
0x121b   : > { %v6240_v29 = vmax.f32 %v6224_v38, 0.0  ;;  %v5817_v5 = vadd.f32 %v5801_v19, %v5717_v55 }
0x121c   : > { %v5344_v9 = vpop.permute.xlu1 %5343 }
0x121d   : > { %v10976_v32 = vrot.slane %v6240_v29, 3  ;;  %v5833_v33 = vadd.f32 %v5817_v5, %v5404_v59  ;;  %v5389_v24 = vmul.f32 %v18917_v23, %v5344_v9  ;;  %v6164_v23 = vrot.slane %v19911_v26, 7 }
0x121f   : > { %v6194_v40 = vadd.f32 %v6163_v61, %v5833_v33  ;;  %v10977_v28 = vsel %vm6095_vm13, %v10976_v32, %v10975_v18  ;;  %v5405_v43 = vadd.f32 %v5389_v24, %v5305_v45 }
0x1220   : > { %v5757_v37 = vpop.permute.xlu1 %5756  ;;  %v10979_v27 = vsel %vm6097_vm14, %v10978_v54, %v10977_v28 }
0x1221   : > { %v6217_v51 = vadd.f32 %v19044_v20, %v6194_v40  ;;  %v5802_v17 = vmul.f32 %v18928_v36, %v5757_v37  ;;  %v10981_v14 = vsel %vm6099_vm15, %v10980_v42, %v10979_v27  ;;  %v10495_v36 = vmax.f32 %v19919_v57, 0.0 }
0x1223   : > { %v6233_v49 = vmax.f32 %v6217_v51, 0.0  ;;  %v5818_v62 = vadd.f32 %v5802_v17, %v5718_v31 }
0x1225   : > { %v10964_v1 = vrot.slane %v6233_v49, 2  ;;  %v5834_v18 = vadd.f32 %v5818_v62, %v5405_v43  ;;  %v10927_v3 = vpop.f32.mrb[160].mxu0 }
0x1226   : > { %v10928_v10 = vadd.f32 %v11831_v41, %v10927_v3  ;;  %v12546_v12 = vpop.f32.mrb[161].mxu0 }
0x1227   : > { %v6195_v4 = vadd.f32 %v6164_v23, %v5834_v18  ;;  %v10965_v2 = vsel %vm6097_vm14, %v10964_v1, %v19109_v60  ;;  %v10930_v39 = vpop.f32.mrb[162].mxu0 }
0x1228   : > { %v10934_v6 = vmax.f32 %v10928_v10, 0.0  ;;  %v10931_v30 = vadd.f32 %v11831_v41, %v10930_v39  ;;  %v12547_v11 = vpop.f32.mrb[163].mxu0 }
0x1229   : > { %v6218_v13 = vadd.f32 %v19044_v20, %v6195_v4 }
0x122a   : > { %v10936_v63 = vadd.f32 %v10934_v6, %v10495_v36  ;;  %v10935_v26 = vmax.f32 %v10931_v30, 0.0 }
0x122b   : > { %v6234_v46 = vmax.f32 %v6218_v13, 0.0 }
0x122c   : > { %v10937_v15 = vadd.f32 %v10935_v26, %v10496_v21 }
0x122d   : > { %v10966_v35 = vrot.slane %v6234_v46, 1 }
0x122e   : > { %v10985_v34 = vadd.f32 %v10981_v14, %v10937_v15 }
0x122f   : > { %v10967_v53 = vsel %vm6099_vm15, %v10966_v35, %v10965_v2 }
0x1230   : > { %v10984_v60 = vadd.f32 %v10967_v53, %v10936_v63 }
0x1232   : > { %v10990_v25 = vpack.c.bf16 %v10985_v34, %v10984_v60 }
0x1234   : > { %12553 = vmatmul.mubr.msk.bf16.vlgmr.msra.gmra.mrb[164].mxu0 %vm10073_vm8, %v10990_v25 }
0x1307   : > { %v11037_v20 = vpop.f32.mrb[164].mxu0 }
0x1308   : > { %v11038_v8 = vadd.f32 %v11833_v56, %v11037_v20  ;;  %v12554_v0 = vpop.f32.mrb[165].mxu0 }
0x1309   : > { %v11040_v50 = vpop.f32.mrb[166].mxu0 }
0x130a   : > { %v11044_v58 = vmax.f32 %v11038_v8, 0.0  ;;  %v11041_v55 = vadd.f32 %v11833_v56, %v11040_v50  ;;  %v12555_v38 = vpop.f32.mrb[167].mxu0 }
0x130c   : > { %11080 = vxpose.xlu1.b32.start [1/2] (short) (narrow) %v11044_v58, 32  ;;  %v11045_v19 = vmax.f32 %v11041_v55, 0.0 }
0x1310   : > { %11081 = vxpose.xlu1.b32.end [2/2] (short) (narrow) %v11045_v19, 32 }
0x1311   : > { %14536 = shalt.err (!%p14533_p5)
}
0x1312   : > { %s14537_s25 = scalar_lea.hbm %s19172_s26, 256  ;;  %s14541_s12 = scalar_lea.hbm %s19922_s4, 512 }
0x1313   : > { %p14538_p11 = scmp.ne.s32.totalorder %s19172_s26, %s14537_s25  ;;  %p14542_p13 = scmp.lt.u32.totalorder %s19172_s26, %s19922_s4 }
0x1314   : > { %p14543_p10 = scmp.lt.u32.totalorder %s14541_s12, %s14537_s25  ;;  %p14545_p2 = scmp.lt.u32.totalorder %s14537_s25, %s19172_s26 }
0x1315   : > { %p14539_p9 = pnand %p14538_p11, %p19923_p8 }
0x1316   : > { %p14544_p12 = por %p14543_p10, %p14542_p13 }
0x1317   : > { %p14540_p4 = pneg %p14539_p9 }
0x1318   : > { %p14546_p3 = por %p14545_p2, %p14544_p12 }
0x131a   : > { %p14547_p6 = pnand %p14546_p3, %p14540_p4 }
0x131c   : > { %14550 = shalt.err (!%p14547_p6)
}
0x131d   : > { %s14784_s27 = smov 128   ;;  %s19924_s9 = sld [smem:[#allocation102_spill]]  ;;  %vm19925_vm0 = vcmask 130048  }
0x131e   : > { %s14785_s18 = smov 8   ;;  %s1467_s10 = scalar_lea.vmem [#allocation50], %s11671_s16  ;;  %vm19926_vm1 = vmmov %vm19925_vm0 }
0x131f   : > { %12687 = dma.vmem_to_hbm [thread:$0]  (%p19923_p8), %s19175_s13, 256, %s19172_s26, %s11117_s21, %s14784_s27, %s14784_s27, %s14785_s18   ;;  %vm19927_vm3 = vmmov %vm19925_vm0 }
0x1320   : > { %s11154_s30 = sshll.u32 %s1467_s10, 4  ;;  %s11848_s7 = sshll.u32 %s19921_s6, 9  ;;  %vm19928_vm4 = vmmov %vm19925_vm0  ;;  %s19206_s30 = int_to_ptr.vmem [resolvable:$true] %s11154_s30 }
0x1321   : > { %s11122_s16 = scalar_lea.sflag [#allocation51], %s15514_s20  ;;  %s14551_s13 = scalar_lea.vmem %s19206_s30, 512 }
0x1322   : > { %p14552_p7 = scmp.ne.s32.totalorder %s19206_s30, %s14551_s13  ;;  %s14786_s21 = smov [#allocation50]  }
0x1323   : > { %s19209_s26 = scalar_lea.hbm %s19924_s9, %s11848_s7  ;;  %s14555_s6 = sshll.u32 %s14786_s21, 4  ;;  %s14556_s6 = int_to_ptr.vmem [resolvable:$false] %s14555_s6 }
0x1324   : > { %p14553_p1 = pnand %p14552_p7, %p19923_p8  ;;  %s14557_s14 = scalar_lea.vmem %s14556_s6, 1024 }
0x1325   : > { %p14558_p5 = scmp.lt.s32.totalorder %s19206_s30, %s14556_s6  ;;  %p14559_p11 = scmp.lt.s32.totalorder %s14557_s14, %s14551_s13 }
0x1326   : > { %p14554_p0 = pneg %p14553_p1 }
0x1327   : > { %p14560_p9 = por %p14559_p11, %p14558_p5 }
0x1329   : > { %p14561_p4 = pnand %p14560_p9, %p14554_p0 }
0x138c   : > { %v11096_v52 = vpop.trf.xlu1 }
0x138d   : > { %11112 = vst.msk [vmem:[%s1467_s10] sm:$0xff] %vm19925_vm0, %v11096_v52 }
0x1390   : > { %v11097_v29 = vpop.trf.xlu1 }
0x1391   : > { %11113 = vst.msk [vmem:[%s1467_s10 + $0x8] sm:$0xff] %vm19926_vm1, %v11097_v29 }
0x1394   : > { %v11098_v59 = vpop.trf.xlu1 }
0x1395   : > { %11114 = vst.msk [vmem:[%s1467_s10 + $0x10] sm:$0xff] %vm19927_vm3, %v11098_v59 }
0x1398   : > { %v11099_v5 = vpop.trf.xlu1 }
0x1399   : > { %11115 = vst.msk [vmem:[%s1467_s10 + $0x18] sm:$0xff] %vm19928_vm4, %v11099_v5 }
0x139a   : > { %14564 = shalt.err (!%p14561_p4)
}
0x139b   : > { %s14565_s3 = scalar_lea.hbm %s19209_s26, 512  ;;  %s14569_s8 = scalar_lea.hbm %s19924_s9, 1024 }
0x139c   : > { %p14566_p13 = scmp.ne.s32.totalorder %s19209_s26, %s14565_s3  ;;  %p14570_p2 = scmp.lt.u32.totalorder %s19209_s26, %s19924_s9 }
0x139d   : > { %p14571_p3 = scmp.lt.u32.totalorder %s14569_s8, %s14565_s3  ;;  %p14573_p7 = scmp.lt.u32.totalorder %s14565_s3, %s19209_s26 }
0x139e   : > { %p14567_p10 = pnand %p14566_p13, %p19923_p8 }
0x139f   : > { %p14572_p6 = por %p14571_p3, %p14570_p2 }
0x13a0   : > { %p14568_p12 = pneg %p14567_p10 }
0x13a1   : > { %p14574_p1 = por %p14573_p7, %p14572_p6 }
0x13a3   : > { %p14575_p0 = pnand %p14574_p1, %p14568_p12 }
0x13a5   : > { %14578 = shalt.err (!%p14575_p0)
}
0x13a6   : > { %12688 = dma.vmem_to_hbm [thread:$0]  (%p19923_p8), %s19206_s30, 512, %s19209_s26, %s11122_s16, %s14784_s27, %s14784_s27, %s14785_s18  }
0x13a7 PF: > { %s11169_s2 = sand.u32 1, %s14681_s0   ;;  %p19929_p5 = scmp.ne.s32.totalorder %s19517_s29, 0 }
0x13a8   : > { %p19930_p11 = scmp.ge.s32.totalorder %s14701_s1, 2  ;;  %s11170_s25 = scalar_lea.sflag [#allocation4], %s11169_s2 }
0x13aa   : > { %p12784_p9 = pnand %p19930_p11, %p19929_p5 }
0x13ac   : > { %14672 = dma.done.wait (!%p12784_p9), %s11170_s25, 256  }
0x13ad   : > { %14674 = vsyncadd (!%p12784_p9), %s11170_s25, 4294967040  ;;  %s11179_s15 = scalar_lea.sflag [#allocation51], %s11169_s2 }
0x13ae   : > { %14676 = dma.done.wait (!%p12784_p9), %s11179_s15, 512  }
0x13af   : > { %14678 = vsyncadd (!%p12784_p9), %s11179_s15, 4294966784  ;;  %s102_s1 = sadd.s32 1, %s14701_s1   ;;  %s19931_s0 = smov %s14685_s22 }
0x13b0   : > { %p99_p4 = scmp.ge.s32.totalorder %s102_s1, 4   ;;  %s19932_s22 = smov %s14689_s23 }
0x13b1   : > { %s19933_s23 = smov %s15177_s17  ;;  %s19934_s26 = smov %s14697_s28 }
0x13b2   : > { %s19935_s28 = smov %s19937_s11  ;;  %101 = sbr.rel (!%p99_p4) target bundleno = 93 (0x5d), region = 374 }
0x13b9   :  { %11184 = vsyncpa [#allocation3], 1 }
0x13ba   :  { %11186 = vsyncpa [#allocation3 + $0x1], 1 }
0x13bb   :  { %11187 = vsyncpa [#allocation6], 1 }
0x13bc   :  { %11189 = vsyncpa [#allocation6 + $0x1], 1 }
0x13bd   :  { %11190 = vsyncpa [#allocation9], 1 }
0x13be   :  { %11192 = vsyncpa [#allocation9 + $0x1], 1 }
0x13bf   :  { %11193 = vsyncpa [#allocation12], 1 }
0x13c0   :  { %11194 = vsyncpa [#allocation15], 1 }
0x13c1   :  { %11195 = vsyncpa [#allocation18], 1 }
0x13c2   :  { %11196 = vsyncpa [#allocation21], 1 }
0x13c3   :  { %11197 = vsyncpa [#allocation24], 1 }
0x13c4   :  { %11198 = vsyncpa [#allocation27], 1 }
0x13c5   :  { %11199 = vsyncpa [#allocation30], 1 }
0x13c6   :  { %11200 = vsyncpa [#allocation33], 1 }
0x13c7   :  { %11201 = vsyncpa [#allocation36], 1 }
0x13c8   :  { %11202 = vsyncpa [#allocation39], 1 }
0x13c9   :  { %11203 = vsyncpa [#allocation42], 1 }
0x13ca   :  { %11204 = vsyncpa [#allocation45], 1 }
0x13cb   :  { %11205 = vsyncpa [#allocation48], 1 }
0x13cc   :  { %11206 = vsyncpa [#allocation4], 1 }
0x13cd   :  { %11208 = vsyncpa [#allocation4 + $0x1], 1 }
0x13ce   :  { %11209 = vsyncpa [#allocation51], 1 }
0x13cf   :  { %11211 = vsyncpa [#allocation51 + $0x1], 1 }

</bundles_post_ra>
